<compile_context>
chip_gen: v6e
topology: v6e:2x2x1
jax: 0.10.0
libtpu: 0.0.40
codegen_flags: <defaults>
</compile_context>

<pallas_src>
import functools

import jax
import jax.numpy as jnp
from jax import lax
from jax.experimental import pallas as pl
from jax.experimental.pallas import tpu as pltpu

_VMEM_LIMIT = 32 * 1024 * 1024  # <= default scoped VMEM on v7x, safe on v5e/v6e too.


# ----------------------------- helpers --------------------------------------

def _pad8(n):
    return ((n + 7) // 8) * 8


def _pick_tile(m, cap=1024):
    """Largest divisor of m that is a multiple of 128, <= cap, leaving >=2 grid
    steps when m is large enough (megacore); falls back to the full dim."""
    if m <= 128 or m % 128 != 0:
        return m
    best = 128
    t = 128
    while t <= min(m // 2, cap):
        if m % t == 0:
            best = t
        t += 128
    return best


# ----------------------------- Pallas kernels ------------------------------

def _fused_mlp_kernel(x_ref, *refs, n_layers, relu_flags):
    # x_ref: (Cin, TM) bf16; refs = w0, b0, ..., w_{L-1}, b_{L-1}, o_ref
    o_ref = refs[-1]
    h = x_ref[...]
    for li in range(n_layers):
        w = refs[2 * li][...]          # (Cout_i, Cin_i) bf16
        b = refs[2 * li + 1][...]      # (Cout_i, 1)    f32
        y = jnp.dot(w, h, preferred_element_type=jnp.float32) + b
        if relu_flags[li]:
            y = jnp.maximum(y, 0.0)
        h = y.astype(jnp.bfloat16) if li < n_layers - 1 else y
    o_ref[...] = h.astype(o_ref.dtype)


def fused_mlp(x_cm, layers, relu_flags, out_dtype=jnp.bfloat16, cap=1024):
    """Whole SharedMLP stack as one pallas_call.  x_cm: (Cin_pad, M) channels-major."""
    x_cm = x_cm.astype(jnp.bfloat16)
    cin, m = x_cm.shape
    cout = layers[-1][0].shape[0]
    tm = _pick_tile(m, cap)

    in_specs = [pl.BlockSpec((cin, tm), lambda i: (0, i))]
    args = [x_cm]
    for (w, b) in layers:
        co, ci = w.shape
        in_specs.append(pl.BlockSpec((co, ci), lambda i: (0, 0)))   # resident weight
        in_specs.append(pl.BlockSpec((co, 1), lambda i: (0, 0)))    # resident bias
        args += [w, b]

    return pl.pallas_call(
        functools.partial(_fused_mlp_kernel, n_layers=len(layers),
                          relu_flags=tuple(relu_flags)),
        out_shape=jax.ShapeDtypeStruct((cout, m), out_dtype),
        grid=(m // tm,),
        in_specs=in_specs,
        out_specs=pl.BlockSpec((cout, tm), lambda i: (0, i)),
        compiler_params=pltpu.CompilerParams(
            dimension_semantics=("parallel",),
            vmem_limit_bytes=_VMEM_LIMIT),
    )(*args)


def _sa_mlp_pool_kernel(x_ref, *refs, n_layers):
    # x_ref: (1, Cin, TP) bf16 — one sample slice; refs = w0,b0,...,o_ref
    # Output block (Cout, TP) stays resident across the sample axis and is used
    # as the running-max accumulator (fused max-pool over nsample).
    o_ref = refs[-1]
    h = x_ref[0]                                   # (Cin, TP) bf16
    for li in range(n_layers):
        w = refs[2 * li][...]
        b = refs[2 * li + 1][...]
        y = jnp.dot(w, h, preferred_element_type=jnp.float32) + b
        h = jnp.maximum(y, 0.0).astype(jnp.bfloat16)
    s = pl.program_id(1)

    @pl.when(s == 0)
    def _init():
        o_ref[...] = h

    @pl.when(s > 0)
    def _acc():
        o_ref[...] = jnp.maximum(o_ref[...], h)


def sa_mlp_pool(x, layers):
    """Fused SharedMLP + max-pool over nsample.  x: (S, Cin_pad, B*P) bf16 ->
    pooled (Cout, B*P) bf16 (lane-dense output)."""
    x = x.astype(jnp.bfloat16)
    S, cin, bp = x.shape
    cout = layers[-1][0].shape[0]
    tp = _pick_tile(bp, cap=512)

    in_specs = [pl.BlockSpec((1, cin, tp), lambda i, s: (s, 0, i))]
    args = [x]
    for (w, b) in layers:
        co, ci = w.shape
        in_specs.append(pl.BlockSpec((co, ci), lambda i, s: (0, 0)))
        in_specs.append(pl.BlockSpec((co, 1), lambda i, s: (0, 0)))
        args += [w, b]

    return pl.pallas_call(
        functools.partial(_sa_mlp_pool_kernel, n_layers=len(layers)),
        out_shape=jax.ShapeDtypeStruct((cout, bp), jnp.bfloat16),
        grid=(bp // tp, S),                           # reduction (sample) axis last
        in_specs=in_specs,
        out_specs=pl.BlockSpec((cout, tp), lambda i, s: (0, i)),
        compiler_params=pltpu.CompilerParams(
            dimension_semantics=("parallel", "arbitrary"),
            vmem_limit_bytes=_VMEM_LIMIT),
    )(*args)


# ----------------------------- JAX glue -------------------------------------

def farthest_point_sample(xyz, npoint):
    # xyz: (B, N, 3) -> (B, npoint) int32 indices (starts at index 0, as in pointnet2_ops)
    B, N, _ = xyz.shape

    def body(i, state):
        idxs, dists, farthest = state
        idxs = idxs.at[:, i].set(farthest)
        centroid = jnp.take_along_axis(xyz, farthest[:, None, None], axis=1)  # (B,1,3)
        d = jnp.sum((xyz - centroid) ** 2, axis=-1)                           # (B,N)
        dists = jnp.minimum(dists, d)
        farthest = jnp.argmax(dists, axis=-1).astype(jnp.int32)
        return idxs, dists, farthest

    init = (jnp.zeros((B, npoint), jnp.int32),
            jnp.full((B, N), 1e10, jnp.float32),
            jnp.zeros((B,), jnp.int32))
    idxs, _, _ = lax.fori_loop(0, npoint, body, init)
    return idxs


def ball_query(radius, nsample, xyz, new_xyz):
    # pointnet2_ops semantics: first `nsample` in-radius indices; missing slots repeat first.
    B, N, _ = xyz.shape
    d2 = jnp.sum((new_xyz[:, :, None, :] - xyz[:, None, :, :]) ** 2, axis=-1)  # (B,P,N)
    mask = d2 < radius * radius
    cum = jnp.cumsum(mask.astype(jnp.int32), axis=-1)
    ar = jnp.arange(N, dtype=jnp.int32)
    slot = jnp.arange(nsample, dtype=jnp.int32)
    cand = jnp.where(
        mask[:, :, None, :] & ((cum - 1)[:, :, None, :] == slot[None, None, :, None]),
        ar[None, None, None, :], N)
    idx = jnp.min(cand, axis=-1)                                               # (B,P,S)
    first = idx[:, :, 0:1]
    first = jnp.where(first == N, 0, first)
    idx = jnp.where(idx == N, first, idx)
    return idx.astype(jnp.int32)


def init_mlp(key, spec, pad_last_out=False):
    """Weights (Cout, Cin) bf16 with channel counts padded to multiples of 8 via
    zero rows/cols; biases (Cout, 1) f32."""
    layers = []
    n = len(spec) - 1
    for li in range(n):
        cin, cout = spec[li], spec[li + 1]
        key, k1 = jax.random.split(key)
        w = jax.random.normal(k1, (cout, cin), jnp.float32) / jnp.sqrt(float(max(cin, 1)))
        cin_p = _pad8(cin) if li == 0 else cin
        cout_p = _pad8(cout) if (li == n - 1 and pad_last_out) else cout
        wp = jnp.zeros((cout_p, cin_p), jnp.float32).at[:cout, :cin].set(w)
        b = jnp.zeros((cout_p, 1), jnp.float32)
        layers.append((wp.astype(jnp.bfloat16), b))
    return key, layers


# ----------------------------- Model ----------------------------------------

class PointNet2SSGPallas:
    """PointNet2_SSG(npoint, up_ratio, use_normal=False, use_bn=False, use_res=False)."""

    def __init__(self, npoint=64, up_ratio=2, seed=0):
        self.npoint = npoint
        self.up_ratio = up_ratio
        self.npoints = [npoint // 2, npoint // 4, npoint // 8]
        self.radius = [0.1, 0.2, 0.3]
        self.nsamples = [32, 32, 32, 32]
        mlps = [[64, 64, 128], [128, 128, 256], [256, 256, 512]]
        fp_mlps = [[128, 128, 128], [256, 128], [256, 256]]

        key = jax.random.PRNGKey(seed)
        # conv0: mlp [0, 32, 32, 64] with use_xyz=True -> first Cin = 3
        key, self.conv0_layers = init_mlp(key, [3, 32, 32, 64])

        in_ch = 64
        skip = [in_ch]
        self.sa_layers = []
        for k in range(3):
            key, lyr = init_mlp(key, [in_ch + 3] + mlps[k])     # use_xyz=True
            self.sa_layers.append(lyr)
            in_ch = mlps[k][-1]
            skip.append(in_ch)

        self.fp_layers = []
        for k in range(3):
            pre = fp_mlps[k + 1][-1] if k < 2 else skip[-1]
            key, lyr = init_mlp(key, [pre + skip[k]] + fp_mlps[k])
            self.fp_layers.append(lyr)

        head_in = fp_mlps[0][-1] + 3                            # 131 -> padded to 136
        key, pcd1 = init_mlp(key, [128, 64])
        key, pcd2 = init_mlp(key, [64, 3], pad_last_out=True)   # output padded 3 -> 8
        self.head_layers = []
        for _ in range(up_ratio):
            key, fc = init_mlp(key, [head_in, 256, 128])
            self.head_layers.append(fc + pcd1 + pcd2)           # FC -> pcd1 -> pcd2
        self.head_cin = self.head_layers[0][0][0].shape[1]      # padded input channels

    # -- PointnetSAModule (single-scale grouping, use_xyz=True), fused MLP+max-pool --
    def sa_forward(self, xyz, feats_cm, layers, npoint, radius, nsample):
        # xyz: (B, N, 3) f32;  feats_cm: (C, B*N) bf16 channels-major (cols = b*N + n)
        B, N, _ = xyz.shape
        P, S = npoint, nsample
        fps_idx = farthest_point_sample(xyz, P)                            # (B, P)
        new_xyz = jnp.take_along_axis(xyz, fps_idx[..., None], axis=1)     # (B, P, 3)
        gidx = ball_query(radius, S, xyz, new_xyz)                         # (B, P, S)

        base = (jnp.arange(B, dtype=jnp.int32) * N)[:, None, None]
        flat = gidx + base                                                 # cols of (.., B*N)
        idx_s_bp = jnp.transpose(flat, (2, 0, 1)).reshape(S, B * P)        # (S, B*P)

        xyz_cm = jnp.transpose(xyz.reshape(B * N, 3))                      # (3, B*N) f32
        g_xyz = jnp.take(xyz_cm, idx_s_bp.reshape(-1), axis=1).reshape(3, S, B * P)
        new_xyz_cm = jnp.transpose(new_xyz.reshape(B * P, 3))              # (3, B*P)
        g_xyz = (g_xyz - new_xyz_cm[:, None, :]).astype(jnp.bfloat16)

        if feats_cm is not None:
            g_feat = jnp.take(feats_cm, idx_s_bp.reshape(-1), axis=1)
            g_feat = g_feat.reshape(feats_cm.shape[0], S, B * P).astype(jnp.bfloat16)
            x = jnp.concatenate([g_xyz, g_feat], axis=0)                   # (3+C, S, B*P)
        else:
            x = g_xyz
        cin_p = layers[0][0].shape[1]
        if cin_p > x.shape[0]:
            x = jnp.pad(x, ((0, cin_p - x.shape[0]), (0, 0), (0, 0)))      # zero channels
        x = jnp.transpose(x, (1, 0, 2))                                    # (S, Cin_p, B*P)
        pooled = sa_mlp_pool(x, layers)                                    # (Cout, B*P) bf16
        return new_xyz, pooled

    # -- PointnetFPModule: 3-NN inverse-distance interpolation + fused MLP --
    def fp_forward(self, unknown_xyz, known_xyz, unknown_feats_cm, known_feats_cm, layers):
        B, n, _ = unknown_xyz.shape
        m = known_xyz.shape[1]
        d2 = jnp.sum((unknown_xyz[:, :, None, :] - known_xyz[:, None, :, :]) ** 2, axis=-1)
        neg_d, idx = lax.top_k(-d2, 3)                                     # (B, n, 3)
        dist = jnp.sqrt(jnp.maximum(-neg_d, 0.0))   # euclidean, matches pointnet2_ops ThreeNN
        w = 1.0 / (dist + 1e-8)
        w = w / jnp.sum(w, axis=-1, keepdims=True)                         # (B, n, 3)

        base = (jnp.arange(B, dtype=jnp.int32) * m)[:, None, None]
        flat = idx.astype(jnp.int32) + base
        C2 = known_feats_cm.shape[0]
        g = jnp.take(known_feats_cm, flat.reshape(-1), axis=1)             # (C2, B*n*3)
        g = g.reshape(C2, B * n, 3).astype(jnp.float32)
        interp = jnp.sum(g * w.reshape(1, B * n, 3), axis=-1)              # (C2, B*n) f32

        x = jnp.concatenate([interp.astype(jnp.bfloat16),
                             unknown_feats_cm.astype(jnp.bfloat16)], axis=0)
        return fused_mlp(x, layers, relu_flags=(True,) * len(layers),
                         out_dtype=jnp.bfloat16)

    def __call__(self, points):
        # points: (B, N, 3) with N == self.npoint (as assumed by the torch module)
        B, N, _ = points.shape
        xyz = points[..., :3]

        # conv0: self-grouping SA on all N points (feats ordered by its FPS permutation,
        # paired with the original xyz — matches the reference module's behaviour).
        _, feats = self.sa_forward(xyz, None, self.conv0_layers,
                                   npoint=self.npoint, radius=self.radius[0] / 2,
                                   nsample=self.nsamples[0])

        l_xyz, l_feats = [xyz], [feats]
        for k in range(3):
            nk_xyz, nk_feats = self.sa_forward(l_xyz[k], l_feats[k], self.sa_layers[k],
                                               npoint=self.npoints[k],
                                               radius=self.radius[k],
                                               nsample=self.nsamples[k])
            l_xyz.append(nk_xyz)
            l_feats.append(nk_feats)

        l_fp = l_feats[-1]
        for i in range(3):
            i = 3 - i
            l_fp = self.fp_forward(l_xyz[i - 1], l_xyz[i], l_feats[i - 1], l_fp,
                                   self.fp_layers[i - 1])                  # (128, B*N)

        xyz_cm = jnp.transpose(xyz.reshape(B * N, 3))                      # (3, B*N)
        head_in = jnp.concatenate([xyz_cm.astype(jnp.bfloat16), l_fp], axis=0)
        head_in = jnp.pad(head_in, ((0, self.head_cin - head_in.shape[0]), (0, 0)))

        outs = []
        for k in range(self.up_ratio):
            o = fused_mlp(head_in, self.head_layers[k],
                          relu_flags=(True, True, True, False),
                          out_dtype=jnp.float32)                           # (8, B*N)
            outs.append(o[:3].reshape(3, B, N))
        stacked = jnp.stack(outs, axis=0)                                  # (up, 3, B, N)
        return jnp.transpose(stacked, (2, 0, 3, 1)).reshape(B, self.up_ratio * N, 3)


# ----------------------------- main ------------------------------------------

if __name__ == "__main__":
    B, N = 2, 64                      # N must equal npoint for this module
    key = jax.random.PRNGKey(0)
    points = jax.random.uniform(key, (B, N, 3), jnp.float32)

    model = PointNet2SSGPallas(npoint=N, up_ratio=2, seed=0)
    fwd = jax.jit(model.__call__)
    out = jax.block_until_ready(fwd(points))

    assert out.shape == (B, model.up_ratio * N, 3), out.shape
    assert bool(jnp.all(jnp.isfinite(out)))
    print("KERNEL_OK")
</pallas_src>

<mosaic_0001>
module attributes {stable_mosaic.version = 11 : i64} {
  func.func @_sa_mlp_pool_kernel(%arg0: i32, %arg1: i32, %arg2: memref<1x8x128xbf16, #tpu.memory_space<vmem>>, %arg3: memref<32x8xbf16, #tpu.memory_space<vmem>>, %arg4: memref<32x1xf32, #tpu.memory_space<vmem>>, %arg5: memref<32x32xbf16, #tpu.memory_space<vmem>>, %arg6: memref<32x1xf32, #tpu.memory_space<vmem>>, %arg7: memref<64x32xbf16, #tpu.memory_space<vmem>>, %arg8: memref<64x1xf32, #tpu.memory_space<vmem>>, %arg9: memref<64x128xbf16, #tpu.memory_space<vmem>>) attributes {dimension_semantics = [#tpu.dimension_semantics<parallel>, #tpu.dimension_semantics<arbitrary>], iteration_bounds = array<i64: 1, 32>, scalar_prefetch = 0 : i64, scratch_operands = 0 : i64, tpu.core_type = #tpu.core_type<tc>, window_params = [{transform_indices = @transform_0, window_bounds = array<i64: 1, 8, 128>}, {pipeline_mode = #tpu.pipeline_mode<synchronous>, transform_indices = @transform_1, window_bounds = array<i64: 32, 8>}, {pipeline_mode = #tpu.pipeline_mode<synchronous>, transform_indices = @transform_2, window_bounds = array<i64: 32, 1>}, {pipeline_mode = #tpu.pipeline_mode<synchronous>, transform_indices = @transform_3, window_bounds = array<i64: 32, 32>}, {pipeline_mode = #tpu.pipeline_mode<synchronous>, transform_indices = @transform_4, window_bounds = array<i64: 32, 1>}, {pipeline_mode = #tpu.pipeline_mode<synchronous>, transform_indices = @transform_5, window_bounds = array<i64: 64, 32>}, {pipeline_mode = #tpu.pipeline_mode<synchronous>, transform_indices = @transform_6, window_bounds = array<i64: 64, 1>}, {transform_indices = @transform_7, window_bounds = array<i64: 64, 128>}]} {
    %c0 = arith.constant 0 : index
    %c0_0 = arith.constant 0 : index
    %c0_1 = arith.constant 0 : index
    %0 = vector.load %arg2[%c0, %c0_0, %c0_1] : memref<1x8x128xbf16, #tpu.memory_space<vmem>>, vector<1x8x128xbf16>
    %1 = vector.shape_cast %0 : vector<1x8x128xbf16> to vector<8x128xbf16>
    %c0_2 = arith.constant 0 : index
    %c0_3 = arith.constant 0 : index
    %2 = vector.load %arg3[%c0_2, %c0_3] : memref<32x8xbf16, #tpu.memory_space<vmem>>, vector<32x8xbf16>
    %c0_4 = arith.constant 0 : index
    %c0_5 = arith.constant 0 : index
    %3 = vector.load %arg4[%c0_4, %c0_5] : memref<32x1xf32, #tpu.memory_space<vmem>>, vector<32x1xf32>
    %cst = arith.constant dense<0.000000e+00> : vector<32x128xf32>
    %4 = tpu.matmul %2, %1, %cst {dimension_numbers = #tpu.dot_dimension_numbers<[1], [0], [0], [1], [0, 0, 1, 1], [], []>} : vector<32x8xbf16>, vector<8x128xbf16>, vector<32x128xf32> -> vector<32x128xf32>
    %5 = vector.broadcast %3 : vector<32x1xf32> to vector<32x128xf32>
    %6 = arith.addf %4, %5 : vector<32x128xf32>
    %cst_6 = arith.constant 0.000000e+00 : f32
    %7 = vector.broadcast %cst_6 : f32 to vector<32x128xf32>
    %8 = arith.maximumf %6, %7 : vector<32x128xf32>
    %9 = arith.truncf %8 : vector<32x128xf32> to vector<32x128xbf16>
    %c0_7 = arith.constant 0 : index
    %c0_8 = arith.constant 0 : index
    %10 = vector.load %arg5[%c0_7, %c0_8] : memref<32x32xbf16, #tpu.memory_space<vmem>>, vector<32x32xbf16>
    %c0_9 = arith.constant 0 : index
    %c0_10 = arith.constant 0 : index
    %11 = vector.load %arg6[%c0_9, %c0_10] : memref<32x1xf32, #tpu.memory_space<vmem>>, vector<32x1xf32>
    %cst_11 = arith.constant dense<0.000000e+00> : vector<32x128xf32>
    %12 = tpu.matmul %10, %9, %cst_11 {dimension_numbers = #tpu.dot_dimension_numbers<[1], [0], [0], [1], [0, 0, 1, 1], [], []>} : vector<32x32xbf16>, vector<32x128xbf16>, vector<32x128xf32> -> vector<32x128xf32>
    %13 = vector.broadcast %11 : vector<32x1xf32> to vector<32x128xf32>
    %14 = arith.addf %12, %13 : vector<32x128xf32>
    %cst_12 = arith.constant 0.000000e+00 : f32
    %15 = vector.broadcast %cst_12 : f32 to vector<32x128xf32>
    %16 = arith.maximumf %14, %15 : vector<32x128xf32>
    %17 = arith.truncf %16 : vector<32x128xf32> to vector<32x128xbf16>
    %c0_13 = arith.constant 0 : index
    %c0_14 = arith.constant 0 : index
    %18 = vector.load %arg7[%c0_13, %c0_14] : memref<64x32xbf16, #tpu.memory_space<vmem>>, vector<64x32xbf16>
    %c0_15 = arith.constant 0 : index
    %c0_16 = arith.constant 0 : index
    %19 = vector.load %arg8[%c0_15, %c0_16] : memref<64x1xf32, #tpu.memory_space<vmem>>, vector<64x1xf32>
    %cst_17 = arith.constant dense<0.000000e+00> : vector<64x128xf32>
    %20 = tpu.matmul %18, %17, %cst_17 {dimension_numbers = #tpu.dot_dimension_numbers<[1], [0], [0], [1], [0, 0, 1, 1], [], []>} : vector<64x32xbf16>, vector<32x128xbf16>, vector<64x128xf32> -> vector<64x128xf32>
    %21 = vector.broadcast %19 : vector<64x1xf32> to vector<64x128xf32>
    %22 = arith.addf %20, %21 : vector<64x128xf32>
    %cst_18 = arith.constant 0.000000e+00 : f32
    %23 = vector.broadcast %cst_18 : f32 to vector<64x128xf32>
    %24 = arith.maximumf %22, %23 : vector<64x128xf32>
    %25 = arith.truncf %24 : vector<64x128xf32> to vector<64x128xbf16>
    %c0_i32 = arith.constant 0 : i32
    %26 = arith.cmpi eq, %arg1, %c0_i32 : i32
    %27 = arith.extui %26 : i1 to i32
    %c0_i32_19 = arith.constant 0 : i32
    %28 = arith.cmpi ne, %27, %c0_i32_19 : i32
    scf.if %28 {
      %c0_22 = arith.constant 0 : index
      %c0_23 = arith.constant 0 : index
      %32 = vector.load %arg9[%c0_22, %c0_23] : memref<64x128xbf16, #tpu.memory_space<vmem>>, vector<64x128xbf16>
      tpu.vector_store %arg9[%c0_22, %c0_23], %25 {strides = array<i32>} : memref<64x128xbf16, #tpu.memory_space<vmem>>, vector<64x128xbf16>,
    } else {
    }
    %c0_i32_20 = arith.constant 0 : i32
    %29 = arith.cmpi sgt, %arg1, %c0_i32_20 : i32
    %30 = arith.extui %29 : i1 to i32
    %c0_i32_21 = arith.constant 0 : i32
    %31 = arith.cmpi ne, %30, %c0_i32_21 : i32
    scf.if %31 {
      %c0_22 = arith.constant 0 : index
      %c0_23 = arith.constant 0 : index
      %32 = vector.load %arg9[%c0_22, %c0_23] : memref<64x128xbf16, #tpu.memory_space<vmem>>, vector<64x128xbf16>
      %33 = arith.maximumf %32, %25 : vector<64x128xbf16>
      %c0_24 = arith.constant 0 : index
      %c0_25 = arith.constant 0 : index
      %34 = vector.load %arg9[%c0_24, %c0_25] : memref<64x128xbf16, #tpu.memory_space<vmem>>, vector<64x128xbf16>
      tpu.vector_store %arg9[%c0_24, %c0_25], %33 {strides = array<i32>} : memref<64x128xbf16, #tpu.memory_space<vmem>>, vector<64x128xbf16>,
    } else {
    }
    return
  }
  func.func @transform_0(%arg0: i32, %arg1: i32) -> (i32, i32, i32) {
    %c0_i32 = arith.constant 0 : i32
    %c0_i32_0 = arith.constant 0 : i32
    return %arg1, %c0_i32, %arg0 : i32, i32, i32
  }
  func.func @transform_1(%arg0: i32, %arg1: i32) -> (i32, i32) {
    %c0_i32 = arith.constant 0 : i32
    %c0_i32_0 = arith.constant 0 : i32
    %c0_i32_1 = arith.constant 0 : i32
    return %c0_i32, %c0_i32_0 : i32, i32
  }
  func.func @transform_2(%arg0: i32, %arg1: i32) -> (i32, i32) {
    %c0_i32 = arith.constant 0 : i32
    %c0_i32_0 = arith.constant 0 : i32
    %c0_i32_1 = arith.constant 0 : i32
    return %c0_i32, %c0_i32_0 : i32, i32
  }
  func.func @transform_3(%arg0: i32, %arg1: i32) -> (i32, i32) {
    %c0_i32 = arith.constant 0 : i32
    %c0_i32_0 = arith.constant 0 : i32
    %c0_i32_1 = arith.constant 0 : i32
    return %c0_i32, %c0_i32_0 : i32, i32
  }
  func.func @transform_4(%arg0: i32, %arg1: i32) -> (i32, i32) {
    %c0_i32 = arith.constant 0 : i32
    %c0_i32_0 = arith.constant 0 : i32
    %c0_i32_1 = arith.constant 0 : i32
    return %c0_i32, %c0_i32_0 : i32, i32
  }
  func.func @transform_5(%arg0: i32, %arg1: i32) -> (i32, i32) {
    %c0_i32 = arith.constant 0 : i32
    %c0_i32_0 = arith.constant 0 : i32
    %c0_i32_1 = arith.constant 0 : i32
    return %c0_i32, %c0_i32_0 : i32, i32
  }
  func.func @transform_6(%arg0: i32, %arg1: i32) -> (i32, i32) {
    %c0_i32 = arith.constant 0 : i32
    %c0_i32_0 = arith.constant 0 : i32
    %c0_i32_1 = arith.constant 0 : i32
    return %c0_i32, %c0_i32_0 : i32, i32
  }
  func.func @transform_7(%arg0: i32, %arg1: i32) -> (i32, i32) {
    %c0_i32 = arith.constant 0 : i32
    %c0_i32_0 = arith.constant 0 : i32
    return %c0_i32, %arg0 : i32, i32
  }
}

module attributes {stable_mosaic.version = 11 : i64} {
  func.func @_sa_mlp_pool_kernel(%arg0: i32, %arg1: i32, %arg2: memref<1x72x64xbf16, #tpu.memory_space<vmem>>, %arg3: memref<64x72xbf16, #tpu.memory_space<vmem>>, %arg4: memref<64x1xf32, #tpu.memory_space<vmem>>, %arg5: memref<64x64xbf16, #tpu.memory_space<vmem>>, %arg6: memref<64x1xf32, #tpu.memory_space<vmem>>, %arg7: memref<128x64xbf16, #tpu.memory_space<vmem>>, %arg8: memref<128x1xf32, #tpu.memory_space<vmem>>, %arg9: memref<128x64xbf16, #tpu.memory_space<vmem>>) attributes {dimension_semantics = [#tpu.dimension_semantics<parallel>, #tpu.dimension_semantics<arbitrary>], iteration_bounds = array<i64: 1, 32>, scalar_prefetch = 0 : i64, scratch_operands = 0 : i64, tpu.core_type = #tpu.core_type<tc>, window_params = [{transform_indices = @transform_0, window_bounds = array<i64: 1, 72, 64>}, {pipeline_mode = #tpu.pipeline_mode<synchronous>, transform_indices = @transform_1, window_bounds = array<i64: 64, 72>}, {pipeline_mode = #tpu.pipeline_mode<synchronous>, transform_indices = @transform_2, window_bounds = array<i64: 64, 1>}, {pipeline_mode = #tpu.pipeline_mode<synchronous>, transform_indices = @transform_3, window_bounds = array<i64: 64, 64>}, {pipeline_mode = #tpu.pipeline_mode<synchronous>, transform_indices = @transform_4, window_bounds = array<i64: 64, 1>}, {pipeline_mode = #tpu.pipeline_mode<synchronous>, transform_indices = @transform_5, window_bounds = array<i64: 128, 64>}, {pipeline_mode = #tpu.pipeline_mode<synchronous>, transform_indices = @transform_6, window_bounds = array<i64: 128, 1>}, {transform_indices = @transform_7, window_bounds = array<i64: 128, 64>}]} {
    %c0 = arith.constant 0 : index
    %c0_0 = arith.constant 0 : index
    %c0_1 = arith.constant 0 : index
    %0 = vector.load %arg2[%c0, %c0_0, %c0_1] : memref<1x72x64xbf16, #tpu.memory_space<vmem>>, vector<1x72x64xbf16>
    %1 = vector.shape_cast %0 : vector<1x72x64xbf16> to vector<72x64xbf16>
    %c0_2 = arith.constant 0 : index
    %c0_3 = arith.constant 0 : index
    %2 = vector.load %arg3[%c0_2, %c0_3] : memref<64x72xbf16, #tpu.memory_space<vmem>>, vector<64x72xbf16>
    %c0_4 = arith.constant 0 : index
    %c0_5 = arith.constant 0 : index
    %3 = vector.load %arg4[%c0_4, %c0_5] : memref<64x1xf32, #tpu.memory_space<vmem>>, vector<64x1xf32>
    %cst = arith.constant dense<0.000000e+00> : vector<64x64xf32>
    %4 = tpu.matmul %2, %1, %cst {dimension_numbers = #tpu.dot_dimension_numbers<[1], [0], [0], [1], [0, 0, 1, 1], [], []>} : vector<64x72xbf16>, vector<72x64xbf16>, vector<64x64xf32> -> vector<64x64xf32>
    %5 = vector.broadcast %3 : vector<64x1xf32> to vector<64x64xf32>
    %6 = arith.addf %4, %5 : vector<64x64xf32>
    %cst_6 = arith.constant 0.000000e+00 : f32
    %7 = vector.broadcast %cst_6 : f32 to vector<64x64xf32>
    %8 = arith.maximumf %6, %7 : vector<64x64xf32>
    %9 = arith.truncf %8 : vector<64x64xf32> to vector<64x64xbf16>
    %c0_7 = arith.constant 0 : index
    %c0_8 = arith.constant 0 : index
    %10 = vector.load %arg5[%c0_7, %c0_8] : memref<64x64xbf16, #tpu.memory_space<vmem>>, vector<64x64xbf16>
    %c0_9 = arith.constant 0 : index
    %c0_10 = arith.constant 0 : index
    %11 = vector.load %arg6[%c0_9, %c0_10] : memref<64x1xf32, #tpu.memory_space<vmem>>, vector<64x1xf32>
    %cst_11 = arith.constant dense<0.000000e+00> : vector<64x64xf32>
    %12 = tpu.matmul %10, %9, %cst_11 {dimension_numbers = #tpu.dot_dimension_numbers<[1], [0], [0], [1], [0, 0, 1, 1], [], []>} : vector<64x64xbf16>, vector<64x64xbf16>, vector<64x64xf32> -> vector<64x64xf32>
    %13 = vector.broadcast %11 : vector<64x1xf32> to vector<64x64xf32>
    %14 = arith.addf %12, %13 : vector<64x64xf32>
    %cst_12 = arith.constant 0.000000e+00 : f32
    %15 = vector.broadcast %cst_12 : f32 to vector<64x64xf32>
    %16 = arith.maximumf %14, %15 : vector<64x64xf32>
    %17 = arith.truncf %16 : vector<64x64xf32> to vector<64x64xbf16>
    %c0_13 = arith.constant 0 : index
    %c0_14 = arith.constant 0 : index
    %18 = vector.load %arg7[%c0_13, %c0_14] : memref<128x64xbf16, #tpu.memory_space<vmem>>, vector<128x64xbf16>
    %c0_15 = arith.constant 0 : index
    %c0_16 = arith.constant 0 : index
    %19 = vector.load %arg8[%c0_15, %c0_16] : memref<128x1xf32, #tpu.memory_space<vmem>>, vector<128x1xf32>
    %cst_17 = arith.constant dense<0.000000e+00> : vector<128x64xf32>
    %20 = tpu.matmul %18, %17, %cst_17 {dimension_numbers = #tpu.dot_dimension_numbers<[1], [0], [0], [1], [0, 0, 1, 1], [], []>} : vector<128x64xbf16>, vector<64x64xbf16>, vector<128x64xf32> -> vector<128x64xf32>
    %21 = vector.broadcast %19 : vector<128x1xf32> to vector<128x64xf32>
    %22 = arith.addf %20, %21 : vector<128x64xf32>
    %cst_18 = arith.constant 0.000000e+00 : f32
    %23 = vector.broadcast %cst_18 : f32 to vector<128x64xf32>
    %24 = arith.maximumf %22, %23 : vector<128x64xf32>
    %25 = arith.truncf %24 : vector<128x64xf32> to vector<128x64xbf16>
    %c0_i32 = arith.constant 0 : i32
    %26 = arith.cmpi eq, %arg1, %c0_i32 : i32
    %27 = arith.extui %26 : i1 to i32
    %c0_i32_19 = arith.constant 0 : i32
    %28 = arith.cmpi ne, %27, %c0_i32_19 : i32
    scf.if %28 {
      %c0_22 = arith.constant 0 : index
      %c0_23 = arith.constant 0 : index
      %32 = vector.load %arg9[%c0_22, %c0_23] : memref<128x64xbf16, #tpu.memory_space<vmem>>, vector<128x64xbf16>
      tpu.vector_store %arg9[%c0_22, %c0_23], %25 {strides = array<i32>} : memref<128x64xbf16, #tpu.memory_space<vmem>>, vector<128x64xbf16>,
    } else {
    }
    %c0_i32_20 = arith.constant 0 : i32
    %29 = arith.cmpi sgt, %arg1, %c0_i32_20 : i32
    %30 = arith.extui %29 : i1 to i32
    %c0_i32_21 = arith.constant 0 : i32
    %31 = arith.cmpi ne, %30, %c0_i32_21 : i32
    scf.if %31 {
      %c0_22 = arith.constant 0 : index
      %c0_23 = arith.constant 0 : index
      %32 = vector.load %arg9[%c0_22, %c0_23] : memref<128x64xbf16, #tpu.memory_space<vmem>>, vector<128x64xbf16>
      %33 = arith.maximumf %32, %25 : vector<128x64xbf16>
      %c0_24 = arith.constant 0 : index
      %c0_25 = arith.constant 0 : index
      %34 = vector.load %arg9[%c0_24, %c0_25] : memref<128x64xbf16, #tpu.memory_space<vmem>>, vector<128x64xbf16>
      tpu.vector_store %arg9[%c0_24, %c0_25], %33 {strides = array<i32>} : memref<128x64xbf16, #tpu.memory_space<vmem>>, vector<128x64xbf16>,
    } else {
    }
    return
  }
  func.func @transform_0(%arg0: i32, %arg1: i32) -> (i32, i32, i32) {
    %c0_i32 = arith.constant 0 : i32
    %c0_i32_0 = arith.constant 0 : i32
    return %arg1, %c0_i32, %arg0 : i32, i32, i32
  }
  func.func @transform_1(%arg0: i32, %arg1: i32) -> (i32, i32) {
    %c0_i32 = arith.constant 0 : i32
    %c0_i32_0 = arith.constant 0 : i32
    %c0_i32_1 = arith.constant 0 : i32
    return %c0_i32, %c0_i32_0 : i32, i32
  }
  func.func @transform_2(%arg0: i32, %arg1: i32) -> (i32, i32) {
    %c0_i32 = arith.constant 0 : i32
    %c0_i32_0 = arith.constant 0 : i32
    %c0_i32_1 = arith.constant 0 : i32
    return %c0_i32, %c0_i32_0 : i32, i32
  }
  func.func @transform_3(%arg0: i32, %arg1: i32) -> (i32, i32) {
    %c0_i32 = arith.constant 0 : i32
    %c0_i32_0 = arith.constant 0 : i32
    %c0_i32_1 = arith.constant 0 : i32
    return %c0_i32, %c0_i32_0 : i32, i32
  }
  func.func @transform_4(%arg0: i32, %arg1: i32) -> (i32, i32) {
    %c0_i32 = arith.constant 0 : i32
    %c0_i32_0 = arith.constant 0 : i32
    %c0_i32_1 = arith.constant 0 : i32
    return %c0_i32, %c0_i32_0 : i32, i32
  }
  func.func @transform_5(%arg0: i32, %arg1: i32) -> (i32, i32) {
    %c0_i32 = arith.constant 0 : i32
    %c0_i32_0 = arith.constant 0 : i32
    %c0_i32_1 = arith.constant 0 : i32
    return %c0_i32, %c0_i32_0 : i32, i32
  }
  func.func @transform_6(%arg0: i32, %arg1: i32) -> (i32, i32) {
    %c0_i32 = arith.constant 0 : i32
    %c0_i32_0 = arith.constant 0 : i32
    %c0_i32_1 = arith.constant 0 : i32
    return %c0_i32, %c0_i32_0 : i32, i32
  }
  func.func @transform_7(%arg0: i32, %arg1: i32) -> (i32, i32) {
    %c0_i32 = arith.constant 0 : i32
    %c0_i32_0 = arith.constant 0 : i32
    return %c0_i32, %arg0 : i32, i32
  }
}

module attributes {stable_mosaic.version = 11 : i64} {
  func.func @_sa_mlp_pool_kernel(%arg0: i32, %arg1: i32, %arg2: memref<1x136x32xbf16, #tpu.memory_space<vmem>>, %arg3: memref<128x136xbf16, #tpu.memory_space<vmem>>, %arg4: memref<128x1xf32, #tpu.memory_space<vmem>>, %arg5: memref<128x128xbf16, #tpu.memory_space<vmem>>, %arg6: memref<128x1xf32, #tpu.memory_space<vmem>>, %arg7: memref<256x128xbf16, #tpu.memory_space<vmem>>, %arg8: memref<256x1xf32, #tpu.memory_space<vmem>>, %arg9: memref<256x32xbf16, #tpu.memory_space<vmem>>) attributes {dimension_semantics = [#tpu.dimension_semantics<parallel>, #tpu.dimension_semantics<arbitrary>], iteration_bounds = array<i64: 1, 32>, scalar_prefetch = 0 : i64, scratch_operands = 0 : i64, tpu.core_type = #tpu.core_type<tc>, window_params = [{transform_indices = @transform_0, window_bounds = array<i64: 1, 136, 32>}, {pipeline_mode = #tpu.pipeline_mode<synchronous>, transform_indices = @transform_1, window_bounds = array<i64: 128, 136>}, {pipeline_mode = #tpu.pipeline_mode<synchronous>, transform_indices = @transform_2, window_bounds = array<i64: 128, 1>}, {pipeline_mode = #tpu.pipeline_mode<synchronous>, transform_indices = @transform_3, window_bounds = array<i64: 128, 128>}, {pipeline_mode = #tpu.pipeline_mode<synchronous>, transform_indices = @transform_4, window_bounds = array<i64: 128, 1>}, {pipeline_mode = #tpu.pipeline_mode<synchronous>, transform_indices = @transform_5, window_bounds = array<i64: 256, 128>}, {pipeline_mode = #tpu.pipeline_mode<synchronous>, transform_indices = @transform_6, window_bounds = array<i64: 256, 1>}, {transform_indices = @transform_7, window_bounds = array<i64: 256, 32>}]} {
    %c0 = arith.constant 0 : index
    %c0_0 = arith.constant 0 : index
    %c0_1 = arith.constant 0 : index
    %0 = vector.load %arg2[%c0, %c0_0, %c0_1] : memref<1x136x32xbf16, #tpu.memory_space<vmem>>, vector<1x136x32xbf16>
    %1 = vector.shape_cast %0 : vector<1x136x32xbf16> to vector<136x32xbf16>
    %c0_2 = arith.constant 0 : index
    %c0_3 = arith.constant 0 : index
    %2 = vector.load %arg3[%c0_2, %c0_3] : memref<128x136xbf16, #tpu.memory_space<vmem>>, vector<128x136xbf16>
    %c0_4 = arith.constant 0 : index
    %c0_5 = arith.constant 0 : index
    %3 = vector.load %arg4[%c0_4, %c0_5] : memref<128x1xf32, #tpu.memory_space<vmem>>, vector<128x1xf32>
    %cst = arith.constant dense<0.000000e+00> : vector<128x32xf32>
    %4 = tpu.matmul %2, %1, %cst {dimension_numbers = #tpu.dot_dimension_numbers<[1], [0], [0], [1], [0, 0, 1, 1], [], []>} : vector<128x136xbf16>, vector<136x32xbf16>, vector<128x32xf32> -> vector<128x32xf32>
    %5 = vector.broadcast %3 : vector<128x1xf32> to vector<128x32xf32>
    %6 = arith.addf %4, %5 : vector<128x32xf32>
    %cst_6 = arith.constant 0.000000e+00 : f32
    %7 = vector.broadcast %cst_6 : f32 to vector<128x32xf32>
    %8 = arith.maximumf %6, %7 : vector<128x32xf32>
    %9 = arith.truncf %8 : vector<128x32xf32> to vector<128x32xbf16>
    %c0_7 = arith.constant 0 : index
    %c0_8 = arith.constant 0 : index
    %10 = vector.load %arg5[%c0_7, %c0_8] : memref<128x128xbf16, #tpu.memory_space<vmem>>, vector<128x128xbf16>
    %c0_9 = arith.constant 0 : index
    %c0_10 = arith.constant 0 : index
    %11 = vector.load %arg6[%c0_9, %c0_10] : memref<128x1xf32, #tpu.memory_space<vmem>>, vector<128x1xf32>
    %cst_11 = arith.constant dense<0.000000e+00> : vector<128x32xf32>
    %12 = tpu.matmul %10, %9, %cst_11 {dimension_numbers = #tpu.dot_dimension_numbers<[1], [0], [0], [1], [0, 0, 1, 1], [], []>} : vector<128x128xbf16>, vector<128x32xbf16>, vector<128x32xf32> -> vector<128x32xf32>
    %13 = vector.broadcast %11 : vector<128x1xf32> to vector<128x32xf32>
    %14 = arith.addf %12, %13 : vector<128x32xf32>
    %cst_12 = arith.constant 0.000000e+00 : f32
    %15 = vector.broadcast %cst_12 : f32 to vector<128x32xf32>
    %16 = arith.maximumf %14, %15 : vector<128x32xf32>
    %17 = arith.truncf %16 : vector<128x32xf32> to vector<128x32xbf16>
    %c0_13 = arith.constant 0 : index
    %c0_14 = arith.constant 0 : index
    %18 = vector.load %arg7[%c0_13, %c0_14] : memref<256x128xbf16, #tpu.memory_space<vmem>>, vector<256x128xbf16>
    %c0_15 = arith.constant 0 : index
    %c0_16 = arith.constant 0 : index
    %19 = vector.load %arg8[%c0_15, %c0_16] : memref<256x1xf32, #tpu.memory_space<vmem>>, vector<256x1xf32>
    %cst_17 = arith.constant dense<0.000000e+00> : vector<256x32xf32>
    %20 = tpu.matmul %18, %17, %cst_17 {dimension_numbers = #tpu.dot_dimension_numbers<[1], [0], [0], [1], [0, 0, 1, 1], [], []>} : vector<256x128xbf16>, vector<128x32xbf16>, vector<256x32xf32> -> vector<256x32xf32>
    %21 = vector.broadcast %19 : vector<256x1xf32> to vector<256x32xf32>
    %22 = arith.addf %20, %21 : vector<256x32xf32>
    %cst_18 = arith.constant 0.000000e+00 : f32
    %23 = vector.broadcast %cst_18 : f32 to vector<256x32xf32>
    %24 = arith.maximumf %22, %23 : vector<256x32xf32>
    %25 = arith.truncf %24 : vector<256x32xf32> to vector<256x32xbf16>
    %c0_i32 = arith.constant 0 : i32
    %26 = arith.cmpi eq, %arg1, %c0_i32 : i32
    %27 = arith.extui %26 : i1 to i32
    %c0_i32_19 = arith.constant 0 : i32
    %28 = arith.cmpi ne, %27, %c0_i32_19 : i32
    scf.if %28 {
      %c0_22 = arith.constant 0 : index
      %c0_23 = arith.constant 0 : index
      %32 = vector.load %arg9[%c0_22, %c0_23] : memref<256x32xbf16, #tpu.memory_space<vmem>>, vector<256x32xbf16>
      tpu.vector_store %arg9[%c0_22, %c0_23], %25 {strides = array<i32>} : memref<256x32xbf16, #tpu.memory_space<vmem>>, vector<256x32xbf16>,
    } else {
    }
    %c0_i32_20 = arith.constant 0 : i32
    %29 = arith.cmpi sgt, %arg1, %c0_i32_20 : i32
    %30 = arith.extui %29 : i1 to i32
    %c0_i32_21 = arith.constant 0 : i32
    %31 = arith.cmpi ne, %30, %c0_i32_21 : i32
    scf.if %31 {
      %c0_22 = arith.constant 0 : index
      %c0_23 = arith.constant 0 : index
      %32 = vector.load %arg9[%c0_22, %c0_23] : memref<256x32xbf16, #tpu.memory_space<vmem>>, vector<256x32xbf16>
      %33 = arith.maximumf %32, %25 : vector<256x32xbf16>
      %c0_24 = arith.constant 0 : index
      %c0_25 = arith.constant 0 : index
      %34 = vector.load %arg9[%c0_24, %c0_25] : memref<256x32xbf16, #tpu.memory_space<vmem>>, vector<256x32xbf16>
      tpu.vector_store %arg9[%c0_24, %c0_25], %33 {strides = array<i32>} : memref<256x32xbf16, #tpu.memory_space<vmem>>, vector<256x32xbf16>,
    } else {
    }
    return
  }
  func.func @transform_0(%arg0: i32, %arg1: i32) -> (i32, i32, i32) {
    %c0_i32 = arith.constant 0 : i32
    %c0_i32_0 = arith.constant 0 : i32
    return %arg1, %c0_i32, %arg0 : i32, i32, i32
  }
  func.func @transform_1(%arg0: i32, %arg1: i32) -> (i32, i32) {
    %c0_i32 = arith.constant 0 : i32
    %c0_i32_0 = arith.constant 0 : i32
    %c0_i32_1 = arith.constant 0 : i32
    return %c0_i32, %c0_i32_0 : i32, i32
  }
  func.func @transform_2(%arg0: i32, %arg1: i32) -> (i32, i32) {
    %c0_i32 = arith.constant 0 : i32
    %c0_i32_0 = arith.constant 0 : i32
    %c0_i32_1 = arith.constant 0 : i32
    return %c0_i32, %c0_i32_0 : i32, i32
  }
  func.func @transform_3(%arg0: i32, %arg1: i32) -> (i32, i32) {
    %c0_i32 = arith.constant 0 : i32
    %c0_i32_0 = arith.constant 0 : i32
    %c0_i32_1 = arith.constant 0 : i32
    return %c0_i32, %c0_i32_0 : i32, i32
  }
  func.func @transform_4(%arg0: i32, %arg1: i32) -> (i32, i32) {
    %c0_i32 = arith.constant 0 : i32
    %c0_i32_0 = arith.constant 0 : i32
    %c0_i32_1 = arith.constant 0 : i32
    return %c0_i32, %c0_i32_0 : i32, i32
  }
  func.func @transform_5(%arg0: i32, %arg1: i32) -> (i32, i32) {
    %c0_i32 = arith.constant 0 : i32
    %c0_i32_0 = arith.constant 0 : i32
    %c0_i32_1 = arith.constant 0 : i32
    return %c0_i32, %c0_i32_0 : i32, i32
  }
  func.func @transform_6(%arg0: i32, %arg1: i32) -> (i32, i32) {
    %c0_i32 = arith.constant 0 : i32
    %c0_i32_0 = arith.constant 0 : i32
    %c0_i32_1 = arith.constant 0 : i32
    return %c0_i32, %c0_i32_0 : i32, i32
  }
  func.func @transform_7(%arg0: i32, %arg1: i32) -> (i32, i32) {
    %c0_i32 = arith.constant 0 : i32
    %c0_i32_0 = arith.constant 0 : i32
    return %c0_i32, %arg0 : i32, i32
  }
}

module attributes {stable_mosaic.version = 11 : i64} {
  func.func @_sa_mlp_pool_kernel(%arg0: i32, %arg1: i32, %arg2: memref<1x264x16xbf16, #tpu.memory_space<vmem>>, %arg3: memref<256x264xbf16, #tpu.memory_space<vmem>>, %arg4: memref<256x1xf32, #tpu.memory_space<vmem>>, %arg5: memref<256x256xbf16, #tpu.memory_space<vmem>>, %arg6: memref<256x1xf32, #tpu.memory_space<vmem>>, %arg7: memref<512x256xbf16, #tpu.memory_space<vmem>>, %arg8: memref<512x1xf32, #tpu.memory_space<vmem>>, %arg9: memref<512x16xbf16, #tpu.memory_space<vmem>>) attributes {dimension_semantics = [#tpu.dimension_semantics<parallel>, #tpu.dimension_semantics<arbitrary>], iteration_bounds = array<i64: 1, 32>, scalar_prefetch = 0 : i64, scratch_operands = 0 : i64, tpu.core_type = #tpu.core_type<tc>, window_params = [{transform_indices = @transform_0, window_bounds = array<i64: 1, 264, 16>}, {pipeline_mode = #tpu.pipeline_mode<synchronous>, transform_indices = @transform_1, window_bounds = array<i64: 256, 264>}, {pipeline_mode = #tpu.pipeline_mode<synchronous>, transform_indices = @transform_2, window_bounds = array<i64: 256, 1>}, {pipeline_mode = #tpu.pipeline_mode<synchronous>, transform_indices = @transform_3, window_bounds = array<i64: 256, 256>}, {pipeline_mode = #tpu.pipeline_mode<synchronous>, transform_indices = @transform_4, window_bounds = array<i64: 256, 1>}, {pipeline_mode = #tpu.pipeline_mode<synchronous>, transform_indices = @transform_5, window_bounds = array<i64: 512, 256>}, {pipeline_mode = #tpu.pipeline_mode<synchronous>, transform_indices = @transform_6, window_bounds = array<i64: 512, 1>}, {transform_indices = @transform_7, window_bounds = array<i64: 512, 16>}]} {
    %c0 = arith.constant 0 : index
    %c0_0 = arith.constant 0 : index
    %c0_1 = arith.constant 0 : index
    %0 = vector.load %arg2[%c0, %c0_0, %c0_1] : memref<1x264x16xbf16, #tpu.memory_space<vmem>>, vector<1x264x16xbf16>
    %1 = vector.shape_cast %0 : vector<1x264x16xbf16> to vector<264x16xbf16>
    %c0_2 = arith.constant 0 : index
    %c0_3 = arith.constant 0 : index
    %2 = vector.load %arg3[%c0_2, %c0_3] : memref<256x264xbf16, #tpu.memory_space<vmem>>, vector<256x264xbf16>
    %c0_4 = arith.constant 0 : index
    %c0_5 = arith.constant 0 : index
    %3 = vector.load %arg4[%c0_4, %c0_5] : memref<256x1xf32, #tpu.memory_space<vmem>>, vector<256x1xf32>
    %cst = arith.constant dense<0.000000e+00> : vector<256x16xf32>
    %4 = tpu.matmul %2, %1, %cst {dimension_numbers = #tpu.dot_dimension_numbers<[1], [0], [0], [1], [0, 0, 1, 1], [], []>} : vector<256x264xbf16>, vector<264x16xbf16>, vector<256x16xf32> -> vector<256x16xf32>
    %5 = vector.broadcast %3 : vector<256x1xf32> to vector<256x16xf32>
    %6 = arith.addf %4, %5 : vector<256x16xf32>
    %cst_6 = arith.constant 0.000000e+00 : f32
    %7 = vector.broadcast %cst_6 : f32 to vector<256x16xf32>
    %8 = arith.maximumf %6, %7 : vector<256x16xf32>
    %9 = arith.truncf %8 : vector<256x16xf32> to vector<256x16xbf16>
    %c0_7 = arith.constant 0 : index
    %c0_8 = arith.constant 0 : index
    %10 = vector.load %arg5[%c0_7, %c0_8] : memref<256x256xbf16, #tpu.memory_space<vmem>>, vector<256x256xbf16>
    %c0_9 = arith.constant 0 : index
    %c0_10 = arith.constant 0 : index
    %11 = vector.load %arg6[%c0_9, %c0_10] : memref<256x1xf32, #tpu.memory_space<vmem>>, vector<256x1xf32>
    %cst_11 = arith.constant dense<0.000000e+00> : vector<256x16xf32>
    %12 = tpu.matmul %10, %9, %cst_11 {dimension_numbers = #tpu.dot_dimension_numbers<[1], [0], [0], [1], [0, 0, 1, 1], [], []>} : vector<256x256xbf16>, vector<256x16xbf16>, vector<256x16xf32> -> vector<256x16xf32>
    %13 = vector.broadcast %11 : vector<256x1xf32> to vector<256x16xf32>
    %14 = arith.addf %12, %13 : vector<256x16xf32>
    %cst_12 = arith.constant 0.000000e+00 : f32
    %15 = vector.broadcast %cst_12 : f32 to vector<256x16xf32>
    %16 = arith.maximumf %14, %15 : vector<256x16xf32>
    %17 = arith.truncf %16 : vector<256x16xf32> to vector<256x16xbf16>
    %c0_13 = arith.constant 0 : index
    %c0_14 = arith.constant 0 : index
    %18 = vector.load %arg7[%c0_13, %c0_14] : memref<512x256xbf16, #tpu.memory_space<vmem>>, vector<512x256xbf16>
    %c0_15 = arith.constant 0 : index
    %c0_16 = arith.constant 0 : index
    %19 = vector.load %arg8[%c0_15, %c0_16] : memref<512x1xf32, #tpu.memory_space<vmem>>, vector<512x1xf32>
    %cst_17 = arith.constant dense<0.000000e+00> : vector<512x16xf32>
    %20 = tpu.matmul %18, %17, %cst_17 {dimension_numbers = #tpu.dot_dimension_numbers<[1], [0], [0], [1], [0, 0, 1, 1], [], []>} : vector<512x256xbf16>, vector<256x16xbf16>, vector<512x16xf32> -> vector<512x16xf32>
    %21 = vector.broadcast %19 : vector<512x1xf32> to vector<512x16xf32>
    %22 = arith.addf %20, %21 : vector<512x16xf32>
    %cst_18 = arith.constant 0.000000e+00 : f32
    %23 = vector.broadcast %cst_18 : f32 to vector<512x16xf32>
    %24 = arith.maximumf %22, %23 : vector<512x16xf32>
    %25 = arith.truncf %24 : vector<512x16xf32> to vector<512x16xbf16>
    %c0_i32 = arith.constant 0 : i32
    %26 = arith.cmpi eq, %arg1, %c0_i32 : i32
    %27 = arith.extui %26 : i1 to i32
    %c0_i32_19 = arith.constant 0 : i32
    %28 = arith.cmpi ne, %27, %c0_i32_19 : i32
    scf.if %28 {
      %c0_22 = arith.constant 0 : index
      %c0_23 = arith.constant 0 : index
      %32 = vector.load %arg9[%c0_22, %c0_23] : memref<512x16xbf16, #tpu.memory_space<vmem>>, vector<512x16xbf16>
      tpu.vector_store %arg9[%c0_22, %c0_23], %25 {strides = array<i32>} : memref<512x16xbf16, #tpu.memory_space<vmem>>, vector<512x16xbf16>,
    } else {
    }
    %c0_i32_20 = arith.constant 0 : i32
    %29 = arith.cmpi sgt, %arg1, %c0_i32_20 : i32
    %30 = arith.extui %29 : i1 to i32
    %c0_i32_21 = arith.constant 0 : i32
    %31 = arith.cmpi ne, %30, %c0_i32_21 : i32
    scf.if %31 {
      %c0_22 = arith.constant 0 : index
      %c0_23 = arith.constant 0 : index
      %32 = vector.load %arg9[%c0_22, %c0_23] : memref<512x16xbf16, #tpu.memory_space<vmem>>, vector<512x16xbf16>
      %33 = arith.maximumf %32, %25 : vector<512x16xbf16>
      %c0_24 = arith.constant 0 : index
      %c0_25 = arith.constant 0 : index
      %34 = vector.load %arg9[%c0_24, %c0_25] : memref<512x16xbf16, #tpu.memory_space<vmem>>, vector<512x16xbf16>
      tpu.vector_store %arg9[%c0_24, %c0_25], %33 {strides = array<i32>} : memref<512x16xbf16, #tpu.memory_space<vmem>>, vector<512x16xbf16>,
    } else {
    }
    return
  }
  func.func @transform_0(%arg0: i32, %arg1: i32) -> (i32, i32, i32) {
    %c0_i32 = arith.constant 0 : i32
    %c0_i32_0 = arith.constant 0 : i32
    return %arg1, %c0_i32, %arg0 : i32, i32, i32
  }
  func.func @transform_1(%arg0: i32, %arg1: i32) -> (i32, i32) {
    %c0_i32 = arith.constant 0 : i32
    %c0_i32_0 = arith.constant 0 : i32
    %c0_i32_1 = arith.constant 0 : i32
    return %c0_i32, %c0_i32_0 : i32, i32
  }
  func.func @transform_2(%arg0: i32, %arg1: i32) -> (i32, i32) {
    %c0_i32 = arith.constant 0 : i32
    %c0_i32_0 = arith.constant 0 : i32
    %c0_i32_1 = arith.constant 0 : i32
    return %c0_i32, %c0_i32_0 : i32, i32
  }
  func.func @transform_3(%arg0: i32, %arg1: i32) -> (i32, i32) {
    %c0_i32 = arith.constant 0 : i32
    %c0_i32_0 = arith.constant 0 : i32
    %c0_i32_1 = arith.constant 0 : i32
    return %c0_i32, %c0_i32_0 : i32, i32
  }
  func.func @transform_4(%arg0: i32, %arg1: i32) -> (i32, i32) {
    %c0_i32 = arith.constant 0 : i32
    %c0_i32_0 = arith.constant 0 : i32
    %c0_i32_1 = arith.constant 0 : i32
    return %c0_i32, %c0_i32_0 : i32, i32
  }
  func.func @transform_5(%arg0: i32, %arg1: i32) -> (i32, i32) {
    %c0_i32 = arith.constant 0 : i32
    %c0_i32_0 = arith.constant 0 : i32
    %c0_i32_1 = arith.constant 0 : i32
    return %c0_i32, %c0_i32_0 : i32, i32
  }
  func.func @transform_6(%arg0: i32, %arg1: i32) -> (i32, i32) {
    %c0_i32 = arith.constant 0 : i32
    %c0_i32_0 = arith.constant 0 : i32
    %c0_i32_1 = arith.constant 0 : i32
    return %c0_i32, %c0_i32_0 : i32, i32
  }
  func.func @transform_7(%arg0: i32, %arg1: i32) -> (i32, i32) {
    %c0_i32 = arith.constant 0 : i32
    %c0_i32_0 = arith.constant 0 : i32
    return %c0_i32, %arg0 : i32, i32
  }
}

module attributes {stable_mosaic.version = 11 : i64} {
  func.func @_fused_mlp_kernel(%arg0: i32, %arg1: memref<768x32xbf16, #tpu.memory_space<vmem>>, %arg2: memref<256x768xbf16, #tpu.memory_space<vmem>>, %arg3: memref<256x1xf32, #tpu.memory_space<vmem>>, %arg4: memref<256x256xbf16, #tpu.memory_space<vmem>>, %arg5: memref<256x1xf32, #tpu.memory_space<vmem>>, %arg6: memref<256x32xbf16, #tpu.memory_space<vmem>>) attributes {dimension_semantics = [#tpu.dimension_semantics<parallel>], iteration_bounds = array<i64: 1>, scalar_prefetch = 0 : i64, scratch_operands = 0 : i64, tpu.core_type = #tpu.core_type<tc>, window_params = [{transform_indices = @transform_0, window_bounds = array<i64: 768, 32>}, {pipeline_mode = #tpu.pipeline_mode<synchronous>, transform_indices = @transform_1, window_bounds = array<i64: 256, 768>}, {pipeline_mode = #tpu.pipeline_mode<synchronous>, transform_indices = @transform_2, window_bounds = array<i64: 256, 1>}, {pipeline_mode = #tpu.pipeline_mode<synchronous>, transform_indices = @transform_3, window_bounds = array<i64: 256, 256>}, {pipeline_mode = #tpu.pipeline_mode<synchronous>, transform_indices = @transform_4, window_bounds = array<i64: 256, 1>}, {transform_indices = @transform_5, window_bounds = array<i64: 256, 32>}]} {
    %c0 = arith.constant 0 : index
    %c0_0 = arith.constant 0 : index
    %0 = vector.load %arg1[%c0, %c0_0] : memref<768x32xbf16, #tpu.memory_space<vmem>>, vector<768x32xbf16>
    %c0_1 = arith.constant 0 : index
    %c0_2 = arith.constant 0 : index
    %1 = vector.load %arg2[%c0_1, %c0_2] : memref<256x768xbf16, #tpu.memory_space<vmem>>, vector<256x768xbf16>
    %c0_3 = arith.constant 0 : index
    %c0_4 = arith.constant 0 : index
    %2 = vector.load %arg3[%c0_3, %c0_4] : memref<256x1xf32, #tpu.memory_space<vmem>>, vector<256x1xf32>
    %cst = arith.constant dense<0.000000e+00> : vector<256x32xf32>
    %3 = tpu.matmul %1, %0, %cst {dimension_numbers = #tpu.dot_dimension_numbers<[1], [0], [0], [1], [0, 0, 1, 1], [], []>} : vector<256x768xbf16>, vector<768x32xbf16>, vector<256x32xf32> -> vector<256x32xf32>
    %4 = vector.broadcast %2 : vector<256x1xf32> to vector<256x32xf32>
    %5 = arith.addf %3, %4 : vector<256x32xf32>
    %cst_5 = arith.constant 0.000000e+00 : f32
    %6 = vector.broadcast %cst_5 : f32 to vector<256x32xf32>
    %7 = arith.maximumf %5, %6 : vector<256x32xf32>
    %8 = arith.truncf %7 : vector<256x32xf32> to vector<256x32xbf16>
    %c0_6 = arith.constant 0 : index
    %c0_7 = arith.constant 0 : index
    %9 = vector.load %arg4[%c0_6, %c0_7] : memref<256x256xbf16, #tpu.memory_space<vmem>>, vector<256x256xbf16>
    %c0_8 = arith.constant 0 : index
    %c0_9 = arith.constant 0 : index
    %10 = vector.load %arg5[%c0_8, %c0_9] : memref<256x1xf32, #tpu.memory_space<vmem>>, vector<256x1xf32>
    %cst_10 = arith.constant dense<0.000000e+00> : vector<256x32xf32>
    %11 = tpu.matmul %9, %8, %cst_10 {dimension_numbers = #tpu.dot_dimension_numbers<[1], [0], [0], [1], [0, 0, 1, 1], [], []>} : vector<256x256xbf16>, vector<256x32xbf16>, vector<256x32xf32> -> vector<256x32xf32>
    %12 = vector.broadcast %10 : vector<256x1xf32> to vector<256x32xf32>
    %13 = arith.addf %11, %12 : vector<256x32xf32>
    %cst_11 = arith.constant 0.000000e+00 : f32
    %14 = vector.broadcast %cst_11 : f32 to vector<256x32xf32>
    %15 = arith.maximumf %13, %14 : vector<256x32xf32>
    %16 = arith.truncf %15 : vector<256x32xf32> to vector<256x32xbf16>
    %c0_12 = arith.constant 0 : index
    %c0_13 = arith.constant 0 : index
    %17 = vector.load %arg6[%c0_12, %c0_13] : memref<256x32xbf16, #tpu.memory_space<vmem>>, vector<256x32xbf16>
    tpu.vector_store %arg6[%c0_12, %c0_13], %16 {strides = array<i32>} : memref<256x32xbf16, #tpu.memory_space<vmem>>, vector<256x32xbf16>,
    return
  }
  func.func @transform_0(%arg0: i32) -> (i32, i32) {
    %c0_i32 = arith.constant 0 : i32
    %c0_i32_0 = arith.constant 0 : i32
    return %c0_i32, %arg0 : i32, i32
  }
  func.func @transform_1(%arg0: i32) -> (i32, i32) {
    %c0_i32 = arith.constant 0 : i32
    %c0_i32_0 = arith.constant 0 : i32
    %c0_i32_1 = arith.constant 0 : i32
    return %c0_i32, %c0_i32_0 : i32, i32
  }
  func.func @transform_2(%arg0: i32) -> (i32, i32) {
    %c0_i32 = arith.constant 0 : i32
    %c0_i32_0 = arith.constant 0 : i32
    %c0_i32_1 = arith.constant 0 : i32
    return %c0_i32, %c0_i32_0 : i32, i32
  }
  func.func @transform_3(%arg0: i32) -> (i32, i32) {
    %c0_i32 = arith.constant 0 : i32
    %c0_i32_0 = arith.constant 0 : i32
    %c0_i32_1 = arith.constant 0 : i32
    return %c0_i32, %c0_i32_0 : i32, i32
  }
  func.func @transform_4(%arg0: i32) -> (i32, i32) {
    %c0_i32 = arith.constant 0 : i32
    %c0_i32_0 = arith.constant 0 : i32
    %c0_i32_1 = arith.constant 0 : i32
    return %c0_i32, %c0_i32_0 : i32, i32
  }
  func.func @transform_5(%arg0: i32) -> (i32, i32) {
    %c0_i32 = arith.constant 0 : i32
    %c0_i32_0 = arith.constant 0 : i32
    return %c0_i32, %arg0 : i32, i32
  }
}

module attributes {stable_mosaic.version = 11 : i64} {
  func.func @_fused_mlp_kernel(%arg0: i32, %arg1: memref<384x64xbf16, #tpu.memory_space<vmem>>, %arg2: memref<256x384xbf16, #tpu.memory_space<vmem>>, %arg3: memref<256x1xf32, #tpu.memory_space<vmem>>, %arg4: memref<128x256xbf16, #tpu.memory_space<vmem>>, %arg5: memref<128x1xf32, #tpu.memory_space<vmem>>, %arg6: memref<128x64xbf16, #tpu.memory_space<vmem>>) attributes {dimension_semantics = [#tpu.dimension_semantics<parallel>], iteration_bounds = array<i64: 1>, scalar_prefetch = 0 : i64, scratch_operands = 0 : i64, tpu.core_type = #tpu.core_type<tc>, window_params = [{transform_indices = @transform_0, window_bounds = array<i64: 384, 64>}, {pipeline_mode = #tpu.pipeline_mode<synchronous>, transform_indices = @transform_1, window_bounds = array<i64: 256, 384>}, {pipeline_mode = #tpu.pipeline_mode<synchronous>, transform_indices = @transform_2, window_bounds = array<i64: 256, 1>}, {pipeline_mode = #tpu.pipeline_mode<synchronous>, transform_indices = @transform_3, window_bounds = array<i64: 128, 256>}, {pipeline_mode = #tpu.pipeline_mode<synchronous>, transform_indices = @transform_4, window_bounds = array<i64: 128, 1>}, {transform_indices = @transform_5, window_bounds = array<i64: 128, 64>}]} {
    %c0 = arith.constant 0 : index
    %c0_0 = arith.constant 0 : index
    %0 = vector.load %arg1[%c0, %c0_0] : memref<384x64xbf16, #tpu.memory_space<vmem>>, vector<384x64xbf16>
    %c0_1 = arith.constant 0 : index
    %c0_2 = arith.constant 0 : index
    %1 = vector.load %arg2[%c0_1, %c0_2] : memref<256x384xbf16, #tpu.memory_space<vmem>>, vector<256x384xbf16>
    %c0_3 = arith.constant 0 : index
    %c0_4 = arith.constant 0 : index
    %2 = vector.load %arg3[%c0_3, %c0_4] : memref<256x1xf32, #tpu.memory_space<vmem>>, vector<256x1xf32>
    %cst = arith.constant dense<0.000000e+00> : vector<256x64xf32>
    %3 = tpu.matmul %1, %0, %cst {dimension_numbers = #tpu.dot_dimension_numbers<[1], [0], [0], [1], [0, 0, 1, 1], [], []>} : vector<256x384xbf16>, vector<384x64xbf16>, vector<256x64xf32> -> vector<256x64xf32>
    %4 = vector.broadcast %2 : vector<256x1xf32> to vector<256x64xf32>
    %5 = arith.addf %3, %4 : vector<256x64xf32>
    %cst_5 = arith.constant 0.000000e+00 : f32
    %6 = vector.broadcast %cst_5 : f32 to vector<256x64xf32>
    %7 = arith.maximumf %5, %6 : vector<256x64xf32>
    %8 = arith.truncf %7 : vector<256x64xf32> to vector<256x64xbf16>
    %c0_6 = arith.constant 0 : index
    %c0_7 = arith.constant 0 : index
    %9 = vector.load %arg4[%c0_6, %c0_7] : memref<128x256xbf16, #tpu.memory_space<vmem>>, vector<128x256xbf16>
    %c0_8 = arith.constant 0 : index
    %c0_9 = arith.constant 0 : index
    %10 = vector.load %arg5[%c0_8, %c0_9] : memref<128x1xf32, #tpu.memory_space<vmem>>, vector<128x1xf32>
    %cst_10 = arith.constant dense<0.000000e+00> : vector<128x64xf32>
    %11 = tpu.matmul %9, %8, %cst_10 {dimension_numbers = #tpu.dot_dimension_numbers<[1], [0], [0], [1], [0, 0, 1, 1], [], []>} : vector<128x256xbf16>, vector<256x64xbf16>, vector<128x64xf32> -> vector<128x64xf32>
    %12 = vector.broadcast %10 : vector<128x1xf32> to vector<128x64xf32>
    %13 = arith.addf %11, %12 : vector<128x64xf32>
    %cst_11 = arith.constant 0.000000e+00 : f32
    %14 = vector.broadcast %cst_11 : f32 to vector<128x64xf32>
    %15 = arith.maximumf %13, %14 : vector<128x64xf32>
    %16 = arith.truncf %15 : vector<128x64xf32> to vector<128x64xbf16>
    %c0_12 = arith.constant 0 : index
    %c0_13 = arith.constant 0 : index
    %17 = vector.load %arg6[%c0_12, %c0_13] : memref<128x64xbf16, #tpu.memory_space<vmem>>, vector<128x64xbf16>
    tpu.vector_store %arg6[%c0_12, %c0_13], %16 {strides = array<i32>} : memref<128x64xbf16, #tpu.memory_space<vmem>>, vector<128x64xbf16>,
    return
  }
  func.func @transform_0(%arg0: i32) -> (i32, i32) {
    %c0_i32 = arith.constant 0 : i32
    %c0_i32_0 = arith.constant 0 : i32
    return %c0_i32, %arg0 : i32, i32
  }
  func.func @transform_1(%arg0: i32) -> (i32, i32) {
    %c0_i32 = arith.constant 0 : i32
    %c0_i32_0 = arith.constant 0 : i32
    %c0_i32_1 = arith.constant 0 : i32
    return %c0_i32, %c0_i32_0 : i32, i32
  }
  func.func @transform_2(%arg0: i32) -> (i32, i32) {
    %c0_i32 = arith.constant 0 : i32
    %c0_i32_0 = arith.constant 0 : i32
    %c0_i32_1 = arith.constant 0 : i32
    return %c0_i32, %c0_i32_0 : i32, i32
  }
  func.func @transform_3(%arg0: i32) -> (i32, i32) {
    %c0_i32 = arith.constant 0 : i32
    %c0_i32_0 = arith.constant 0 : i32
    %c0_i32_1 = arith.constant 0 : i32
    return %c0_i32, %c0_i32_0 : i32, i32
  }
  func.func @transform_4(%arg0: i32) -> (i32, i32) {
    %c0_i32 = arith.constant 0 : i32
    %c0_i32_0 = arith.constant 0 : i32
    %c0_i32_1 = arith.constant 0 : i32
    return %c0_i32, %c0_i32_0 : i32, i32
  }
  func.func @transform_5(%arg0: i32) -> (i32, i32) {
    %c0_i32 = arith.constant 0 : i32
    %c0_i32_0 = arith.constant 0 : i32
    return %c0_i32, %arg0 : i32, i32
  }
}

module attributes {stable_mosaic.version = 11 : i64} {
  func.func @_fused_mlp_kernel(%arg0: i32, %arg1: memref<192x128xbf16, #tpu.memory_space<vmem>>, %arg2: memref<128x192xbf16, #tpu.memory_space<vmem>>, %arg3: memref<128x1xf32, #tpu.memory_space<vmem>>, %arg4: memref<128x128xbf16, #tpu.memory_space<vmem>>, %arg5: memref<128x1xf32, #tpu.memory_space<vmem>>, %arg6: memref<128x128xbf16, #tpu.memory_space<vmem>>, %arg7: memref<128x1xf32, #tpu.memory_space<vmem>>, %arg8: memref<128x128xbf16, #tpu.memory_space<vmem>>) attributes {dimension_semantics = [#tpu.dimension_semantics<parallel>], iteration_bounds = array<i64: 1>, scalar_prefetch = 0 : i64, scratch_operands = 0 : i64, tpu.core_type = #tpu.core_type<tc>, window_params = [{transform_indices = @transform_0, window_bounds = array<i64: 192, 128>}, {pipeline_mode = #tpu.pipeline_mode<synchronous>, transform_indices = @transform_1, window_bounds = array<i64: 128, 192>}, {pipeline_mode = #tpu.pipeline_mode<synchronous>, transform_indices = @transform_2, window_bounds = array<i64: 128, 1>}, {pipeline_mode = #tpu.pipeline_mode<synchronous>, transform_indices = @transform_3, window_bounds = array<i64: 128, 128>}, {pipeline_mode = #tpu.pipeline_mode<synchronous>, transform_indices = @transform_4, window_bounds = array<i64: 128, 1>}, {pipeline_mode = #tpu.pipeline_mode<synchronous>, transform_indices = @transform_5, window_bounds = array<i64: 128, 128>}, {pipeline_mode = #tpu.pipeline_mode<synchronous>, transform_indices = @transform_6, window_bounds = array<i64: 128, 1>}, {transform_indices = @transform_7, window_bounds = array<i64: 128, 128>}]} {
    %c0 = arith.constant 0 : index
    %c0_0 = arith.constant 0 : index
    %0 = vector.load %arg1[%c0, %c0_0] : memref<192x128xbf16, #tpu.memory_space<vmem>>, vector<192x128xbf16>
    %c0_1 = arith.constant 0 : index
    %c0_2 = arith.constant 0 : index
    %1 = vector.load %arg2[%c0_1, %c0_2] : memref<128x192xbf16, #tpu.memory_space<vmem>>, vector<128x192xbf16>
    %c0_3 = arith.constant 0 : index
    %c0_4 = arith.constant 0 : index
    %2 = vector.load %arg3[%c0_3, %c0_4] : memref<128x1xf32, #tpu.memory_space<vmem>>, vector<128x1xf32>
    %cst = arith.constant dense<0.000000e+00> : vector<128x128xf32>
    %3 = tpu.matmul %1, %0, %cst {dimension_numbers = #tpu.dot_dimension_numbers<[1], [0], [0], [1], [0, 0, 1, 1], [], []>} : vector<128x192xbf16>, vector<192x128xbf16>, vector<128x128xf32> -> vector<128x128xf32>
    %4 = vector.broadcast %2 : vector<128x1xf32> to vector<128x128xf32>
    %5 = arith.addf %3, %4 : vector<128x128xf32>
    %cst_5 = arith.constant 0.000000e+00 : f32
    %6 = vector.broadcast %cst_5 : f32 to vector<128x128xf32>
    %7 = arith.maximumf %5, %6 : vector<128x128xf32>
    %8 = arith.truncf %7 : vector<128x128xf32> to vector<128x128xbf16>
    %c0_6 = arith.constant 0 : index
    %c0_7 = arith.constant 0 : index
    %9 = vector.load %arg4[%c0_6, %c0_7] : memref<128x128xbf16, #tpu.memory_space<vmem>>, vector<128x128xbf16>
    %c0_8 = arith.constant 0 : index
    %c0_9 = arith.constant 0 : index
    %10 = vector.load %arg5[%c0_8, %c0_9] : memref<128x1xf32, #tpu.memory_space<vmem>>, vector<128x1xf32>
    %cst_10 = arith.constant dense<0.000000e+00> : vector<128x128xf32>
    %11 = tpu.matmul %9, %8, %cst_10 {dimension_numbers = #tpu.dot_dimension_numbers<[1], [0], [0], [1], [0, 0, 1, 1], [], []>} : vector<128x128xbf16>, vector<128x128xbf16>, vector<128x128xf32> -> vector<128x128xf32>
    %12 = vector.broadcast %10 : vector<128x1xf32> to vector<128x128xf32>
    %13 = arith.addf %11, %12 : vector<128x128xf32>
    %cst_11 = arith.constant 0.000000e+00 : f32
    %14 = vector.broadcast %cst_11 : f32 to vector<128x128xf32>
    %15 = arith.maximumf %13, %14 : vector<128x128xf32>
    %16 = arith.truncf %15 : vector<128x128xf32> to vector<128x128xbf16>
    %c0_12 = arith.constant 0 : index
    %c0_13 = arith.constant 0 : index
    %17 = vector.load %arg6[%c0_12, %c0_13] : memref<128x128xbf16, #tpu.memory_space<vmem>>, vector<128x128xbf16>
    %c0_14 = arith.constant 0 : index
    %c0_15 = arith.constant 0 : index
    %18 = vector.load %arg7[%c0_14, %c0_15] : memref<128x1xf32, #tpu.memory_space<vmem>>, vector<128x1xf32>
    %cst_16 = arith.constant dense<0.000000e+00> : vector<128x128xf32>
    %19 = tpu.matmul %17, %16, %cst_16 {dimension_numbers = #tpu.dot_dimension_numbers<[1], [0], [0], [1], [0, 0, 1, 1], [], []>} : vector<128x128xbf16>, vector<128x128xbf16>, vector<128x128xf32> -> vector<128x128xf32>
    %20 = vector.broadcast %18 : vector<128x1xf32> to vector<128x128xf32>
    %21 = arith.addf %19, %20 : vector<128x128xf32>
    %cst_17 = arith.constant 0.000000e+00 : f32
    %22 = vector.broadcast %cst_17 : f32 to vector<128x128xf32>
    %23 = arith.maximumf %21, %22 : vector<128x128xf32>
    %24 = arith.truncf %23 : vector<128x128xf32> to vector<128x128xbf16>
    %c0_18 = arith.constant 0 : index
    %c0_19 = arith.constant 0 : index
    %25 = vector.load %arg8[%c0_18, %c0_19] : memref<128x128xbf16, #tpu.memory_space<vmem>>, vector<128x128xbf16>
    tpu.vector_store %arg8[%c0_18, %c0_19], %24 {strides = array<i32>} : memref<128x128xbf16, #tpu.memory_space<vmem>>, vector<128x128xbf16>,
    return
  }
  func.func @transform_0(%arg0: i32) -> (i32, i32) {
    %c0_i32 = arith.constant 0 : i32
    %c0_i32_0 = arith.constant 0 : i32
    return %c0_i32, %arg0 : i32, i32
  }
  func.func @transform_1(%arg0: i32) -> (i32, i32) {
    %c0_i32 = arith.constant 0 : i32
    %c0_i32_0 = arith.constant 0 : i32
    %c0_i32_1 = arith.constant 0 : i32
    return %c0_i32, %c0_i32_0 : i32, i32
  }
  func.func @transform_2(%arg0: i32) -> (i32, i32) {
    %c0_i32 = arith.constant 0 : i32
    %c0_i32_0 = arith.constant 0 : i32
    %c0_i32_1 = arith.constant 0 : i32
    return %c0_i32, %c0_i32_0 : i32, i32
  }
  func.func @transform_3(%arg0: i32) -> (i32, i32) {
    %c0_i32 = arith.constant 0 : i32
    %c0_i32_0 = arith.constant 0 : i32
    %c0_i32_1 = arith.constant 0 : i32
    return %c0_i32, %c0_i32_0 : i32, i32
  }
  func.func @transform_4(%arg0: i32) -> (i32, i32) {
    %c0_i32 = arith.constant 0 : i32
    %c0_i32_0 = arith.constant 0 : i32
    %c0_i32_1 = arith.constant 0 : i32
    return %c0_i32, %c0_i32_0 : i32, i32
  }
  func.func @transform_5(%arg0: i32) -> (i32, i32) {
    %c0_i32 = arith.constant 0 : i32
    %c0_i32_0 = arith.constant 0 : i32
    %c0_i32_1 = arith.constant 0 : i32
    return %c0_i32, %c0_i32_0 : i32, i32
  }
  func.func @transform_6(%arg0: i32) -> (i32, i32) {
    %c0_i32 = arith.constant 0 : i32
    %c0_i32_0 = arith.constant 0 : i32
    %c0_i32_1 = arith.constant 0 : i32
    return %c0_i32, %c0_i32_0 : i32, i32
  }
  func.func @transform_7(%arg0: i32) -> (i32, i32) {
    %c0_i32 = arith.constant 0 : i32
    %c0_i32_0 = arith.constant 0 : i32
    return %c0_i32, %arg0 : i32, i32
  }
}

module attributes {stable_mosaic.version = 11 : i64} {
  func.func @_fused_mlp_kernel(%arg0: i32, %arg1: memref<136x128xbf16, #tpu.memory_space<vmem>>, %arg2: memref<256x136xbf16, #tpu.memory_space<vmem>>, %arg3: memref<256x1xf32, #tpu.memory_space<vmem>>, %arg4: memref<128x256xbf16, #tpu.memory_space<vmem>>, %arg5: memref<128x1xf32, #tpu.memory_space<vmem>>, %arg6: memref<64x128xbf16, #tpu.memory_space<vmem>>, %arg7: memref<64x1xf32, #tpu.memory_space<vmem>>, %arg8: memref<8x64xbf16, #tpu.memory_space<vmem>>, %arg9: memref<8x1xf32, #tpu.memory_space<vmem>>, %arg10: memref<8x128xf32, #tpu.memory_space<vmem>>) attributes {dimension_semantics = [#tpu.dimension_semantics<parallel>], iteration_bounds = array<i64: 1>, scalar_prefetch = 0 : i64, scratch_operands = 0 : i64, tpu.core_type = #tpu.core_type<tc>, window_params = [{transform_indices = @transform_0, window_bounds = array<i64: 136, 128>}, {pipeline_mode = #tpu.pipeline_mode<synchronous>, transform_indices = @transform_1, window_bounds = array<i64: 256, 136>}, {pipeline_mode = #tpu.pipeline_mode<synchronous>, transform_indices = @transform_2, window_bounds = array<i64: 256, 1>}, {pipeline_mode = #tpu.pipeline_mode<synchronous>, transform_indices = @transform_3, window_bounds = array<i64: 128, 256>}, {pipeline_mode = #tpu.pipeline_mode<synchronous>, transform_indices = @transform_4, window_bounds = array<i64: 128, 1>}, {pipeline_mode = #tpu.pipeline_mode<synchronous>, transform_indices = @transform_5, window_bounds = array<i64: 64, 128>}, {pipeline_mode = #tpu.pipeline_mode<synchronous>, transform_indices = @transform_6, window_bounds = array<i64: 64, 1>}, {pipeline_mode = #tpu.pipeline_mode<synchronous>, transform_indices = @transform_7, window_bounds = array<i64: 8, 64>}, {pipeline_mode = #tpu.pipeline_mode<synchronous>, transform_indices = @transform_8, window_bounds = array<i64: 8, 1>}, {transform_indices = @transform_9, window_bounds = array<i64: 8, 128>}]} {
    %c0 = arith.constant 0 : index
    %c0_0 = arith.constant 0 : index
    %0 = vector.load %arg1[%c0, %c0_0] : memref<136x128xbf16, #tpu.memory_space<vmem>>, vector<136x128xbf16>
    %c0_1 = arith.constant 0 : index
    %c0_2 = arith.constant 0 : index
    %1 = vector.load %arg2[%c0_1, %c0_2] : memref<256x136xbf16, #tpu.memory_space<vmem>>, vector<256x136xbf16>
    %c0_3 = arith.constant 0 : index
    %c0_4 = arith.constant 0 : index
    %2 = vector.load %arg3[%c0_3, %c0_4] : memref<256x1xf32, #tpu.memory_space<vmem>>, vector<256x1xf32>
    %cst = arith.constant dense<0.000000e+00> : vector<256x128xf32>
    %3 = tpu.matmul %1, %0, %cst {dimension_numbers = #tpu.dot_dimension_numbers<[1], [0], [0], [1], [0, 0, 1, 1], [], []>} : vector<256x136xbf16>, vector<136x128xbf16>, vector<256x128xf32> -> vector<256x128xf32>
    %4 = vector.broadcast %2 : vector<256x1xf32> to vector<256x128xf32>
    %5 = arith.addf %3, %4 : vector<256x128xf32>
    %cst_5 = arith.constant 0.000000e+00 : f32
    %6 = vector.broadcast %cst_5 : f32 to vector<256x128xf32>
    %7 = arith.maximumf %5, %6 : vector<256x128xf32>
    %8 = arith.truncf %7 : vector<256x128xf32> to vector<256x128xbf16>
    %c0_6 = arith.constant 0 : index
    %c0_7 = arith.constant 0 : index
    %9 = vector.load %arg4[%c0_6, %c0_7] : memref<128x256xbf16, #tpu.memory_space<vmem>>, vector<128x256xbf16>
    %c0_8 = arith.constant 0 : index
    %c0_9 = arith.constant 0 : index
    %10 = vector.load %arg5[%c0_8, %c0_9] : memref<128x1xf32, #tpu.memory_space<vmem>>, vector<128x1xf32>
    %cst_10 = arith.constant dense<0.000000e+00> : vector<128x128xf32>
    %11 = tpu.matmul %9, %8, %cst_10 {dimension_numbers = #tpu.dot_dimension_numbers<[1], [0], [0], [1], [0, 0, 1, 1], [], []>} : vector<128x256xbf16>, vector<256x128xbf16>, vector<128x128xf32> -> vector<128x128xf32>
    %12 = vector.broadcast %10 : vector<128x1xf32> to vector<128x128xf32>
    %13 = arith.addf %11, %12 : vector<128x128xf32>
    %cst_11 = arith.constant 0.000000e+00 : f32
    %14 = vector.broadcast %cst_11 : f32 to vector<128x128xf32>
    %15 = arith.maximumf %13, %14 : vector<128x128xf32>
    %16 = arith.truncf %15 : vector<128x128xf32> to vector<128x128xbf16>
    %c0_12 = arith.constant 0 : index
    %c0_13 = arith.constant 0 : index
    %17 = vector.load %arg6[%c0_12, %c0_13] : memref<64x128xbf16, #tpu.memory_space<vmem>>, vector<64x128xbf16>
    %c0_14 = arith.constant 0 : index
    %c0_15 = arith.constant 0 : index
    %18 = vector.load %arg7[%c0_14, %c0_15] : memref<64x1xf32, #tpu.memory_space<vmem>>, vector<64x1xf32>
    %cst_16 = arith.constant dense<0.000000e+00> : vector<64x128xf32>
    %19 = tpu.matmul %17, %16, %cst_16 {dimension_numbers = #tpu.dot_dimension_numbers<[1], [0], [0], [1], [0, 0, 1, 1], [], []>} : vector<64x128xbf16>, vector<128x128xbf16>, vector<64x128xf32> -> vector<64x128xf32>
    %20 = vector.broadcast %18 : vector<64x1xf32> to vector<64x128xf32>
    %21 = arith.addf %19, %20 : vector<64x128xf32>
    %cst_17 = arith.constant 0.000000e+00 : f32
    %22 = vector.broadcast %cst_17 : f32 to vector<64x128xf32>
    %23 = arith.maximumf %21, %22 : vector<64x128xf32>
    %24 = arith.truncf %23 : vector<64x128xf32> to vector<64x128xbf16>
    %c0_18 = arith.constant 0 : index
    %c0_19 = arith.constant 0 : index
    %25 = vector.load %arg8[%c0_18, %c0_19] : memref<8x64xbf16, #tpu.memory_space<vmem>>, vector<8x64xbf16>
    %c0_20 = arith.constant 0 : index
    %c0_21 = arith.constant 0 : index
    %26 = vector.load %arg9[%c0_20, %c0_21] : memref<8x1xf32, #tpu.memory_space<vmem>>, vector<8x1xf32>
    %cst_22 = arith.constant dense<0.000000e+00> : vector<8x128xf32>
    %27 = tpu.matmul %25, %24, %cst_22 {dimension_numbers = #tpu.dot_dimension_numbers<[1], [0], [0], [1], [0, 0, 1, 1], [], []>} : vector<8x64xbf16>, vector<64x128xbf16>, vector<8x128xf32> -> vector<8x128xf32>
    %28 = vector.broadcast %26 : vector<8x1xf32> to vector<8x128xf32>
    %29 = arith.addf %27, %28 : vector<8x128xf32>
    %c0_23 = arith.constant 0 : index
    %c0_24 = arith.constant 0 : index
    %30 = vector.load %arg10[%c0_23, %c0_24] : memref<8x128xf32, #tpu.memory_space<vmem>>, vector<8x128xf32>
    tpu.vector_store %arg10[%c0_23, %c0_24], %29 {strides = array<i32>} : memref<8x128xf32, #tpu.memory_space<vmem>>, vector<8x128xf32>,
    return
  }
  func.func @transform_0(%arg0: i32) -> (i32, i32) {
    %c0_i32 = arith.constant 0 : i32
    %c0_i32_0 = arith.constant 0 : i32
    return %c0_i32, %arg0 : i32, i32
  }
  func.func @transform_1(%arg0: i32) -> (i32, i32) {
    %c0_i32 = arith.constant 0 : i32
    %c0_i32_0 = arith.constant 0 : i32
    %c0_i32_1 = arith.constant 0 : i32
    return %c0_i32, %c0_i32_0 : i32, i32
  }
  func.func @transform_2(%arg0: i32) -> (i32, i32) {
    %c0_i32 = arith.constant 0 : i32
    %c0_i32_0 = arith.constant 0 : i32
    %c0_i32_1 = arith.constant 0 : i32
    return %c0_i32, %c0_i32_0 : i32, i32
  }
  func.func @transform_3(%arg0: i32) -> (i32, i32) {
    %c0_i32 = arith.constant 0 : i32
    %c0_i32_0 = arith.constant 0 : i32
    %c0_i32_1 = arith.constant 0 : i32
    return %c0_i32, %c0_i32_0 : i32, i32
  }
  func.func @transform_4(%arg0: i32) -> (i32, i32) {
    %c0_i32 = arith.constant 0 : i32
    %c0_i32_0 = arith.constant 0 : i32
    %c0_i32_1 = arith.constant 0 : i32
    return %c0_i32, %c0_i32_0 : i32, i32
  }
  func.func @transform_5(%arg0: i32) -> (i32, i32) {
    %c0_i32 = arith.constant 0 : i32
    %c0_i32_0 = arith.constant 0 : i32
    %c0_i32_1 = arith.constant 0 : i32
    return %c0_i32, %c0_i32_0 : i32, i32
  }
  func.func @transform_6(%arg0: i32) -> (i32, i32) {
    %c0_i32 = arith.constant 0 : i32
    %c0_i32_0 = arith.constant 0 : i32
    %c0_i32_1 = arith.constant 0 : i32
    return %c0_i32, %c0_i32_0 : i32, i32
  }
  func.func @transform_7(%arg0: i32) -> (i32, i32) {
    %c0_i32 = arith.constant 0 : i32
    %c0_i32_0 = arith.constant 0 : i32
    %c0_i32_1 = arith.constant 0 : i32
    return %c0_i32, %c0_i32_0 : i32, i32
  }
  func.func @transform_8(%arg0: i32) -> (i32, i32) {
    %c0_i32 = arith.constant 0 : i32
    %c0_i32_0 = arith.constant 0 : i32
    %c0_i32_1 = arith.constant 0 : i32
    return %c0_i32, %c0_i32_0 : i32, i32
  }
  func.func @transform_9(%arg0: i32) -> (i32, i32) {
    %c0_i32 = arith.constant 0 : i32
    %c0_i32_0 = arith.constant 0 : i32
    return %c0_i32, %arg0 : i32, i32
  }
}

</mosaic_0001>

<bundles_post_ra>
// kernel: custom-call.17
= control target key start
LH: loop header
LB: loop body
LE: loop exit
PB: predicated region body
PF: predicated region fallthrough
CT: control target
= control target key end

     0   :  { %s6_s0 = inlined_call_operand.vmem [shape: f32[2,64], index: 0, kind: output, shape index: {}]  }

// kernel: custom-call.18
= control target key start
LH: loop header
LB: loop body
LE: loop exit
PB: predicated region body
PF: predicated region fallthrough
CT: control target
= control target key end

     0   :  { %s6_s0 = inlined_call_operand.vmem [shape: f32[2,32], index: 0, kind: output, shape index: {}]  }

// kernel: custom-call.19
= control target key start
LH: loop header
LB: loop body
LE: loop exit
PB: predicated region body
PF: predicated region fallthrough
CT: control target
= control target key end

     0   :  { %s6_s0 = inlined_call_operand.vmem [shape: f32[2,16], index: 0, kind: output, shape index: {}]  }

// kernel: a_call__.9
= control target key start
LH: loop header
LB: loop body
LE: loop exit
PB: predicated region body
PF: predicated region fallthrough
CT: control target
= control target key end

     0   :  { %s1074_s24 = smov 0   ;;  %s1076_s25 = smov 0   ;;  %s1238_s0 = inlined_call_operand.vmem [shape: bf16[32,8,128], index: 0, kind: input, shape index: {}]   ;;  %s1239_s1 = inlined_call_operand.vmem [shape: bf16[32,8], index: 1, kind: input, shape index: {}]   ;;  %s1240_s2 = inlined_call_operand.vmem [shape: f32[32,1], index: 2, kind: input, shape index: {}, may-alias: {2,4}]   ;;  %s1241_s3 = inlined_call_operand.vmem [shape: bf16[32,32], index: 3, kind: input, shape index: {}]   ;;  %s1242_s4 = inlined_call_operand.vmem [shape: f32[32,1], index: 4, kind: input, shape index: {}, may-alias: {2,4}]   ;;  %s1243_s5 = inlined_call_operand.vmem [shape: bf16[64,32], index: 5, kind: input, shape index: {}]   ;;  %s1244_s6 = inlined_call_operand.vmem [shape: f32[64,1], index: 6, kind: input, shape index: {}]   ;;  %s1245_s7 = inlined_call_operand.vmem [shape: bf16[64,128], index: 7, kind: output, shape index: {}]  }
   0x1   :  { %s1078_s26 = smov 0  }
   0x2 LB: > { %s26_s27 = sadd.s32 1, %s1027_s25  ;;  %p829_p0 = scmp.ge.s32.totalorder %s1031_s26, 1  ;;  %s1031_s26 = sphi %s1078_s26, %s17_s26   ;;  %s1027_s25 = sphi %s1076_s25, %s1247_s25   ;;  %s1023_s24 = sphi %s1074_s24, %s1246_s24  }
   0x3   : > { %p27_p1 = scmp.ge.s32.totalorder %s26_s27, 32  ;;  %p253_p2 = scmp.lt.s32.totalorder %s1031_s26, 33 }
   0x5   : > { %s1249_s27 = smov (%p27_p1, %s26_s27), 0  ;;  %p254_p3 = pnand %p829_p0, %p253_p2 }
   0x6   : > { %p286_p4 = scmp.lt.s32.totalorder (!%p254_p3), %s1023_s24, 31  ;;  %p847_p5 = scmp.ne.s32.totalorder (!%p254_p3), %s1023_s24, 0 }
   0x7   : > { %257 = sbr.rel (%p254_p3) target bundleno = 672 (0x2a0), region = 48 }
   0xc   : > { %v1001_v0 = vld [vmem:[%s1239_s1] sm:$0xff]   ;;  %vm337_vm0 = vcmask 64512   ;;  %s287_s30 = scalar_select %p286_p4, %s1023_s24, 31  ;;  %v305_v1 = vld [vmem:[%s1240_s2 + $0x10] sm:$0xff]  ;;  %v1033_v2 = vmov 0   ;;  %vm344_vm1 = vcmask 1043456  }
   0xd   : > { %949 = vmatprep.mubr.msk.bf16.mxu1 %vm337_vm0, %v1001_v0  ;;  %999 = vset.pattern.permute.xlu0 %v1033_v2  ;;  %v303_v3 = vld [vmem:[%s1240_s2] sm:$0xff]  ;;  %v306_v4 = vld [vmem:[%s1240_s2 + $0x18] sm:$0xff]  ;;  %v304_v6 = vld [vmem:[%s1240_s2 + $0x8] sm:$0xff]  ;;  %vm441_vm2 = vcmask 261120  }
   0xe   : > { %s830_s12 = sshll.u32 %s287_s30, 2  ;;  %319 = vperm.xlu0 %999, %v305_v1   ;;  %1000 = vset.pattern.permute.xlu1 %v1033_v2  ;;  %v1002_v8 = vld [vmem:[%s1239_s1 + $0x8] sm:$0xff]   ;;  %v409_v9 = vld [vmem:[%s1242_s4 + $0x10] sm:$0xff]  ;;  %v410_v10 = vld [vmem:[%s1242_s4 + $0x18] sm:$0xff] }
   0xf   : > { %s292_s15 = scalar_lea.vmem %s1238_s0, %s830_s12  ;;  %309 = vperm.xlu1 %1000, %v303_v3   ;;  %v407_v11 = vld [vmem:[%s1242_s4] sm:$0xff]  ;;  %v408_v12 = vld [vmem:[%s1242_s4 + $0x8] sm:$0xff]  ;;  %v513_v15 = vld [vmem:[%s1244_s6 + $0x10] sm:$0xff] }
  0x10   : > { %v298_v5 = vld [vmem:[%s292_s15] sm:$0xf]  ;;  %v512_v14 = vld [vmem:[%s1244_s6 + $0x8] sm:$0xff]  ;;  %v514_v16 = vld [vmem:[%s1244_s6 + $0x18] sm:$0xff] }
  0x11   : > { %973 = vmatprep.subr.msk.bf16.mxu1 %vm344_vm1, %v298_v5  ;;  %v346_v7 = vsel %vm344_vm1, %v298_v5, 0  ;;  %v511_v13 = vld [vmem:[%s1244_s6] sm:$0xff]  ;;  %v516_v18 = vld [vmem:[%s1244_s6 + $0x28] sm:$0xff]  ;;  %v517_v19 = vld [vmem:[%s1244_s6 + $0x30] sm:$0xff] }
  0x12   : > { %948 = vmatpush3.bf16.msra.mxu1 %v346_v7  ;;  %324 = vperm.xlu0 %999, %v306_v4   ;;  %v515_v17 = vld [vmem:[%s1244_s6 + $0x20] sm:$0xff]  ;;  %v518_v20 = vld [vmem:[%s1244_s6 + $0x38] sm:$0xff]  ;;  %v1004_v40 = vld [vmem:[%s1241_s3 + $0x8] sm:$0xff]  }
  0x13   : > { %314 = vperm.xlu1 %1000, %v304_v6   ;;  %v1003_v21 = vld [vmem:[%s1241_s3] sm:$0xff]   ;;  %v1006_v60 = vld [vmem:[%s1243_s5 + $0x8] sm:$0xff]   ;;  %v1007_v61 = vld [vmem:[%s1243_s5 + $0x10] sm:$0xff]  }
  0x14   : > { %v1005_v41 = vld [vmem:[%s1243_s5] sm:$0xff]   ;;  %v1008_v62 = vld [vmem:[%s1243_s5 + $0x18] sm:$0xff]  }
  0x15   : > { %950 = vmatmul.mubr.msk.bf16.vlgmr.msra.gmra.mxu1 %vm337_vm0, %v1002_v8  ;;  %965 = vmatprep.mubr.msk.bf16.mxu0 %vm441_vm2, %v1005_v41 }
  0x16   : > { %423 = vperm.xlu0 %999, %v409_v9   ;;  %957 = vmatprep.mubr.msk.bf16.mxu1 %vm441_vm2, %v1003_v21 }
  0x17   : > { %428 = vperm.xlu1 %1000, %v410_v10  }
  0x1a   : > { %413 = vperm.xlu0 %999, %v407_v11  }
  0x1b   : > { %418 = vperm.xlu1 %1000, %v408_v12  }
  0x1e   : > { %521 = vperm.xlu0 %999, %v511_v13  }
  0x1f   : > { %526 = vperm.xlu1 %1000, %v512_v14  }
  0x22   : > { %531 = vperm.xlu0 %999, %v513_v15  }
  0x23   : > { %536 = vperm.xlu1 %1000, %v514_v16  }
  0x26   : > { %541 = vperm.xlu0 %999, %v515_v17  }
  0x27   : > { %546 = vperm.xlu1 %1000, %v516_v18  }
  0x2a   : > { %551 = vperm.xlu0 %999, %v517_v19  }
  0x2b   : > { %556 = vperm.xlu1 %1000, %v518_v20  }
  0x89   : > { %v320_v22 = vpop.permute.xlu0 %319 }
  0x8a   : > { %v310_v23 = vpop.permute.xlu1 %309 }
  0x8d   : > { %v325_v27 = vpop.permute.xlu0 %324 }
  0x8e   : > { %v315_v31 = vpop.permute.xlu1 %314 }
  0x91   : > { %v424_v42 = vpop.permute.xlu0 %423 }
  0x92   : > { %v429_v43 = vpop.permute.xlu1 %428 }
  0x95   : > { %v414_v47 = vpop.permute.xlu0 %413 }
  0x96   : > { %v419_v51 = vpop.permute.xlu1 %418 }
  0x99   : > { %v522_v63 = vpop.permute.xlu0 %521 }
  0x9a   : > { %v527_v0 = vpop.permute.xlu1 %526 }
  0x9d   : > { %v532_v1 = vpop.permute.xlu0 %531 }
  0x9e   : > { %v537_v2 = vpop.permute.xlu1 %536 }
  0xa1   : > { %v542_v5 = vpop.permute.xlu0 %541 }
  0xa2   : > { %v547_v12 = vpop.permute.xlu1 %546 }
  0xa5   : > { %v552_v16 = vpop.permute.xlu0 %551 }
  0xd5   : > { %v951_v24 = vpop.f32.mrf.mxu1 }
  0xd6   : > { %v391_v26 = vadd.f32 %v951_v24, %v320_v22 }
  0xd7   : > { %v382_v25 = vpop.f32.mrf.mxu1 }
  0xd8   : > { %v383_v29 = vadd.f32 %v382_v25, %v310_v23  ;;  %v399_v33 = vmax.f32 %v391_v26, 0.0  ;;  %v557_v23 = vpop.permute.xlu1 %556 }
  0xd9   : > { %v952_v28 = vpop.f32.mrf.mxu1 }
  0xda   : > { %v394_v30 = vadd.f32 %v952_v28, %v325_v27  ;;  %v397_v36 = vmax.f32 %v383_v29, 0.0 }
  0xdb   : > { %v385_v32 = vpop.f32.mrf.mxu1 }
  0xdc   : > { %v400_v34 = vmax.f32 %v394_v30, 0.0  ;;  %v386_v35 = vadd.f32 %v385_v32, %v315_v31 }
  0xde   : > { %v402_v37 = vpack.c.bf16 %v400_v34, %v399_v33  ;;  %v398_v38 = vmax.f32 %v386_v35, 0.0 }
  0xe0   : > { %v401_v39 = vpack.c.bf16 %v398_v38, %v397_v36  ;;  %953 = vmatprep.subr.bf16.mxu1 %v402_v37 }
  0xe1   : > { %954 = vmatpush3.bf16.msra.mxu1 %v402_v37 }
  0xe2   : > { %955 = vmatprep.subr.bf16.mxu1 %v401_v39 }
  0xe5   : > { %956 = vmatpush3.bf16.msra.mxu1 %v401_v39 }
  0xe8   : > { %958 = vmatmul.mubr.msk.bf16.vlgmr.msra.gmra.mxu1 %vm441_vm2, %v1004_v40 }
 0x1a8   : > { %v959_v44 = vpop.f32.mrf.mxu1 }
 0x1a9   : > { %v491_v46 = vadd.f32 %v959_v44, %v424_v42 }
 0x1aa   : > { %v482_v45 = vpop.f32.mrf.mxu1 }
 0x1ab   : > { %v483_v49 = vadd.f32 %v482_v45, %v414_v47  ;;  %v499_v53 = vmax.f32 %v491_v46, 0.0 }
 0x1ac   : > { %v960_v48 = vpop.f32.mrf.mxu1 }
 0x1ad   : > { %v494_v50 = vadd.f32 %v960_v48, %v429_v43  ;;  %v497_v56 = vmax.f32 %v483_v49, 0.0 }
 0x1ae   : > { %v485_v52 = vpop.f32.mrf.mxu1 }
 0x1af   : > { %v500_v54 = vmax.f32 %v494_v50, 0.0  ;;  %v486_v55 = vadd.f32 %v485_v52, %v419_v51 }
 0x1b1   : > { %v498_v57 = vmax.f32 %v486_v55, 0.0  ;;  %v502_v58 = vpack.c.bf16 %v500_v54, %v499_v53 }
 0x1b3   : > { %v501_v59 = vpack.c.bf16 %v498_v57, %v497_v56  ;;  %961 = vmatprep.subr.bf16.mxu0 %v502_v58 }
 0x1b4   : > { %962 = vmatpush3.bf16.msra.mxu0 %v502_v58 }
 0x1b5   : > { %963 = vmatprep.subr.bf16.mxu0 %v501_v59 }
 0x1b8   : > { %964 = vmatpush3.bf16.msra.mxu0 %v501_v59 }
 0x1bb   : > { %966 = vmatmul.mubr.msk.bf16.vlgmr.msra.gmra.mxu0 %vm441_vm2, %v1006_v60 }
 0x1bc   : > { %969 = vmatprep.mubr.msk.bf16.mxu0 %vm441_vm2, %v1007_v61 }
 0x1c3   : > { %970 = vmatmul.mubr.msk.bf16.gmra.mxu0 %vm441_vm2, %v1008_v62 }
 0x27b   : > { %v967_v3 = vpop.f32.mrf.mxu0 }
 0x27c   : > { %v634_v4 = vadd.f32 %v967_v3, %v532_v1 }
 0x27d   : > { %v625_v6 = vpop.f32.mrf.mxu0 }
 0x27e   : > { %v658_v7 = vmax.f32 %v634_v4, 0.0  ;;  %v626_v8 = vadd.f32 %v625_v6, %v522_v63 }
 0x27f   : > { %v968_v9 = vpop.f32.mrf.mxu0 }
 0x280   : > { %v656_v10 = vmax.f32 %v626_v8, 0.0  ;;  %v637_v11 = vadd.f32 %v968_v9, %v537_v2 }
 0x281   : > { %v628_v13 = vpop.f32.mrf.mxu0 }
 0x282   : > { %v659_v14 = vmax.f32 %v637_v11, 0.0  ;;  %v629_v15 = vadd.f32 %v628_v13, %v527_v0 }
 0x283   : > { %v971_v17 = vpop.f32.mrf.mxu0 }
 0x284   : > { %v657_v18 = vmax.f32 %v629_v15, 0.0  ;;  %v650_v19 = vadd.f32 %v971_v17, %v552_v16 }
 0x285   : > { %v641_v20 = vpop.f32.mrf.mxu0 }
 0x286   : > { %v662_v21 = vmax.f32 %v650_v19, 0.0  ;;  %v642_v22 = vadd.f32 %v641_v20, %v542_v5 }
 0x287   : > { %v972_v24 = vpop.f32.mrf.mxu0 }
 0x288   : > { %v660_v25 = vmax.f32 %v642_v22, 0.0  ;;  %v653_v26 = vadd.f32 %v972_v24, %v557_v23  ;;  %671 = sbr.rel (%p847_p5) target bundleno = 657 (0x291), region = 52 }
 0x289   : > { %v644_v27 = vpop.f32.mrf.mxu0 }
 0x28a   : > { %v663_v28 = vmax.f32 %v653_v26, 0.0  ;;  %v645_v29 = vadd.f32 %v644_v27, %v547_v12 }
 0x28c   : > { %v661_v30 = vmax.f32 %v645_v29, 0.0 }
 0x28d   : > { %v887_v31 = vpack.c.bf16 %v657_v18, %v656_v10  ;;  %v892_v32 = vpack.c.bf16 %v659_v14, %v658_v7  ;;  %v902_v34 = vpack.c.bf16 %v663_v28, %v662_v21 }
 0x28e   : > { %v897_v33 = vpack.c.bf16 %v661_v30, %v660_v25 }
 0x28f   : > { %888 = vst [vmem:[%s1245_s7] sm:$0xff] %v887_v31   ;;  %924 = vst [vmem:[%s1245_s7 + $0x8] sm:$0xff] %v892_v32  }
 0x290   : > { %925 = vst [vmem:[%s1245_s7 + $0x10] sm:$0xff] %v897_v33   ;;  %926 = vst [vmem:[%s1245_s7 + $0x18] sm:$0xff] %v902_v34  }
 0x291 PF: > { %p856_p6 = scmp.le.s32.totalorder %s1023_s24, 0 }
 0x293   : > { %711 = sbr.rel (%p856_p6) target bundleno = 672 (0x2a0), region = 56 }
 0x298   : > { %v712_v35 = vld [vmem:[%s1245_s7] sm:$0xf]  ;;  %v713_v36 = vld [vmem:[%s1245_s7 + $0x4] sm:$0xf]  ;;  %v876_v37 = vpack.c.bf16 %v656_v10, %v656_v10  ;;  %v877_v38 = vpack.c.bf16 %v657_v18, %v657_v18  ;;  %v714_v39 = vld [vmem:[%s1245_s7 + $0x8] sm:$0xf]  ;;  %v878_v40 = vpack.c.bf16 %v658_v7, %v658_v7  ;;  %v879_v41 = vpack.c.bf16 %v659_v14, %v659_v14 }
 0x299   : > { %v715_v42 = vld [vmem:[%s1245_s7 + $0xc] sm:$0xf]  ;;  %v716_v43 = vld [vmem:[%s1245_s7 + $0x10] sm:$0xf]  ;;  %v717_v44 = vld [vmem:[%s1245_s7 + $0x14] sm:$0xf]  ;;  %v880_v45 = vpack.c.bf16 %v660_v25, %v660_v25  ;;  %v881_v46 = vpack.c.bf16 %v661_v30, %v661_v30  ;;  %v882_v47 = vpack.c.bf16 %v662_v21, %v662_v21  ;;  %v883_v48 = vpack.c.bf16 %v663_v28, %v663_v28 }
 0x29a   : > { %v748_v49 = vmax.bf16 %v876_v37, %v712_v35  ;;  %v749_v50 = vmax.bf16 %v877_v38, %v713_v36  ;;  %v750_v51 = vmax.bf16 %v878_v40, %v714_v39  ;;  %v751_v52 = vmax.bf16 %v879_v41, %v715_v42  ;;  %v718_v53 = vld [vmem:[%s1245_s7 + $0x18] sm:$0xf]  ;;  %v719_v54 = vld [vmem:[%s1245_s7 + $0x1c] sm:$0xf] }
 0x29b   : > { %v752_v55 = vmax.bf16 %v880_v45, %v716_v43  ;;  %v753_v56 = vmax.bf16 %v881_v46, %v717_v44  ;;  %v754_v57 = vmax.bf16 %v882_v47, %v718_v53  ;;  %v755_v58 = vmax.bf16 %v883_v48, %v719_v54 }
 0x29c   : > { %v927_v59 = vcombine.low %v748_v49, %v749_v50  ;;  %v928_v60 = vcombine.low %v750_v51, %v751_v52 }
 0x29d   : > { %v930_v61 = vcombine.low %v752_v55, %v753_v56  ;;  %v932_v62 = vcombine.low %v754_v57, %v755_v58 }
 0x29e   : > { %908 = vst [vmem:[%s1245_s7] sm:$0xff] %v927_v59   ;;  %929 = vst [vmem:[%s1245_s7 + $0x8] sm:$0xff] %v928_v60  }
 0x29f   : > { %931 = vst [vmem:[%s1245_s7 + $0x10] sm:$0xff] %v930_v61   ;;  %933 = vst [vmem:[%s1245_s7 + $0x18] sm:$0xff] %v932_v62  }
 0x2a0 PF: > { %s17_s26 = sadd.s32 1, %s1031_s26   ;;  %s1246_s24 = smov %s1027_s25 }
 0x2a1   : > { %p14_p7 = scmp.ge.s32.totalorder %s17_s26, 34   ;;  %s1247_s25 = smov %s1249_s27 }
 0x2a3   :  { %16 = sbr.rel (!%p14_p7) target bundleno = 2 (0x2), region = 86 }

// kernel: a_call__.10
= control target key start
LH: loop header
LB: loop body
LE: loop exit
PB: predicated region body
PF: predicated region fallthrough
CT: control target
= control target key end

     0   :  { %s1534_s24 = smov 0   ;;  %s1536_s25 = smov 0   ;;  %s2002_s0 = inlined_call_operand.vmem [shape: bf16[32,72,64], index: 0, kind: input, shape index: {}]   ;;  %s2003_s1 = inlined_call_operand.vmem [shape: bf16[64,72], index: 1, kind: input, shape index: {}]   ;;  %s2004_s2 = inlined_call_operand.vmem [shape: f32[64,1], index: 2, kind: input, shape index: {}, may-alias: {2,4}]   ;;  %s2005_s3 = inlined_call_operand.vmem [shape: bf16[64,64], index: 3, kind: input, shape index: {}]   ;;  %s2006_s4 = inlined_call_operand.vmem [shape: f32[64,1], index: 4, kind: input, shape index: {}, may-alias: {2,4}]   ;;  %s2007_s5 = inlined_call_operand.vmem [shape: bf16[128,64], index: 5, kind: input, shape index: {}]   ;;  %s2008_s6 = inlined_call_operand.vmem [shape: f32[128,1], index: 6, kind: input, shape index: {}]   ;;  %s2009_s7 = inlined_call_operand.vmem [shape: bf16[128,64], index: 7, kind: output, shape index: {}]  }
   0x1   :  { %s1538_s26 = smov 0  }
   0x2 LB: > { %s26_s27 = sadd.s32 1, %s1487_s25  ;;  %p1224_p0 = scmp.ge.s32.totalorder %s1491_s26, 1  ;;  %s1491_s26 = sphi %s1538_s26, %s17_s26   ;;  %s1487_s25 = sphi %s1536_s25, %s2011_s25   ;;  %s1483_s24 = sphi %s1534_s24, %s2010_s24  }
   0x3   : > { %p27_p1 = scmp.ge.s32.totalorder %s26_s27, 32  ;;  %p254_p2 = scmp.lt.s32.totalorder %s1491_s26, 33 }
   0x5   : > { %s2013_s27 = smov (%p27_p1, %s26_s27), 0  ;;  %p255_p3 = pnand %p1224_p0, %p254_p2 }
   0x6   : > { %p288_p4 = scmp.lt.s32.totalorder (!%p255_p3), %s1483_s24, 31  ;;  %p1263_p5 = scmp.ne.s32.totalorder (!%p255_p3), %s1483_s24, 0 }
   0x7   : > { %258 = sbr.rel (%p255_p3) target bundleno = 748 (0x2ec), region = 48 }
   0xc   : > { %v1453_v0 = vld [vmem:[%s2003_s1] sm:$0xff]   ;;  %vm413_vm0 = vcmask 588800   ;;  %s289_s30 = scalar_select %p288_p4, %s1483_s24, 31  ;;  %v1493_v1 = vmov 0   ;;  %v324_v2 = vld [vmem:[%s2004_s2 + $0x30] sm:$0xff]  ;;  %vm426_vm1 = vcmask 1043456  }
   0xd   : > { %1371 = vmatprep.mubr.msk.bf16.mxu0 %vm413_vm0, %v1453_v0  ;;  %1446 = vset.pattern.permute.xlu0 %v1493_v1  ;;  %v322_v3 = vld [vmem:[%s2004_s2 + $0x20] sm:$0xff]  ;;  %v325_v4 = vld [vmem:[%s2004_s2 + $0x38] sm:$0xff]  ;;  %v323_v5 = vld [vmem:[%s2004_s2 + $0x28] sm:$0xff]  ;;  %vm583_vm2 = vcmask 523264  }
   0xe   : > { %s1420_s8 = smul.u32 36, %s289_s30  ;;  %1447 = vset.pattern.permute.xlu1 %v1493_v1  ;;  %358 = vperm.xlu0 %1446, %v324_v2   ;;  %v320_v9 = vld [vmem:[%s2004_s2 + $0x10] sm:$0xff]  ;;  %v321_v11 = vld [vmem:[%s2004_s2 + $0x18] sm:$0xff]  ;;  %v318_v12 = vld [vmem:[%s2004_s2] sm:$0xff] }
   0xf   : > { %348 = vperm.xlu1 %1447, %v322_v3   ;;  %v319_v14 = vld [vmem:[%s2004_s2 + $0x8] sm:$0xff]  ;;  %v521_v15 = vld [vmem:[%s2006_s4 + $0x30] sm:$0xff]  ;;  %v522_v17 = vld [vmem:[%s2006_s4 + $0x38] sm:$0xff] }
  0x10   : > { %s295_s15 = scalar_lea.vmem %s2002_s0, %s1420_s8  ;;  %v519_v18 = vld [vmem:[%s2006_s4 + $0x20] sm:$0xff]  ;;  %v520_v19 = vld [vmem:[%s2006_s4 + $0x28] sm:$0xff]  ;;  %v1455_v21 = vld [vmem:[%s2003_s1 + $0x10] sm:$0xff]  }
  0x11   : > { %v1448_v6 = vld [vmem:[%s295_s15 + $0x20] ss:$0 sps:$4 sm:$0xff]   ;;  %v1449_v7 = vld [vmem:[%s295_s15 + $0x18] sm:$0xff]   ;;  %v1450_v10 = vld [vmem:[%s295_s15 + $0x10] sm:$0xff]  }
  0x12   : > { %1419 = vmatprep.subr.msk.bf16.mxu0 %vm426_vm1, %v1448_v6  ;;  %v428_v8 = vsel %vm426_vm1, %v1448_v6, 0  ;;  %363 = vperm.xlu0 %1446, %v325_v4   ;;  %v1451_v13 = vld [vmem:[%s295_s15 + $0x8] sm:$0xff]   ;;  %v1452_v16 = vld [vmem:[%s295_s15] sm:$0xff]   ;;  %v517_v22 = vld [vmem:[%s2006_s4 + $0x10] sm:$0xff] }
  0x13   : > { %1362 = vmatpush3.bf16.msra.mxu0 %v428_v8  ;;  %353 = vperm.xlu1 %1447, %v323_v5   ;;  %v1454_v20 = vld [vmem:[%s2003_s1 + $0x8] sm:$0xff]   ;;  %v518_v23 = vld [vmem:[%s2006_s4 + $0x18] sm:$0xff]  ;;  %v515_v24 = vld [vmem:[%s2006_s4] sm:$0xff] }
  0x14   : > { %1363 = vmatprep.subr.bf16.mxu0 %v1449_v7  ;;  %v516_v25 = vld [vmem:[%s2006_s4 + $0x8] sm:$0xff]  ;;  %v1456_v26 = vld [vmem:[%s2003_s1 + $0x18] sm:$0xff]   ;;  %v689_v27 = vld [vmem:[%s2008_s6] sm:$0xff] }
  0x15   : > { %v690_v28 = vld [vmem:[%s2008_s6 + $0x8] sm:$0xff]  ;;  %v691_v29 = vld [vmem:[%s2008_s6 + $0x10] sm:$0xff]  ;;  %v692_v30 = vld [vmem:[%s2008_s6 + $0x18] sm:$0xff] }
  0x16   : > { %338 = vperm.xlu0 %1446, %v320_v9   ;;  %v693_v31 = vld [vmem:[%s2008_s6 + $0x20] sm:$0xff]  ;;  %v694_v32 = vld [vmem:[%s2008_s6 + $0x28] sm:$0xff]  ;;  %v695_v33 = vld [vmem:[%s2008_s6 + $0x30] sm:$0xff] }
  0x17   : > { %1364 = vmatpush3.bf16.msra.mxu0 %v1449_v7  ;;  %343 = vperm.xlu1 %1447, %v321_v11   ;;  %v696_v34 = vld [vmem:[%s2008_s6 + $0x38] sm:$0xff]  ;;  %v697_v35 = vld [vmem:[%s2008_s6 + $0x40] sm:$0xff]  ;;  %v698_v36 = vld [vmem:[%s2008_s6 + $0x48] sm:$0xff] }
  0x18   : > { %1365 = vmatprep.subr.bf16.mxu0 %v1450_v10  ;;  %v699_v37 = vld [vmem:[%s2008_s6 + $0x50] sm:$0xff]  ;;  %v700_v38 = vld [vmem:[%s2008_s6 + $0x58] sm:$0xff]  ;;  %v701_v39 = vld [vmem:[%s2008_s6 + $0x60] sm:$0xff] }
  0x19   : > { %v702_v40 = vld [vmem:[%s2008_s6 + $0x68] sm:$0xff]  ;;  %v703_v41 = vld [vmem:[%s2008_s6 + $0x70] sm:$0xff]  ;;  %v704_v42 = vld [vmem:[%s2008_s6 + $0x78] sm:$0xff] }
  0x1a   : > { %328 = vperm.xlu0 %1446, %v318_v12   ;;  %v1457_v43 = vld [vmem:[%s2005_s3] sm:$0xff]  }
  0x1b   : > { %1366 = vmatpush3.bf16.msra.mxu0 %v1450_v10  ;;  %333 = vperm.xlu1 %1447, %v319_v14  }
  0x1c   : > { %1367 = vmatprep.subr.bf16.mxu0 %v1451_v13 }
  0x1e   : > { %555 = vperm.xlu0 %1446, %v521_v15  }
  0x1f   : > { %1368 = vmatpush3.bf16.msra.mxu0 %v1451_v13  ;;  %560 = vperm.xlu1 %1447, %v522_v17   ;;  %v1459_v17 = vld [vmem:[%s2005_s3 + $0x10] sm:$0xff]  }
  0x20   : > { %1369 = vmatprep.subr.bf16.mxu0 %v1452_v16 }
  0x22   : > { %545 = vperm.xlu0 %1446, %v519_v18   ;;  %v1460_v18 = vld [vmem:[%s2005_s3 + $0x18] sm:$0xff]  }
  0x23   : > { %1370 = vmatpush3.bf16.msra.mxu0 %v1452_v16  ;;  %550 = vperm.xlu1 %1447, %v520_v19   ;;  %v1458_v16 = vld [vmem:[%s2005_s3 + $0x8] sm:$0xff]   ;;  %v1461_v19 = vld [vmem:[%s2007_s5] sm:$0xff]  }
  0x24   : > { %1403 = vmatprep.mubr.msk.bf16.mxu1 %vm583_vm2, %v1461_v19 }
  0x26   : > { %1372 = vmatmul.mubr.msk.bf16.vlgmr.msra.gmra.mxu0 %vm413_vm0, %v1454_v20  ;;  %535 = vperm.xlu0 %1446, %v517_v22  }
  0x27   : > { %1375 = vmatprep.mubr.msk.bf16.mxu0 %vm413_vm0, %v1455_v21  ;;  %540 = vperm.xlu1 %1447, %v518_v23  }
  0x2a   : > { %525 = vperm.xlu0 %1446, %v515_v24  }
  0x2b   : > { %530 = vperm.xlu1 %1447, %v516_v25  }
  0x2e   : > { %1376 = vmatmul.mubr.msk.bf16.gmra.mxu0 %vm413_vm0, %v1456_v26  ;;  %707 = vperm.xlu0 %1446, %v689_v27  }
  0x2f   : > { %712 = vperm.xlu1 %1447, %v690_v28   ;;  %1387 = vmatprep.mubr.msk.bf16.mxu0 %vm583_vm2, %v1457_v43 }
  0x32   : > { %717 = vperm.xlu0 %1446, %v691_v29  }
  0x33   : > { %722 = vperm.xlu1 %1447, %v692_v30  }
  0x36   : > { %727 = vperm.xlu0 %1446, %v693_v31  }
  0x37   : > { %732 = vperm.xlu1 %1447, %v694_v32  }
  0x3a   : > { %737 = vperm.xlu0 %1446, %v695_v33  }
  0x3b   : > { %742 = vperm.xlu1 %1447, %v696_v34  }
  0x3e   : > { %747 = vperm.xlu0 %1446, %v697_v35  }
  0x3f   : > { %752 = vperm.xlu1 %1447, %v698_v36  }
  0x42   : > { %757 = vperm.xlu0 %1446, %v699_v37  }
  0x43   : > { %762 = vperm.xlu1 %1447, %v700_v38  }
  0x46   : > { %767 = vperm.xlu0 %1446, %v701_v39  }
  0x47   : > { %772 = vperm.xlu1 %1447, %v702_v40  }
  0x4a   : > { %777 = vperm.xlu0 %1446, %v703_v41  }
  0x4b   : > { %782 = vperm.xlu1 %1447, %v704_v42  }
  0x89   : > { %v359_v46 = vpop.permute.xlu0 %358 }
  0x8a   : > { %v349_v44 = vpop.permute.xlu1 %348 }
  0x8d   : > { %v364_v51 = vpop.permute.xlu0 %363 }
  0x8e   : > { %v354_v49 = vpop.permute.xlu1 %353 }
  0x91   : > { %v339_v59 = vpop.permute.xlu0 %338 }
  0x92   : > { %v344_v55 = vpop.permute.xlu1 %343 }
  0x95   : > { %v329_v9 = vpop.permute.xlu0 %328 }
  0x96   : > { %v334_v5 = vpop.permute.xlu1 %333 }
  0x99   : > { %v556_v22 = vpop.permute.xlu0 %555 }
  0x9a   : > { %v561_v20 = vpop.permute.xlu1 %560 }
  0x9d   : > { %v546_v27 = vpop.permute.xlu0 %545 }
  0x9e   : > { %v551_v25 = vpop.permute.xlu1 %550 }
  0xa1   : > { %v536_v35 = vpop.permute.xlu0 %535 }
  0xa2   : > { %v541_v31 = vpop.permute.xlu1 %540 }
  0xe6   : > { %v1373_v45 = vpop.f32.mrf.mxu0 }
  0xe7   : > { %v473_v1 = vadd.f32 %v1373_v45, %v339_v59  ;;  %v531_v45 = vpop.permute.xlu1 %530  ;;  %v1465_v59 = vld [vmem:[%s2007_s5 + $0x20] sm:$0xff]  }
  0xe8   : > { %v464_v47 = vpop.f32.mrf.mxu0 }
  0xe9   : > { %v497_v10 = vmax.f32 %v473_v1, 0.0  ;;  %v465_v11 = vadd.f32 %v464_v47, %v329_v9 }
  0xea   : > { %v1374_v48 = vpop.f32.mrf.mxu0 }
  0xeb   : > { %v476_v61 = vadd.f32 %v1374_v48, %v344_v55  ;;  %v495_v14 = vmax.f32 %v465_v11, 0.0 }
  0xec   : > { %v467_v50 = vpop.f32.mrf.mxu0 }
  0xed   : > { %v498_v6 = vmax.f32 %v476_v61, 0.0  ;;  %v468_v7 = vadd.f32 %v467_v50, %v334_v5  ;;  %v1467_v61 = vld [vmem:[%s2007_s5 + $0x30] sm:$0xff]  }
  0xee   : > { %v1377_v52 = vpop.f32.mrf.mxu0 }
  0xef   : > { %v489_v54 = vadd.f32 %v1377_v52, %v359_v46  ;;  %v504_v12 = vpack.c.bf16 %v498_v6, %v497_v10  ;;  %v496_v13 = vmax.f32 %v468_v7, 0.0 }
  0xf0   : > { %v480_v53 = vpop.f32.mrf.mxu0 }
  0xf1   : > { %v481_v57 = vadd.f32 %v480_v53, %v349_v44  ;;  %v501_v62 = vmax.f32 %v489_v54, 0.0  ;;  %v503_v15 = vpack.c.bf16 %v496_v13, %v495_v14 }
  0xf2   : > { %v1378_v56 = vpop.f32.mrf.mxu0 }
  0xf3   : > { %v492_v58 = vadd.f32 %v1378_v56, %v364_v51  ;;  %v499_v2 = vmax.f32 %v481_v57, 0.0  ;;  %v1462_v56 = vld [vmem:[%s2007_s5 + $0x8] sm:$0xff]   ;;  %v1463_v57 = vld [vmem:[%s2007_s5 + $0x10] sm:$0xff]  }
  0xf4   : > { %v483_v60 = vpop.f32.mrf.mxu0 }
  0xf5   : > { %v502_v63 = vmax.f32 %v492_v58, 0.0  ;;  %v484_v0 = vadd.f32 %v483_v60, %v354_v49  ;;  %v526_v49 = vpop.permute.xlu0 %525  ;;  %v1464_v58 = vld [vmem:[%s2007_s5 + $0x18] sm:$0xff]   ;;  %v1466_v60 = vld [vmem:[%s2007_s5 + $0x28] sm:$0xff]  }
  0xf7   : > { %v506_v3 = vpack.c.bf16 %v502_v63, %v501_v62  ;;  %v500_v4 = vmax.f32 %v484_v0, 0.0  ;;  %v1468_v62 = vld [vmem:[%s2007_s5 + $0x38] sm:$0xff]   ;;  %v713_v0 = vpop.permute.xlu1 %712 }
  0xf9   : > { %v505_v8 = vpack.c.bf16 %v500_v4, %v499_v2  ;;  %1379 = vmatprep.subr.bf16.mxu0 %v506_v3  ;;  %v708_v63 = vpop.permute.xlu0 %707 }
  0xfa   : > { %1380 = vmatpush3.bf16.msra.mxu0 %v506_v3 }
  0xfb   : > { %1381 = vmatprep.subr.bf16.mxu0 %v505_v8  ;;  %v723_v2 = vpop.permute.xlu1 %722 }
  0xfd   : > { %v718_v1 = vpop.permute.xlu0 %717 }
  0xfe   : > { %1382 = vmatpush3.bf16.msra.mxu0 %v505_v8 }
  0xff   : > { %1383 = vmatprep.subr.bf16.mxu0 %v504_v12  ;;  %v733_v4 = vpop.permute.xlu1 %732 }
 0x101   : > { %v728_v3 = vpop.permute.xlu0 %727 }
 0x102   : > { %1384 = vmatpush3.bf16.msra.mxu0 %v504_v12 }
 0x103   : > { %1385 = vmatprep.subr.bf16.mxu0 %v503_v15  ;;  %v743_v11 = vpop.permute.xlu1 %742 }
 0x105   : > { %v738_v5 = vpop.permute.xlu0 %737 }
 0x106   : > { %1386 = vmatpush3.bf16.msra.mxu0 %v503_v15 }
 0x109   : > { %1388 = vmatmul.mubr.msk.bf16.vlgmr.msra.gmra.mxu0 %vm583_vm2, %v1458_v16  ;;  %v748_v15 = vpop.permute.xlu0 %747 }
 0x10a   : > { %1391 = vmatprep.mubr.msk.bf16.mxu0 %vm583_vm2, %v1459_v17 }
 0x111   : > { %1392 = vmatmul.mubr.msk.bf16.gmra.mxu0 %vm583_vm2, %v1460_v18 }
 0x1c9   : > { %v1389_v21 = vpop.f32.mrf.mxu0 }
 0x1ca   : > { %v639_v41 = vadd.f32 %v1389_v21, %v536_v35 }
 0x1cb   : > { %v630_v23 = vpop.f32.mrf.mxu0 }
 0x1cc   : > { %v663_v50 = vmax.f32 %v639_v41, 0.0  ;;  %v631_v51 = vadd.f32 %v630_v23, %v526_v49 }
 0x1cd   : > { %v1390_v24 = vpop.f32.mrf.mxu0 }
 0x1ce   : > { %v642_v37 = vadd.f32 %v1390_v24, %v541_v31  ;;  %v661_v54 = vmax.f32 %v631_v51, 0.0 }
 0x1cf   : > { %v633_v26 = vpop.f32.mrf.mxu0 }
 0x1d0   : > { %v664_v46 = vmax.f32 %v642_v37, 0.0  ;;  %v634_v47 = vadd.f32 %v633_v26, %v531_v45  ;;  %v758_v26 = vpop.permute.xlu0 %757 }
 0x1d1   : > { %v1393_v28 = vpop.f32.mrf.mxu0 }
 0x1d2   : > { %v655_v30 = vadd.f32 %v1393_v28, %v556_v22  ;;  %v670_v52 = vpack.c.bf16 %v664_v46, %v663_v50  ;;  %v662_v53 = vmax.f32 %v634_v47, 0.0  ;;  %v753_v22 = vpop.permute.xlu1 %752 }
 0x1d3   : > { %v646_v29 = vpop.f32.mrf.mxu0 }
 0x1d4   : > { %v647_v33 = vadd.f32 %v646_v29, %v546_v27  ;;  %v667_v38 = vmax.f32 %v655_v30, 0.0  ;;  %v669_v55 = vpack.c.bf16 %v662_v53, %v661_v54  ;;  %v768_v37 = vpop.permute.xlu0 %767 }
 0x1d5   : > { %v1394_v32 = vpop.f32.mrf.mxu0 }
 0x1d6   : > { %v658_v34 = vadd.f32 %v1394_v32, %v561_v20  ;;  %v665_v42 = vmax.f32 %v647_v33, 0.0  ;;  %v763_v33 = vpop.permute.xlu1 %762 }
 0x1d7   : > { %v649_v36 = vpop.f32.mrf.mxu0 }
 0x1d8   : > { %v668_v39 = vmax.f32 %v658_v34, 0.0  ;;  %v650_v40 = vadd.f32 %v649_v36, %v551_v25 }
 0x1da   : > { %v666_v43 = vmax.f32 %v650_v40, 0.0  ;;  %v672_v44 = vpack.c.bf16 %v668_v39, %v667_v38 }
 0x1dc   : > { %v671_v48 = vpack.c.bf16 %v666_v43, %v665_v42  ;;  %1395 = vmatprep.subr.bf16.mxu1 %v672_v44 }
 0x1dd   : > { %1396 = vmatpush3.bf16.msra.mxu1 %v672_v44  ;;  %v773_v44 = vpop.permute.xlu1 %772 }
 0x1de   : > { %1397 = vmatprep.subr.bf16.mxu1 %v671_v48 }
 0x1e1   : > { %1398 = vmatpush3.bf16.msra.mxu1 %v671_v48  ;;  %v778_v48 = vpop.permute.xlu0 %777 }
 0x1e2   : > { %1399 = vmatprep.subr.bf16.mxu1 %v670_v52 }
 0x1e5   : > { %1400 = vmatpush3.bf16.msra.mxu1 %v670_v52 }
 0x1e6   : > { %1401 = vmatprep.subr.bf16.mxu1 %v669_v55 }
 0x1e9   : > { %1402 = vmatpush3.bf16.msra.mxu1 %v669_v55  ;;  %v783_v55 = vpop.permute.xlu1 %782 }
 0x1ec   : > { %1404 = vmatmul.mubr.msk.bf16.vlgmr.msra.gmra.mxu1 %vm583_vm2, %v1462_v56 }
 0x1ed   : > { %1407 = vmatprep.mubr.msk.bf16.mxu1 %vm583_vm2, %v1463_v57 }
 0x1f4   : > { %1408 = vmatmul.mubr.msk.bf16.gmra.mxu1 %vm583_vm2, %v1464_v58 }
 0x1f5   : > { %1411 = vmatprep.mubr.msk.bf16.mxu1 %vm583_vm2, %v1465_v59 }
 0x1fc   : > { %1412 = vmatmul.mubr.msk.bf16.gmra.mxu1 %vm583_vm2, %v1466_v60 }
 0x1fd   : > { %1415 = vmatprep.mubr.msk.bf16.mxu1 %vm583_vm2, %v1467_v61 }
 0x204   : > { %1416 = vmatmul.mubr.msk.bf16.gmra.mxu1 %vm583_vm2, %v1468_v62 }
 0x2ac   : > { %v1405_v6 = vpop.f32.mrf.mxu1 }
 0x2ad   : > { %v892_v7 = vadd.f32 %v1405_v6, %v718_v1 }
 0x2ae   : > { %v883_v8 = vpop.f32.mrf.mxu1 }
 0x2af   : > { %v1719_v9 = vmax.f32 %v892_v7, 0.0  ;;  %v884_v10 = vadd.f32 %v883_v8, %v708_v63 }
 0x2b0   : > { %v1406_v12 = vpop.f32.mrf.mxu1 }
 0x2b1   : > { %v1721_v13 = vmax.f32 %v884_v10, 0.0  ;;  %v895_v14 = vadd.f32 %v1406_v12, %v723_v2 }
 0x2b2   : > { %v886_v16 = vpop.f32.mrf.mxu1 }
 0x2b3   : > { %v1723_v17 = vmax.f32 %v895_v14, 0.0  ;;  %v887_v18 = vadd.f32 %v886_v16, %v713_v0 }
 0x2b4   : > { %v1409_v19 = vpop.f32.mrf.mxu1 }
 0x2b5   : > { %v1725_v20 = vmax.f32 %v887_v18, 0.0  ;;  %v908_v21 = vadd.f32 %v1409_v19, %v738_v5 }
 0x2b6   : > { %v899_v23 = vpop.f32.mrf.mxu1 }
 0x2b7   : > { %v1727_v24 = vmax.f32 %v908_v21, 0.0  ;;  %v900_v25 = vadd.f32 %v899_v23, %v728_v3 }
 0x2b8   : > { %v1410_v27 = vpop.f32.mrf.mxu1 }
 0x2b9   : > { %v1729_v28 = vmax.f32 %v900_v25, 0.0  ;;  %v911_v29 = vadd.f32 %v1410_v27, %v743_v11 }
 0x2ba   : > { %v902_v30 = vpop.f32.mrf.mxu1 }
 0x2bb   : > { %v1731_v31 = vmax.f32 %v911_v29, 0.0  ;;  %v903_v32 = vadd.f32 %v902_v30, %v733_v4 }
 0x2bc   : > { %v1413_v34 = vpop.f32.mrf.mxu1 }
 0x2bd   : > { %v1733_v35 = vmax.f32 %v903_v32, 0.0  ;;  %v924_v36 = vadd.f32 %v1413_v34, %v758_v26 }
 0x2be   : > { %v915_v38 = vpop.f32.mrf.mxu1 }
 0x2bf   : > { %v1735_v39 = vmax.f32 %v924_v36, 0.0  ;;  %v916_v40 = vadd.f32 %v915_v38, %v748_v15 }
 0x2c0   : > { %v1414_v41 = vpop.f32.mrf.mxu1 }
 0x2c1   : > { %v1737_v42 = vmax.f32 %v916_v40, 0.0  ;;  %v927_v43 = vadd.f32 %v1414_v41, %v763_v33 }
 0x2c2   : > { %v918_v45 = vpop.f32.mrf.mxu1 }
 0x2c3   : > { %v1739_v46 = vmax.f32 %v927_v43, 0.0  ;;  %v919_v47 = vadd.f32 %v918_v45, %v753_v22 }
 0x2c4   : > { %v1417_v49 = vpop.f32.mrf.mxu1 }
 0x2c5   : > { %v1741_v50 = vmax.f32 %v919_v47, 0.0  ;;  %v940_v51 = vadd.f32 %v1417_v49, %v778_v48 }
 0x2c6   : > { %v931_v52 = vpop.f32.mrf.mxu1 }
 0x2c7   : > { %v1743_v53 = vmax.f32 %v940_v51, 0.0  ;;  %v932_v54 = vadd.f32 %v931_v52, %v768_v37 }
 0x2c8   : > { %v1418_v56 = vpop.f32.mrf.mxu1 }
 0x2c9   : > { %v1745_v57 = vmax.f32 %v932_v54, 0.0  ;;  %v943_v58 = vadd.f32 %v1418_v56, %v783_v55  ;;  %973 = sbr.rel (%p1263_p5) target bundleno = 728 (0x2d8), region = 52 }
 0x2ca   : > { %v934_v59 = vpop.f32.mrf.mxu1 }
 0x2cb   : > { %v1747_v60 = vmax.f32 %v943_v58, 0.0  ;;  %v935_v61 = vadd.f32 %v934_v59, %v773_v44 }
 0x2cd   : > { %v1749_v62 = vmax.f32 %v935_v61, 0.0 }
 0x2ce   : > { %v1300_v63 = vpack.c.bf16 %v1721_v13, %v1721_v13  ;;  %vm1030_vm3 = vcmask 519168   ;;  %v1301_v0 = vpack.c.bf16 %v1725_v20, %v1725_v20  ;;  %v1302_v1 = vpack.c.bf16 %v1719_v9, %v1719_v9 }
 0x2cf   : > { %v1303_v2 = vpack.c.bf16 %v1723_v17, %v1723_v17  ;;  %v1304_v3 = vpack.c.bf16 %v1729_v28, %v1729_v28  ;;  %v1305_v4 = vpack.c.bf16 %v1733_v35, %v1733_v35  ;;  %v1306_v5 = vpack.c.bf16 %v1727_v24, %v1727_v24 }
 0x2d0   : > { %1031 = vst.msk [vmem:[%s2009_s7] sm:$0xf] %vm1030_vm3, %v1300_v63  ;;  %1032 = vst.msk [vmem:[%s2009_s7 + $0x4] sm:$0xf] %vm1030_vm3, %v1301_v0  ;;  %v1307_v6 = vpack.c.bf16 %v1731_v31, %v1731_v31  ;;  %v1308_v7 = vpack.c.bf16 %v1737_v42, %v1737_v42  ;;  %v1309_v8 = vpack.c.bf16 %v1741_v50, %v1741_v50 }
 0x2d1   : > { %1033 = vst.msk [vmem:[%s2009_s7 + $0x8] sm:$0xf] %vm1030_vm3, %v1302_v1  ;;  %v1310_v10 = vpack.c.bf16 %v1735_v39, %v1735_v39  ;;  %1034 = vst.msk [vmem:[%s2009_s7 + $0xc] sm:$0xf] %vm1030_vm3, %v1303_v2  ;;  %v1311_v11 = vpack.c.bf16 %v1739_v46, %v1739_v46  ;;  %v1312_v12 = vpack.c.bf16 %v1745_v57, %v1745_v57 }
 0x2d2   : > { %1035 = vst.msk [vmem:[%s2009_s7 + $0x10] sm:$0xf] %vm1030_vm3, %v1304_v3  ;;  %1036 = vst.msk [vmem:[%s2009_s7 + $0x14] sm:$0xf] %vm1030_vm3, %v1305_v4  ;;  %v1313_v14 = vpack.c.bf16 %v1749_v62, %v1749_v62  ;;  %v1314_v15 = vpack.c.bf16 %v1743_v53, %v1743_v53  ;;  %v1315_v16 = vpack.c.bf16 %v1747_v60, %v1747_v60 }
 0x2d3   : > { %1037 = vst.msk [vmem:[%s2009_s7 + $0x18] sm:$0xf] %vm1030_vm3, %v1306_v5  ;;  %1038 = vst.msk [vmem:[%s2009_s7 + $0x1c] sm:$0xf] %vm1030_vm3, %v1307_v6 }
 0x2d4   : > { %1039 = vst.msk [vmem:[%s2009_s7 + $0x20] sm:$0xf] %vm1030_vm3, %v1308_v7  ;;  %1040 = vst.msk [vmem:[%s2009_s7 + $0x24] sm:$0xf] %vm1030_vm3, %v1309_v8 }
 0x2d5   : > { %1041 = vst.msk [vmem:[%s2009_s7 + $0x28] sm:$0xf] %vm1030_vm3, %v1310_v10  ;;  %1042 = vst.msk [vmem:[%s2009_s7 + $0x2c] sm:$0xf] %vm1030_vm3, %v1311_v11 }
 0x2d6   : > { %1043 = vst.msk [vmem:[%s2009_s7 + $0x30] sm:$0xf] %vm1030_vm3, %v1312_v12  ;;  %1044 = vst.msk [vmem:[%s2009_s7 + $0x34] sm:$0xf] %vm1030_vm3, %v1313_v14 }
 0x2d7   : > { %1045 = vst.msk [vmem:[%s2009_s7 + $0x38] sm:$0xf] %vm1030_vm3, %v1314_v15  ;;  %1046 = vst.msk [vmem:[%s2009_s7 + $0x3c] sm:$0xf] %vm1030_vm3, %v1315_v16 }
 0x2d8 PF: > { %p1280_p6 = scmp.le.s32.totalorder %s1483_s24, 0 }
 0x2da   : > { %1050 = sbr.rel (%p1280_p6) target bundleno = 748 (0x2ec), region = 56 }
 0x2df   : > { %v1051_v18 = vld [vmem:[%s2009_s7] sm:$0xf]  ;;  %v1316_v19 = vpack.c.bf16 %v1721_v13, %v1721_v13  ;;  %vm1139_vm4 = vcmask 519168   ;;  %v1052_v21 = vld [vmem:[%s2009_s7 + $0x4] sm:$0xf]  ;;  %v1317_v22 = vpack.c.bf16 %v1725_v20, %v1725_v20  ;;  %v1318_v23 = vpack.c.bf16 %v1719_v9, %v1719_v9 }
 0x2e0   : > { %v1053_v25 = vld [vmem:[%s2009_s7 + $0x8] sm:$0xf]  ;;  %v1054_v26 = vld [vmem:[%s2009_s7 + $0xc] sm:$0xf]  ;;  %v1319_v13 = vpack.c.bf16 %v1723_v17, %v1723_v17  ;;  %v1055_v27 = vld [vmem:[%s2009_s7 + $0x10] sm:$0xf]  ;;  %v1320_v20 = vpack.c.bf16 %v1729_v28, %v1729_v28  ;;  %v1321_v9 = vpack.c.bf16 %v1733_v35, %v1733_v35  ;;  %v1322_v29 = vpack.c.bf16 %v1727_v24, %v1727_v24 }
 0x2e1   : > { %v1123_v30 = vmax.bf16 %v1316_v19, %v1051_v18  ;;  %v1124_v32 = vmax.bf16 %v1317_v22, %v1052_v21  ;;  %v1125_v33 = vmax.bf16 %v1318_v23, %v1053_v25  ;;  %v1056_v17 = vld [vmem:[%s2009_s7 + $0x14] sm:$0xf]  ;;  %v1057_v34 = vld [vmem:[%s2009_s7 + $0x18] sm:$0xf]  ;;  %v1058_v28 = vld [vmem:[%s2009_s7 + $0x1c] sm:$0xf]  ;;  %v1323_v35 = vpack.c.bf16 %v1731_v31, %v1731_v31 }
 0x2e2   : > { %v1126_v36 = vmax.bf16 %v1319_v13, %v1054_v26  ;;  %v1127_v24 = vmax.bf16 %v1320_v20, %v1055_v27  ;;  %v1128_v37 = vmax.bf16 %v1321_v9, %v1056_v17  ;;  %v1129_v38 = vmax.bf16 %v1322_v29, %v1057_v34  ;;  %v1059_v40 = vld [vmem:[%s2009_s7 + $0x20] sm:$0xf]  ;;  %v1060_v41 = vld [vmem:[%s2009_s7 + $0x24] sm:$0xf]  ;;  %v1061_v43 = vld [vmem:[%s2009_s7 + $0x28] sm:$0xf] }
 0x2e3   : > { %1140 = vst.msk [vmem:[%s2009_s7] sm:$0xf] %vm1139_vm4, %v1123_v30  ;;  %1141 = vst.msk [vmem:[%s2009_s7 + $0x4] sm:$0xf] %vm1139_vm4, %v1124_v32  ;;  %v1130_v31 = vmax.bf16 %v1323_v35, %v1058_v28  ;;  %v1324_v44 = vpack.c.bf16 %v1737_v42, %v1737_v42  ;;  %v1325_v45 = vpack.c.bf16 %v1741_v50, %v1741_v50  ;;  %v1062_v48 = vld [vmem:[%s2009_s7 + $0x2c] sm:$0xf] }
 0x2e4   : > { %1142 = vst.msk [vmem:[%s2009_s7 + $0x8] sm:$0xf] %vm1139_vm4, %v1125_v33  ;;  %v1326_v47 = vpack.c.bf16 %v1735_v39, %v1735_v39  ;;  %v1063_v49 = vld [vmem:[%s2009_s7 + $0x30] sm:$0xf]  ;;  %v1064_v51 = vld [vmem:[%s2009_s7 + $0x34] sm:$0xf]  ;;  %v1327_v39 = vpack.c.bf16 %v1739_v46, %v1739_v46  ;;  %v1328_v42 = vpack.c.bf16 %v1745_v57, %v1745_v57  ;;  %v1329_v50 = vpack.c.bf16 %v1749_v62, %v1749_v62 }
 0x2e5   : > { %1143 = vst.msk [vmem:[%s2009_s7 + $0xc] sm:$0xf] %vm1139_vm4, %v1126_v36  ;;  %1144 = vst.msk [vmem:[%s2009_s7 + $0x10] sm:$0xf] %vm1139_vm4, %v1127_v24  ;;  %v1065_v52 = vld [vmem:[%s2009_s7 + $0x38] sm:$0xf]  ;;  %v1330_v54 = vpack.c.bf16 %v1743_v53, %v1743_v53  ;;  %v1131_v46 = vmax.bf16 %v1324_v44, %v1059_v40  ;;  %v1132_v56 = vmax.bf16 %v1325_v45, %v1060_v41 }
 0x2e6   : > { %1145 = vst.msk [vmem:[%s2009_s7 + $0x14] sm:$0xf] %vm1139_vm4, %v1128_v37  ;;  %1146 = vst.msk [vmem:[%s2009_s7 + $0x18] sm:$0xf] %vm1139_vm4, %v1129_v38  ;;  %v1066_v55 = vld [vmem:[%s2009_s7 + $0x3c] sm:$0xf]  ;;  %v1133_v57 = vmax.bf16 %v1326_v47, %v1061_v43  ;;  %v1331_v58 = vpack.c.bf16 %v1747_v60, %v1747_v60  ;;  %v1134_v59 = vmax.bf16 %v1327_v39, %v1062_v48 }
 0x2e7   : > { %1147 = vst.msk [vmem:[%s2009_s7 + $0x1c] sm:$0xf] %vm1139_vm4, %v1130_v31  ;;  %v1135_v61 = vmax.bf16 %v1328_v42, %v1063_v49  ;;  %v1136_v62 = vmax.bf16 %v1329_v50, %v1064_v51  ;;  %v1137_v63 = vmax.bf16 %v1330_v54, %v1065_v52  ;;  %1148 = vst.msk [vmem:[%s2009_s7 + $0x20] sm:$0xf] %vm1139_vm4, %v1131_v46 }
 0x2e8   : > { %1149 = vst.msk [vmem:[%s2009_s7 + $0x24] sm:$0xf] %vm1139_vm4, %v1132_v56  ;;  %1150 = vst.msk [vmem:[%s2009_s7 + $0x28] sm:$0xf] %vm1139_vm4, %v1133_v57  ;;  %v1138_v53 = vmax.bf16 %v1331_v58, %v1066_v55 }
 0x2e9   : > { %1151 = vst.msk [vmem:[%s2009_s7 + $0x2c] sm:$0xf] %vm1139_vm4, %v1134_v59  ;;  %1152 = vst.msk [vmem:[%s2009_s7 + $0x30] sm:$0xf] %vm1139_vm4, %v1135_v61 }
 0x2ea   : > { %1153 = vst.msk [vmem:[%s2009_s7 + $0x34] sm:$0xf] %vm1139_vm4, %v1136_v62  ;;  %1154 = vst.msk [vmem:[%s2009_s7 + $0x38] sm:$0xf] %vm1139_vm4, %v1137_v63 }
 0x2eb   : > { %1155 = vst.msk [vmem:[%s2009_s7 + $0x3c] sm:$0xf] %vm1139_vm4, %v1138_v53 }
 0x2ec PF: > { %s17_s26 = sadd.s32 1, %s1491_s26   ;;  %s2010_s24 = smov %s1487_s25 }
 0x2ed   : > { %p14_p7 = scmp.ge.s32.totalorder %s17_s26, 34   ;;  %s2011_s25 = smov %s2013_s27 }
 0x2ef   :  { %16 = sbr.rel (!%p14_p7) target bundleno = 2 (0x2), region = 86 }

// kernel: a_call__.11
= control target key start
LH: loop header
LB: loop body
LE: loop exit
PB: predicated region body
PF: predicated region fallthrough
CT: control target
= control target key end

     0   :  { %s2421_s24 = smov 0   ;;  %s2423_s25 = smov 0   ;;  %s3378_s0 = inlined_call_operand.vmem [shape: bf16[32,136,32], index: 0, kind: input, shape index: {}]   ;;  %s3379_s1 = inlined_call_operand.vmem [shape: bf16[128,136], index: 1, kind: input, shape index: {}]   ;;  %s3380_s2 = inlined_call_operand.vmem [shape: f32[128,1], index: 2, kind: input, shape index: {}, may-alias: {2,4}]   ;;  %s3381_s3 = inlined_call_operand.vmem [shape: bf16[128,128], index: 3, kind: input, shape index: {}]   ;;  %s3382_s4 = inlined_call_operand.vmem [shape: f32[128,1], index: 4, kind: input, shape index: {}, may-alias: {2,4}]   ;;  %s3383_s5 = inlined_call_operand.vmem [shape: bf16[256,128], index: 5, kind: input, shape index: {}]   ;;  %s3384_s6 = inlined_call_operand.vmem [shape: f32[256,1], index: 6, kind: input, shape index: {}]   ;;  %s3385_s7 = inlined_call_operand.vmem [shape: bf16[256,32], index: 7, kind: output, shape index: {}]  }
   0x1   :  { %s2425_s26 = smov 0  }
   0x2 LB: > { %s26_s27 = sadd.s32 1, %s2374_s25  ;;  %p1943_p0 = scmp.ge.s32.totalorder %s2378_s26, 1  ;;  %s2378_s26 = sphi %s2425_s26, %s17_s26   ;;  %s2374_s25 = sphi %s2423_s25, %s3387_s25   ;;  %s2370_s24 = sphi %s2421_s24, %s3386_s24  }
   0x3   : > { %p27_p1 = scmp.ge.s32.totalorder %s26_s27, 32  ;;  %p254_p2 = scmp.lt.s32.totalorder %s2378_s26, 33 }
   0x5   : > { %s3389_s27 = smov (%p27_p1, %s26_s27), 0  ;;  %p255_p3 = pnand %p1943_p0, %p254_p2 }
   0x6   : > { %p288_p4 = scmp.lt.s32.totalorder (!%p255_p3), %s2370_s24, 31  ;;  %p2002_p5 = scmp.ne.s32.totalorder (!%p255_p3), %s2370_s24, 0 }
   0x7   : > { %258 = sbr.rel (%p255_p3) target bundleno = 902 (0x386), region = 48 }
   0xc   : > { %vm553_vm0 = vcmask 64512   ;;  %v2380_v0 = vmov 0   ;;  %v2310_v1 = vld [vmem:[%s3379_s1 + $0x4] ss:$8 sps:$4 sm:$0xff]   ;;  %v348_v2 = vld [vmem:[%s3380_s2 + $0x70] sm:$0xff]  ;;  %s289_s9 = scalar_select %p288_p4, %s2370_s24, 31 }
   0xd   : > { %582 = vmatprep.subr.bf16.mxu0 %v2380_v0  ;;  %2297 = vset.pattern.permute.xlu0 %v2380_v0  ;;  %v346_v3 = vld [vmem:[%s3380_s2 + $0x60] sm:$0xff]  ;;  %v349_v4 = vld [vmem:[%s3380_s2 + $0x78] sm:$0xff]  ;;  %v347_v5 = vld [vmem:[%s3380_s2 + $0x68] sm:$0xff]  ;;  %vm578_vm1 = vcmask 1043456  }
   0xe   : > { %422 = vperm.xlu0 %2297, %v348_v2   ;;  %2298 = vset.pattern.permute.xlu1 %v2380_v0  ;;  %s2271_s14 = smul.u32 68, %s289_s9  ;;  %v344_v6 = vld [vmem:[%s3380_s2 + $0x50] sm:$0xff]  ;;  %v345_v8 = vld [vmem:[%s3380_s2 + $0x58] sm:$0xff]  ;;  %v342_v10 = vld [vmem:[%s3380_s2 + $0x40] sm:$0xff] }
   0xf   : > { %1970 = vmatprep.mubr.msk.bf16.mxu0 %vm553_vm0, %v2310_v1  ;;  %412 = vperm.xlu1 %2298, %v346_v3   ;;  %v343_v11 = vld [vmem:[%s3380_s2 + $0x48] sm:$0xff]  ;;  %v340_v13 = vld [vmem:[%s3380_s2 + $0x30] sm:$0xff]  ;;  %v341_v14 = vld [vmem:[%s3380_s2 + $0x38] sm:$0xff] }
  0x10   : > { %s2465_s19 = scalar_lea.vmem %s3378_s0, %s2271_s14  ;;  %v338_v16 = vld [vmem:[%s3380_s2 + $0x20] sm:$0xff]  ;;  %v339_v17 = vld [vmem:[%s3380_s2 + $0x28] sm:$0xff]  ;;  %v336_v19 = vld [vmem:[%s3380_s2 + $0x10] sm:$0xff] }
  0x11   : > { %v2299_v7 = vld [vmem:[%s2465_s19 + $0x38] sm:$0xff]   ;;  %v2300_v9 = vld [vmem:[%s2465_s19 + $0x30] sm:$0xff]   ;;  %v2301_v12 = vld [vmem:[%s2465_s19 + $0x28] sm:$0xff]  }
  0x12   : > { %427 = vperm.xlu0 %2297, %v349_v4   ;;  %583 = vmatpush1.bf16.msra.mxu0 %v2299_v7  ;;  %v2302_v15 = vld [vmem:[%s2465_s19 + $0x20] sm:$0xff]   ;;  %v2303_v18 = vld [vmem:[%s2465_s19 + $0x18] sm:$0xff]   ;;  %v2304_v21 = vld [vmem:[%s2465_s19 + $0x10] sm:$0xff]  }
  0x13   : > { %417 = vperm.xlu1 %2298, %v347_v5   ;;  %584 = vmatprep.subr.bf16.mxu0 %v2380_v0  ;;  %v337_v20 = vld [vmem:[%s3380_s2 + $0x18] sm:$0xff]  ;;  %v334_v22 = vld [vmem:[%s3380_s2] sm:$0xff]  ;;  %v335_v23 = vld [vmem:[%s3380_s2 + $0x8] sm:$0xff] }
  0x14   : > { %v2305_v24 = vld [vmem:[%s2465_s19 + $0x8] sm:$0xff]   ;;  %v733_v25 = vld [vmem:[%s3382_s4 + $0x70] sm:$0xff]  ;;  %v734_v26 = vld [vmem:[%s3382_s4 + $0x78] sm:$0xff] }
  0x15   : > { %v2306_v27 = vld [vmem:[%s2465_s19] sm:$0xff]   ;;  %v732_v30 = vld [vmem:[%s3382_s4 + $0x68] sm:$0xff]  ;;  %v729_v32 = vld [vmem:[%s3382_s4 + $0x50] sm:$0xff] }
  0x16   : > { %402 = vperm.xlu0 %2297, %v344_v6   ;;  %585 = vmatpush1.bf16.msra.mxu0 %v2300_v9  ;;  %v2307_v28 = vld [vmem:[%s2465_s19 + $0x40] ss:$0 sps:$4 sm:$0xff]   ;;  %v2311_v34 = vld [vmem:[%s3379_s1 + $0x14] ss:$8 sps:$4 sm:$0xff]   ;;  %v728_v37 = vld [vmem:[%s3382_s4 + $0x48] sm:$0xff] }
  0x17   : > { %407 = vperm.xlu1 %2298, %v345_v8   ;;  %586 = vmatprep.subr.bf16.mxu0 %v2380_v0  ;;  %v731_v29 = vld [vmem:[%s3382_s4 + $0x60] sm:$0xff]  ;;  %v580_v31 = vsel %vm578_vm1, %v2307_v28, 0  ;;  %v730_v35 = vld [vmem:[%s3382_s4 + $0x58] sm:$0xff]  ;;  %v725_v38 = vld [vmem:[%s3382_s4 + $0x30] sm:$0xff] }
  0x18   : > { %v2308_v33 = vld [vmem:[%s3379_s1] ss:$8 sps:$4 sm:$0xff]   ;;  %v2313_v39 = vld [vmem:[%s3379_s1 + $0x10] ss:$8 sps:$4 sm:$0xff]   ;;  %v2314_v41 = vld [vmem:[%s3379_s1 + $0x24] ss:$8 sps:$4 sm:$0xff]  }
  0x19   : > { %v727_v36 = vld [vmem:[%s3382_s4 + $0x40] sm:$0xff]  ;;  %v726_v40 = vld [vmem:[%s3382_s4 + $0x38] sm:$0xff]  ;;  %v724_v43 = vld [vmem:[%s3382_s4 + $0x28] sm:$0xff] }
  0x1a   : > { %392 = vperm.xlu0 %2297, %v342_v10   ;;  %587 = vmatpush1.bf16.msra.mxu0 %v2301_v12  ;;  %v723_v42 = vld [vmem:[%s3382_s4 + $0x20] sm:$0xff]  ;;  %v721_v44 = vld [vmem:[%s3382_s4 + $0x10] sm:$0xff]  ;;  %v722_v46 = vld [vmem:[%s3382_s4 + $0x18] sm:$0xff] }
  0x1b   : > { %397 = vperm.xlu1 %2298, %v343_v11   ;;  %588 = vmatprep.subr.bf16.mxu0 %v2380_v0  ;;  %v2316_v45 = vld [vmem:[%s3379_s1 + $0x20] ss:$8 sps:$4 sm:$0xff]   ;;  %v2317_v47 = vld [vmem:[%s3379_s1 + $0x34] ss:$8 sps:$4 sm:$0xff]   ;;  %v2319_v51 = vld [vmem:[%s3379_s1 + $0x30] ss:$8 sps:$4 sm:$0xff]  }
  0x1c   : > { %v719_v48 = vld [vmem:[%s3382_s4] sm:$0xff]  ;;  %v720_v49 = vld [vmem:[%s3382_s4 + $0x8] sm:$0xff]  ;;  %v1018_v54 = vld [vmem:[%s3384_s6 + $0x10] sm:$0xff] }
  0x1d   : > { %v1016_v50 = vld [vmem:[%s3384_s6] sm:$0xff]  ;;  %v1017_v52 = vld [vmem:[%s3384_s6 + $0x8] sm:$0xff]  ;;  %v1019_v55 = vld [vmem:[%s3384_s6 + $0x18] sm:$0xff] }
  0x1e   : > { %382 = vperm.xlu0 %2297, %v340_v13   ;;  %589 = vmatpush1.bf16.msra.mxu0 %v2302_v15  ;;  %v2320_v53 = vld [vmem:[%s3379_s1 + $0x44] ss:$8 sps:$4 sm:$0xff]   ;;  %v2322_v57 = vld [vmem:[%s3379_s1 + $0x40] ss:$8 sps:$4 sm:$0xff]   ;;  %v2323_v59 = vld [vmem:[%s3379_s1 + $0x54] ss:$8 sps:$4 sm:$0xff]  }
  0x1f   : > { %387 = vperm.xlu1 %2298, %v341_v14   ;;  %590 = vmatprep.subr.bf16.mxu0 %v2380_v0  ;;  %v1020_v56 = vld [vmem:[%s3384_s6 + $0x20] sm:$0xff]  ;;  %v1021_v58 = vld [vmem:[%s3384_s6 + $0x28] sm:$0xff]  ;;  %v1022_v60 = vld [vmem:[%s3384_s6 + $0x30] sm:$0xff] }
  0x20   : > { %v1023_v61 = vld [vmem:[%s3384_s6 + $0x38] sm:$0xff]  ;;  %v1024_v62 = vld [vmem:[%s3384_s6 + $0x40] sm:$0xff]  ;;  %v1026_v2 = vld [vmem:[%s3384_s6 + $0x50] sm:$0xff] }
  0x21   : > { %v2325_v63 = vld [vmem:[%s3379_s1 + $0x50] ss:$8 sps:$4 sm:$0xff]   ;;  %v2326_v1 = vld [vmem:[%s3379_s1 + $0x64] ss:$8 sps:$4 sm:$0xff]   ;;  %v2328_v5 = vld [vmem:[%s3379_s1 + $0x60] ss:$8 sps:$4 sm:$0xff]  }
  0x22   : > { %372 = vperm.xlu0 %2297, %v338_v16   ;;  %591 = vmatpush1.bf16.msra.mxu0 %v2303_v18  ;;  %v1027_v3 = vld [vmem:[%s3384_s6 + $0x58] sm:$0xff]  ;;  %v1028_v4 = vld [vmem:[%s3384_s6 + $0x60] sm:$0xff]  ;;  %v1029_v6 = vld [vmem:[%s3384_s6 + $0x68] sm:$0xff] }
  0x23   : > { %377 = vperm.xlu1 %2298, %v339_v17   ;;  %592 = vmatprep.subr.bf16.mxu0 %v2380_v0  ;;  %v2329_v7 = vld [vmem:[%s3379_s1 + $0x74] ss:$8 sps:$4 sm:$0xff]   ;;  %v1032_v10 = vld [vmem:[%s3384_s6 + $0x80] sm:$0xff]  ;;  %v2331_v11 = vld [vmem:[%s3379_s1 + $0x70] ss:$8 sps:$4 sm:$0xff]  }
  0x24   : > { %v1030_v8 = vld [vmem:[%s3384_s6 + $0x70] sm:$0xff]  ;;  %v1031_v9 = vld [vmem:[%s3384_s6 + $0x78] sm:$0xff]  ;;  %v1033_v12 = vld [vmem:[%s3384_s6 + $0x88] sm:$0xff] }
  0x25   : > { %v1034_v13 = vld [vmem:[%s3384_s6 + $0x90] sm:$0xff]  ;;  %v1035_v14 = vld [vmem:[%s3384_s6 + $0x98] sm:$0xff]  ;;  %v1036_v15 = vld [vmem:[%s3384_s6 + $0xa0] sm:$0xff] }
  0x26   : > { %362 = vperm.xlu0 %2297, %v336_v19   ;;  %593 = vmatpush1.bf16.msra.mxu0 %v2304_v21  ;;  %v1037_v16 = vld [vmem:[%s3384_s6 + $0xa8] sm:$0xff]  ;;  %v1038_v17 = vld [vmem:[%s3384_s6 + $0xb0] sm:$0xff]  ;;  %v1039_v18 = vld [vmem:[%s3384_s6 + $0xb8] sm:$0xff] }
  0x27   : > { %367 = vperm.xlu1 %2298, %v337_v20   ;;  %594 = vmatprep.subr.bf16.mxu0 %v2380_v0  ;;  %v1040_v19 = vld [vmem:[%s3384_s6 + $0xc0] sm:$0xff]  ;;  %v1041_v20 = vld [vmem:[%s3384_s6 + $0xc8] sm:$0xff]  ;;  %v1042_v21 = vld [vmem:[%s3384_s6 + $0xd0] sm:$0xff] }
  0x2a   : > { %352 = vperm.xlu0 %2297, %v334_v22   ;;  %595 = vmatpush1.bf16.msra.mxu0 %v2305_v24  ;;  %v1043_v22 = vld [vmem:[%s3384_s6 + $0xd8] sm:$0xff]  ;;  %v1045_v24 = vld [vmem:[%s3384_s6 + $0xe8] sm:$0xff] }
  0x2b   : > { %357 = vperm.xlu1 %2298, %v335_v23   ;;  %596 = vmatprep.subr.bf16.mxu0 %v2380_v0  ;;  %v1044_v23 = vld [vmem:[%s3384_s6 + $0xe0] sm:$0xff] }
  0x2e   : > { %807 = vperm.xlu0 %2297, %v733_v25   ;;  %597 = vmatpush1.bf16.msra.mxu0 %v2306_v27  ;;  %v1046_v25 = vld [vmem:[%s3384_s6 + $0xf0] sm:$0xff] }
  0x2f   : > { %812 = vperm.xlu1 %2298, %v734_v26   ;;  %612 = vmatprep.subr.bf16.mxu0 %v2380_v0  ;;  %v1025_v0 = vld [vmem:[%s3384_s6 + $0x48] sm:$0xff]  ;;  %v1047_v26 = vld [vmem:[%s3384_s6 + $0xf8] sm:$0xff] }
  0x32   : > { %797 = vperm.xlu0 %2297, %v731_v29   ;;  %613 = vmatpush2.bf16.msra.mxu0 %v580_v31  ;;  %v2332_v31 = vld [vmem:[%s3381_s3] sm:$0xff]  }
  0x33   : > { %802 = vperm.xlu1 %2298, %v732_v30   ;;  %2191 = vmatprep.mubr.bf16.mxu1 %v2332_v31 }
  0x35   : > { %615 = vmatmul.mubr.bf16.vlgmr.msra.gmra.mxu0 %v2308_v33 }
  0x36   : > { %787 = vperm.xlu0 %2297, %v729_v32   ;;  %1971 = vmatprep.mubr.msk.bf16.mxu0 %vm553_vm0, %v2311_v34 }
  0x37   : > { %792 = vperm.xlu1 %2298, %v730_v35  }
  0x3a   : > { %777 = vperm.xlu0 %2297, %v727_v36  }
  0x3b   : > { %782 = vperm.xlu1 %2298, %v728_v37  }
  0x3d   : > { %623 = vmatmul.mubr.bf16.gmra.mxu0 %v2313_v39 }
  0x3e   : > { %767 = vperm.xlu0 %2297, %v725_v38   ;;  %1972 = vmatprep.mubr.msk.bf16.mxu0 %vm553_vm0, %v2314_v41 }
  0x3f   : > { %772 = vperm.xlu1 %2298, %v726_v40  }
  0x42   : > { %757 = vperm.xlu0 %2297, %v723_v42  }
  0x43   : > { %762 = vperm.xlu1 %2298, %v724_v43  }
  0x45   : > { %631 = vmatmul.mubr.bf16.gmra.mxu0 %v2316_v45 }
  0x46   : > { %747 = vperm.xlu0 %2297, %v721_v44   ;;  %1973 = vmatprep.mubr.msk.bf16.mxu0 %vm553_vm0, %v2317_v47 }
  0x47   : > { %752 = vperm.xlu1 %2298, %v722_v46  }
  0x4a   : > { %737 = vperm.xlu0 %2297, %v719_v48  }
  0x4b   : > { %742 = vperm.xlu1 %2298, %v720_v49  }
  0x4d   : > { %639 = vmatmul.mubr.bf16.gmra.mxu0 %v2319_v51 }
  0x4e   : > { %1050 = vperm.xlu0 %2297, %v1016_v50   ;;  %1974 = vmatprep.mubr.msk.bf16.mxu0 %vm553_vm0, %v2320_v53 }
  0x4f   : > { %1055 = vperm.xlu1 %2298, %v1017_v52  }
  0x52   : > { %1060 = vperm.xlu0 %2297, %v1018_v54  }
  0x53   : > { %1065 = vperm.xlu1 %2298, %v1019_v55  }
  0x55   : > { %647 = vmatmul.mubr.bf16.gmra.mxu0 %v2322_v57 }
  0x56   : > { %1070 = vperm.xlu0 %2297, %v1020_v56   ;;  %1975 = vmatprep.mubr.msk.bf16.mxu0 %vm553_vm0, %v2323_v59 }
  0x57   : > { %1075 = vperm.xlu1 %2298, %v1021_v58  }
  0x5a   : > { %1080 = vperm.xlu0 %2297, %v1022_v60  }
  0x5b   : > { %1085 = vperm.xlu1 %2298, %v1023_v61  }
  0x5d   : > { %655 = vmatmul.mubr.bf16.gmra.mxu0 %v2325_v63 }
  0x5e   : > { %1090 = vperm.xlu0 %2297, %v1024_v62   ;;  %1976 = vmatprep.mubr.msk.bf16.mxu0 %vm553_vm0, %v2326_v1 }
  0x5f   : > { %1095 = vperm.xlu1 %2298, %v1025_v0  }
  0x62   : > { %1100 = vperm.xlu0 %2297, %v1026_v2  }
  0x63   : > { %1105 = vperm.xlu1 %2298, %v1027_v3  }
  0x65   : > { %663 = vmatmul.mubr.bf16.gmra.mxu0 %v2328_v5 }
  0x66   : > { %1110 = vperm.xlu0 %2297, %v1028_v4   ;;  %1977 = vmatprep.mubr.msk.bf16.mxu0 %vm553_vm0, %v2329_v7 }
  0x67   : > { %1115 = vperm.xlu1 %2298, %v1029_v6  }
  0x6a   : > { %1120 = vperm.xlu0 %2297, %v1030_v8  }
  0x6b   : > { %1125 = vperm.xlu1 %2298, %v1031_v9  }
  0x6d   : > { %671 = vmatmul.mubr.bf16.gmra.mxu0 %v2331_v11 }
  0x6e   : > { %1130 = vperm.xlu0 %2297, %v1032_v10  }
  0x6f   : > { %1135 = vperm.xlu1 %2298, %v1033_v12  }
  0x72   : > { %1140 = vperm.xlu0 %2297, %v1034_v13  }
  0x73   : > { %1145 = vperm.xlu1 %2298, %v1035_v14  }
  0x76   : > { %1150 = vperm.xlu0 %2297, %v1036_v15  }
  0x77   : > { %1155 = vperm.xlu1 %2298, %v1037_v16  }
  0x7a   : > { %1160 = vperm.xlu0 %2297, %v1038_v17  }
  0x7b   : > { %1165 = vperm.xlu1 %2298, %v1039_v18  }
  0x7e   : > { %1170 = vperm.xlu0 %2297, %v1040_v19  }
  0x7f   : > { %1175 = vperm.xlu1 %2298, %v1041_v20  }
  0x82   : > { %1180 = vperm.xlu0 %2297, %v1042_v21  }
  0x83   : > { %1185 = vperm.xlu1 %2298, %v1043_v22  }
  0x86   : > { %1190 = vperm.xlu0 %2297, %v1044_v23  }
  0x87   : > { %1195 = vperm.xlu1 %2298, %v1045_v24  }
  0x89   : > { %v423_v27 = vpop.permute.xlu0 %422 }
  0x8a   : > { %1200 = vperm.xlu0 %2297, %v1046_v25   ;;  %v413_v28 = vpop.permute.xlu1 %412 }
  0x8b   : > { %1205 = vperm.xlu1 %2298, %v1047_v26  }
  0x8d   : > { %v428_v29 = vpop.permute.xlu0 %427 }
  0x8e   : > { %v418_v30 = vpop.permute.xlu1 %417 }
  0x91   : > { %v403_v32 = vpop.permute.xlu0 %402 }
  0x92   : > { %v408_v33 = vpop.permute.xlu1 %407 }
  0x95   : > { %v2719_v34 = vpop.permute.xlu0 %392 }
  0x96   : > { %v398_v35 = vpop.permute.xlu1 %397 }
  0x99   : > { %v2721_v36 = vpop.permute.xlu0 %382 }
  0x9a   : > { %v2723_v37 = vpop.permute.xlu1 %387 }
  0x9d   : > { %v2725_v38 = vpop.permute.xlu0 %372 }
  0x9e   : > { %v2727_v39 = vpop.permute.xlu1 %377 }
  0xa1   : > { %v363_v40 = vpop.permute.xlu0 %362 }
  0xa2   : > { %v368_v41 = vpop.permute.xlu1 %367 }
  0xa5   : > { %v353_v43 = vpop.permute.xlu0 %352 }
  0xa6   : > { %v358_v46 = vpop.permute.xlu1 %357 }
  0xf5   : > { %v616_v42 = vpop.f32.mrf.mxu0 }
  0xf6   : > { %v617_v45 = vadd.f32 %v616_v42, %v353_v43 }
  0xf7   : > { %v618_v44 = vpop.f32.mrf.mxu0 }
  0xf8   : > { %v679_v50 = vmax.f32 %v617_v45, 0.0 }
  0xf9   : > { %v619_v47 = vpop.f32.mrf.mxu0 }
  0xfa   : > { %v620_v48 = vadd.f32 %v619_v47, %v358_v46 }
  0xfb   : > { %v621_v49 = vpop.f32.mrf.mxu0 }
  0xfc   : > { %v680_v51 = vmax.f32 %v620_v48, 0.0 }
  0xfd   : > { %v624_v52 = vpop.f32.mrf.mxu0 }
  0xfe   : > { %v2729_v53 = vpack.c.bf16 %v680_v51, %v679_v50  ;;  %v625_v55 = vadd.f32 %v624_v52, %v363_v40 }
  0xff   : > { %v626_v54 = vpop.f32.mrf.mxu0 }
 0x100   : > { %v681_v59 = vmax.f32 %v625_v55, 0.0 }
 0x101   : > { %v627_v56 = vpop.f32.mrf.mxu0 }
 0x102   : > { %v628_v57 = vadd.f32 %v627_v56, %v368_v41  ;;  %v2336_v56 = vld [vmem:[%s3381_s3 + $0x20] sm:$0xff]  }
 0x103   : > { %v629_v58 = vpop.f32.mrf.mxu0 }
 0x104   : > { %v682_v60 = vmax.f32 %v628_v57, 0.0  ;;  %v2338_v57 = vld [vmem:[%s3381_s3 + $0x30] sm:$0xff]   ;;  %v2339_v58 = vld [vmem:[%s3381_s3 + $0x38] sm:$0xff]  }
 0x105   : > { %v632_v61 = vpop.f32.mrf.mxu0 }
 0x106   : > { %v2731_v62 = vpack.c.bf16 %v682_v60, %v681_v59  ;;  %v633_v51 = vadd.f32 %v632_v61, %v2725_v38  ;;  %v2334_v38 = vld [vmem:[%s3381_s3 + $0x10] sm:$0xff]   ;;  %v2340_v59 = vld [vmem:[%s3383_s5] sm:$0xff]  }
 0x107   : > { %v634_v63 = vpop.f32.mrf.mxu0  ;;  %v2341_v60 = vld [vmem:[%s3383_s5 + $0x10] sm:$0xff]   ;;  %2223 = vmatprep.mubr.bf16.mxu0 %v2340_v59 }
 0x109   : > { %v635_v0 = vpop.f32.mrf.mxu0 }
 0x10b   : > { %v637_v1 = vpop.f32.mrf.mxu0 }
 0x10c   : > { %v813_v1 = vpop.permute.xlu1 %812 }
 0x10d   : > { %v640_v2 = vpop.f32.mrf.mxu0 }
 0x10f   : > { %v642_v3 = vpop.f32.mrf.mxu0 }
 0x110   : > { %v808_v3 = vpop.permute.xlu0 %807 }
 0x111   : > { %v643_v4 = vpop.f32.mrf.mxu0 }
 0x113   : > { %v645_v5 = vpop.f32.mrf.mxu0 }
 0x115   : > { %v648_v6 = vpop.f32.mrf.mxu0 }
 0x116   : > { %v649_v48 = vadd.f32 %v648_v6, %v2719_v34  ;;  %v803_v6 = vpop.permute.xlu1 %802 }
 0x117   : > { %v650_v7 = vpop.f32.mrf.mxu0 }
 0x118   : > { %v687_v49 = vmax.f32 %v649_v48, 0.0 }
 0x119   : > { %v651_v8 = vpop.f32.mrf.mxu0 }
 0x11a   : > { %v652_v45 = vadd.f32 %v651_v8, %v398_v35  ;;  %v798_v8 = vpop.permute.xlu0 %797 }
 0x11b   : > { %v653_v9 = vpop.f32.mrf.mxu0 }
 0x11d   : > { %v656_v10 = vpop.f32.mrf.mxu0 }
 0x11e   : > { %v657_v42 = vadd.f32 %v656_v10, %v403_v32  ;;  %v636_v32 = vadd.f32 %v635_v0, %v2727_v39  ;;  %v2335_v39 = vld [vmem:[%s3381_s3 + $0x18] sm:$0xff]  }
 0x11f   : > { %v658_v11 = vpop.f32.mrf.mxu0 }
 0x120   : > { %v684_v34 = vmax.f32 %v636_v32, 0.0  ;;  %v793_v11 = vpop.permute.xlu1 %792 }
 0x121   : > { %v659_v12 = vpop.f32.mrf.mxu0 }
 0x122   : > { %v660_v26 = vadd.f32 %v659_v12, %v408_v33  ;;  %v641_v33 = vadd.f32 %v640_v2, %v2721_v36  ;;  %v2333_v36 = vld [vmem:[%s3381_s3 + $0x8] sm:$0xff]  }
 0x123   : > { %v661_v13 = vpop.f32.mrf.mxu0 }
 0x124   : > { %v690_v46 = vmax.f32 %v660_v26, 0.0  ;;  %v685_v52 = vmax.f32 %v641_v33, 0.0  ;;  %v788_v13 = vpop.permute.xlu0 %787 }
 0x125   : > { %v664_v14 = vpop.f32.mrf.mxu0 }
 0x126   : > { %v665_v23 = vadd.f32 %v664_v14, %v413_v28  ;;  %v688_v28 = vmax.f32 %v652_v45, 0.0 }
 0x127   : > { %v666_v15 = vpop.f32.mrf.mxu0 }
 0x128   : > { %v691_v43 = vmax.f32 %v665_v23, 0.0  ;;  %v699_v50 = vpack.c.bf16 %v688_v28, %v687_v49 }
 0x129   : > { %v667_v16 = vpop.f32.mrf.mxu0 }
 0x12a   : > { %v668_v20 = vadd.f32 %v667_v16, %v418_v30  ;;  %v689_v30 = vmax.f32 %v657_v42, 0.0  ;;  %v783_v16 = vpop.permute.xlu1 %782 }
 0x12b   : > { %v669_v17 = vpop.f32.mrf.mxu0 }
 0x12c   : > { %v692_v31 = vmax.f32 %v668_v20, 0.0 }
 0x12d   : > { %v672_v18 = vpop.f32.mrf.mxu0 }
 0x12e   : > { %v673_v21 = vadd.f32 %v672_v18, %v423_v27  ;;  %v701_v47 = vpack.c.bf16 %v692_v31, %v691_v43  ;;  %v644_v27 = vadd.f32 %v643_v4, %v2723_v37  ;;  %v683_v37 = vmax.f32 %v633_v51, 0.0 }
 0x12f   : > { %v674_v19 = vpop.f32.mrf.mxu0 }
 0x130   : > { %v693_v40 = vmax.f32 %v673_v21, 0.0  ;;  %v686_v35 = vmax.f32 %v644_v27, 0.0  ;;  %v697_v55 = vpack.c.bf16 %v684_v34, %v683_v37  ;;  %v778_v19 = vpop.permute.xlu0 %777 }
 0x131   : > { %v675_v22 = vpop.f32.mrf.mxu0 }
 0x132   : > { %v676_v24 = vadd.f32 %v675_v22, %v428_v29  ;;  %v700_v29 = vpack.c.bf16 %v690_v46, %v689_v30  ;;  %v698_v54 = vpack.c.bf16 %v686_v35, %v685_v52 }
 0x133   : > { %v677_v25 = vpop.f32.mrf.mxu0 }
 0x134   : > { %v694_v41 = vmax.f32 %v676_v24, 0.0  ;;  %v768_v45 = vpop.permute.xlu0 %767 }
 0x136   : > { %v702_v44 = vpack.c.bf16 %v694_v41, %v693_v40  ;;  %v773_v40 = vpop.permute.xlu1 %772 }
 0x138   : > { %2175 = vmatprep.subr.bf16.mxu1 %v702_v44  ;;  %v758_v32 = vpop.permute.xlu0 %757 }
 0x139   : > { %2176 = vmatpush3.bf16.msra.mxu1 %v702_v44 }
 0x13a   : > { %2177 = vmatprep.subr.bf16.mxu1 %v701_v47  ;;  %v763_v28 = vpop.permute.xlu1 %762 }
 0x13d   : > { %2178 = vmatpush3.bf16.msra.mxu1 %v701_v47 }
 0x13e   : > { %2179 = vmatprep.subr.bf16.mxu1 %v700_v29 }
 0x141   : > { %2180 = vmatpush3.bf16.msra.mxu1 %v700_v29 }
 0x142   : > { %2181 = vmatprep.subr.bf16.mxu1 %v699_v50 }
 0x145   : > { %2182 = vmatpush3.bf16.msra.mxu1 %v699_v50 }
 0x146   : > { %2183 = vmatprep.subr.bf16.mxu1 %v698_v54 }
 0x149   : > { %2184 = vmatpush3.bf16.msra.mxu1 %v698_v54  ;;  %v753_v54 = vpop.permute.xlu1 %752 }
 0x14a   : > { %2185 = vmatprep.subr.bf16.mxu1 %v697_v55 }
 0x14d   : > { %2186 = vmatpush3.bf16.msra.mxu1 %v697_v55 }
 0x14e   : > { %2187 = vmatprep.subr.bf16.mxu1 %v2731_v62 }
 0x151   : > { %2188 = vmatpush3.bf16.msra.mxu1 %v2731_v62 }
 0x152   : > { %2189 = vmatprep.subr.bf16.mxu1 %v2729_v53 }
 0x155   : > { %2190 = vmatpush3.bf16.msra.mxu1 %v2729_v53  ;;  %v2337_v53 = vld [vmem:[%s3381_s3 + $0x28] sm:$0xff]  }
 0x158   : > { %2192 = vmatmul.mubr.bf16.vlgmr.msra.gmra.mxu1 %v2333_v36  ;;  %v748_v36 = vpop.permute.xlu0 %747 }
 0x159   : > { %2195 = vmatprep.mubr.bf16.mxu1 %v2334_v38 }
 0x160   : > { %2196 = vmatmul.mubr.bf16.gmra.mxu1 %v2335_v39 }
 0x161   : > { %2199 = vmatprep.mubr.bf16.mxu1 %v2336_v56 }
 0x168   : > { %2200 = vmatmul.mubr.bf16.gmra.mxu1 %v2337_v53 }
 0x169   : > { %2203 = vmatprep.mubr.bf16.mxu1 %v2338_v57 }
 0x170   : > { %2204 = vmatmul.mubr.bf16.gmra.mxu1 %v2339_v58  ;;  %v743_v58 = vpop.permute.xlu1 %742 }
 0x171   : > { %2227 = vmatprep.mubr.bf16.mxu1 %v2341_v60 }
 0x218   : > { %v2769_v61 = vpop.f32.mrf.mxu1 }
 0x219   : > { %v906_v53 = vadd.f32 %v2769_v61, %v748_v36 }
 0x21a   : > { %v2771_v62 = vpop.f32.mrf.mxu1 }
 0x21c   : > { %v2773_v63 = vpop.f32.mrf.mxu1 }
 0x21d   : > { %v909_v38 = vadd.f32 %v2773_v63, %v753_v54 }
 0x21e   : > { %v2775_v0 = vpop.f32.mrf.mxu1 }
 0x21f   : > { %v963_v59 = vmax.f32 %v909_v38, 0.0  ;;  %v901_v60 = vadd.f32 %v2775_v0, %v743_v58  ;;  %v2342_v0 = vld [vmem:[%s3383_s5 + $0x8] sm:$0xff]  }
 0x220   : > { %v2197_v2 = vpop.f32.mrf.mxu1 }
 0x221   : > { %v922_v35 = vadd.f32 %v2197_v2, %v768_v45  ;;  %v738_v2 = vpop.permute.xlu0 %737 }
 0x222   : > { %v913_v4 = vpop.f32.mrf.mxu1  ;;  %v898_v63 = vadd.f32 %v2771_v62, %v738_v2  ;;  %v2343_v62 = vld [vmem:[%s3383_s5 + $0x18] sm:$0xff]  }
 0x223   : > { %v966_v37 = vmax.f32 %v922_v35, 0.0  ;;  %v914_v55 = vadd.f32 %v913_v4, %v758_v32 }
 0x224   : > { %v2198_v5 = vpop.f32.mrf.mxu1  ;;  %v960_v61 = vmax.f32 %v898_v63, 0.0 }
 0x225   : > { %v925_v29 = vadd.f32 %v2198_v5, %v773_v40  ;;  %v964_v57 = vmax.f32 %v914_v55, 0.0  ;;  %v961_v5 = vmax.f32 %v901_v60, 0.0 }
 0x226   : > { %v916_v7 = vpop.f32.mrf.mxu1 }
 0x227   : > { %v967_v51 = vmax.f32 %v925_v29, 0.0  ;;  %v917_v52 = vadd.f32 %v916_v7, %v763_v28  ;;  %v2344_v7 = vld [vmem:[%s3383_s5 + $0x20] sm:$0xff]  }
 0x228   : > { %v2201_v9 = vpop.f32.mrf.mxu1 }
 0x229   : > { %v938_v41 = vadd.f32 %v2201_v9, %v788_v13  ;;  %v979_v39 = vpack.c.bf16 %v967_v51, %v966_v37  ;;  %v965_v56 = vmax.f32 %v917_v52, 0.0  ;;  %v2346_v9 = vld [vmem:[%s3383_s5 + $0x30] sm:$0xff]  }
 0x22a   : > { %v929_v10 = vpop.f32.mrf.mxu1  ;;  %v2350_v13 = vld [vmem:[%s3383_s5 + $0x50] sm:$0xff]  }
 0x22b   : > { %v970_v30 = vmax.f32 %v938_v41, 0.0  ;;  %v930_v27 = vadd.f32 %v929_v10, %v778_v19  ;;  %v2347_v10 = vld [vmem:[%s3383_s5 + $0x38] sm:$0xff]   ;;  %v1051_v19 = vpop.permute.xlu0 %1050 }
 0x22c   : > { %v2202_v12 = vpop.f32.mrf.mxu1 }
 0x22d   : > { %v941_v24 = vadd.f32 %v2202_v12, %v793_v11  ;;  %v968_v50 = vmax.f32 %v930_v27, 0.0  ;;  %v2348_v11 = vld [vmem:[%s3383_s5 + $0x40] sm:$0xff]   ;;  %v2349_v12 = vld [vmem:[%s3383_s5 + $0x48] sm:$0xff]  }
 0x22e   : > { %v932_v14 = vpop.f32.mrf.mxu1 }
 0x22f   : > { %v971_v46 = vmax.f32 %v941_v24, 0.0  ;;  %v933_v47 = vadd.f32 %v932_v14, %v783_v16  ;;  %v2351_v14 = vld [vmem:[%s3383_s5 + $0x58] sm:$0xff]   ;;  %v2353_v16 = vld [vmem:[%s3383_s5 + $0x68] sm:$0xff]  }
 0x230   : > { %v2205_v15 = vpop.f32.mrf.mxu1 }
 0x231   : > { %v954_v18 = vadd.f32 %v2205_v15, %v808_v3  ;;  %v981_v33 = vpack.c.bf16 %v971_v46, %v970_v30  ;;  %v969_v49 = vmax.f32 %v933_v47, 0.0  ;;  %v962_v3 = vmax.f32 %v906_v53, 0.0  ;;  %v2352_v15 = vld [vmem:[%s3383_s5 + $0x60] sm:$0xff]  }
 0x232   : > { %v945_v17 = vpop.f32.mrf.mxu1 }
 0x233   : > { %v946_v21 = vadd.f32 %v945_v17, %v798_v8  ;;  %v974_v25 = vmax.f32 %v954_v18, 0.0  ;;  %v980_v34 = vpack.c.bf16 %v969_v49, %v968_v50  ;;  %v977_v4 = vpack.c.bf16 %v963_v59, %v962_v3  ;;  %v2345_v8 = vld [vmem:[%s3383_s5 + $0x28] sm:$0xff]   ;;  %v2354_v17 = vld [vmem:[%s3383_s5 + $0x70] sm:$0xff]   ;;  %v2355_v18 = vld [vmem:[%s3383_s5 + $0x78] sm:$0xff]  }
 0x234   : > { %v2206_v20 = vpop.f32.mrf.mxu1 }
 0x235   : > { %v957_v22 = vadd.f32 %v2206_v20, %v813_v1  ;;  %v972_v42 = vmax.f32 %v946_v21, 0.0  ;;  %v978_v1 = vpack.c.bf16 %v965_v56, %v964_v57  ;;  %v1056_v20 = vpop.permute.xlu1 %1055  ;;  %v1061_v21 = vpop.permute.xlu0 %1060 }
 0x236   : > { %v948_v23 = vpop.f32.mrf.mxu1 }
 0x237   : > { %v975_v26 = vmax.f32 %v957_v22, 0.0  ;;  %v949_v31 = vadd.f32 %v948_v23, %v803_v6  ;;  %v976_v6 = vpack.c.bf16 %v961_v5, %v960_v61 }
 0x239   : > { %v983_v43 = vpack.c.bf16 %v975_v26, %v974_v25  ;;  %v973_v44 = vmax.f32 %v949_v31, 0.0  ;;  %v1066_v22 = vpop.permute.xlu1 %1065  ;;  %v1071_v23 = vpop.permute.xlu0 %1070 }
 0x23b   : > { %v982_v48 = vpack.c.bf16 %v973_v44, %v972_v42  ;;  %2207 = vmatprep.subr.bf16.mxu0 %v983_v43  ;;  %2255 = vmatprep.subr.bf16.mxu1 %v983_v43 }
 0x23c   : > { %2208 = vmatpush3.bf16.msra.mxu0 %v983_v43  ;;  %2263 = vmatpush3.bf16.msra.mxu1 %v983_v43 }
 0x23d   : > { %2209 = vmatprep.subr.bf16.mxu0 %v982_v48  ;;  %2256 = vmatprep.subr.bf16.mxu1 %v982_v48  ;;  %v1076_v24 = vpop.permute.xlu1 %1075  ;;  %v1081_v25 = vpop.permute.xlu0 %1080 }
 0x240   : > { %2210 = vmatpush3.bf16.msra.mxu0 %v982_v48  ;;  %2264 = vmatpush3.bf16.msra.mxu1 %v982_v48 }
 0x241   : > { %2211 = vmatprep.subr.bf16.mxu0 %v981_v33  ;;  %2257 = vmatprep.subr.bf16.mxu1 %v981_v33  ;;  %v1086_v26 = vpop.permute.xlu1 %1085  ;;  %v1091_v31 = vpop.permute.xlu0 %1090 }
 0x244   : > { %2212 = vmatpush3.bf16.msra.mxu0 %v981_v33  ;;  %2265 = vmatpush3.bf16.msra.mxu1 %v981_v33 }
 0x245   : > { %2213 = vmatprep.subr.bf16.mxu0 %v980_v34  ;;  %2258 = vmatprep.subr.bf16.mxu1 %v980_v34  ;;  %v1096_v40 = vpop.permute.xlu1 %1095  ;;  %v1101_v41 = vpop.permute.xlu0 %1100 }
 0x248   : > { %2214 = vmatpush3.bf16.msra.mxu0 %v980_v34  ;;  %2266 = vmatpush3.bf16.msra.mxu1 %v980_v34 }
 0x249   : > { %2215 = vmatprep.subr.bf16.mxu0 %v979_v39  ;;  %2259 = vmatprep.subr.bf16.mxu1 %v979_v39  ;;  %v1106_v42 = vpop.permute.xlu1 %1105  ;;  %v1111_v43 = vpop.permute.xlu0 %1110 }
 0x24c   : > { %2216 = vmatpush3.bf16.msra.mxu0 %v979_v39  ;;  %2267 = vmatpush3.bf16.msra.mxu1 %v979_v39 }
 0x24d   : > { %2217 = vmatprep.subr.bf16.mxu0 %v978_v1  ;;  %2260 = vmatprep.subr.bf16.mxu1 %v978_v1  ;;  %v1116_v44 = vpop.permute.xlu1 %1115  ;;  %v1121_v45 = vpop.permute.xlu0 %1120 }
 0x250   : > { %2218 = vmatpush3.bf16.msra.mxu0 %v978_v1  ;;  %2268 = vmatpush3.bf16.msra.mxu1 %v978_v1 }
 0x251   : > { %2219 = vmatprep.subr.bf16.mxu0 %v977_v4  ;;  %2261 = vmatprep.subr.bf16.mxu1 %v977_v4  ;;  %v1126_v29 = vpop.permute.xlu1 %1125  ;;  %v1131_v52 = vpop.permute.xlu0 %1130 }
 0x254   : > { %2220 = vmatpush3.bf16.msra.mxu0 %v977_v4  ;;  %2269 = vmatpush3.bf16.msra.mxu1 %v977_v4 }
 0x255   : > { %2221 = vmatprep.subr.bf16.mxu0 %v976_v6  ;;  %2262 = vmatprep.subr.bf16.mxu1 %v976_v6  ;;  %v1136_v2 = vpop.permute.xlu1 %1135  ;;  %v1141_v5 = vpop.permute.xlu0 %1140 }
 0x258   : > { %2222 = vmatpush3.bf16.msra.mxu0 %v976_v6  ;;  %2270 = vmatpush3.bf16.msra.mxu1 %v976_v6 }
 0x25b   : > { %2224 = vmatmul.mubr.bf16.vlgmr.msra.gmra.mxu0 %v2342_v0  ;;  %2228 = vmatmul.mubr.bf16.vlgmr.msra.gmra.mxu1 %v2343_v62 }
 0x25c   : > { %2231 = vmatprep.mubr.bf16.mxu1 %v2344_v7 }
 0x263   : > { %2232 = vmatmul.mubr.bf16.gmra.mxu1 %v2345_v8 }
 0x264   : > { %2235 = vmatprep.mubr.bf16.mxu1 %v2346_v9  ;;  %v1146_v9 = vpop.permute.xlu1 %1145 }
 0x26b   : > { %2236 = vmatmul.mubr.bf16.gmra.mxu1 %v2347_v10 }
 0x26c   : > { %2239 = vmatprep.mubr.bf16.mxu1 %v2348_v11 }
 0x273   : > { %2240 = vmatmul.mubr.bf16.gmra.mxu1 %v2349_v12 }
 0x274   : > { %2243 = vmatprep.mubr.bf16.mxu1 %v2350_v13  ;;  %v1151_v13 = vpop.permute.xlu0 %1150 }
 0x27b   : > { %2244 = vmatmul.mubr.bf16.gmra.mxu1 %v2351_v14 }
 0x27c   : > { %2247 = vmatprep.mubr.bf16.mxu1 %v2352_v15 }
 0x283   : > { %2248 = vmatmul.mubr.bf16.gmra.mxu1 %v2353_v16 }
 0x284   : > { %2251 = vmatprep.mubr.bf16.mxu1 %v2354_v17 }
 0x28b   : > { %2252 = vmatmul.mubr.bf16.gmra.mxu1 %v2355_v18 }
 0x31b   : > { %v2225_v46 = vpop.f32.mrf.mxu0  ;;  %v2229_v47 = vpop.f32.mrf.mxu1 }
 0x31c   : > { %v1347_v48 = vadd.f32 %v2225_v46, %v1061_v21  ;;  %v1363_v30 = vadd.f32 %v2229_v47, %v1081_v25 }
 0x31d   : > { %v1338_v27 = vpop.f32.mrf.mxu0  ;;  %v1354_v28 = vpop.f32.mrf.mxu1 }
 0x31e   : > { %v2823_v33 = vmax.f32 %v1347_v48, 0.0  ;;  %v2825_v49 = vmax.f32 %v1363_v30, 0.0  ;;  %v1339_v32 = vadd.f32 %v1338_v27, %v1051_v19  ;;  %v1355_v35 = vadd.f32 %v1354_v28, %v1071_v23 }
 0x31f   : > { %v2226_v50 = vpop.f32.mrf.mxu0  ;;  %v2230_v51 = vpop.f32.mrf.mxu1 }
 0x320   : > { %v2827_v34 = vmax.f32 %v1339_v32, 0.0  ;;  %v2829_v54 = vmax.f32 %v1355_v35, 0.0  ;;  %v1350_v37 = vadd.f32 %v2226_v50, %v1066_v22  ;;  %v1366_v55 = vadd.f32 %v2230_v51, %v1086_v26 }
 0x321   : > { %v1341_v36 = vpop.f32.mrf.mxu0  ;;  %v1357_v38 = vpop.f32.mrf.mxu1 }
 0x322   : > { %v2831_v39 = vmax.f32 %v1350_v37, 0.0  ;;  %v2833_v56 = vmax.f32 %v1366_v55, 0.0  ;;  %v1342_v53 = vadd.f32 %v1341_v36, %v1056_v20  ;;  %v1358_v57 = vadd.f32 %v1357_v38, %v1076_v24  ;;  %v1156_v20 = vpop.permute.xlu1 %1155  ;;  %v1161_v24 = vpop.permute.xlu0 %1160 }
 0x323   : > { %v2233_v58 = vpop.f32.mrf.mxu1 }
 0x324   : > { %v2835_v59 = vmax.f32 %v1342_v53, 0.0  ;;  %v2837_v60 = vmax.f32 %v1358_v57, 0.0  ;;  %v1379_v1 = vadd.f32 %v2233_v58, %v1101_v41 }
 0x325   : > { %v1370_v3 = vpop.f32.mrf.mxu1 }
 0x326   : > { %v2839_v63 = vmax.f32 %v1379_v1, 0.0  ;;  %v1371_v4 = vadd.f32 %v1370_v3, %v1091_v31  ;;  %v1171_v48 = vpop.permute.xlu0 %1170 }
 0x327   : > { %v2234_v61 = vpop.f32.mrf.mxu1 }
 0x328   : > { %v2841_v6 = vmax.f32 %v1371_v4, 0.0  ;;  %v1382_v0 = vadd.f32 %v2234_v61, %v1106_v42 }
 0x329   : > { %v1373_v62 = vpop.f32.mrf.mxu1 }
 0x32a   : > { %v2843_v7 = vmax.f32 %v1382_v0, 0.0  ;;  %v1374_v8 = vadd.f32 %v1373_v62, %v1096_v40 }
 0x32b   : > { %v2237_v10 = vpop.f32.mrf.mxu1 }
 0x32c   : > { %v2845_v11 = vmax.f32 %v1374_v8, 0.0  ;;  %v1395_v12 = vadd.f32 %v2237_v10, %v1121_v45  ;;  %v1166_v45 = vpop.permute.xlu1 %1165 }
 0x32d   : > { %v1386_v14 = vpop.f32.mrf.mxu1 }
 0x32e   : > { %v2847_v15 = vmax.f32 %v1395_v12, 0.0  ;;  %v1387_v16 = vadd.f32 %v1386_v14, %v1111_v43 }
 0x32f   : > { %v2238_v17 = vpop.f32.mrf.mxu1 }
 0x330   : > { %v2849_v18 = vmax.f32 %v1387_v16, 0.0  ;;  %v1398_v19 = vadd.f32 %v2238_v17, %v1126_v29  ;;  %v1176_v35 = vpop.permute.xlu1 %1175 }
 0x331   : > { %v1389_v21 = vpop.f32.mrf.mxu1 }
 0x332   : > { %v2851_v22 = vmax.f32 %v1398_v19, 0.0  ;;  %v1390_v23 = vadd.f32 %v1389_v21, %v1116_v44 }
 0x333   : > { %v2241_v25 = vpop.f32.mrf.mxu1 }
 0x334   : > { %v2853_v26 = vmax.f32 %v1390_v23, 0.0  ;;  %v1411_v31 = vadd.f32 %v2241_v25, %v1141_v5  ;;  %v1186_v1 = vpop.permute.xlu1 %1185 }
 0x335   : > { %v1402_v40 = vpop.f32.mrf.mxu1 }
 0x336   : > { %v2855_v41 = vmax.f32 %v1411_v31, 0.0  ;;  %v1403_v42 = vadd.f32 %v1402_v40, %v1131_v52  ;;  %v1181_v52 = vpop.permute.xlu0 %1180 }
 0x337   : > { %v2242_v43 = vpop.f32.mrf.mxu1 }
 0x338   : > { %v2857_v46 = vmax.f32 %v1403_v42, 0.0  ;;  %v1414_v47 = vadd.f32 %v2242_v43, %v1146_v9  ;;  %v1196_v12 = vpop.permute.xlu1 %1195 }
 0x339   : > { %v1405_v30 = vpop.f32.mrf.mxu1 }
 0x33a   : > { %v2859_v27 = vmax.f32 %v1414_v47, 0.0  ;;  %v1406_v28 = vadd.f32 %v1405_v30, %v1136_v2  ;;  %v1191_v5 = vpop.permute.xlu0 %1190 }
 0x33b   : > { %v2245_v44 = vpop.f32.mrf.mxu1 }
 0x33c   : > { %v2861_v29 = vmax.f32 %v1406_v28, 0.0  ;;  %v1427_v32 = vadd.f32 %v2245_v44, %v1161_v24  ;;  %v1206_v31 = vpop.permute.xlu1 %1205 }
 0x33d   : > { %v1418_v50 = vpop.f32.mrf.mxu1 }
 0x33e   : > { %v2863_v51 = vmax.f32 %v1427_v32, 0.0  ;;  %v1419_v37 = vadd.f32 %v1418_v50, %v1151_v13  ;;  %v1201_v17 = vpop.permute.xlu0 %1200 }
 0x33f   : > { %v2246_v55 = vpop.f32.mrf.mxu1 }
 0x340   : > { %v2865_v36 = vmax.f32 %v1419_v37, 0.0  ;;  %v1430_v38 = vadd.f32 %v2246_v55, %v1166_v45 }
 0x341   : > { %v1421_v53 = vpop.f32.mrf.mxu1 }
 0x342   : > { %v2867_v57 = vmax.f32 %v1430_v38, 0.0  ;;  %v1422_v58 = vadd.f32 %v1421_v53, %v1156_v20 }
 0x343   : > { %v2249_v2 = vpop.f32.mrf.mxu1 }
 0x344   : > { %v2869_v3 = vmax.f32 %v1422_v58, 0.0  ;;  %v1443_v4 = vadd.f32 %v2249_v2, %v1181_v52 }
 0x345   : > { %v1434_v61 = vpop.f32.mrf.mxu1 }
 0x346   : > { %v2871_v0 = vmax.f32 %v1443_v4, 0.0  ;;  %v1435_v62 = vadd.f32 %v1434_v61, %v1171_v48 }
 0x347   : > { %v2250_v8 = vpop.f32.mrf.mxu1 }
 0x348   : > { %v2873_v9 = vmax.f32 %v1435_v62, 0.0  ;;  %v1446_v10 = vadd.f32 %v2250_v8, %v1186_v1 }
 0x349   : > { %v1437_v13 = vpop.f32.mrf.mxu1 }
 0x34a   : > { %v2875_v14 = vmax.f32 %v1446_v10, 0.0  ;;  %v1438_v16 = vadd.f32 %v1437_v13, %v1176_v35 }
 0x34b   : > { %v2253_v19 = vpop.f32.mrf.mxu1 }
 0x34c   : > { %v2877_v20 = vmax.f32 %v1438_v16, 0.0  ;;  %v1459_v21 = vadd.f32 %v2253_v19, %v1201_v17 }
 0x34d   : > { %v1450_v23 = vpop.f32.mrf.mxu1 }
 0x34e   : > { %v2879_v24 = vmax.f32 %v1459_v21, 0.0  ;;  %v1451_v25 = vadd.f32 %v1450_v23, %v1191_v5 }
 0x34f   : > { %v2254_v40 = vpop.f32.mrf.mxu1 }
 0x350   : > { %v2881_v42 = vmax.f32 %v1451_v25, 0.0  ;;  %v1462_v45 = vadd.f32 %v2254_v40, %v1206_v31  ;;  %1516 = sbr.rel (%p2002_p5) target bundleno = 871 (0x367), region = 52 }
 0x351   : > { %v1453_v43 = vpop.f32.mrf.mxu1 }
 0x352   : > { %v2883_v47 = vmax.f32 %v1462_v45, 0.0  ;;  %v1454_v48 = vadd.f32 %v1453_v43, %v1196_v12 }
 0x354   : > { %v2885_v30 = vmax.f32 %v1454_v48, 0.0 }
 0x355   : > { %v2071_v28 = vpack.c.bf16 %v2827_v34, %v2827_v34  ;;  %vm1629_vm2 = vcmask 257024   ;;  %v2072_v44 = vpack.c.bf16 %v2835_v59, %v2835_v59  ;;  %v2073_v32 = vpack.c.bf16 %v2823_v33, %v2823_v33 }
 0x356   : > { %v2074_v35 = vpack.c.bf16 %v2831_v39, %v2831_v39  ;;  %v2075_v50 = vpack.c.bf16 %v2829_v54, %v2829_v54  ;;  %v2076_v37 = vpack.c.bf16 %v2837_v60, %v2837_v60  ;;  %v2077_v52 = vpack.c.bf16 %v2825_v49, %v2825_v49 }
 0x357   : > { %1630 = vst.msk [vmem:[%s3385_s7] sm:$0xf] %vm1629_vm2, %v2071_v28  ;;  %1631 = vst.msk [vmem:[%s3385_s7 + $0x4] sm:$0xf] %vm1629_vm2, %v2072_v44  ;;  %v2078_v55 = vpack.c.bf16 %v2833_v56, %v2833_v56  ;;  %v2079_v38 = vpack.c.bf16 %v2841_v6, %v2841_v6  ;;  %v2080_v53 = vpack.c.bf16 %v2845_v11, %v2845_v11 }
 0x358   : > { %1632 = vst.msk [vmem:[%s3385_s7 + $0x8] sm:$0xf] %vm1629_vm2, %v2073_v32  ;;  %v2081_v58 = vpack.c.bf16 %v2839_v63, %v2839_v63  ;;  %1633 = vst.msk [vmem:[%s3385_s7 + $0xc] sm:$0xf] %vm1629_vm2, %v2074_v35  ;;  %v2082_v1 = vpack.c.bf16 %v2843_v7, %v2843_v7  ;;  %v2083_v2 = vpack.c.bf16 %v2849_v18, %v2849_v18 }
 0x359   : > { %1634 = vst.msk [vmem:[%s3385_s7 + $0x10] sm:$0xf] %vm1629_vm2, %v2075_v50  ;;  %1635 = vst.msk [vmem:[%s3385_s7 + $0x14] sm:$0xf] %vm1629_vm2, %v2076_v37  ;;  %v2084_v4 = vpack.c.bf16 %v2853_v26, %v2853_v26  ;;  %v2085_v5 = vpack.c.bf16 %v2847_v15, %v2847_v15  ;;  %v2086_v61 = vpack.c.bf16 %v2851_v22, %v2851_v22 }
 0x35a   : > { %1636 = vst.msk [vmem:[%s3385_s7 + $0x18] sm:$0xf] %vm1629_vm2, %v2077_v52  ;;  %1637 = vst.msk [vmem:[%s3385_s7 + $0x1c] sm:$0xf] %vm1629_vm2, %v2078_v55  ;;  %v2087_v62 = vpack.c.bf16 %v2857_v46, %v2857_v46  ;;  %v2088_v8 = vpack.c.bf16 %v2861_v29, %v2861_v29  ;;  %v2089_v10 = vpack.c.bf16 %v2855_v41, %v2855_v41 }
 0x35b   : > { %1638 = vst.msk [vmem:[%s3385_s7 + $0x20] sm:$0xf] %vm1629_vm2, %v2079_v38  ;;  %1639 = vst.msk [vmem:[%s3385_s7 + $0x24] sm:$0xf] %vm1629_vm2, %v2080_v53  ;;  %v2090_v12 = vpack.c.bf16 %v2859_v27, %v2859_v27  ;;  %v2091_v13 = vpack.c.bf16 %v2865_v36, %v2865_v36  ;;  %v2092_v16 = vpack.c.bf16 %v2869_v3, %v2869_v3 }
 0x35c   : > { %1640 = vst.msk [vmem:[%s3385_s7 + $0x28] sm:$0xf] %vm1629_vm2, %v2081_v58  ;;  %1641 = vst.msk [vmem:[%s3385_s7 + $0x2c] sm:$0xf] %vm1629_vm2, %v2082_v1  ;;  %v2093_v17 = vpack.c.bf16 %v2863_v51, %v2863_v51  ;;  %v2094_v19 = vpack.c.bf16 %v2867_v57, %v2867_v57  ;;  %v2095_v21 = vpack.c.bf16 %v2873_v9, %v2873_v9 }
 0x35d   : > { %1642 = vst.msk [vmem:[%s3385_s7 + $0x30] sm:$0xf] %vm1629_vm2, %v2083_v2  ;;  %1643 = vst.msk [vmem:[%s3385_s7 + $0x34] sm:$0xf] %vm1629_vm2, %v2084_v4  ;;  %v2096_v23 = vpack.c.bf16 %v2877_v20, %v2877_v20  ;;  %v2097_v25 = vpack.c.bf16 %v2871_v0, %v2871_v0  ;;  %v2098_v31 = vpack.c.bf16 %v2875_v14, %v2875_v14 }
 0x35e   : > { %1644 = vst.msk [vmem:[%s3385_s7 + $0x38] sm:$0xf] %vm1629_vm2, %v2085_v5  ;;  %1645 = vst.msk [vmem:[%s3385_s7 + $0x3c] sm:$0xf] %vm1629_vm2, %v2086_v61  ;;  %v2099_v40 = vpack.c.bf16 %v2881_v42, %v2881_v42  ;;  %v2100_v45 = vpack.c.bf16 %v2885_v30, %v2885_v30  ;;  %v2101_v43 = vpack.c.bf16 %v2879_v24, %v2879_v24 }
 0x35f   : > { %1646 = vst.msk [vmem:[%s3385_s7 + $0x40] sm:$0xf] %vm1629_vm2, %v2087_v62  ;;  %1647 = vst.msk [vmem:[%s3385_s7 + $0x44] sm:$0xf] %vm1629_vm2, %v2088_v8  ;;  %v2102_v48 = vpack.c.bf16 %v2883_v47, %v2883_v47 }
 0x360   : > { %1648 = vst.msk [vmem:[%s3385_s7 + $0x48] sm:$0xf] %vm1629_vm2, %v2089_v10  ;;  %1649 = vst.msk [vmem:[%s3385_s7 + $0x4c] sm:$0xf] %vm1629_vm2, %v2090_v12 }
 0x361   : > { %1650 = vst.msk [vmem:[%s3385_s7 + $0x50] sm:$0xf] %vm1629_vm2, %v2091_v13  ;;  %1651 = vst.msk [vmem:[%s3385_s7 + $0x54] sm:$0xf] %vm1629_vm2, %v2092_v16 }
 0x362   : > { %1652 = vst.msk [vmem:[%s3385_s7 + $0x58] sm:$0xf] %vm1629_vm2, %v2093_v17  ;;  %1653 = vst.msk [vmem:[%s3385_s7 + $0x5c] sm:$0xf] %vm1629_vm2, %v2094_v19 }
 0x363   : > { %1654 = vst.msk [vmem:[%s3385_s7 + $0x60] sm:$0xf] %vm1629_vm2, %v2095_v21  ;;  %1655 = vst.msk [vmem:[%s3385_s7 + $0x64] sm:$0xf] %vm1629_vm2, %v2096_v23 }
 0x364   : > { %1656 = vst.msk [vmem:[%s3385_s7 + $0x68] sm:$0xf] %vm1629_vm2, %v2097_v25  ;;  %1657 = vst.msk [vmem:[%s3385_s7 + $0x6c] sm:$0xf] %vm1629_vm2, %v2098_v31 }
 0x365   : > { %1658 = vst.msk [vmem:[%s3385_s7 + $0x70] sm:$0xf] %vm1629_vm2, %v2099_v40  ;;  %1659 = vst.msk [vmem:[%s3385_s7 + $0x74] sm:$0xf] %vm1629_vm2, %v2100_v45 }
 0x366   : > { %1660 = vst.msk [vmem:[%s3385_s7 + $0x78] sm:$0xf] %vm1629_vm2, %v2101_v43  ;;  %1661 = vst.msk [vmem:[%s3385_s7 + $0x7c] sm:$0xf] %vm1629_vm2, %v2102_v48 }
 0x367 PF: > { %p2035_p6 = scmp.le.s32.totalorder %s2370_s24, 0 }
 0x369   : > { %1665 = sbr.rel (%p2035_p6) target bundleno = 902 (0x386), region = 56 }
 0x36e   : > { %v1666_v28 = vld [vmem:[%s3385_s7] sm:$0xf]  ;;  %v2103_v44 = vpack.c.bf16 %v2827_v34, %v2827_v34  ;;  %vm1842_vm3 = vcmask 257024   ;;  %v1667_v32 = vld [vmem:[%s3385_s7 + $0x4] sm:$0xf]  ;;  %v2104_v35 = vpack.c.bf16 %v2835_v59, %v2835_v59  ;;  %v2105_v50 = vpack.c.bf16 %v2823_v33, %v2823_v33 }
 0x36f   : > { %v1668_v37 = vld [vmem:[%s3385_s7 + $0x8] sm:$0xf]  ;;  %v1669_v52 = vld [vmem:[%s3385_s7 + $0xc] sm:$0xf]  ;;  %v2106_v34 = vpack.c.bf16 %v2831_v39, %v2831_v39  ;;  %v1670_v55 = vld [vmem:[%s3385_s7 + $0x10] sm:$0xf]  ;;  %v2107_v59 = vpack.c.bf16 %v2829_v54, %v2829_v54  ;;  %v2108_v33 = vpack.c.bf16 %v2837_v60, %v2837_v60  ;;  %v2109_v38 = vpack.c.bf16 %v2825_v49, %v2825_v49 }
 0x370   : > { %v1810_v53 = vmax.bf16 %v2103_v44, %v1666_v28  ;;  %v1811_v58 = vmax.bf16 %v2104_v35, %v1667_v32  ;;  %v1812_v1 = vmax.bf16 %v2105_v50, %v1668_v37  ;;  %v1671_v39 = vld [vmem:[%s3385_s7 + $0x14] sm:$0xf]  ;;  %v1672_v2 = vld [vmem:[%s3385_s7 + $0x18] sm:$0xf]  ;;  %v1673_v54 = vld [vmem:[%s3385_s7 + $0x1c] sm:$0xf]  ;;  %v2110_v60 = vpack.c.bf16 %v2833_v56, %v2833_v56 }
 0x371   : > { %v1813_v4 = vmax.bf16 %v2106_v34, %v1669_v52  ;;  %v1814_v49 = vmax.bf16 %v2107_v59, %v1670_v55  ;;  %v1815_v5 = vmax.bf16 %v2108_v33, %v1671_v39  ;;  %v1816_v61 = vmax.bf16 %v2109_v38, %v1672_v2  ;;  %v1674_v62 = vld [vmem:[%s3385_s7 + $0x20] sm:$0xf]  ;;  %v1675_v8 = vld [vmem:[%s3385_s7 + $0x24] sm:$0xf]  ;;  %v1676_v10 = vld [vmem:[%s3385_s7 + $0x28] sm:$0xf] }
 0x372   : > { %1843 = vst.msk [vmem:[%s3385_s7] sm:$0xf] %vm1842_vm3, %v1810_v53  ;;  %1844 = vst.msk [vmem:[%s3385_s7 + $0x4] sm:$0xf] %vm1842_vm3, %v1811_v58  ;;  %v1817_v56 = vmax.bf16 %v2110_v60, %v1673_v54  ;;  %v2111_v12 = vpack.c.bf16 %v2841_v6, %v2841_v6  ;;  %v2112_v13 = vpack.c.bf16 %v2845_v11, %v2845_v11  ;;  %v1677_v17 = vld [vmem:[%s3385_s7 + $0x2c] sm:$0xf] }
 0x373   : > { %1845 = vst.msk [vmem:[%s3385_s7 + $0x8] sm:$0xf] %vm1842_vm3, %v1812_v1  ;;  %v2113_v16 = vpack.c.bf16 %v2839_v63, %v2839_v63  ;;  %v1678_v19 = vld [vmem:[%s3385_s7 + $0x30] sm:$0xf]  ;;  %v1679_v21 = vld [vmem:[%s3385_s7 + $0x34] sm:$0xf]  ;;  %v2114_v63 = vpack.c.bf16 %v2843_v7, %v2843_v7  ;;  %v2115_v6 = vpack.c.bf16 %v2849_v18, %v2849_v18  ;;  %v2116_v11 = vpack.c.bf16 %v2853_v26, %v2853_v26 }
 0x374   : > { %1846 = vst.msk [vmem:[%s3385_s7 + $0xc] sm:$0xf] %vm1842_vm3, %v1813_v4  ;;  %1847 = vst.msk [vmem:[%s3385_s7 + $0x10] sm:$0xf] %vm1842_vm3, %v1814_v49  ;;  %v1680_v23 = vld [vmem:[%s3385_s7 + $0x38] sm:$0xf]  ;;  %v2117_v25 = vpack.c.bf16 %v2847_v15, %v2847_v15  ;;  %v1818_v7 = vmax.bf16 %v2111_v12, %v1674_v62  ;;  %v1819_v18 = vmax.bf16 %v2112_v13, %v1675_v8 }
 0x375   : > { %1848 = vst.msk [vmem:[%s3385_s7 + $0x14] sm:$0xf] %vm1842_vm3, %v1815_v5  ;;  %1849 = vst.msk [vmem:[%s3385_s7 + $0x18] sm:$0xf] %vm1842_vm3, %v1816_v61  ;;  %v1681_v31 = vld [vmem:[%s3385_s7 + $0x3c] sm:$0xf]  ;;  %v1820_v40 = vmax.bf16 %v2113_v16, %v1676_v10  ;;  %v2118_v26 = vpack.c.bf16 %v2851_v22, %v2851_v22  ;;  %v1821_v15 = vmax.bf16 %v2114_v63, %v1677_v17 }
 0x376   : > { %1850 = vst.msk [vmem:[%s3385_s7 + $0x1c] sm:$0xf] %vm1842_vm3, %v1817_v56  ;;  %v1682_v45 = vld [vmem:[%s3385_s7 + $0x40] sm:$0xf]  ;;  %v1822_v43 = vmax.bf16 %v2115_v6, %v1678_v19  ;;  %v1823_v48 = vmax.bf16 %v2116_v11, %v1679_v21  ;;  %v1824_v28 = vmax.bf16 %v2117_v25, %v1680_v23  ;;  %v1683_v44 = vld [vmem:[%s3385_s7 + $0x44] sm:$0xf]  ;;  %v2119_v50 = vpack.c.bf16 %v2857_v46, %v2857_v46 }
 0x377   : > { %v1684_v32 = vld [vmem:[%s3385_s7 + $0x48] sm:$0xf]  ;;  %v1685_v22 = vld [vmem:[%s3385_s7 + $0x4c] sm:$0xf]  ;;  %1851 = vst.msk [vmem:[%s3385_s7 + $0x20] sm:$0xf] %vm1842_vm3, %v1818_v7  ;;  %v1825_v35 = vmax.bf16 %v2118_v26, %v1681_v31  ;;  %v2120_v37 = vpack.c.bf16 %v2861_v29, %v2861_v29  ;;  %v2121_v52 = vpack.c.bf16 %v2855_v41, %v2855_v41  ;;  %v2122_v41 = vpack.c.bf16 %v2859_v27, %v2859_v27 }
 0x378   : > { %1852 = vst.msk [vmem:[%s3385_s7 + $0x24] sm:$0xf] %vm1842_vm3, %v1819_v18  ;;  %1853 = vst.msk [vmem:[%s3385_s7 + $0x28] sm:$0xf] %vm1842_vm3, %v1820_v40  ;;  %v1686_v34 = vld [vmem:[%s3385_s7 + $0x50] sm:$0xf]  ;;  %v2123_v46 = vpack.c.bf16 %v2865_v36, %v2865_v36  ;;  %v2124_v29 = vpack.c.bf16 %v2869_v3, %v2869_v3  ;;  %v2125_v33 = vpack.c.bf16 %v2863_v51, %v2863_v51 }
 0x379   : > { %v1687_v55 = vld [vmem:[%s3385_s7 + $0x54] sm:$0xf]  ;;  %v1688_v59 = vld [vmem:[%s3385_s7 + $0x58] sm:$0xf]  ;;  %1854 = vst.msk [vmem:[%s3385_s7 + $0x2c] sm:$0xf] %vm1842_vm3, %v1821_v15  ;;  %v1826_v53 = vmax.bf16 %v2119_v50, %v1682_v45  ;;  %v1827_v27 = vmax.bf16 %v2120_v37, %v1683_v44  ;;  %v1828_v58 = vmax.bf16 %v2121_v52, %v1684_v32  ;;  %v2126_v36 = vpack.c.bf16 %v2867_v57, %v2867_v57 }
 0x37a   : > { %1855 = vst.msk [vmem:[%s3385_s7 + $0x30] sm:$0xf] %vm1842_vm3, %v1822_v43  ;;  %1856 = vst.msk [vmem:[%s3385_s7 + $0x34] sm:$0xf] %vm1842_vm3, %v1823_v48  ;;  %v1689_v38 = vld [vmem:[%s3385_s7 + $0x5c] sm:$0xf]  ;;  %v1829_v51 = vmax.bf16 %v2122_v41, %v1685_v22  ;;  %v1830_v1 = vmax.bf16 %v2123_v46, %v1686_v34  ;;  %v1831_v39 = vmax.bf16 %v2124_v29, %v1687_v55 }
 0x37b   : > { %1857 = vst.msk [vmem:[%s3385_s7 + $0x38] sm:$0xf] %vm1842_vm3, %v1824_v28  ;;  %1858 = vst.msk [vmem:[%s3385_s7 + $0x3c] sm:$0xf] %vm1842_vm3, %v1825_v35  ;;  %v1690_v3 = vld [vmem:[%s3385_s7 + $0x60] sm:$0xf]  ;;  %v1832_v2 = vmax.bf16 %v2125_v33, %v1688_v59  ;;  %v1833_v4 = vmax.bf16 %v2126_v36, %v1689_v38  ;;  %v2127_v49 = vpack.c.bf16 %v2873_v9, %v2873_v9 }
 0x37c   : > { %v1691_v54 = vld [vmem:[%s3385_s7 + $0x64] sm:$0xf]  ;;  %v1692_v60 = vld [vmem:[%s3385_s7 + $0x68] sm:$0xf]  ;;  %v1693_v57 = vld [vmem:[%s3385_s7 + $0x6c] sm:$0xf]  ;;  %v2128_v5 = vpack.c.bf16 %v2877_v20, %v2877_v20  ;;  %v2129_v61 = vpack.c.bf16 %v2871_v0, %v2871_v0  ;;  %v2130_v0 = vpack.c.bf16 %v2875_v14, %v2875_v14  ;;  %v2131_v9 = vpack.c.bf16 %v2881_v42, %v2881_v42 }
 0x37d   : > { %1859 = vst.msk [vmem:[%s3385_s7 + $0x40] sm:$0xf] %vm1842_vm3, %v1826_v53  ;;  %1860 = vst.msk [vmem:[%s3385_s7 + $0x44] sm:$0xf] %vm1842_vm3, %v1827_v27  ;;  %v1694_v62 = vld [vmem:[%s3385_s7 + $0x70] sm:$0xf]  ;;  %v2132_v20 = vpack.c.bf16 %v2885_v30, %v2885_v30  ;;  %v2133_v56 = vpack.c.bf16 %v2879_v24, %v2879_v24  ;;  %v1834_v13 = vmax.bf16 %v2127_v49, %v1690_v3 }
 0x37e   : > { %1861 = vst.msk [vmem:[%s3385_s7 + $0x48] sm:$0xf] %vm1842_vm3, %v1828_v58  ;;  %v1695_v8 = vld [vmem:[%s3385_s7 + $0x74] sm:$0xf]  ;;  %v1696_v10 = vld [vmem:[%s3385_s7 + $0x78] sm:$0xf]  ;;  %v1835_v14 = vmax.bf16 %v2128_v5, %v1691_v54  ;;  %v1836_v16 = vmax.bf16 %v2129_v61, %v1692_v60  ;;  %v2134_v42 = vpack.c.bf16 %v2883_v47, %v2883_v47  ;;  %v1837_v17 = vmax.bf16 %v2130_v0, %v1693_v57 }
 0x37f   : > { %1862 = vst.msk [vmem:[%s3385_s7 + $0x4c] sm:$0xf] %vm1842_vm3, %v1829_v51  ;;  %1863 = vst.msk [vmem:[%s3385_s7 + $0x50] sm:$0xf] %vm1842_vm3, %v1830_v1  ;;  %v1697_v12 = vld [vmem:[%s3385_s7 + $0x7c] sm:$0xf]  ;;  %v1838_v30 = vmax.bf16 %v2131_v9, %v1694_v62  ;;  %v1839_v19 = vmax.bf16 %v2132_v20, %v1695_v8  ;;  %v1840_v21 = vmax.bf16 %v2133_v56, %v1696_v10 }
 0x380   : > { %1864 = vst.msk [vmem:[%s3385_s7 + $0x54] sm:$0xf] %vm1842_vm3, %v1831_v39  ;;  %1865 = vst.msk [vmem:[%s3385_s7 + $0x58] sm:$0xf] %vm1842_vm3, %v1832_v2  ;;  %v1841_v24 = vmax.bf16 %v2134_v42, %v1697_v12 }
 0x381   : > { %1866 = vst.msk [vmem:[%s3385_s7 + $0x5c] sm:$0xf] %vm1842_vm3, %v1833_v4  ;;  %1867 = vst.msk [vmem:[%s3385_s7 + $0x60] sm:$0xf] %vm1842_vm3, %v1834_v13 }
 0x382   : > { %1868 = vst.msk [vmem:[%s3385_s7 + $0x64] sm:$0xf] %vm1842_vm3, %v1835_v14  ;;  %1869 = vst.msk [vmem:[%s3385_s7 + $0x68] sm:$0xf] %vm1842_vm3, %v1836_v16 }
 0x383   : > { %1870 = vst.msk [vmem:[%s3385_s7 + $0x6c] sm:$0xf] %vm1842_vm3, %v1837_v17  ;;  %1871 = vst.msk [vmem:[%s3385_s7 + $0x70] sm:$0xf] %vm1842_vm3, %v1838_v30 }
 0x384   : > { %1872 = vst.msk [vmem:[%s3385_s7 + $0x74] sm:$0xf] %vm1842_vm3, %v1839_v19  ;;  %1873 = vst.msk [vmem:[%s3385_s7 + $0x78] sm:$0xf] %vm1842_vm3, %v1840_v21 }
 0x385   : > { %1874 = vst.msk [vmem:[%s3385_s7 + $0x7c] sm:$0xf] %vm1842_vm3, %v1841_v24 }
 0x386 PF: > { %s17_s26 = sadd.s32 1, %s2378_s26   ;;  %s3386_s24 = smov %s2374_s25 }
 0x387   : > { %p14_p7 = scmp.ge.s32.totalorder %s17_s26, 34   ;;  %s3387_s25 = smov %s3389_s27 }
 0x389   :  { %16 = sbr.rel (!%p14_p7) target bundleno = 2 (0x2), region = 86 }

// kernel: neg.6
= control target key start
LH: loop header
LB: loop body
LE: loop exit
PB: predicated region body
PF: predicated region fallthrough
CT: control target
= control target key end

     0   :  { %s40_s0 = inlined_call_operand.vmem [shape: f32[2,16,8], index: 0, kind: input, shape index: {}]   ;;  %s41_s1 = inlined_call_operand.vmem [shape: f32[2,16,8], index: 1, kind: output, shape index: {}]  }
   0x1   :  { %v2_v0 = vld [vmem:[%s40_s0] sm:$0xff]  ;;  %v16_v1 = vld [vmem:[%s40_s0 + $0x8] sm:$0xff] }
   0x2   :  { %v5_v2 = vxor.u32 2147483648, %v2_v0  ;;  %v12_v3 = vxor.u32 2147483648, %v16_v1 }
   0x4   :  { %7 = vst [vmem:[%s41_s1] sm:$0xff] %v5_v2  ;;  %17 = vst [vmem:[%s41_s1 + $0x8] sm:$0xff] %v12_v3 }

// kernel: a_call__.12
= control target key start
LH: loop header
LB: loop body
LE: loop exit
PB: predicated region body
PF: predicated region fallthrough
CT: control target
= control target key end

     0   :  { %s4946_s24 = smov 0   ;;  %s4948_s25 = smov 0   ;;  %s7322_s0 = inlined_call_operand.vmem [shape: bf16[32,264,16], index: 0, kind: input, shape index: {}]   ;;  %s7323_s1 = inlined_call_operand.vmem [shape: bf16[256,264], index: 1, kind: input, shape index: {}]   ;;  %s7324_s2 = inlined_call_operand.vmem [shape: f32[256,1], index: 2, kind: input, shape index: {}, may-alias: {2,4}]   ;;  %s7325_s3 = inlined_call_operand.vmem [shape: bf16[256,256], index: 3, kind: input, shape index: {}]   ;;  %s7326_s4 = inlined_call_operand.vmem [shape: f32[256,1], index: 4, kind: input, shape index: {}, may-alias: {2,4}]   ;;  %s7327_s5 = inlined_call_operand.vmem [shape: bf16[512,256], index: 5, kind: input, shape index: {}]   ;;  %s7328_s6 = inlined_call_operand.vmem [shape: f32[512,1], index: 6, kind: input, shape index: {}]   ;;  %s7329_s7 = inlined_call_operand.vmem [shape: bf16[512,16], index: 7, kind: output, shape index: {}]  }
   0x1   :  { %s4950_s26 = smov 0  }
   0x2 LB: > { %s26_s27 = sadd.s32 1, %s4899_s25  ;;  %p3880_p0 = scmp.ge.s32.totalorder %s4903_s26, 1  ;;  %s4903_s26 = sphi %s4950_s26, %s17_s26   ;;  %s4899_s25 = sphi %s4948_s25, %s7392_s25   ;;  %s4895_s24 = sphi %s4946_s24, %s7391_s24  }
   0x3   : > { %p27_p1 = scmp.ge.s32.totalorder %s26_s27, 32  ;;  %p254_p2 = scmp.lt.s32.totalorder %s4903_s26, 33 }
   0x5   : > { %s7394_s27 = smov (%p27_p1, %s26_s27), 0  ;;  %p255_p3 = pnand %p3880_p0, %p254_p2 }
   0x7   : > { %258 = sbr.rel (%p255_p3) target bundleno = 1204 (0x4b4), region = 48 }
   0xc   : > { %v428_v0 = vld [vmem:[%s7324_s2 + $0xf0] sm:$0xff]  ;;  %p288_p4 = scmp.lt.s32.totalorder %s4895_s24, 31  ;;  %v7330_v2 = vmov 0   ;;  %v429_v3 = vld [vmem:[%s7324_s2 + $0xf8] sm:$0xff]  ;;  %v426_v5 = vld [vmem:[%s7324_s2 + $0xe0] sm:$0xff]  ;;  %vm978_vm0 = vcmask 1043456  }
   0xd   : > { %v412_v1 = vld [vmem:[%s7324_s2 + $0x70] sm:$0xff]  ;;  %4655 = vset.pattern.permute.xlu1 %v7330_v2  ;;  %4654 = vset.pattern.permute.xlu0 %v7330_v2  ;;  %v413_v4 = vld [vmem:[%s7324_s2 + $0x78] sm:$0xff]  ;;  %v427_v6 = vld [vmem:[%s7324_s2 + $0xe8] sm:$0xff]  ;;  %vm929_vm1 = vcmask 64512   ;;  %p4059_p5 = scmp.ne.s32.totalorder %s4895_s24, 0 }
   0xe   : > { %582 = vperm.xlu0 %4654, %v428_v0   ;;  %502 = vperm.xlu1 %4655, %v412_v1   ;;  %s289_s9 = scalar_select %p288_p4, %s4895_s24, 31  ;;  %v411_v9 = vld [vmem:[%s7324_s2 + $0x68] sm:$0xff]  ;;  %v410_v11 = vld [vmem:[%s7324_s2 + $0x60] sm:$0xff]  ;;  %v425_v14 = vld [vmem:[%s7324_s2 + $0xd8] sm:$0xff] }
   0xf   : > { %v424_v15 = vld [vmem:[%s7324_s2 + $0xd0] sm:$0xff]  ;;  %v409_v18 = vld [vmem:[%s7324_s2 + $0x58] sm:$0xff]  ;;  %v423_v22 = vld [vmem:[%s7324_s2 + $0xc8] sm:$0xff] }
  0x10   : > { %s4628_s14 = smul.u32 132, %s289_s9  ;;  %v408_v19 = vld [vmem:[%s7324_s2 + $0x50] sm:$0xff]  ;;  %v422_v23 = vld [vmem:[%s7324_s2 + $0xc0] sm:$0xff]  ;;  %v407_v27 = vld [vmem:[%s7324_s2 + $0x48] sm:$0xff] }
  0x11   : > { %v4674_v25 = vld [vmem:[%s7323_s1 + $0x4] ss:$12 sps:$4 sm:$0xff]   ;;  %v4676_v31 = vld [vmem:[%s7323_s1 + $0x8] ss:$12 sps:$4 sm:$0xff]   ;;  %v4677_v34 = vld [vmem:[%s7323_s1 + $0x20] ss:$12 sps:$4 sm:$0xff]  }
  0x12   : > { %587 = vperm.xlu0 %4654, %v429_v3   ;;  %507 = vperm.xlu1 %4655, %v413_v4   ;;  %s4991_s21 = scalar_lea.vmem %s7322_s0, %s4628_s14  ;;  %v406_v29 = vld [vmem:[%s7324_s2 + $0x40] sm:$0xff]  ;;  %v421_v35 = vld [vmem:[%s7324_s2 + $0xb8] sm:$0xff]  ;;  %v420_v36 = vld [vmem:[%s7324_s2 + $0xb0] sm:$0xff] }
  0x13   : > { %v4656_v7 = vld [vmem:[%s4991_s21 + $0x78] sm:$0xff]   ;;  %v4658_v10 = vld [vmem:[%s4991_s21 + $0x70] sm:$0xff]   ;;  %v4660_v13 = vld [vmem:[%s4991_s21 + $0x68] sm:$0xff]   ;;  %1014 = vmatprep.mubr.bf16.mxu0 %v4674_v25  ;;  %4563 = vmatprep.mubr.msk.bf16.mxu1 %vm929_vm1, %v4676_v31 }
  0x14   : > { %v4657_v8 = vld [vmem:[%s4991_s21 + $0x38] sm:$0xff]   ;;  %4320 = vmatprep.subr.bf16.mxu0 %v4656_v7  ;;  %v4659_v12 = vld [vmem:[%s4991_s21 + $0x30] sm:$0xff]   ;;  %v4661_v16 = vld [vmem:[%s4991_s21 + $0x28] sm:$0xff]  }
  0x15   : > { %4321 = vmatpush3.bf16.msra.mxu0 %v4657_v8  ;;  %v4662_v17 = vld [vmem:[%s4991_s21 + $0x60] sm:$0xff]   ;;  %v4664_v21 = vld [vmem:[%s4991_s21 + $0x58] sm:$0xff]   ;;  %v4666_v26 = vld [vmem:[%s4991_s21 + $0x50] sm:$0xff]  }
  0x16   : > { %572 = vperm.xlu0 %4654, %v426_v5   ;;  %577 = vperm.xlu1 %4655, %v427_v6   ;;  %v4663_v20 = vld [vmem:[%s4991_s21 + $0x20] sm:$0xff]   ;;  %v4665_v24 = vld [vmem:[%s4991_s21 + $0x18] sm:$0xff]   ;;  %v4667_v30 = vld [vmem:[%s4991_s21 + $0x10] sm:$0xff]  }
  0x17   : > { %4322 = vmatprep.subr.bf16.mxu0 %v4658_v10  ;;  %v4675_v28 = vld [vmem:[%s4991_s21 + $0x80] ss:$0 sps:$4 sm:$0xff]   ;;  %v4668_v33 = vld [vmem:[%s4991_s21 + $0x48] sm:$0xff]   ;;  %v405_v39 = vld [vmem:[%s7324_s2 + $0x38] sm:$0xff] }
  0x18   : > { %4627 = vmatprep.subr.msk.bf16.mxu1 %vm978_vm0, %v4675_v28  ;;  %v980_v32 = vsel %vm978_vm0, %v4675_v28, 0  ;;  %v4669_v37 = vld [vmem:[%s4991_s21 + $0x8] sm:$0xff]   ;;  %v4670_v38 = vld [vmem:[%s4991_s21 + $0x40] sm:$0xff]   ;;  %v404_v40 = vld [vmem:[%s7324_s2 + $0x30] sm:$0xff] }
  0x19   : > { %4323 = vmatpush3.bf16.msra.mxu0 %v4659_v12  ;;  %4562 = vmatpush3.bf16.msra.mxu1 %v980_v32  ;;  %v4684_v41 = vld [vmem:[%s7323_s1 + $0x38] ss:$12 sps:$4 sm:$0xff]   ;;  %v4685_v43 = vld [vmem:[%s7323_s1 + $0x50] ss:$12 sps:$4 sm:$0xff]   ;;  %v4672_v44 = vld [vmem:[%s7323_s1] ss:$12 sps:$4 sm:$0xff]  }
  0x1a   : > { %497 = vperm.xlu1 %4655, %v411_v9   ;;  %492 = vperm.xlu0 %4654, %v410_v11   ;;  %v4671_v42 = vld [vmem:[%s4991_s21] sm:$0xff]   ;;  %v419_v45 = vld [vmem:[%s7324_s2 + $0xa8] sm:$0xff]  ;;  %v417_v52 = vld [vmem:[%s7324_s2 + $0x98] sm:$0xff] }
  0x1b   : > { %4324 = vmatprep.subr.bf16.mxu0 %v4660_v13  ;;  %v418_v46 = vld [vmem:[%s7324_s2 + $0xa0] sm:$0xff]  ;;  %v4678_v47 = vld [vmem:[%s7323_s1 + $0x1c] ss:$12 sps:$4 sm:$0xff]   ;;  %v416_v53 = vld [vmem:[%s7324_s2 + $0x90] sm:$0xff] }
  0x1c   : > { %4564 = vmatmul.mubr.msk.bf16.vlgmr.msra.gmra.mxu1 %vm929_vm1, %v4677_v34  ;;  %v4692_v48 = vld [vmem:[%s7323_s1 + $0x68] ss:$12 sps:$4 sm:$0xff]   ;;  %v402_v50 = vld [vmem:[%s7324_s2 + $0x20] sm:$0xff]  ;;  %v401_v57 = vld [vmem:[%s7324_s2 + $0x18] sm:$0xff] }
  0x1d   : > { %4325 = vmatpush3.bf16.msra.mxu0 %v4661_v16  ;;  %4567 = vmatprep.mubr.msk.bf16.mxu1 %vm929_vm1, %v4684_v41  ;;  %v403_v49 = vld [vmem:[%s7324_s2 + $0x28] sm:$0xff]  ;;  %v4680_v54 = vld [vmem:[%s7323_s1 + $0x18] ss:$12 sps:$4 sm:$0xff]   ;;  %v4681_v55 = vld [vmem:[%s7323_s1 + $0x34] ss:$12 sps:$4 sm:$0xff]  }
  0x1e   : > { %567 = vperm.xlu1 %4655, %v425_v14   ;;  %562 = vperm.xlu0 %4654, %v424_v15   ;;  %v4693_v51 = vld [vmem:[%s7323_s1 + $0x80] ss:$12 sps:$4 sm:$0xff]   ;;  %v4700_v56 = vld [vmem:[%s7323_s1 + $0x98] ss:$12 sps:$4 sm:$0xff]   ;;  %v400_v58 = vld [vmem:[%s7324_s2 + $0x10] sm:$0xff] }
  0x1f   : > { %4326 = vmatprep.subr.bf16.mxu0 %v4662_v17  ;;  %v4701_v59 = vld [vmem:[%s7323_s1 + $0xb0] ss:$12 sps:$4 sm:$0xff]   ;;  %v415_v60 = vld [vmem:[%s7324_s2 + $0x88] sm:$0xff]  ;;  %v414_v61 = vld [vmem:[%s7324_s2 + $0x80] sm:$0xff] }
  0x20   : > { %v4683_v62 = vld [vmem:[%s7323_s1 + $0x30] ss:$12 sps:$4 sm:$0xff]   ;;  %v4708_v63 = vld [vmem:[%s7323_s1 + $0xc8] ss:$12 sps:$4 sm:$0xff]   ;;  %v4686_v0 = vld [vmem:[%s7323_s1 + $0x4c] ss:$12 sps:$4 sm:$0xff]  }
  0x21   : > { %4327 = vmatpush3.bf16.msra.mxu0 %v4663_v20  ;;  %v399_v1 = vld [vmem:[%s7324_s2 + $0x8] sm:$0xff]  ;;  %v398_v3 = vld [vmem:[%s7324_s2] sm:$0xff]  ;;  %v1399_v5 = vld [vmem:[%s7326_s4 + $0x78] sm:$0xff] }
  0x22   : > { %487 = vperm.xlu1 %4655, %v409_v18   ;;  %482 = vperm.xlu0 %4654, %v408_v19   ;;  %v4709_v4 = vld [vmem:[%s7323_s1 + $0xe0] ss:$12 sps:$4 sm:$0xff]   ;;  %v4716_v6 = vld [vmem:[%s7323_s1 + $0xf8] ss:$12 sps:$4 sm:$0xff]   ;;  %v1398_v7 = vld [vmem:[%s7326_s4 + $0x70] sm:$0xff] }
  0x23   : > { %4328 = vmatprep.subr.bf16.mxu0 %v4664_v21  ;;  %v4688_v8 = vld [vmem:[%s7323_s1 + $0x48] ss:$12 sps:$4 sm:$0xff]   ;;  %v4689_v9 = vld [vmem:[%s7323_s1 + $0x64] ss:$12 sps:$4 sm:$0xff]   ;;  %v1395_v13 = vld [vmem:[%s7326_s4 + $0x58] sm:$0xff] }
  0x24   : > { %4568 = vmatmul.mubr.msk.bf16.gmra.mxu1 %vm929_vm1, %v4685_v43  ;;  %v1397_v10 = vld [vmem:[%s7326_s4 + $0x68] sm:$0xff]  ;;  %v1396_v11 = vld [vmem:[%s7326_s4 + $0x60] sm:$0xff]  ;;  %v4717_v12 = vld [vmem:[%s7323_s1 + $0x110] ss:$12 sps:$4 sm:$0xff]  }
  0x25   : > { %4329 = vmatpush3.bf16.msra.mxu0 %v4665_v24  ;;  %4571 = vmatprep.mubr.msk.bf16.mxu1 %vm929_vm1, %v4692_v48  ;;  %v1394_v14 = vld [vmem:[%s7326_s4 + $0x50] sm:$0xff]  ;;  %v4691_v16 = vld [vmem:[%s7323_s1 + $0x60] ss:$12 sps:$4 sm:$0xff]   ;;  %v4694_v17 = vld [vmem:[%s7323_s1 + $0x7c] ss:$12 sps:$4 sm:$0xff]  }
  0x26   : > { %557 = vperm.xlu1 %4655, %v423_v22   ;;  %552 = vperm.xlu0 %4654, %v422_v23   ;;  %v4724_v15 = vld [vmem:[%s7323_s1 + $0x128] ss:$12 sps:$4 sm:$0xff]   ;;  %v1392_v19 = vld [vmem:[%s7326_s4 + $0x40] sm:$0xff]  ;;  %v1391_v21 = vld [vmem:[%s7326_s4 + $0x38] sm:$0xff] }
  0x27   : > { %4330 = vmatprep.subr.bf16.mxu0 %v4666_v26  ;;  %v1393_v18 = vld [vmem:[%s7326_s4 + $0x48] sm:$0xff]  ;;  %v4732_v22 = vld [vmem:[%s7323_s1 + $0x158] ss:$12 sps:$4 sm:$0xff]   ;;  %v1390_v23 = vld [vmem:[%s7326_s4 + $0x30] sm:$0xff] }
  0x28   : > { %v4725_v20 = vld [vmem:[%s7323_s1 + $0x140] ss:$12 sps:$4 sm:$0xff]   ;;  %v4696_v24 = vld [vmem:[%s7323_s1 + $0x78] ss:$12 sps:$4 sm:$0xff]   ;;  %v4733_v28 = vld [vmem:[%s7323_s1 + $0x170] ss:$12 sps:$4 sm:$0xff]  }
  0x29   : > { %4331 = vmatpush3.bf16.msra.mxu0 %v4667_v30  ;;  %v4697_v25 = vld [vmem:[%s7323_s1 + $0x94] ss:$12 sps:$4 sm:$0xff]   ;;  %v1389_v26 = vld [vmem:[%s7326_s4 + $0x28] sm:$0xff]  ;;  %v4699_v31 = vld [vmem:[%s7323_s1 + $0x90] ss:$12 sps:$4 sm:$0xff]  }
  0x2a   : > { %477 = vperm.xlu1 %4655, %v407_v27   ;;  %472 = vperm.xlu0 %4654, %v406_v29   ;;  %v1388_v27 = vld [vmem:[%s7326_s4 + $0x20] sm:$0xff]  ;;  %v1387_v29 = vld [vmem:[%s7326_s4 + $0x18] sm:$0xff]  ;;  %v1386_v30 = vld [vmem:[%s7326_s4 + $0x10] sm:$0xff] }
  0x2b   : > { %4332 = vmatprep.subr.bf16.mxu0 %v4668_v33  ;;  %v4702_v32 = vld [vmem:[%s7323_s1 + $0xac] ss:$12 sps:$4 sm:$0xff]   ;;  %v1384_v34 = vld [vmem:[%s7326_s4] sm:$0xff]  ;;  %v1406_v48 = vld [vmem:[%s7326_s4 + $0xb0] sm:$0xff] }
  0x2c   : > { %4572 = vmatmul.mubr.msk.bf16.gmra.mxu1 %vm929_vm1, %v4693_v51  ;;  %v1385_v33 = vld [vmem:[%s7326_s4 + $0x8] sm:$0xff]  ;;  %v1411_v41 = vld [vmem:[%s7326_s4 + $0xd8] sm:$0xff] }
  0x2d   : > { %4333 = vmatpush3.bf16.msra.mxu0 %v4669_v37  ;;  %4575 = vmatprep.mubr.msk.bf16.mxu1 %vm929_vm1, %v4700_v56  ;;  %v4704_v37 = vld [vmem:[%s7323_s1 + $0xa8] ss:$12 sps:$4 sm:$0xff]   ;;  %v4707_v43 = vld [vmem:[%s7323_s1 + $0xc0] ss:$12 sps:$4 sm:$0xff]  }
  0x2e   : > { %547 = vperm.xlu1 %4655, %v421_v35   ;;  %542 = vperm.xlu0 %4654, %v420_v36   ;;  %v1415_v35 = vld [vmem:[%s7326_s4 + $0xf8] sm:$0xff]  ;;  %v1414_v36 = vld [vmem:[%s7326_s4 + $0xf0] sm:$0xff]  ;;  %v1405_v51 = vld [vmem:[%s7326_s4 + $0xa8] sm:$0xff] }
  0x2f   : > { %4334 = vmatprep.subr.bf16.mxu0 %v4670_v38  ;;  %v4705_v38 = vld [vmem:[%s7323_s1 + $0xc4] ss:$12 sps:$4 sm:$0xff]   ;;  %v4718_v56 = vld [vmem:[%s7323_s1 + $0x10c] ss:$12 sps:$4 sm:$0xff]  }
  0x31   : > { %4335 = vmatpush3.bf16.msra.mxu0 %v4671_v42  ;;  %v1410_v42 = vld [vmem:[%s7326_s4 + $0xd0] sm:$0xff] }
  0x32   : > { %467 = vperm.xlu1 %4655, %v405_v39   ;;  %462 = vperm.xlu0 %4654, %v404_v40   ;;  %v1413_v39 = vld [vmem:[%s7326_s4 + $0xe8] sm:$0xff]  ;;  %v1412_v40 = vld [vmem:[%s7326_s4 + $0xe0] sm:$0xff] }
  0x33   : > { %2713 = vmatprep.subr.bf16.mxu0 %v7330_v2 }
  0x34   : > { %1015 = vmatmul.mubr.bf16.vlgmr.msra.gmra.mxu0 %v4672_v44  ;;  %4576 = vmatmul.mubr.msk.bf16.gmra.mxu1 %vm929_vm1, %v4701_v59  ;;  %v4710_v44 = vld [vmem:[%s7323_s1 + $0xdc] ss:$12 sps:$4 sm:$0xff]  }
  0x35   : > { %1022 = vmatprep.mubr.bf16.mxu0 %v4678_v47  ;;  %4579 = vmatprep.mubr.msk.bf16.mxu1 %vm929_vm1, %v4708_v63  ;;  %v1407_v47 = vld [vmem:[%s7326_s4 + $0xb8] sm:$0xff]  ;;  %v2010_v59 = vld [vmem:[%s7328_s6 + $0x8] sm:$0xff] }
  0x36   : > { %537 = vperm.xlu1 %4655, %v419_v45   ;;  %532 = vperm.xlu0 %4654, %v418_v46   ;;  %v1409_v45 = vld [vmem:[%s7326_s4 + $0xc8] sm:$0xff]  ;;  %v1408_v46 = vld [vmem:[%s7326_s4 + $0xc0] sm:$0xff]  ;;  %v2012_v63 = vld [vmem:[%s7328_s6 + $0x18] sm:$0xff] }
  0x3a   : > { %457 = vperm.xlu1 %4655, %v403_v49   ;;  %452 = vperm.xlu0 %4654, %v402_v50   ;;  %v4712_v49 = vld [vmem:[%s7323_s1 + $0xd8] ss:$12 sps:$4 sm:$0xff]   ;;  %v4713_v50 = vld [vmem:[%s7323_s1 + $0xf4] ss:$12 sps:$4 sm:$0xff]  }
  0x3c   : > { %1023 = vmatmul.mubr.bf16.gmra.mxu0 %v4680_v54  ;;  %4580 = vmatmul.mubr.msk.bf16.gmra.mxu1 %vm929_vm1, %v4709_v4  ;;  %v1402_v54 = vld [vmem:[%s7326_s4 + $0x90] sm:$0xff]  ;;  %v4723_v4 = vld [vmem:[%s7323_s1 + $0x120] ss:$12 sps:$4 sm:$0xff]  }
  0x3d   : > { %1030 = vmatprep.mubr.bf16.mxu0 %v4681_v55  ;;  %4583 = vmatprep.mubr.msk.bf16.mxu1 %vm929_vm1, %v4716_v6  ;;  %v4715_v55 = vld [vmem:[%s7323_s1 + $0xf0] ss:$12 sps:$4 sm:$0xff]  }
  0x3e   : > { %527 = vperm.xlu1 %4655, %v417_v52   ;;  %522 = vperm.xlu0 %4654, %v416_v53   ;;  %v1404_v52 = vld [vmem:[%s7326_s4 + $0xa0] sm:$0xff]  ;;  %v1403_v53 = vld [vmem:[%s7326_s4 + $0x98] sm:$0xff] }
  0x3f   : > { %v2016_v6 = vld [vmem:[%s7328_s6 + $0x38] sm:$0xff] }
  0x42   : > { %447 = vperm.xlu1 %4655, %v401_v57   ;;  %442 = vperm.xlu0 %4654, %v400_v58   ;;  %v1401_v57 = vld [vmem:[%s7326_s4 + $0x88] sm:$0xff]  ;;  %v1400_v58 = vld [vmem:[%s7326_s4 + $0x80] sm:$0xff] }
  0x44   : > { %1031 = vmatmul.mubr.bf16.gmra.mxu0 %v4683_v62  ;;  %4584 = vmatmul.mubr.msk.bf16.gmra.mxu1 %vm929_vm1, %v4717_v12  ;;  %v4721_v62 = vld [vmem:[%s7323_s1 + $0x124] ss:$12 sps:$4 sm:$0xff]   ;;  %v2020_v12 = vld [vmem:[%s7328_s6 + $0x58] sm:$0xff] }
  0x45   : > { %1038 = vmatprep.mubr.bf16.mxu0 %v4686_v0  ;;  %4587 = vmatprep.mubr.msk.bf16.mxu1 %vm929_vm1, %v4724_v15  ;;  %v2011_v0 = vld [vmem:[%s7328_s6 + $0x10] sm:$0xff]  ;;  %v2022_v15 = vld [vmem:[%s7328_s6 + $0x68] sm:$0xff] }
  0x46   : > { %517 = vperm.xlu1 %4655, %v415_v60   ;;  %512 = vperm.xlu0 %4654, %v414_v61   ;;  %v2009_v60 = vld [vmem:[%s7328_s6] sm:$0xff]  ;;  %v4720_v61 = vld [vmem:[%s7323_s1 + $0x108] ss:$12 sps:$4 sm:$0xff]  }
  0x4a   : > { %437 = vperm.xlu1 %4655, %v399_v1   ;;  %432 = vperm.xlu0 %4654, %v398_v3   ;;  %v2014_v1 = vld [vmem:[%s7328_s6 + $0x28] sm:$0xff]  ;;  %v2013_v3 = vld [vmem:[%s7328_s6 + $0x20] sm:$0xff] }
  0x4c   : > { %1039 = vmatmul.mubr.bf16.gmra.mxu0 %v4688_v8  ;;  %4588 = vmatmul.mubr.msk.bf16.gmra.mxu1 %vm929_vm1, %v4725_v20  ;;  %v2018_v8 = vld [vmem:[%s7328_s6 + $0x48] sm:$0xff] }
  0x4d   : > { %1046 = vmatprep.mubr.bf16.mxu0 %v4689_v9  ;;  %4591 = vmatprep.mubr.msk.bf16.mxu1 %vm929_vm1, %v4732_v22  ;;  %v2017_v9 = vld [vmem:[%s7328_s6 + $0x40] sm:$0xff]  ;;  %v2023_v22 = vld [vmem:[%s7328_s6 + $0x70] sm:$0xff] }
  0x4e   : > { %1493 = vperm.xlu1 %4655, %v1399_v5   ;;  %1488 = vperm.xlu0 %4654, %v1398_v7   ;;  %v4726_v5 = vld [vmem:[%s7323_s1 + $0x13c] ss:$12 sps:$4 sm:$0xff]   ;;  %v2015_v7 = vld [vmem:[%s7328_s6 + $0x30] sm:$0xff] }
  0x52   : > { %1483 = vperm.xlu1 %4655, %v1397_v10   ;;  %1478 = vperm.xlu0 %4654, %v1396_v11   ;;  %v4728_v10 = vld [vmem:[%s7323_s1 + $0x138] ss:$12 sps:$4 sm:$0xff]   ;;  %v4729_v11 = vld [vmem:[%s7323_s1 + $0x154] ss:$12 sps:$4 sm:$0xff]  }
  0x54   : > { %1047 = vmatmul.mubr.bf16.gmra.mxu0 %v4691_v16  ;;  %4592 = vmatmul.mubr.msk.bf16.gmra.mxu1 %vm929_vm1, %v4733_v28  ;;  %v2021_v16 = vld [vmem:[%s7328_s6 + $0x60] sm:$0xff]  ;;  %v2028_v28 = vld [vmem:[%s7328_s6 + $0x98] sm:$0xff] }
  0x55   : > { %1054 = vmatprep.mubr.bf16.mxu0 %v4694_v17  ;;  %v4731_v17 = vld [vmem:[%s7323_s1 + $0x150] ss:$12 sps:$4 sm:$0xff]  }
  0x56   : > { %1473 = vperm.xlu1 %4655, %v1395_v13   ;;  %1468 = vperm.xlu0 %4654, %v1394_v14   ;;  %v2019_v13 = vld [vmem:[%s7328_s6 + $0x50] sm:$0xff] }
  0x5a   : > { %1463 = vperm.xlu1 %4655, %v1393_v18   ;;  %1458 = vperm.xlu0 %4654, %v1392_v19   ;;  %v4734_v19 = vld [vmem:[%s7323_s1 + $0x16c] ss:$12 sps:$4 sm:$0xff]  }
  0x5c   : > { %1055 = vmatmul.mubr.bf16.gmra.mxu0 %v4696_v24  ;;  %v2026_v24 = vld [vmem:[%s7328_s6 + $0x88] sm:$0xff] }
  0x5d   : > { %1062 = vmatprep.mubr.bf16.mxu0 %v4697_v25  ;;  %v2025_v25 = vld [vmem:[%s7328_s6 + $0x80] sm:$0xff] }
  0x5e   : > { %1453 = vperm.xlu1 %4655, %v1391_v21   ;;  %1448 = vperm.xlu0 %4654, %v1390_v23   ;;  %v2024_v21 = vld [vmem:[%s7328_s6 + $0x78] sm:$0xff] }
  0x62   : > { %1443 = vperm.xlu1 %4655, %v1389_v26   ;;  %1438 = vperm.xlu0 %4654, %v1388_v27   ;;  %v4736_v26 = vld [vmem:[%s7323_s1 + $0x168] ss:$12 sps:$4 sm:$0xff]  }
  0x64   : > { %1063 = vmatmul.mubr.bf16.gmra.mxu0 %v4699_v31 }
  0x65   : > { %1070 = vmatprep.mubr.bf16.mxu0 %v4702_v32  ;;  %v2030_v32 = vld [vmem:[%s7328_s6 + $0xa8] sm:$0xff] }
  0x66   : > { %1433 = vperm.xlu1 %4655, %v1387_v29   ;;  %1428 = vperm.xlu0 %4654, %v1386_v30   ;;  %v2027_v29 = vld [vmem:[%s7328_s6 + $0x90] sm:$0xff] }
  0x6a   : > { %1423 = vperm.xlu1 %4655, %v1385_v33   ;;  %1418 = vperm.xlu0 %4654, %v1384_v34   ;;  %v2029_v33 = vld [vmem:[%s7328_s6 + $0xa0] sm:$0xff] }
  0x6c   : > { %1071 = vmatmul.mubr.bf16.gmra.mxu0 %v4704_v37 }
  0x6d   : > { %1078 = vmatprep.mubr.bf16.mxu0 %v4705_v38  ;;  %v2034_v38 = vld [vmem:[%s7328_s6 + $0xc8] sm:$0xff] }
  0x6e   : > { %1573 = vperm.xlu1 %4655, %v1415_v35   ;;  %1568 = vperm.xlu0 %4654, %v1414_v36   ;;  %v2032_v35 = vld [vmem:[%s7328_s6 + $0xb8] sm:$0xff]  ;;  %v2031_v36 = vld [vmem:[%s7328_s6 + $0xb0] sm:$0xff] }
  0x72   : > { %1563 = vperm.xlu1 %4655, %v1413_v39   ;;  %1558 = vperm.xlu0 %4654, %v1412_v40   ;;  %v2033_v39 = vld [vmem:[%s7328_s6 + $0xc0] sm:$0xff] }
  0x74   : > { %1079 = vmatmul.mubr.bf16.gmra.mxu0 %v4707_v43  ;;  %v2035_v43 = vld [vmem:[%s7328_s6 + $0xd0] sm:$0xff] }
  0x75   : > { %1086 = vmatprep.mubr.bf16.mxu0 %v4710_v44 }
  0x76   : > { %1553 = vperm.xlu1 %4655, %v1411_v41   ;;  %1548 = vperm.xlu0 %4654, %v1410_v42   ;;  %v2036_v42 = vld [vmem:[%s7328_s6 + $0xd8] sm:$0xff] }
  0x7a   : > { %1543 = vperm.xlu1 %4655, %v1409_v45   ;;  %1538 = vperm.xlu0 %4654, %v1408_v46   ;;  %v2038_v45 = vld [vmem:[%s7328_s6 + $0xe8] sm:$0xff]  ;;  %v2037_v46 = vld [vmem:[%s7328_s6 + $0xe0] sm:$0xff] }
  0x7c   : > { %1087 = vmatmul.mubr.bf16.gmra.mxu0 %v4712_v49  ;;  %v2039_v49 = vld [vmem:[%s7328_s6 + $0xf0] sm:$0xff] }
  0x7d   : > { %1094 = vmatprep.mubr.bf16.mxu0 %v4713_v50 }
  0x7e   : > { %1533 = vperm.xlu1 %4655, %v1407_v47   ;;  %1528 = vperm.xlu0 %4654, %v1406_v48   ;;  %v2040_v48 = vld [vmem:[%s7328_s6 + $0xf8] sm:$0xff] }
  0x82   : > { %1523 = vperm.xlu1 %4655, %v1405_v51   ;;  %1518 = vperm.xlu0 %4654, %v1404_v52   ;;  %v2042_v52 = vld [vmem:[%s7328_s6 + $0x108] sm:$0xff] }
  0x84   : > { %1095 = vmatmul.mubr.bf16.gmra.mxu0 %v4715_v55  ;;  %v2044_v55 = vld [vmem:[%s7328_s6 + $0x118] sm:$0xff] }
  0x85   : > { %1102 = vmatprep.mubr.bf16.mxu0 %v4718_v56  ;;  %v2043_v56 = vld [vmem:[%s7328_s6 + $0x110] sm:$0xff] }
  0x86   : > { %1513 = vperm.xlu1 %4655, %v1403_v53   ;;  %1508 = vperm.xlu0 %4654, %v1402_v54   ;;  %v2041_v53 = vld [vmem:[%s7328_s6 + $0x100] sm:$0xff] }
  0x89   : > { %v5372_v14 = vpop.permute.xlu0 %582  ;;  %v5383_v18 = vpop.permute.xlu1 %502 }
  0x8a   : > { %1503 = vperm.xlu1 %4655, %v1401_v57   ;;  %1498 = vperm.xlu0 %4654, %v1400_v58   ;;  %v2046_v58 = vld [vmem:[%s7328_s6 + $0x128] sm:$0xff] }
  0x8c   : > { %1103 = vmatmul.mubr.bf16.gmra.mxu0 %v4720_v61 }
  0x8d   : > { %1110 = vmatprep.mubr.bf16.mxu0 %v4721_v62  ;;  %v5388_v20 = vpop.permute.xlu0 %587  ;;  %v5396_v23 = vpop.permute.xlu1 %507  ;;  %v2048_v62 = vld [vmem:[%s7328_s6 + $0x138] sm:$0xff] }
  0x8e   : > { %2080 = vperm.xlu1 %4655, %v2010_v59   ;;  %2075 = vperm.xlu0 %4654, %v2009_v60   ;;  %v2045_v59 = vld [vmem:[%s7328_s6 + $0x120] sm:$0xff] }
  0x91   : > { %v5407_v27 = vpop.permute.xlu0 %572  ;;  %v5415_v30 = vpop.permute.xlu1 %577 }
  0x92   : > { %2090 = vperm.xlu1 %4655, %v2012_v63   ;;  %2085 = vperm.xlu0 %4654, %v2011_v0   ;;  %v2047_v63 = vld [vmem:[%s7328_s6 + $0x130] sm:$0xff] }
  0x94   : > { %1111 = vmatmul.mubr.bf16.gmra.mxu0 %v4723_v4 }
  0x95   : > { %1118 = vmatprep.mubr.bf16.mxu0 %v4726_v5  ;;  %v5417_v31 = vpop.permute.xlu0 %492  ;;  %v5425_v34 = vpop.permute.xlu1 %497  ;;  %v2052_v5 = vld [vmem:[%s7328_s6 + $0x158] sm:$0xff] }
  0x96   : > { %2100 = vperm.xlu1 %4655, %v2014_v1   ;;  %2095 = vperm.xlu0 %4654, %v2013_v3   ;;  %v2050_v1 = vld [vmem:[%s7328_s6 + $0x148] sm:$0xff]  ;;  %v2049_v3 = vld [vmem:[%s7328_s6 + $0x140] sm:$0xff] }
  0x99   : > { %v5433_v37 = vpop.permute.xlu0 %562  ;;  %v5441_v40 = vpop.permute.xlu1 %567 }
  0x9a   : > { %2110 = vperm.xlu1 %4655, %v2016_v6   ;;  %2105 = vperm.xlu0 %4654, %v2015_v7   ;;  %v2051_v6 = vld [vmem:[%s7328_s6 + $0x150] sm:$0xff] }
  0x9c   : > { %1119 = vmatmul.mubr.bf16.gmra.mxu0 %v4728_v10  ;;  %v2053_v10 = vld [vmem:[%s7328_s6 + $0x160] sm:$0xff] }
  0x9d   : > { %1126 = vmatprep.mubr.bf16.mxu0 %v4729_v11  ;;  %v5443_v41 = vpop.permute.xlu0 %482  ;;  %v5451_v44 = vpop.permute.xlu1 %487 }
  0x9e   : > { %2120 = vperm.xlu1 %4655, %v2018_v8   ;;  %2115 = vperm.xlu0 %4654, %v2017_v9   ;;  %v2054_v9 = vld [vmem:[%s7328_s6 + $0x168] sm:$0xff] }
  0xa1   : > { %v5459_v47 = vpop.permute.xlu0 %552  ;;  %v5467_v50 = vpop.permute.xlu1 %557 }
  0xa2   : > { %2130 = vperm.xlu1 %4655, %v2020_v12   ;;  %2125 = vperm.xlu0 %4654, %v2019_v13   ;;  %v2056_v12 = vld [vmem:[%s7328_s6 + $0x178] sm:$0xff]  ;;  %v2055_v13 = vld [vmem:[%s7328_s6 + $0x170] sm:$0xff] }
  0xa4   : > { %1127 = vmatmul.mubr.bf16.gmra.mxu0 %v4731_v17  ;;  %v2057_v17 = vld [vmem:[%s7328_s6 + $0x180] sm:$0xff] }
  0xa5   : > { %1134 = vmatprep.mubr.bf16.mxu0 %v4734_v19  ;;  %v5469_v51 = vpop.permute.xlu0 %472  ;;  %v5477_v54 = vpop.permute.xlu1 %477 }
  0xa6   : > { %2140 = vperm.xlu1 %4655, %v2022_v15   ;;  %2135 = vperm.xlu0 %4654, %v2021_v16   ;;  %v2058_v16 = vld [vmem:[%s7328_s6 + $0x188] sm:$0xff] }
  0xa9   : > { %v5485_v57 = vpop.permute.xlu0 %542  ;;  %v5493_v60 = vpop.permute.xlu1 %547 }
  0xaa   : > { %2150 = vperm.xlu1 %4655, %v2024_v21   ;;  %2145 = vperm.xlu0 %4654, %v2023_v22   ;;  %v2060_v22 = vld [vmem:[%s7328_s6 + $0x198] sm:$0xff] }
  0xac   : > { %1135 = vmatmul.mubr.bf16.gmra.mxu0 %v4736_v26  ;;  %v2062_v26 = vld [vmem:[%s7328_s6 + $0x1a8] sm:$0xff] }
  0xad   : > { %v5495_v61 = vpop.permute.xlu0 %462  ;;  %v5503_v0 = vpop.permute.xlu1 %467 }
  0xae   : > { %2160 = vperm.xlu1 %4655, %v2026_v24   ;;  %2155 = vperm.xlu0 %4654, %v2025_v25   ;;  %v2059_v24 = vld [vmem:[%s7328_s6 + $0x190] sm:$0xff] }
  0xb1   : > { %v5511_v4 = vpop.permute.xlu0 %532  ;;  %v5519_v7 = vpop.permute.xlu1 %537 }
  0xb2   : > { %2170 = vperm.xlu1 %4655, %v2028_v28   ;;  %2165 = vperm.xlu0 %4654, %v2027_v29   ;;  %v2061_v28 = vld [vmem:[%s7328_s6 + $0x1a0] sm:$0xff] }
  0xb5   : > { %v5521_v8 = vpop.permute.xlu0 %452  ;;  %v5529_v11 = vpop.permute.xlu1 %457 }
  0xb6   : > { %2180 = vperm.xlu1 %4655, %v2030_v32   ;;  %2175 = vperm.xlu0 %4654, %v2029_v33  }
  0xb9   : > { %v5537_v15 = vpop.permute.xlu0 %522  ;;  %v5545_v19 = vpop.permute.xlu1 %527 }
  0xba   : > { %2190 = vperm.xlu1 %4655, %v2032_v35   ;;  %2185 = vperm.xlu0 %4654, %v2031_v36   ;;  %v2064_v35 = vld [vmem:[%s7328_s6 + $0x1b8] sm:$0xff]  ;;  %v2063_v36 = vld [vmem:[%s7328_s6 + $0x1b0] sm:$0xff] }
  0xbd   : > { %v443_v21 = vpop.permute.xlu0 %442  ;;  %v448_v25 = vpop.permute.xlu1 %447 }
  0xbe   : > { %2200 = vperm.xlu1 %4655, %v2034_v38   ;;  %2195 = vperm.xlu0 %4654, %v2033_v39  }
  0xc1   : > { %v5559_v32 = vpop.permute.xlu0 %512  ;;  %v5567_v39 = vpop.permute.xlu1 %517 }
  0xc2   : > { %2210 = vperm.xlu1 %4655, %v2036_v42   ;;  %2205 = vperm.xlu0 %4654, %v2035_v43  }
  0xc5   : > { %v433_v43 = vpop.permute.xlu0 %432 }
  0xc6   : > { %2220 = vperm.xlu1 %4655, %v2038_v45   ;;  %2215 = vperm.xlu0 %4654, %v2037_v46  }
  0xca   : > { %2230 = vperm.xlu1 %4655, %v2040_v48   ;;  %2225 = vperm.xlu0 %4654, %v2039_v49   ;;  %v2066_v48 = vld [vmem:[%s7328_s6 + $0x1c8] sm:$0xff]  ;;  %v2065_v49 = vld [vmem:[%s7328_s6 + $0x1c0] sm:$0xff] }
  0xce   : > { %2240 = vperm.xlu1 %4655, %v2042_v52   ;;  %2235 = vperm.xlu0 %4654, %v2041_v53  }
  0xd2   : > { %2250 = vperm.xlu1 %4655, %v2044_v55   ;;  %2245 = vperm.xlu0 %4654, %v2043_v56   ;;  %v438_v56 = vpop.permute.xlu1 %437 }
  0xd6   : > { %2260 = vperm.xlu1 %4655, %v2046_v58   ;;  %2255 = vperm.xlu0 %4654, %v2045_v59  }
  0xda   : > { %2270 = vperm.xlu1 %4655, %v2048_v62   ;;  %2265 = vperm.xlu0 %4654, %v2047_v63  }
  0xdc   : > { %v4565_v29 = vpop.f32.mrf.mxu1 }
  0xde   : > { %2280 = vperm.xlu1 %4655, %v2050_v1   ;;  %2275 = vperm.xlu0 %4654, %v2049_v3   ;;  %v1177_v38 = vpop.f32.mrf.mxu1  ;;  %v2068_v1 = vld [vmem:[%s7328_s6 + $0x1d8] sm:$0xff]  ;;  %v2067_v3 = vld [vmem:[%s7328_s6 + $0x1d0] sm:$0xff] }
  0xe0   : > { %v4566_v52 = vpop.f32.mrf.mxu1 }
  0xe2   : > { %2290 = vperm.xlu1 %4655, %v2052_v5   ;;  %2285 = vperm.xlu0 %4654, %v2051_v6   ;;  %v1180_v63 = vpop.f32.mrf.mxu1 }
  0xe6   : > { %2300 = vperm.xlu1 %4655, %v2054_v9   ;;  %2295 = vperm.xlu0 %4654, %v2053_v10  }
  0xea   : > { %2310 = vperm.xlu1 %4655, %v2056_v12   ;;  %2305 = vperm.xlu0 %4654, %v2055_v13   ;;  %v2070_v13 = vld [vmem:[%s7328_s6 + $0x1e8] sm:$0xff] }
  0xee   : > { %2320 = vperm.xlu1 %4655, %v2058_v16   ;;  %2315 = vperm.xlu0 %4654, %v2057_v17   ;;  %v2069_v16 = vld [vmem:[%s7328_s6 + $0x1e0] sm:$0xff]  ;;  %v4569_v17 = vpop.f32.mrf.mxu1 }
  0xf2   : > { %2330 = vperm.xlu1 %4655, %v2060_v22   ;;  %2325 = vperm.xlu0 %4654, %v2059_v24  }
  0xf4   : > { %v4336_v33 = vpop.f32.mrf.mxu0 }
  0xf6   : > { %2340 = vperm.xlu1 %4655, %v2062_v26   ;;  %2335 = vperm.xlu0 %4654, %v2061_v28   ;;  %v4337_v42 = vpop.f32.mrf.mxu0 }
  0xf7   : > { %v4338_v45 = vadd.f32 %v4337_v42, %v4336_v33  ;;  %v2072_v42 = vld [vmem:[%s7328_s6 + $0x1f8] sm:$0xff] }
  0xf8   : > { %v4339_v46 = vpop.f32.mrf.mxu0 }
  0xf9   : > { %v1017_v53 = vadd.f32 %v4338_v45, %v433_v43  ;;  %v2071_v43 = vld [vmem:[%s7328_s6 + $0x1f0] sm:$0xff]  ;;  %v1193_v45 = vpop.f32.mrf.mxu1 }
  0xfa   : > { %2350 = vperm.xlu1 %4655, %v2064_v35   ;;  %2345 = vperm.xlu0 %4654, %v2063_v36   ;;  %v4340_v55 = vpop.f32.mrf.mxu0 }
  0xfb   : > { %v4341_v58 = vadd.f32 %v4340_v55, %v4339_v46  ;;  %v1178_v59 = vadd.f32 %v1177_v38, %v1017_v53  ;;  %v4570_v53 = vpop.f32.mrf.mxu1 }
  0xfc   : > { %v4342_v62 = vpop.f32.mrf.mxu0 }
  0xfd   : > { %v1020_v5 = vadd.f32 %v4341_v58, %v438_v56  ;;  %v1304_v22 = vmax.f32 %v1178_v59, 0.0 }
  0xfe   : > { %2360 = vperm.xlu1 %4655, %v2066_v48   ;;  %2355 = vperm.xlu0 %4654, %v2065_v49   ;;  %v4343_v6 = vpop.f32.mrf.mxu0 }
  0xff   : > { %v4344_v9 = vadd.f32 %v4343_v6, %v4342_v62  ;;  %v1181_v10 = vadd.f32 %v1180_v63, %v1020_v5  ;;  %v1196_v5 = vpop.f32.mrf.mxu1 }
 0x100   : > { %v4345_v12 = vpop.f32.mrf.mxu0 }
 0x101   : > { %v1025_v24 = vadd.f32 %v4344_v9, %v443_v21  ;;  %v1305_v26 = vmax.f32 %v1181_v10, 0.0 }
 0x102   : > { %2370 = vperm.xlu1 %4655, %v2068_v1   ;;  %2365 = vperm.xlu0 %4654, %v2067_v3   ;;  %v4346_v28 = vpop.f32.mrf.mxu0 }
 0x103   : > { %v1186_v33 = vadd.f32 %v4565_v29, %v1025_v24  ;;  %v5587_v35 = vpack.c.bf16 %v1305_v26, %v1304_v22  ;;  %v4347_v36 = vadd.f32 %v4346_v28, %v4345_v12  ;;  %v4573_v12 = vpop.f32.mrf.mxu1 }
 0x104   : > { %v4348_v38 = vpop.f32.mrf.mxu0 }
 0x105   : > { %7332 = vst [vmem:[#allocation2_spill] sm:$0xff] %v5587_v35  ;;  %v1028_v46 = vadd.f32 %v4347_v36, %v448_v25  ;;  %v1306_v55 = vmax.f32 %v1186_v33, 0.0  ;;  %v1209_v36 = vpop.f32.mrf.mxu1 }
 0x106   : > { %2380 = vperm.xlu1 %4655, %v2070_v13   ;;  %2375 = vperm.xlu0 %4654, %v2069_v16   ;;  %v4349_v21 = vpop.f32.mrf.mxu0 }
 0x107   : > { %v1189_v48 = vadd.f32 %v4566_v52, %v1028_v46  ;;  %v4350_v49 = vadd.f32 %v4349_v21, %v4348_v38  ;;  %v4574_v46 = vpop.f32.mrf.mxu1 }
 0x108   : > { %v4351_v29 = vpop.f32.mrf.mxu0 }
 0x109   : > { %v1307_v56 = vmax.f32 %v1189_v48, 0.0  ;;  %v1033_v58 = vadd.f32 %v4350_v49, %v5521_v8 }
 0x10a   : > { %2390 = vperm.xlu1 %4655, %v2072_v42   ;;  %2385 = vperm.xlu0 %4654, %v2071_v43   ;;  %v4352_v59 = vpop.f32.mrf.mxu0 }
 0x10b   : > { %v4353_v62 = vadd.f32 %v4352_v59, %v4351_v29  ;;  %v1194_v63 = vadd.f32 %v1193_v45, %v1033_v58  ;;  %v5596_v1 = vpack.c.bf16 %v1307_v56, %v1306_v55  ;;  %v1212_v58 = vpop.f32.mrf.mxu1 }
 0x10c   : > { %v4354_v3 = vpop.f32.mrf.mxu0 }
 0x10d   : > { %7333 = vst [vmem:[#allocation3_spill] sm:$0xff] %v5596_v1  ;;  %v1036_v25 = vadd.f32 %v4353_v62, %v5529_v11  ;;  %v1308_v13 = vmax.f32 %v1194_v63, 0.0 }
 0x10e   : > { %v4355_v6 = vpop.f32.mrf.mxu0 }
 0x10f   : > { %v4356_v52 = vadd.f32 %v4355_v6, %v4354_v3  ;;  %v1197_v9 = vadd.f32 %v1196_v5, %v1036_v25  ;;  %v4577_v5 = vpop.f32.mrf.mxu1 }
 0x110   : > { %v4357_v10 = vpop.f32.mrf.mxu0 }
 0x111   : > { %v1041_v16 = vadd.f32 %v4356_v52, %v5495_v61  ;;  %v1309_v22 = vmax.f32 %v1197_v9, 0.0 }
 0x112   : > { %v4358_v24 = vpop.f32.mrf.mxu0 }
 0x113   : > { %v1202_v8 = vadd.f32 %v4569_v17, %v1041_v16  ;;  %v5600_v26 = vpack.c.bf16 %v1309_v22, %v1308_v13  ;;  %v4359_v28 = vadd.f32 %v4358_v24, %v4357_v10  ;;  %v4739_v17 = vld [vmem:[%s7325_s3 + $0x4] ss:$8 sps:$4 sm:$0xff]   ;;  %v1225_v16 = vpop.f32.mrf.mxu1 }
 0x114   : > { %v4360_v33 = vpop.f32.mrf.mxu0  ;;  %1768 = vmatprep.mubr.bf16.mxu1 %v4739_v17 }
 0x115   : > { %7334 = vst [vmem:[#allocation4_spill] sm:$0xff] %v5600_v26  ;;  %v1044_v38 = vadd.f32 %v4359_v28, %v5503_v0  ;;  %v1310_v21 = vmax.f32 %v1202_v8, 0.0 }
 0x116   : > { %v4361_v42 = vpop.f32.mrf.mxu0 }
 0x117   : > { %v1205_v11 = vadd.f32 %v4570_v53, %v1044_v38  ;;  %v4362_v43 = vadd.f32 %v4361_v42, %v4360_v33 }
 0x118   : > { %v4363_v45 = vpop.f32.mrf.mxu0 }
 0x119   : > { %v1311_v48 = vmax.f32 %v1205_v11, 0.0  ;;  %v1049_v49 = vadd.f32 %v4362_v43, %v5469_v51 }
 0x11a   : > { %v4364_v61 = vpop.f32.mrf.mxu0 }
 0x11b   : > { %v4365_v29 = vadd.f32 %v4364_v61, %v4363_v45  ;;  %v5607_v55 = vpack.c.bf16 %v1311_v48, %v1310_v21  ;;  %v1210_v0 = vadd.f32 %v1209_v36, %v1049_v49  ;;  %v4578_v36 = vpop.f32.mrf.mxu1 }
 0x11c   : > { %v4366_v56 = vpop.f32.mrf.mxu0 }
 0x11d   : > { %v1052_v53 = vadd.f32 %v4365_v29, %v5477_v54  ;;  %v1312_v51 = vmax.f32 %v1210_v0, 0.0  ;;  %v1228_v48 = vpop.f32.mrf.mxu1 }
 0x11e   : > { %v4367_v59 = vpop.f32.mrf.mxu0 }
 0x11f   : > { %v4368_v62 = vadd.f32 %v4367_v59, %v4366_v56  ;;  %v1213_v63 = vadd.f32 %v1212_v58, %v1052_v53  ;;  %v4581_v29 = vpop.f32.mrf.mxu1 }
 0x120   : > { %v4369_v3 = vpop.f32.mrf.mxu0 }
 0x121   : > { %v1057_v25 = vadd.f32 %v4368_v62, %v5443_v41  ;;  %v1313_v6 = vmax.f32 %v1213_v63, 0.0  ;;  %v1241_v63 = vpop.f32.mrf.mxu1 }
 0x122   : > { %v4370_v52 = vpop.f32.mrf.mxu0 }
 0x123   : > { %v5611_v9 = vpack.c.bf16 %v1313_v6, %v1312_v51  ;;  %v4371_v10 = vadd.f32 %v4370_v52, %v4369_v3  ;;  %v1218_v22 = vadd.f32 %v4573_v12, %v1057_v25 }
 0x124   : > { %v4372_v13 = vpop.f32.mrf.mxu0 }
 0x125   : > { %v1060_v24 = vadd.f32 %v4371_v10, %v5451_v44  ;;  %v1314_v38 = vmax.f32 %v1218_v22, 0.0  ;;  %v4582_v10 = vpop.f32.mrf.mxu1 }
 0x126   : > { %v4373_v8 = vpop.f32.mrf.mxu0 }
 0x127   : > { %v1221_v54 = vadd.f32 %v4574_v46, %v1060_v24  ;;  %v4374_v28 = vadd.f32 %v4373_v8, %v4372_v13 }
 0x128   : > { %v4375_v33 = vpop.f32.mrf.mxu0 }
 0x129   : > { %v1315_v42 = vmax.f32 %v1221_v54, 0.0  ;;  %v1065_v11 = vadd.f32 %v4374_v28, %v5417_v31  ;;  %v1244_v28 = vpop.f32.mrf.mxu1 }
 0x12a   : > { %v4376_v41 = vpop.f32.mrf.mxu0 }
 0x12b   : > { %v4377_v43 = vadd.f32 %v4376_v41, %v4375_v33  ;;  %v5615_v45 = vpack.c.bf16 %v1315_v42, %v1314_v38  ;;  %v1226_v49 = vadd.f32 %v1225_v16, %v1065_v11 }
 0x12c   : > { %v4378_v21 = vpop.f32.mrf.mxu0 }
 0x12d   : > { %v1068_v12 = vadd.f32 %v4377_v43, %v5425_v34  ;;  %v1316_v56 = vmax.f32 %v1226_v49, 0.0 }
 0x12e   : > { %v4379_v61 = vpop.f32.mrf.mxu0 }
 0x12f   : > { %v4380_v44 = vadd.f32 %v4379_v61, %v4378_v21  ;;  %v1229_v17 = vadd.f32 %v1228_v48, %v1068_v12 }
 0x130   : > { %v4381_v46 = vpop.f32.mrf.mxu0 }
 0x131   : > { %v1073_v58 = vadd.f32 %v4380_v44, %v5383_v18  ;;  %v1317_v0 = vmax.f32 %v1229_v17, 0.0 }
 0x132   : > { %v4382_v53 = vpop.f32.mrf.mxu0 }
 0x133   : > { %v5619_v31 = vpack.c.bf16 %v1317_v0, %v1316_v56  ;;  %v4383_v59 = vadd.f32 %v4382_v53, %v4381_v46  ;;  %v1234_v3 = vadd.f32 %v4577_v5, %v1073_v58  ;;  %v5636_v58 = vpop.f32.mrf.mxu1 }
 0x134   : > { %v4384_v62 = vpop.f32.mrf.mxu0 }
 0x135   : > { %v1076_v51 = vadd.f32 %v4383_v59, %v5396_v23  ;;  %v1318_v13 = vmax.f32 %v1234_v3, 0.0  ;;  %v5640_v59 = vpop.f32.mrf.mxu1 }
 0x136   : > { %v4385_v25 = vpop.f32.mrf.mxu0 }
 0x137   : > { %v1237_v34 = vadd.f32 %v4578_v36, %v1076_v51  ;;  %v4386_v6 = vadd.f32 %v4385_v25, %v4384_v62 }
 0x138   : > { %v4387_v52 = vpop.f32.mrf.mxu0 }
 0x139   : > { %v1319_v16 = vmax.f32 %v1237_v34, 0.0  ;;  %v1081_v22 = vadd.f32 %v4386_v6, %v5559_v32 }
 0x13a   : > { %v4388_v18 = vpop.f32.mrf.mxu0 }
 0x13b   : > { %v5623_v24 = vpack.c.bf16 %v1319_v16, %v1318_v13  ;;  %v4389_v8 = vadd.f32 %v4388_v18, %v4387_v52  ;;  %v1242_v5 = vadd.f32 %v1241_v63, %v1081_v22 }
 0x13c   : > { %v4390_v54 = vpop.f32.mrf.mxu0 }
 0x13d   : > { %v1084_v33 = vadd.f32 %v4389_v8, %v5567_v39  ;;  %v1320_v11 = vmax.f32 %v1242_v5, 0.0 }
 0x13e   : > { %v4391_v38 = vpop.f32.mrf.mxu0 }
 0x13f   : > { %v4392_v23 = vadd.f32 %v4391_v38, %v4390_v54  ;;  %v1245_v42 = vadd.f32 %v1244_v28, %v1084_v33 }
 0x140   : > { %v4393_v36 = vpop.f32.mrf.mxu0 }
 0x141   : > { %v1089_v41 = vadd.f32 %v4392_v23, %v5537_v15  ;;  %v1321_v43 = vmax.f32 %v1245_v42, 0.0 }
 0x142   : > { %v4394_v21 = vpop.f32.mrf.mxu0 }
 0x143   : > { %v4395_v48 = vadd.f32 %v4394_v21, %v4393_v36  ;;  %v5627_v32 = vpack.c.bf16 %v1321_v43, %v1320_v11  ;;  %v1250_v12 = vadd.f32 %v4581_v29, %v1089_v41  ;;  %v5642_v29 = vpop.f32.mrf.mxu1 }
 0x144   : > { %v5629_v49 = vpop.f32.mrf.mxu0 }
 0x145   : > { %7335 = vst [vmem:[#allocation5_spill] sm:$0xff] %v5627_v32  ;;  %v1092_v61 = vadd.f32 %v4395_v48, %v5545_v19  ;;  %v1322_v46 = vmax.f32 %v1250_v12, 0.0  ;;  %v5644_v51 = vpop.f32.mrf.mxu1 }
 0x146   : > { %v5632_v44 = vpop.f32.mrf.mxu0 }
 0x147   : > { %v1253_v39 = vadd.f32 %v4582_v10, %v1092_v61  ;;  %v4589_v6 = vpop.f32.mrf.mxu1 }
 0x148   : > { %v5634_v17 = vpop.f32.mrf.mxu0 }
 0x149   : > { %v1323_v56 = vmax.f32 %v1253_v39, 0.0  ;;  %v1273_v10 = vpop.f32.mrf.mxu1 }
 0x14a   : > { %v4400_v15 = vpop.f32.mrf.mxu0 }
 0x14b   : > { %v5638_v0 = vpack.c.bf16 %v1323_v56, %v1322_v46  ;;  %v4590_v22 = vpop.f32.mrf.mxu1 }
 0x14c   : > { %v4402_v53 = vpop.f32.mrf.mxu0 }
 0x14d   : > { %7336 = vst [vmem:[#allocation6_spill] sm:$0xff] %v5638_v0  ;;  %v1276_v54 = vpop.f32.mrf.mxu1 }
 0x14e   : > { %v4403_v62 = vpop.f32.mrf.mxu0 }
 0x14f   : > { %v4593_v5 = vpop.f32.mrf.mxu1 }
 0x150   : > { %v4405_v63 = vpop.f32.mrf.mxu0 }
 0x151   : > { %v1289_v42 = vpop.f32.mrf.mxu1 }
 0x152   : > { %v4406_v19 = vpop.f32.mrf.mxu0 }
 0x153   : > { %v4594_v41 = vpop.f32.mrf.mxu1 }
 0x154   : > { %v4408_v3 = vpop.f32.mrf.mxu0 }
 0x155   : > { %v1292_v56 = vpop.f32.mrf.mxu1 }
 0x156   : > { %v4409_v25 = vpop.f32.mrf.mxu0 }
 0x158   : > { %v4411_v34 = vpop.f32.mrf.mxu0 }
 0x15a   : > { %v4412_v52 = vpop.f32.mrf.mxu0 }
 0x15b   : > { %v4413_v0 = vadd.f32 %v4412_v52, %v4411_v34 }
 0x15c   : > { %v4414_v13 = vpop.f32.mrf.mxu0 }
 0x15e   : > { %v4415_v16 = vpop.f32.mrf.mxu0 }
 0x15f   : > { %v4416_v35 = vadd.f32 %v4415_v16, %v4414_v13 }
 0x160   : > { %v4417_v18 = vpop.f32.mrf.mxu0 }
 0x162   : > { %v4418_v8 = vpop.f32.mrf.mxu0 }
 0x163   : > { %v4419_v61 = vadd.f32 %v4418_v8, %v4417_v18  ;;  %v1121_v18 = vadd.f32 %v4416_v35, %v5433_v37 }
 0x164   : > { %v4420_v28 = vpop.f32.mrf.mxu0 }
 0x165   : > { %v1124_v26 = vadd.f32 %v4419_v61, %v5441_v40  ;;  %v1282_v40 = vadd.f32 %v4589_v6, %v1121_v18  ;;  %v7341_v6 = vld [vmem:[#allocation2_spill] sm:$0xff] }
 0x166   : > { %v4421_v33 = vpop.f32.mrf.mxu0  ;;  %v4755_v61 = vld [vmem:[%s7325_s3 + $0x64] ss:$8 sps:$4 sm:$0xff]  }
 0x167   : > { %v4422_v21 = vadd.f32 %v4421_v33, %v4420_v28  ;;  %v4410_v33 = vadd.f32 %v4409_v25, %v4408_v3  ;;  %v7339_v25 = vld [vmem:[#allocation3_spill] sm:$0xff] }
 0x168   : > { %v4423_v38 = vpop.f32.mrf.mxu0  ;;  %v4767_v18 = vld [vmem:[%s7325_s3 + $0xa4] ss:$8 sps:$4 sm:$0xff]  }
 0x169   : > { %v1129_v32 = vadd.f32 %v4422_v21, %v5407_v27  ;;  %v1113_v34 = vadd.f32 %v4410_v33, %v5459_v47  ;;  %v1330_v47 = vmax.f32 %v1282_v40, 0.0  ;;  %v4751_v21 = vld [vmem:[%s7325_s3 + $0x40] ss:$8 sps:$4 sm:$0xff]   ;;  %v4766_v33 = vld [vmem:[%s7325_s3 + $0x90] ss:$8 sps:$4 sm:$0xff]  }
 0x16a   : > { %v4424_v23 = vpop.f32.mrf.mxu0  ;;  %v4784_v40 = vld [vmem:[%s7325_s3 + $0xf0] ss:$8 sps:$4 sm:$0xff]  }
 0x16b   : > { %v4425_v11 = vadd.f32 %v4424_v23, %v4423_v38  ;;  %v1290_v8 = vadd.f32 %v1289_v42, %v1129_v32  ;;  %v4746_v42 = vld [vmem:[%s7325_s3 + $0x34] ss:$8 sps:$4 sm:$0xff]  }
 0x16c   : > { %v4426_v36 = vpop.f32.mrf.mxu0 }
 0x16d   : > { %v1132_v39 = vadd.f32 %v4425_v11, %v5415_v30  ;;  %v1285_v11 = vadd.f32 %v4590_v22, %v1124_v26  ;;  %v1332_v52 = vmax.f32 %v1290_v8, 0.0  ;;  %v4743_v22 = vld [vmem:[%s7325_s3 + $0x24] ss:$8 sps:$4 sm:$0xff]   ;;  %v4769_v8 = vld [vmem:[%s7325_s3 + $0xa0] ss:$8 sps:$4 sm:$0xff]  }
 0x16e   : > { %v4427_v43 = vpop.f32.mrf.mxu0 }
 0x16f   : > { %v4428_v48 = vadd.f32 %v4427_v43, %v4426_v36  ;;  %v1293_v23 = vadd.f32 %v1292_v56, %v1132_v39  ;;  %v4407_v36 = vadd.f32 %v4406_v19, %v4405_v63  ;;  %v1331_v35 = vmax.f32 %v1285_v11, 0.0  ;;  %v4749_v43 = vld [vmem:[%s7325_s3 + $0x44] ss:$8 sps:$4 sm:$0xff]   ;;  %v4757_v39 = vld [vmem:[%s7325_s3 + $0x60] ss:$8 sps:$4 sm:$0xff]  }
 0x170   : > { %v4429_v12 = vpop.f32.mrf.mxu0  ;;  %v4760_v56 = vld [vmem:[%s7325_s3 + $0x70] ss:$8 sps:$4 sm:$0xff]   ;;  %v4775_v11 = vld [vmem:[%s7325_s3 + $0xc0] ss:$8 sps:$4 sm:$0xff]  }
 0x171   : > { %v1137_v46 = vadd.f32 %v4428_v48, %v5372_v14  ;;  %v1116_v14 = vadd.f32 %v4413_v0, %v5467_v50  ;;  %v1333_v16 = vmax.f32 %v1293_v23, 0.0  ;;  %v4398_v50 = vadd.f32 %v5632_v44, %v5629_v49  ;;  %v4752_v48 = vld [vmem:[%s7325_s3 + $0x54] ss:$8 sps:$4 sm:$0xff]   ;;  %v4763_v23 = vld [vmem:[%s7325_s3 + $0x80] ss:$8 sps:$4 sm:$0xff]  }
 0x172   : > { %v4430_v2 = vpop.f32.mrf.mxu0  ;;  %v1274_v0 = vadd.f32 %v1273_v10, %v1113_v34  ;;  %v4742_v10 = vld [vmem:[%s7325_s3 + $0x10] ss:$8 sps:$4 sm:$0xff]   ;;  %v4782_v34 = vld [vmem:[%s7325_s3 + $0xf4] ss:$8 sps:$4 sm:$0xff]  }
 0x173   : > { %v4431_v1 = vadd.f32 %v4430_v2, %v4429_v12  ;;  %v1298_v38 = vadd.f32 %v4593_v5, %v1137_v46  ;;  %v4404_v2 = vadd.f32 %v4403_v62, %v4402_v53  ;;  %v1277_v37 = vadd.f32 %v1276_v54, %v1116_v14  ;;  %v4745_v54 = vld [vmem:[%s7325_s3 + $0x20] ss:$8 sps:$4 sm:$0xff]   ;;  %v4754_v12 = vld [vmem:[%s7325_s3 + $0x50] ss:$8 sps:$4 sm:$0xff]   ;;  %v4758_v46 = vld [vmem:[%s7325_s3 + $0x74] ss:$8 sps:$4 sm:$0xff]  }
 0x174   : > { %v1350_v32 = vpack.c.bf16 %v1333_v16, %v1332_v52  ;;  %v1097_v62 = vadd.f32 %v4398_v50, %v5511_v4  ;;  %v1328_v63 = vmax.f32 %v1274_v0, 0.0  ;;  %v4773_v14 = vld [vmem:[%s7325_s3 + $0xc4] ss:$8 sps:$4 sm:$0xff]   ;;  %v4778_v16 = vld [vmem:[%s7325_s3 + $0xd0] ss:$8 sps:$4 sm:$0xff]   ;;  %v5769_v52 = vpop.permute.xlu0 %1488 }
 0x175   : > { %v1140_v28 = vadd.f32 %v4431_v1, %v5388_v20  ;;  %v1334_v13 = vmax.f32 %v1298_v38, 0.0  ;;  %v4401_v20 = vadd.f32 %v4400_v15, %v5634_v17  ;;  %v1108_v1 = vadd.f32 %v4407_v36, %v5493_v60  ;;  %v4761_v38 = vld [vmem:[%s7325_s3 + $0x84] ss:$8 sps:$4 sm:$0xff]   ;;  %v4772_v36 = vld [vmem:[%s7325_s3 + $0xb0] ss:$8 sps:$4 sm:$0xff]  }
 0x176   : > { %v1105_v26 = vadd.f32 %v4404_v2, %v5485_v57  ;;  %v1329_v15 = vmax.f32 %v1277_v37, 0.0  ;;  %v1349_v60 = vpack.c.bf16 %v1331_v35, %v1330_v47  ;;  %v4781_v2 = vld [vmem:[%s7325_s3 + $0xe0] ss:$8 sps:$4 sm:$0xff]  }
 0x177   : > { %v1301_v30 = vadd.f32 %v4594_v41, %v1140_v28  ;;  %v1100_v53 = vadd.f32 %v4401_v20, %v5519_v7  ;;  %v1269_v17 = vadd.f32 %v5642_v29, %v1108_v1  ;;  %v1258_v7 = vadd.f32 %v5640_v59, %v1097_v62  ;;  %v4737_v59 = vld [vmem:[%s7325_s3] ss:$8 sps:$4 sm:$0xff]   ;;  %v4748_v41 = vld [vmem:[%s7325_s3 + $0x30] ss:$8 sps:$4 sm:$0xff]   ;;  %v4764_v28 = vld [vmem:[%s7325_s3 + $0x94] ss:$8 sps:$4 sm:$0xff]  }
 0x178   : > { %v1348_v44 = vpack.c.bf16 %v1329_v15, %v1328_v63  ;;  %v5773_v20 = vpop.permute.xlu0 %1478 }
 0x179   : > { %v1335_v27 = vmax.f32 %v1301_v30, 0.0  ;;  %v1261_v49 = vadd.f32 %v5644_v51, %v1100_v53  ;;  %v1327_v57 = vmax.f32 %v1269_v17, 0.0  ;;  %v7338_v51 = vld [vmem:[#allocation6_spill] sm:$0xff]  ;;  %v4770_v30 = vld [vmem:[%s7325_s3 + $0xb4] ss:$8 sps:$4 sm:$0xff]  }
 0x17b   : > { %v1351_v5 = vpack.c.bf16 %v1335_v27, %v1334_v13  ;;  %v1325_v29 = vmax.f32 %v1261_v49, 0.0  ;;  %v4776_v13 = vld [vmem:[%s7325_s3 + $0xd4] ss:$8 sps:$4 sm:$0xff]   ;;  %v4779_v27 = vld [vmem:[%s7325_s3 + $0xe4] ss:$8 sps:$4 sm:$0xff]  }
 0x17c   : > { %v5777_v37 = vpop.permute.xlu0 %1468 }
 0x17d   : > { %4449 = vmatprep.subr.bf16.mxu1 %v1351_v5  ;;  %v5771_v5 = vpop.permute.xlu1 %1493 }
 0x17e   : > { %4450 = vmatpush3.bf16.msra.mxu1 %v5623_v24  ;;  %v1266_v24 = vadd.f32 %v5636_v58, %v1105_v26  ;;  %v7337_v58 = vld [vmem:[#allocation4_spill] sm:$0xff] }
 0x17f   : > { %4451 = vmatprep.subr.bf16.mxu1 %v1350_v32 }
 0x180   : > { %v1326_v19 = vmax.f32 %v1266_v24, 0.0  ;;  %v5781_v32 = vpop.permute.xlu0 %1458 }
 0x181   : > { %v5775_v1 = vpop.permute.xlu1 %1483 }
 0x182   : > { %4452 = vmatpush3.bf16.msra.mxu1 %v5619_v31  ;;  %v1347_v3 = vpack.c.bf16 %v1327_v57, %v1326_v19  ;;  %v1324_v31 = vmax.f32 %v1258_v7, 0.0 }
 0x183   : > { %4453 = vmatprep.subr.bf16.mxu1 %v1349_v60 }
 0x184   : > { %v1346_v4 = vpack.c.bf16 %v1325_v29, %v1324_v31  ;;  %v5785_v26 = vpop.permute.xlu0 %1448 }
 0x185   : > { %v5779_v35 = vpop.permute.xlu1 %1473 }
 0x186   : > { %4454 = vmatpush3.bf16.msra.mxu1 %v5615_v45  ;;  %v7340_v45 = vld [vmem:[#allocation5_spill] sm:$0xff] }
 0x187   : > { %4455 = vmatprep.subr.bf16.mxu1 %v1348_v44 }
 0x188   : > { %v5789_v47 = vpop.permute.xlu0 %1438 }
 0x189   : > { %v5783_v50 = vpop.permute.xlu1 %1463 }
 0x18a   : > { %4456 = vmatpush3.bf16.msra.mxu1 %v5611_v9  ;;  %v4740_v9 = vld [vmem:[%s7325_s3 + $0x14] ss:$8 sps:$4 sm:$0xff]  }
 0x18b   : > { %4457 = vmatprep.subr.bf16.mxu1 %v1347_v3 }
 0x18c   : > { %v1429_v17 = vpop.permute.xlu0 %1428 }
 0x18d   : > { %v5787_v0 = vpop.permute.xlu1 %1453 }
 0x18e   : > { %4458 = vmatpush3.bf16.msra.mxu1 %v5607_v55  ;;  %v7342_v55 = vmov 0  }
 0x18f   : > { %4459 = vmatprep.subr.bf16.mxu1 %v1346_v4 }
 0x190   : > { %v1419_v49 = vpop.permute.xlu0 %1418 }
 0x191   : > { %v5791_v53 = vpop.permute.xlu1 %1443 }
 0x192   : > { %4460 = vmatpush3.bf16.msra.mxu1 %v7337_v58 }
 0x193   : > { %4461 = vmatprep.subr.bf16.mxu1 %v7338_v51 }
 0x195   : > { %v1434_v60 = vpop.permute.xlu1 %1433 }
 0x196   : > { %4462 = vmatpush3.bf16.msra.mxu1 %v7339_v25 }
 0x197   : > { %4463 = vmatprep.subr.bf16.mxu1 %v7340_v45 }
 0x199   : > { %v1424_v19 = vpop.permute.xlu1 %1423 }
 0x19a   : > { %4464 = vmatpush3.bf16.msra.mxu1 %v7341_v6 }
 0x19b   : > { %4595 = vmatprep.subr.bf16.mxu1 %v7342_v55 }
 0x19d   : > { %1769 = vmatmul.mubr.bf16.vlgmr.msra.gmra.mxu1 %v4737_v59 }
 0x19e   : > { %1776 = vmatprep.mubr.bf16.mxu1 %v4740_v9 }
 0x1a5   : > { %1777 = vmatmul.mubr.bf16.gmra.mxu1 %v4742_v10 }
 0x1a6   : > { %1784 = vmatprep.mubr.bf16.mxu1 %v4743_v22 }
 0x1ad   : > { %1785 = vmatmul.mubr.bf16.gmra.mxu1 %v4745_v54 }
 0x1ae   : > { %1792 = vmatprep.mubr.bf16.mxu1 %v4746_v42 }
 0x1b5   : > { %1793 = vmatmul.mubr.bf16.gmra.mxu1 %v4748_v41 }
 0x1b6   : > { %1800 = vmatprep.mubr.bf16.mxu1 %v4749_v43 }
 0x1bd   : > { %1801 = vmatmul.mubr.bf16.gmra.mxu1 %v4751_v21 }
 0x1be   : > { %1808 = vmatprep.mubr.bf16.mxu1 %v4752_v48 }
 0x1c5   : > { %1809 = vmatmul.mubr.bf16.gmra.mxu1 %v4754_v12 }
 0x1c6   : > { %1816 = vmatprep.mubr.bf16.mxu1 %v4755_v61 }
 0x1cd   : > { %1817 = vmatmul.mubr.bf16.gmra.mxu1 %v4757_v39 }
 0x1ce   : > { %1824 = vmatprep.mubr.bf16.mxu1 %v4758_v46  ;;  %v5807_v46 = vpop.permute.xlu0 %1568 }
 0x1d5   : > { %1825 = vmatmul.mubr.bf16.gmra.mxu1 %v4760_v56 }
 0x1d6   : > { %1832 = vmatprep.mubr.bf16.mxu1 %v4761_v38  ;;  %v5811_v38 = vpop.permute.xlu1 %1573 }
 0x1dd   : > { %1833 = vmatmul.mubr.bf16.gmra.mxu1 %v4763_v23 }
 0x1de   : > { %1840 = vmatprep.mubr.bf16.mxu1 %v4764_v28 }
 0x1e5   : > { %1841 = vmatmul.mubr.bf16.gmra.mxu1 %v4766_v33  ;;  %v5815_v33 = vpop.permute.xlu0 %1558 }
 0x1e6   : > { %1848 = vmatprep.mubr.bf16.mxu1 %v4767_v18 }
 0x1ed   : > { %1849 = vmatmul.mubr.bf16.gmra.mxu1 %v4769_v8  ;;  %v4787_v8 = vld [vmem:[%s7327_s5 + $0x4] ss:$8 sps:$4 sm:$0xff]  }
 0x1ee   : > { %1856 = vmatprep.mubr.bf16.mxu1 %v4770_v30  ;;  %v5820_v30 = vpop.permute.xlu1 %1563  ;;  %2745 = vmatprep.mubr.bf16.mxu0 %v4787_v8 }
 0x1f5   : > { %1857 = vmatmul.mubr.bf16.gmra.mxu1 %v4772_v36 }
 0x1f6   : > { %1864 = vmatprep.mubr.bf16.mxu1 %v4773_v14  ;;  %v4790_v14 = vld [vmem:[%s7327_s5 + $0x134] ss:$8 sps:$4 sm:$0xff]  }
 0x1fd   : > { %1865 = vmatmul.mubr.bf16.gmra.mxu1 %v4775_v11 }
 0x1fe   : > { %1872 = vmatprep.mubr.bf16.mxu1 %v4776_v13  ;;  %v5825_v13 = vpop.permute.xlu0 %1548 }
 0x205   : > { %1873 = vmatmul.mubr.bf16.gmra.mxu1 %v4778_v16 }
 0x206   : > { %1880 = vmatprep.mubr.bf16.mxu1 %v4779_v27  ;;  %v5827_v27 = vpop.permute.xlu1 %1553 }
 0x20d   : > { %1881 = vmatmul.mubr.bf16.gmra.mxu1 %v4781_v2 }
 0x20e   : > { %1888 = vmatprep.mubr.bf16.mxu1 %v4782_v34 }
 0x215   : > { %1889 = vmatmul.mubr.bf16.gmra.mxu1 %v4784_v40  ;;  %v5829_v40 = vpop.permute.xlu0 %1538 }
 0x216   : > { %2897 = vmatprep.mubr.bf16.mxu1 %v4790_v14 }
 0x25d   : > { %v4465_v15 = vpop.f32.mrf.mxu1 }
 0x25f   : > { %v4466_v62 = vpop.f32.mrf.mxu1 }
 0x260   : > { %v4467_v24 = vadd.f32 %v4466_v62, %v4465_v15  ;;  %v5831_v15 = vpop.permute.xlu1 %1543 }
 0x261   : > { %v4468_v63 = vpop.f32.mrf.mxu1 }
 0x262   : > { %v1771_v44 = vadd.f32 %v4467_v24, %v1419_v49  ;;  %v5833_v24 = vpop.permute.xlu0 %1528 }
 0x263   : > { %v4469_v57 = vpop.f32.mrf.mxu1 }
 0x264   : > { %v4470_v7 = vadd.f32 %v4469_v57, %v4468_v63  ;;  %v1897_v4 = vmax.f32 %v1771_v44, 0.0  ;;  %v5835_v49 = vpop.permute.xlu1 %1533 }
 0x265   : > { %v4471_v29 = vpop.f32.mrf.mxu1 }
 0x266   : > { %v1774_v3 = vadd.f32 %v4470_v7, %v1424_v19  ;;  %v5837_v7 = vpop.permute.xlu0 %1518 }
 0x267   : > { %v4472_v31 = vpop.f32.mrf.mxu1 }
 0x268   : > { %v1898_v58 = vmax.f32 %v1774_v3, 0.0  ;;  %v4473_v51 = vadd.f32 %v4472_v31, %v4471_v29  ;;  %v5839_v3 = vpop.permute.xlu1 %1523 }
 0x269   : > { %v4474_v25 = vpop.f32.mrf.mxu1 }
 0x26a   : > { %v5793_v45 = vpack.c.bf16 %v1898_v58, %v1897_v4  ;;  %v1779_v6 = vadd.f32 %v4473_v51, %v1429_v17 }
 0x26b   : > { %v4475_v59 = vpop.f32.mrf.mxu1 }
 0x26c   : > { %v4476_v9 = vadd.f32 %v4475_v59, %v4474_v25  ;;  %v1899_v42 = vmax.f32 %v1779_v6, 0.0  ;;  %v1509_v6 = vpop.permute.xlu0 %1508 }
 0x26d   : > { %v4477_v10 = vpop.f32.mrf.mxu1 }
 0x26e   : > { %v1782_v22 = vadd.f32 %v4476_v9, %v1434_v60 }
 0x26f   : > { %v4478_v54 = vpop.f32.mrf.mxu1 }
 0x270   : > { %v1900_v41 = vmax.f32 %v1782_v22, 0.0  ;;  %v5795_v43 = vadd.f32 %v4478_v54, %v4477_v10 }
 0x271   : > { %v5797_v21 = vpop.f32.mrf.mxu1 }
 0x272   : > { %v5799_v48 = vpack.c.bf16 %v1900_v41, %v1899_v42  ;;  %v1514_v42 = vpop.permute.xlu1 %1513 }
 0x273   : > { %v5801_v12 = vpop.f32.mrf.mxu1 }
 0x275   : > { %v5803_v61 = vpop.f32.mrf.mxu1 }
 0x277   : > { %v5805_v39 = vpop.f32.mrf.mxu1 }
 0x279   : > { %v5809_v56 = vpop.f32.mrf.mxu1 }
 0x27b   : > { %v5813_v23 = vpop.f32.mrf.mxu1 }
 0x27d   : > { %v4489_v28 = vpop.f32.mrf.mxu1 }
 0x27f   : > { %v4490_v18 = vpop.f32.mrf.mxu1 }
 0x281   : > { %v4492_v36 = vpop.f32.mrf.mxu1 }
 0x283   : > { %v4493_v11 = vpop.f32.mrf.mxu1 }
 0x285   : > { %v4495_v16 = vpop.f32.mrf.mxu1 }
 0x287   : > { %v4496_v2 = vpop.f32.mrf.mxu1 }
 0x288   : > { %v4497_v41 = vadd.f32 %v4496_v2, %v4495_v16  ;;  %v4488_v2 = vadd.f32 %v5813_v23, %v5809_v56  ;;  %v4482_v23 = vadd.f32 %v5801_v12, %v5797_v21 }
 0x289   : > { %v4498_v34 = vpop.f32.mrf.mxu1 }
 0x28a   : > { %v1790_v12 = vadd.f32 %v4482_v23, %v5791_v53 }
 0x28b   : > { %v4499_v17 = vpop.f32.mrf.mxu1 }
 0x28c   : > { %v4500_v10 = vadd.f32 %v4499_v17, %v4498_v34  ;;  %v4491_v34 = vadd.f32 %v4490_v18, %v4489_v28  ;;  %v1902_v53 = vmax.f32 %v1790_v12, 0.0 }
 0x28d   : > { %v4501_v60 = vpop.f32.mrf.mxu1 }
 0x28f   : > { %v4502_v62 = vpop.f32.mrf.mxu1 }
 0x290   : > { %v4503_v51 = vadd.f32 %v4502_v62, %v4501_v60  ;;  %v4494_v60 = vadd.f32 %v4493_v11, %v4492_v36  ;;  %v1803_v11 = vadd.f32 %v4491_v34, %v5781_v32 }
 0x291   : > { %v4504_v63 = vpop.f32.mrf.mxu1 }
 0x292   : > { %v1819_v14 = vadd.f32 %v4503_v51, %v5773_v20  ;;  %v1504_v20 = vpop.permute.xlu1 %1503 }
 0x293   : > { %v4505_v57 = vpop.f32.mrf.mxu1 }
 0x294   : > { %v4506_v4 = vadd.f32 %v4505_v57, %v4504_v63 }
 0x295   : > { %v4507_v44 = vpop.f32.mrf.mxu1 }
 0x296   : > { %v1822_v22 = vadd.f32 %v4506_v4, %v5775_v1  ;;  %v1811_v1 = vadd.f32 %v4497_v41, %v5777_v37  ;;  %v4485_v37 = vadd.f32 %v5805_v39, %v5803_v61  ;;  %v1905_v41 = vmax.f32 %v1803_v11, 0.0 }
 0x297   : > { %v4508_v19 = vpop.f32.mrf.mxu1 }
 0x298   : > { %v4509_v29 = vadd.f32 %v4508_v19, %v4507_v44  ;;  %v1910_v62 = vmax.f32 %v1822_v22, 0.0 }
 0x299   : > { %v4510_v31 = vpop.f32.mrf.mxu1 }
 0x29a   : > { %v1827_v25 = vadd.f32 %v4509_v29, %v5769_v52  ;;  %v1814_v52 = vadd.f32 %v4500_v10, %v5779_v35  ;;  %v1806_v35 = vadd.f32 %v4494_v60, %v5783_v50  ;;  %v1798_v50 = vadd.f32 %v4488_v2, %v5787_v0 }
 0x29b   : > { %v4511_v58 = vpop.f32.mrf.mxu1 }
 0x29c   : > { %v4512_v59 = vadd.f32 %v4511_v58, %v4510_v31  ;;  %v1911_v44 = vmax.f32 %v1827_v25, 0.0  ;;  %v1499_v31 = vpop.permute.xlu0 %1498  ;;  %v1908_v28 = vmax.f32 %v1814_v52, 0.0  ;;  %v1907_v25 = vmax.f32 %v1811_v1, 0.0 }
 0x29d   : > { %v4513_v9 = vpop.f32.mrf.mxu1  ;;  %v1906_v61 = vmax.f32 %v1806_v35, 0.0  ;;  %v1904_v0 = vmax.f32 %v1798_v50, 0.0 }
 0x29e   : > { %v1830_v54 = vadd.f32 %v4512_v59, %v5771_v5  ;;  %v1909_v5 = vmax.f32 %v1819_v14, 0.0  ;;  %v1934_v39 = vpack.c.bf16 %v1908_v28, %v1907_v25 }
 0x29f   : > { %v4514_v8 = vpop.f32.mrf.mxu1 }
 0x2a0   : > { %v1912_v19 = vmax.f32 %v1830_v54, 0.0  ;;  %v4515_v63 = vadd.f32 %v4514_v8, %v4513_v9  ;;  %v1935_v18 = vpack.c.bf16 %v1910_v62, %v1909_v5  ;;  %v1795_v54 = vadd.f32 %v4485_v37, %v5785_v26 }
 0x2a1   : > { %v4516_v57 = vpop.f32.mrf.mxu1 }
 0x2a2   : > { %v1936_v29 = vpack.c.bf16 %v1912_v19, %v1911_v44  ;;  %v1835_v4 = vadd.f32 %v4515_v63, %v1499_v31  ;;  %v1933_v44 = vpack.c.bf16 %v1906_v61, %v1905_v41  ;;  %v1787_v63 = vadd.f32 %v5795_v43, %v5789_v47 }
 0x2a3   : > { %v4517_v17 = vpop.f32.mrf.mxu1  ;;  %v1903_v26 = vmax.f32 %v1795_v54, 0.0 }
 0x2a4   : > { %v4518_v16 = vadd.f32 %v4517_v17, %v4516_v57  ;;  %2714 = vmatpush1.bf16.msra.mxu0 %v1936_v29  ;;  %4611 = vmatpush1.bf16.msra.mxu1 %v1936_v29  ;;  %v1913_v59 = vmax.f32 %v1835_v4, 0.0  ;;  %v1901_v47 = vmax.f32 %v1787_v63, 0.0 }
 0x2a5   : > { %v4519_v58 = vpop.f32.mrf.mxu1  ;;  %2715 = vmatprep.subr.bf16.mxu0 %v7342_v55  ;;  %4596 = vmatprep.subr.bf16.mxu1 %v7342_v55  ;;  %v1932_v29 = vpack.c.bf16 %v1904_v0, %v1903_v26 }
 0x2a6   : > { %v1838_v36 = vadd.f32 %v4518_v16, %v1504_v20  ;;  %v1931_v34 = vpack.c.bf16 %v1902_v53, %v1901_v47 }
 0x2a7   : > { %v4520_v51 = vpop.f32.mrf.mxu1 }
 0x2a8   : > { %v1914_v9 = vmax.f32 %v1838_v36, 0.0  ;;  %v4521_v56 = vadd.f32 %v4520_v51, %v4519_v58  ;;  %2716 = vmatpush1.bf16.msra.mxu0 %v1935_v18  ;;  %4612 = vmatpush1.bf16.msra.mxu1 %v1935_v18 }
 0x2a9   : > { %v4522_v10 = vpop.f32.mrf.mxu1  ;;  %2717 = vmatprep.subr.bf16.mxu0 %v7342_v55  ;;  %4597 = vmatprep.subr.bf16.mxu1 %v7342_v55 }
 0x2aa   : > { %v5860_v32 = vpack.c.bf16 %v1914_v9, %v1913_v59  ;;  %v1843_v8 = vadd.f32 %v4521_v56, %v1509_v6 }
 0x2ab   : > { %v4523_v22 = vpop.f32.mrf.mxu1 }
 0x2ac   : > { %v4524_v14 = vadd.f32 %v4523_v22, %v4522_v10  ;;  %2718 = vmatpush1.bf16.msra.mxu0 %v1934_v39  ;;  %4613 = vmatpush1.bf16.msra.mxu1 %v1934_v39  ;;  %v1915_v60 = vmax.f32 %v1843_v8, 0.0 }
 0x2ad   : > { %v4525_v21 = vpop.f32.mrf.mxu1  ;;  %2719 = vmatprep.subr.bf16.mxu0 %v7342_v55  ;;  %4598 = vmatprep.subr.bf16.mxu1 %v7342_v55 }
 0x2ae   : > { %v1846_v19 = vadd.f32 %v4524_v14, %v1514_v42 }
 0x2af   : > { %v4526_v57 = vpop.f32.mrf.mxu1 }
 0x2b0   : > { %v1916_v6 = vmax.f32 %v1846_v19, 0.0  ;;  %v5868_v52 = vadd.f32 %v4526_v57, %v4525_v21  ;;  %2720 = vmatpush1.bf16.msra.mxu0 %v1933_v44  ;;  %4614 = vmatpush1.bf16.msra.mxu1 %v1933_v44 }
 0x2b1   : > { %v5870_v62 = vpop.f32.mrf.mxu1  ;;  %2721 = vmatprep.subr.bf16.mxu0 %v7342_v55  ;;  %4599 = vmatprep.subr.bf16.mxu1 %v7342_v55 }
 0x2b2   : > { %v5874_v42 = vpack.c.bf16 %v1916_v6, %v1915_v60 }
 0x2b3   : > { %v5876_v31 = vpop.f32.mrf.mxu1 }
 0x2b4   : > { %2722 = vmatpush1.bf16.msra.mxu0 %v1932_v29  ;;  %4615 = vmatpush1.bf16.msra.mxu1 %v1932_v29 }
 0x2b5   : > { %v4531_v43 = vpop.f32.mrf.mxu1  ;;  %2723 = vmatprep.subr.bf16.mxu0 %v7342_v55  ;;  %4600 = vmatprep.subr.bf16.mxu1 %v7342_v55 }
 0x2b7   : > { %v4532_v17 = vpop.f32.mrf.mxu1 }
 0x2b8   : > { %2724 = vmatpush1.bf16.msra.mxu0 %v1931_v34  ;;  %4616 = vmatpush1.bf16.msra.mxu1 %v1931_v34  ;;  %v4533_v26 = vadd.f32 %v4532_v17, %v4531_v43 }
 0x2b9   : > { %v4534_v1 = vpop.f32.mrf.mxu1  ;;  %2725 = vmatprep.subr.bf16.mxu0 %v7342_v55  ;;  %4601 = vmatprep.subr.bf16.mxu1 %v7342_v55 }
 0x2bb   : > { %v4535_v5 = vpop.f32.mrf.mxu1 }
 0x2bc   : > { %2726 = vmatpush1.bf16.msra.mxu0 %v5799_v48  ;;  %4617 = vmatpush1.bf16.msra.mxu1 %v5799_v48 }
 0x2bd   : > { %v4537_v4 = vpop.f32.mrf.mxu1  ;;  %2727 = vmatprep.subr.bf16.mxu0 %v7342_v55  ;;  %4602 = vmatprep.subr.bf16.mxu1 %v7342_v55 }
 0x2bf   : > { %v4538_v16 = vpop.f32.mrf.mxu1 }
 0x2c0   : > { %2728 = vmatpush1.bf16.msra.mxu0 %v5793_v45  ;;  %4618 = vmatpush1.bf16.msra.mxu1 %v5793_v45  ;;  %v4539_v19 = vadd.f32 %v4538_v16, %v4537_v4  ;;  %v4799_v4 = vld [vmem:[%s7327_s5 + $0x154] ss:$8 sps:$4 sm:$0xff]   ;;  %v4801_v16 = vld [vmem:[%s7327_s5 + $0x20] ss:$8 sps:$4 sm:$0xff]  }
 0x2c1   : > { %v4540_v20 = vpop.f32.mrf.mxu1  ;;  %2729 = vmatprep.subr.bf16.mxu0 %v7342_v55  ;;  %4603 = vmatprep.subr.bf16.mxu1 %v7342_v55 }
 0x2c3   : > { %v4541_v2 = vpop.f32.mrf.mxu1 }
 0x2c4   : > { %v4542_v21 = vadd.f32 %v4541_v2, %v4540_v20  ;;  %v4802_v20 = vld [vmem:[%s7327_s5 + $0x150] ss:$8 sps:$4 sm:$0xff]   ;;  %v4803_v2 = vld [vmem:[%s7327_s5 + $0x34] ss:$8 sps:$4 sm:$0xff]  }
 0x2c5   : > { %v4543_v58 = vpop.f32.mrf.mxu1 }
 0x2c7   : > { %v4544_v35 = vpop.f32.mrf.mxu1 }
 0x2c8   : > { %v4545_v54 = vadd.f32 %v4544_v35, %v4543_v58  ;;  %v4805_v58 = vld [vmem:[%s7327_s5 + $0x164] ss:$8 sps:$4 sm:$0xff]   ;;  %v4807_v35 = vld [vmem:[%s7327_s5 + $0x30] ss:$8 sps:$4 sm:$0xff]  }
 0x2c9   : > { %v4546_v28 = vpop.f32.mrf.mxu1 }
 0x2ca   : > { %v1875_v63 = vadd.f32 %v4545_v54, %v5825_v13  ;;  %v4530_v13 = vadd.f32 %v5876_v31, %v5870_v62  ;;  %v1851_v62 = vadd.f32 %v5868_v52, %v5837_v7  ;;  %v4785_v7 = vld [vmem:[%s7327_s5] ss:$8 sps:$4 sm:$0xff]   ;;  %v4788_v52 = vld [vmem:[%s7327_s5 + $0x130] ss:$8 sps:$4 sm:$0xff]   ;;  %v4837_v54 = vld [vmem:[%s7327_s5 + $0x1b4] ss:$8 sps:$4 sm:$0xff]  }
 0x2cb   : > { %v4547_v48 = vpop.f32.mrf.mxu1 }
 0x2cc   : > { %v4548_v61 = vadd.f32 %v4547_v48, %v4546_v28  ;;  %v1923_v60 = vmax.f32 %v1875_v63, 0.0  ;;  %v1917_v17 = vmax.f32 %v1851_v62, 0.0  ;;  %v4808_v28 = vld [vmem:[%s7327_s5 + $0x160] ss:$8 sps:$4 sm:$0xff]   ;;  %v4809_v48 = vld [vmem:[%s7327_s5 + $0x44] ss:$8 sps:$4 sm:$0xff]  }
 0x2cd   : > { %v4549_v18 = vpop.f32.mrf.mxu1  ;;  %v4847_v63 = vld [vmem:[%s7327_s5 + $0x1d0] ss:$8 sps:$4 sm:$0xff]  }
 0x2ce   : > { %v1878_v12 = vadd.f32 %v4548_v61, %v5827_v27  ;;  %v1867_v27 = vadd.f32 %v4539_v19, %v5829_v40  ;;  %v1854_v40 = vadd.f32 %v4530_v13, %v5839_v3  ;;  %v4829_v61 = vld [vmem:[%s7327_s5 + $0x1a0] ss:$8 sps:$4 sm:$0xff]   ;;  %v4849_v19 = vld [vmem:[%s7327_s5 + $0x1d4] ss:$8 sps:$4 sm:$0xff]   ;;  %v4859_v13 = vld [vmem:[%s7327_s5 + $0xc4] ss:$8 sps:$4 sm:$0xff]  }
 0x2cf   : > { %v4550_v36 = vpop.f32.mrf.mxu1 }
 0x2d0   : > { %v4551_v23 = vadd.f32 %v4550_v36, %v4549_v18  ;;  %v1921_v47 = vmax.f32 %v1867_v27, 0.0  ;;  %v4813_v18 = vld [vmem:[%s7327_s5 + $0x174] ss:$8 sps:$4 sm:$0xff]   ;;  %v4811_v36 = vld [vmem:[%s7327_s5 + $0x170] ss:$8 sps:$4 sm:$0xff]  }
 0x2d1   : > { %v4552_v37 = vpop.f32.mrf.mxu1  ;;  %v4853_v27 = vld [vmem:[%s7327_s5 + $0x1e0] ss:$8 sps:$4 sm:$0xff]  }
 0x2d2   : > { %v1883_v41 = vadd.f32 %v4551_v23, %v5815_v33  ;;  %v1870_v33 = vadd.f32 %v4542_v21, %v5831_v15  ;;  %v1859_v15 = vadd.f32 %v4533_v26, %v5833_v24  ;;  %v1918_v24 = vmax.f32 %v1854_v40, 0.0  ;;  %v4826_v23 = vld [vmem:[%s7327_s5 + $0x60] ss:$8 sps:$4 sm:$0xff]   ;;  %v4843_v21 = vld [vmem:[%s7327_s5 + $0x1c4] ss:$8 sps:$4 sm:$0xff]  }
 0x2d3   : > { %v4553_v11 = vpop.f32.mrf.mxu1 }
 0x2d4   : > { %v4554_v56 = vadd.f32 %v4553_v11, %v4552_v37  ;;  %v1922_v53 = vmax.f32 %v1870_v33, 0.0  ;;  %v1919_v31 = vmax.f32 %v1859_v15, 0.0  ;;  %v1939_v3 = vpack.c.bf16 %v1918_v24, %v1917_v17  ;;  %v4814_v37 = vld [vmem:[%s7327_s5 + $0x40] ss:$8 sps:$4 sm:$0xff]   ;;  %v4815_v11 = vld [vmem:[%s7327_s5 + $0x54] ss:$8 sps:$4 sm:$0xff]  }
 0x2d5   : > { %v4555_v51 = vpop.f32.mrf.mxu1  ;;  %v4851_v33 = vld [vmem:[%s7327_s5 + $0xb4] ss:$8 sps:$4 sm:$0xff]   ;;  %v4857_v15 = vld [vmem:[%s7327_s5 + $0xc0] ss:$8 sps:$4 sm:$0xff]  }
 0x2d6   : > { %v1886_v39 = vadd.f32 %v4554_v56, %v5820_v30  ;;  %v1924_v30 = vmax.f32 %v1878_v12, 0.0  ;;  %v1941_v34 = vpack.c.bf16 %v1922_v53, %v1921_v47  ;;  %v4825_v56 = vld [vmem:[%s7327_s5 + $0x194] ss:$8 sps:$4 sm:$0xff]   ;;  %v4841_v12 = vld [vmem:[%s7327_s5 + $0x1c0] ss:$8 sps:$4 sm:$0xff]  }
 0x2d7   : > { %v4556_v25 = vpop.f32.mrf.mxu1  ;;  %v4860_v47 = vld [vmem:[%s7327_s5 + $0x1f0] ss:$8 sps:$4 sm:$0xff]  }
 0x2d8   : > { %v4557_v59 = vadd.f32 %v4556_v25, %v4555_v51  ;;  %v1926_v0 = vmax.f32 %v1886_v39, 0.0  ;;  %v1942_v29 = vpack.c.bf16 %v1924_v30, %v1923_v60  ;;  %v4819_v51 = vld [vmem:[%s7327_s5 + $0x184] ss:$8 sps:$4 sm:$0xff]   ;;  %v4817_v25 = vld [vmem:[%s7327_s5 + $0x180] ss:$8 sps:$4 sm:$0xff]  }
 0x2d9   : > { %v4558_v9 = vpop.f32.mrf.mxu1  ;;  %v4832_v39 = vld [vmem:[%s7327_s5 + $0x70] ss:$8 sps:$4 sm:$0xff]   ;;  %v4855_v30 = vld [vmem:[%s7327_s5 + $0x1e4] ss:$8 sps:$4 sm:$0xff]  }
 0x2da   : > { %v1891_v10 = vadd.f32 %v4557_v59, %v5807_v46  ;;  %v1925_v46 = vmax.f32 %v1883_v41, 0.0  ;;  %v4820_v59 = vld [vmem:[%s7327_s5 + $0x50] ss:$8 sps:$4 sm:$0xff]  }
 0x2db   : > { %v4559_v45 = vpop.f32.mrf.mxu1  ;;  %v4835_v41 = vld [vmem:[%s7327_s5 + $0x1b0] ss:$8 sps:$4 sm:$0xff]  }
 0x2dc   : > { %v4560_v50 = vadd.f32 %v4559_v45, %v4558_v9  ;;  %v1927_v8 = vmax.f32 %v1891_v10, 0.0  ;;  %v1943_v57 = vpack.c.bf16 %v1926_v0, %v1925_v46  ;;  %v4821_v9 = vld [vmem:[%s7327_s5 + $0x64] ss:$8 sps:$4 sm:$0xff]   ;;  %v4823_v45 = vld [vmem:[%s7327_s5 + $0x190] ss:$8 sps:$4 sm:$0xff]  }
 0x2dd   : > { %v4827_v10 = vld [vmem:[%s7327_s5 + $0x74] ss:$8 sps:$4 sm:$0xff]   ;;  %v4844_v0 = vld [vmem:[%s7327_s5 + $0x90] ss:$8 sps:$4 sm:$0xff]   ;;  %v4850_v46 = vld [vmem:[%s7327_s5 + $0xa0] ss:$8 sps:$4 sm:$0xff]  }
 0x2de   : > { %v1894_v22 = vadd.f32 %v4560_v50, %v5811_v38  ;;  %v4536_v38 = vadd.f32 %v4535_v5, %v4534_v1  ;;  %v4795_v1 = vld [vmem:[%s7327_s5 + $0x10] ss:$8 sps:$4 sm:$0xff]   ;;  %v4797_v5 = vld [vmem:[%s7327_s5 + $0x24] ss:$8 sps:$4 sm:$0xff]  }
 0x2df   : > { %v4831_v50 = vld [vmem:[%s7327_s5 + $0x1a4] ss:$8 sps:$4 sm:$0xff]   ;;  %v4856_v60 = vld [vmem:[%s7327_s5 + $0xb0] ss:$8 sps:$4 sm:$0xff]  }
 0x2e0   : > { %v1928_v14 = vmax.f32 %v1894_v22, 0.0  ;;  %v1862_v6 = vadd.f32 %v4536_v38, %v5835_v49  ;;  %v4833_v22 = vld [vmem:[%s7327_s5 + $0x84] ss:$8 sps:$4 sm:$0xff]   ;;  %v6049_v38 = vpop.permute.xlu0 %2075 }
 0x2e2   : > { %v1944_v44 = vpack.c.bf16 %v1928_v14, %v1927_v8  ;;  %v1920_v43 = vmax.f32 %v1862_v6, 0.0  ;;  %v4838_v8 = vld [vmem:[%s7327_s5 + $0x80] ss:$8 sps:$4 sm:$0xff]   ;;  %v4839_v14 = vld [vmem:[%s7327_s5 + $0x94] ss:$8 sps:$4 sm:$0xff]  }
 0x2e3   : > { %v4862_v6 = vld [vmem:[%s7327_s5 + $0x1f4] ss:$8 sps:$4 sm:$0xff]  }
 0x2e4   : > { %2730 = vmatpush2.bf16.msra.mxu0 %v1944_v44  ;;  %4619 = vmatpush2.bf16.msra.mxu1 %v1944_v44  ;;  %v1940_v49 = vpack.c.bf16 %v1920_v43, %v1919_v31  ;;  %v4845_v44 = vld [vmem:[%s7327_s5 + $0xa4] ss:$8 sps:$4 sm:$0xff]   ;;  %v6059_v26 = vpop.permute.xlu0 %2085  ;;  %v4865_v43 = vld [vmem:[%s7327_s5 + $0xd4] ss:$8 sps:$4 sm:$0xff]   ;;  %v4863_v31 = vld [vmem:[%s7327_s5 + $0xd0] ss:$8 sps:$4 sm:$0xff]  }
 0x2e5   : > { %2731 = vmatprep.subr.bf16.mxu0 %v7342_v55  ;;  %4604 = vmatprep.subr.bf16.mxu1 %v7342_v55 }
 0x2e8   : > { %2732 = vmatpush2.bf16.msra.mxu0 %v1943_v57  ;;  %4620 = vmatpush2.bf16.msra.mxu1 %v1943_v57  ;;  %v6057_v57 = vpop.permute.xlu1 %2080 }
 0x2e9   : > { %2733 = vmatprep.subr.bf16.mxu0 %v7342_v55  ;;  %4605 = vmatprep.subr.bf16.mxu1 %v7342_v55 }
 0x2ec   : > { %2734 = vmatpush2.bf16.msra.mxu0 %v1942_v29  ;;  %4621 = vmatpush2.bf16.msra.mxu1 %v1942_v29  ;;  %v6073_v53 = vpop.permute.xlu1 %2090  ;;  %v6075_v29 = vpop.permute.xlu0 %2095 }
 0x2ed   : > { %2735 = vmatprep.subr.bf16.mxu0 %v7342_v55  ;;  %4606 = vmatprep.subr.bf16.mxu1 %v7342_v55 }
 0x2f0   : > { %2736 = vmatpush2.bf16.msra.mxu0 %v1941_v34  ;;  %4622 = vmatpush2.bf16.msra.mxu1 %v1941_v34  ;;  %v6083_v40 = vpop.permute.xlu1 %2100  ;;  %v6088_v34 = vpop.permute.xlu0 %2105 }
 0x2f1   : > { %2737 = vmatprep.subr.bf16.mxu0 %v7342_v55  ;;  %4607 = vmatprep.subr.bf16.mxu1 %v7342_v55 }
 0x2f4   : > { %2738 = vmatpush2.bf16.msra.mxu0 %v1940_v49  ;;  %4623 = vmatpush2.bf16.msra.mxu1 %v1940_v49  ;;  %v6090_v62 = vpop.permute.xlu1 %2110  ;;  %v6095_v24 = vpop.permute.xlu0 %2115  ;;  %v4868_v49 = vld [vmem:[%s7327_s5 + $0xe4] ss:$8 sps:$4 sm:$0xff]  }
 0x2f5   : > { %2739 = vmatprep.subr.bf16.mxu0 %v7342_v55  ;;  %4608 = vmatprep.subr.bf16.mxu1 %v7342_v55 }
 0x2f8   : > { %2740 = vmatpush2.bf16.msra.mxu0 %v1939_v3  ;;  %4624 = vmatpush2.bf16.msra.mxu1 %v1939_v3  ;;  %v6100_v17 = vpop.permute.xlu1 %2120  ;;  %v6102_v3 = vpop.permute.xlu0 %2125 }
 0x2f9   : > { %2741 = vmatprep.subr.bf16.mxu0 %v7342_v55  ;;  %4609 = vmatprep.subr.bf16.mxu1 %v7342_v55 }
 0x2fc   : > { %2742 = vmatpush2.bf16.msra.mxu0 %v5874_v42  ;;  %4625 = vmatpush2.bf16.msra.mxu1 %v5874_v42  ;;  %v4791_v42 = vld [vmem:[%s7327_s5 + $0x14] ss:$8 sps:$4 sm:$0xff]  }
 0x2fd   : > { %2743 = vmatprep.subr.bf16.mxu0 %v7342_v55  ;;  %4610 = vmatprep.subr.bf16.mxu1 %v7342_v55  ;;  %v4793_v55 = vld [vmem:[%s7327_s5 + $0x144] ss:$8 sps:$4 sm:$0xff]  }
 0x300   : > { %2744 = vmatpush2.bf16.msra.mxu0 %v5860_v32  ;;  %4626 = vmatpush2.bf16.msra.mxu1 %v5860_v32  ;;  %v4796_v32 = vld [vmem:[%s7327_s5 + $0x140] ss:$8 sps:$4 sm:$0xff]  }
 0x303   : > { %2746 = vmatmul.mubr.bf16.vlgmr.msra.gmra.mxu0 %v4785_v7  ;;  %2898 = vmatmul.mubr.bf16.vlgmr.msra.gmra.mxu1 %v4788_v52  ;;  %v4866_v7 = vld [vmem:[%s7327_s5 + $0xe0] ss:$8 sps:$4 sm:$0xff]   ;;  %v4871_v52 = vld [vmem:[%s7327_s5 + $0xf4] ss:$8 sps:$4 sm:$0xff]  }
 0x304   : > { %2753 = vmatprep.mubr.bf16.mxu0 %v4791_v42  ;;  %2905 = vmatprep.mubr.bf16.mxu1 %v4793_v55  ;;  %v6110_v42 = vpop.permute.xlu1 %2130  ;;  %v6112_v55 = vpop.permute.xlu0 %2135 }
 0x30b   : > { %2754 = vmatmul.mubr.bf16.gmra.mxu0 %v4795_v1  ;;  %2906 = vmatmul.mubr.bf16.gmra.mxu1 %v4796_v32  ;;  %v4869_v1 = vld [vmem:[%s7327_s5 + $0xf0] ss:$8 sps:$4 sm:$0xff]   ;;  %v6117_v32 = vpop.permute.xlu1 %2140 }
 0x30c   : > { %2761 = vmatprep.mubr.bf16.mxu0 %v4797_v5  ;;  %2913 = vmatprep.mubr.bf16.mxu1 %v4799_v4  ;;  %v4874_v5 = vld [vmem:[%s7327_s5 + $0x104] ss:$8 sps:$4 sm:$0xff]   ;;  %v6122_v4 = vpop.permute.xlu0 %2145 }
 0x313   : > { %2762 = vmatmul.mubr.bf16.gmra.mxu0 %v4801_v16  ;;  %2914 = vmatmul.mubr.bf16.gmra.mxu1 %v4802_v20  ;;  %v6124_v16 = vpop.permute.xlu1 %2150  ;;  %v4872_v20 = vld [vmem:[%s7327_s5 + $0x100] ss:$8 sps:$4 sm:$0xff]  }
 0x314   : > { %2769 = vmatprep.mubr.bf16.mxu0 %v4803_v2  ;;  %2921 = vmatprep.mubr.bf16.mxu1 %v4805_v58  ;;  %v6129_v2 = vpop.permute.xlu0 %2155  ;;  %v4877_v58 = vld [vmem:[%s7327_s5 + $0x114] ss:$8 sps:$4 sm:$0xff]  }
 0x31b   : > { %2770 = vmatmul.mubr.bf16.gmra.mxu0 %v4807_v35  ;;  %2922 = vmatmul.mubr.bf16.gmra.mxu1 %v4808_v28  ;;  %v6134_v35 = vpop.permute.xlu1 %2160  ;;  %v6136_v28 = vpop.permute.xlu0 %2165 }
 0x31c   : > { %2777 = vmatprep.mubr.bf16.mxu0 %v4809_v48  ;;  %2929 = vmatprep.mubr.bf16.mxu1 %v4813_v18  ;;  %v4875_v48 = vld [vmem:[%s7327_s5 + $0x110] ss:$8 sps:$4 sm:$0xff]   ;;  %v4880_v18 = vld [vmem:[%s7327_s5 + $0x124] ss:$8 sps:$4 sm:$0xff]  }
 0x323   : > { %2778 = vmatmul.mubr.bf16.gmra.mxu0 %v4814_v37  ;;  %2930 = vmatmul.mubr.bf16.gmra.mxu1 %v4811_v36  ;;  %v6144_v36 = vpop.permute.xlu1 %2170  ;;  %v6146_v37 = vpop.permute.xlu0 %2175 }
 0x324   : > { %2785 = vmatprep.mubr.bf16.mxu0 %v4815_v11  ;;  %2937 = vmatprep.mubr.bf16.mxu1 %v4819_v51  ;;  %v4878_v11 = vld [vmem:[%s7327_s5 + $0x120] ss:$8 sps:$4 sm:$0xff]  }
 0x327   : > { %v6151_v51 = vpop.permute.xlu1 %2180 }
 0x32b   : > { %2786 = vmatmul.mubr.bf16.gmra.mxu0 %v4820_v59  ;;  %2938 = vmatmul.mubr.bf16.gmra.mxu1 %v4817_v25  ;;  %v6153_v25 = vpop.permute.xlu0 %2185  ;;  %v6155_v59 = vpop.permute.xlu1 %2190 }
 0x32c   : > { %2793 = vmatprep.mubr.bf16.mxu0 %v4821_v9  ;;  %2945 = vmatprep.mubr.bf16.mxu1 %v4825_v56 }
 0x32f   : > { %v6157_v9 = vpop.permute.xlu0 %2195  ;;  %v6159_v56 = vpop.permute.xlu1 %2200 }
 0x333   : > { %2794 = vmatmul.mubr.bf16.gmra.mxu0 %v4826_v23  ;;  %2946 = vmatmul.mubr.bf16.gmra.mxu1 %v4823_v45  ;;  %v6161_v45 = vpop.permute.xlu0 %2205  ;;  %v6163_v23 = vpop.permute.xlu1 %2210 }
 0x334   : > { %2801 = vmatprep.mubr.bf16.mxu0 %v4827_v10  ;;  %2953 = vmatprep.mubr.bf16.mxu1 %v4831_v50 }
 0x337   : > { %v6165_v10 = vpop.permute.xlu0 %2215  ;;  %v6167_v50 = vpop.permute.xlu1 %2220 }
 0x33b   : > { %2802 = vmatmul.mubr.bf16.gmra.mxu0 %v4832_v39  ;;  %2954 = vmatmul.mubr.bf16.gmra.mxu1 %v4829_v61  ;;  %v6169_v61 = vpop.permute.xlu0 %2225  ;;  %v6171_v39 = vpop.permute.xlu1 %2230 }
 0x33c   : > { %2809 = vmatprep.mubr.bf16.mxu0 %v4833_v22  ;;  %2961 = vmatprep.mubr.bf16.mxu1 %v4837_v54 }
 0x33f   : > { %v6173_v22 = vpop.permute.xlu0 %2235  ;;  %v6175_v54 = vpop.permute.xlu1 %2240 }
 0x343   : > { %2810 = vmatmul.mubr.bf16.gmra.mxu0 %v4838_v8  ;;  %2962 = vmatmul.mubr.bf16.gmra.mxu1 %v4835_v41  ;;  %v6177_v41 = vpop.permute.xlu0 %2245  ;;  %v6179_v8 = vpop.permute.xlu1 %2250 }
 0x344   : > { %2817 = vmatprep.mubr.bf16.mxu0 %v4839_v14  ;;  %2969 = vmatprep.mubr.bf16.mxu1 %v4843_v21 }
 0x347   : > { %v6181_v14 = vpop.permute.xlu0 %2255  ;;  %v6183_v21 = vpop.permute.xlu1 %2260 }
 0x34b   : > { %2818 = vmatmul.mubr.bf16.gmra.mxu0 %v4844_v0  ;;  %2970 = vmatmul.mubr.bf16.gmra.mxu1 %v4841_v12  ;;  %v2266_v12 = vpop.permute.xlu0 %2265 }
 0x34c   : > { %2825 = vmatprep.mubr.bf16.mxu0 %v4845_v44  ;;  %2977 = vmatprep.mubr.bf16.mxu1 %v4849_v19 }
 0x353   : > { %2826 = vmatmul.mubr.bf16.gmra.mxu0 %v4850_v46  ;;  %2978 = vmatmul.mubr.bf16.gmra.mxu1 %v4847_v63 }
 0x354   : > { %2833 = vmatprep.mubr.bf16.mxu0 %v4851_v33  ;;  %2985 = vmatprep.mubr.bf16.mxu1 %v4855_v30  ;;  %v2271_v30 = vpop.permute.xlu1 %2270 }
 0x35b   : > { %2834 = vmatmul.mubr.bf16.gmra.mxu0 %v4856_v60  ;;  %2986 = vmatmul.mubr.bf16.gmra.mxu1 %v4853_v27 }
 0x35c   : > { %2841 = vmatprep.mubr.bf16.mxu0 %v4859_v13  ;;  %2993 = vmatprep.mubr.bf16.mxu1 %v4862_v6 }
 0x363   : > { %2842 = vmatmul.mubr.bf16.gmra.mxu0 %v4857_v15  ;;  %2994 = vmatmul.mubr.bf16.gmra.mxu1 %v4860_v47 }
 0x364   : > { %2849 = vmatprep.mubr.bf16.mxu0 %v4865_v43 }
 0x36b   : > { %2850 = vmatmul.mubr.bf16.gmra.mxu0 %v4863_v31 }
 0x36c   : > { %2857 = vmatprep.mubr.bf16.mxu0 %v4868_v49  ;;  %v2276_v49 = vpop.permute.xlu0 %2275 }
 0x373   : > { %2858 = vmatmul.mubr.bf16.gmra.mxu0 %v4866_v7 }
 0x374   : > { %2865 = vmatprep.mubr.bf16.mxu0 %v4871_v52 }
 0x37b   : > { %2866 = vmatmul.mubr.bf16.gmra.mxu0 %v4869_v1 }
 0x37c   : > { %2873 = vmatprep.mubr.bf16.mxu0 %v4874_v5 }
 0x383   : > { %2874 = vmatmul.mubr.bf16.gmra.mxu0 %v4872_v20 }
 0x384   : > { %2881 = vmatprep.mubr.bf16.mxu0 %v4877_v58 }
 0x38b   : > { %2882 = vmatmul.mubr.bf16.gmra.mxu0 %v4875_v48 }
 0x38c   : > { %2889 = vmatprep.mubr.bf16.mxu0 %v4880_v18  ;;  %v2281_v18 = vpop.permute.xlu1 %2280 }
 0x393   : > { %2890 = vmatmul.mubr.bf16.gmra.mxu0 %v4878_v11 }
 0x3c3   : > { %v2747_v0 = vpop.f32.mrf.mxu0  ;;  %v2899_v44 = vpop.f32.mrf.mxu1 }
 0x3c4   : > { %v2748_v19 = vadd.f32 %v2747_v0, %v6049_v38  ;;  %v2900_v63 = vadd.f32 %v2899_v44, %v2266_v12 }
 0x3c5   : > { %v2749_v46 = vpop.f32.mrf.mxu0  ;;  %v2901_v33 = vpop.f32.mrf.mxu1 }
 0x3c6   : > { %v6186_v27 = vmax.f32 %v2748_v19, 0.0  ;;  %v6188_v60 = vmax.f32 %v2900_v63, 0.0  ;;  %v2286_v33 = vpop.permute.xlu0 %2285 }
 0x3c7   : > { %v2750_v13 = vpop.f32.mrf.mxu0  ;;  %v2902_v6 = vpop.f32.mrf.mxu1 }
 0x3c8   : > { %v2751_v15 = vadd.f32 %v2750_v13, %v6057_v57  ;;  %v2903_v47 = vadd.f32 %v2902_v6, %v2271_v30 }
 0x3c9   : > { %v2752_v43 = vpop.f32.mrf.mxu0  ;;  %v2904_v31 = vpop.f32.mrf.mxu1 }
 0x3ca   : > { %v6191_v7 = vmax.f32 %v2751_v15, 0.0  ;;  %v6193_v52 = vmax.f32 %v2903_v47, 0.0 }
 0x3cb   : > { %v2755_v38 = vpop.f32.mrf.mxu0  ;;  %v2907_v1 = vpop.f32.mrf.mxu1 }
 0x3cc   : > { %v2756_v5 = vadd.f32 %v2755_v38, %v6059_v26  ;;  %v2908_v20 = vadd.f32 %v2907_v1, %v2276_v49  ;;  %v2291_v49 = vpop.permute.xlu1 %2290 }
 0x3cd   : > { %v2757_v58 = vpop.f32.mrf.mxu0  ;;  %v2909_v48 = vpop.f32.mrf.mxu1 }
 0x3ce   : > { %v6196_v11 = vmax.f32 %v2756_v5, 0.0  ;;  %v6198_v12 = vmax.f32 %v2908_v20, 0.0 }
 0x3cf   : > { %v2758_v57 = vpop.f32.mrf.mxu0  ;;  %v2910_v0 = vpop.f32.mrf.mxu1 }
 0x3d0   : > { %v2759_v44 = vadd.f32 %v2758_v57, %v6073_v53  ;;  %v2911_v19 = vadd.f32 %v2910_v0, %v2281_v18  ;;  %v2296_v57 = vpop.permute.xlu0 %2295 }
 0x3d1   : > { %v2760_v63 = vpop.f32.mrf.mxu0  ;;  %v2912_v46 = vpop.f32.mrf.mxu1 }
 0x3d2   : > { %v6201_v30 = vmax.f32 %v2759_v44, 0.0  ;;  %v6203_v13 = vmax.f32 %v2911_v19, 0.0 }
 0x3d3   : > { %v2763_v26 = vpop.f32.mrf.mxu0  ;;  %v2915_v6 = vpop.f32.mrf.mxu1 }
 0x3d4   : > { %v2764_v15 = vadd.f32 %v2763_v26, %v6075_v29  ;;  %v2916_v47 = vadd.f32 %v2915_v6, %v2286_v33  ;;  %v2301_v6 = vpop.permute.xlu1 %2300 }
 0x3d5   : > { %v2765_v43 = vpop.f32.mrf.mxu0  ;;  %v2917_v31 = vpop.f32.mrf.mxu1 }
 0x3d6   : > { %v6206_v38 = vmax.f32 %v2764_v15, 0.0  ;;  %v6208_v1 = vmax.f32 %v2916_v47, 0.0 }
 0x3d7   : > { %v2766_v53 = vpop.f32.mrf.mxu0  ;;  %v2918_v5 = vpop.f32.mrf.mxu1 }
 0x3d8   : > { %v2767_v20 = vadd.f32 %v2766_v53, %v6083_v40  ;;  %v2919_v58 = vadd.f32 %v2918_v5, %v2291_v49 }
 0x3d9   : > { %v2768_v48 = vpop.f32.mrf.mxu0  ;;  %v2920_v18 = vpop.f32.mrf.mxu1 }
 0x3da   : > { %v6211_v0 = vmax.f32 %v2767_v20, 0.0  ;;  %v6213_v44 = vmax.f32 %v2919_v58, 0.0  ;;  %v2306_v20 = vpop.permute.xlu0 %2305 }
 0x3db   : > { %v2771_v29 = vpop.f32.mrf.mxu0  ;;  %v2923_v19 = vpop.f32.mrf.mxu1 }
 0x3dc   : > { %v2772_v63 = vadd.f32 %v2771_v29, %v6088_v34  ;;  %v2924_v46 = vadd.f32 %v2923_v19, %v2296_v57 }
 0x3dd   : > { %v2773_v33 = vpop.f32.mrf.mxu0  ;;  %v2925_v26 = vpop.f32.mrf.mxu1 }
 0x3de   : > { %v6216_v15 = vmax.f32 %v2772_v63, 0.0  ;;  %v6218_v47 = vmax.f32 %v2924_v46, 0.0  ;;  %v2311_v46 = vpop.permute.xlu1 %2310 }
 0x3df   : > { %v2774_v40 = vpop.f32.mrf.mxu0  ;;  %v2926_v43 = vpop.f32.mrf.mxu1 }
 0x3e0   : > { %v2775_v31 = vadd.f32 %v2774_v40, %v6090_v62  ;;  %v2927_v49 = vadd.f32 %v2926_v43, %v2301_v6 }
 0x3e1   : > { %v2776_v53 = vpop.f32.mrf.mxu0  ;;  %v2928_v5 = vpop.f32.mrf.mxu1 }
 0x3e2   : > { %v6221_v58 = vmax.f32 %v2775_v31, 0.0  ;;  %v6223_v48 = vmax.f32 %v2927_v49, 0.0  ;;  %v2316_v53 = vpop.permute.xlu0 %2315 }
 0x3e3   : > { %v2779_v34 = vpop.f32.mrf.mxu0  ;;  %v2931_v18 = vpop.f32.mrf.mxu1 }
 0x3e4   : > { %7343 = vst [vmem:[#allocation4_spill] sm:$0xff] %v6223_v48  ;;  %v2780_v57 = vadd.f32 %v2779_v34, %v6095_v24  ;;  %v2932_v29 = vadd.f32 %v2931_v18, %v2306_v20 }
 0x3e5   : > { %v2781_v19 = vpop.f32.mrf.mxu0  ;;  %v2933_v63 = vpop.f32.mrf.mxu1 }
 0x3e6   : > { %v6226_v33 = vmax.f32 %v2780_v57, 0.0  ;;  %v6228_v26 = vmax.f32 %v2932_v29, 0.0  ;;  %v2321_v19 = vpop.permute.xlu1 %2320 }
 0x3e7   : > { %v2782_v62 = vpop.f32.mrf.mxu0  ;;  %v2934_v6 = vpop.f32.mrf.mxu1 }
 0x3e8   : > { %7344 = vst [vmem:[#allocation6_spill] sm:$0xff] %v6228_v26  ;;  %v2783_v40 = vadd.f32 %v2782_v62, %v6100_v17  ;;  %v2935_v43 = vadd.f32 %v2934_v6, %v2311_v46 }
 0x3e9   : > { %v2784_v31 = vpop.f32.mrf.mxu0  ;;  %v2936_v49 = vpop.f32.mrf.mxu1 }
 0x3ea   : > { %v6231_v5 = vmax.f32 %v2783_v40, 0.0  ;;  %v6233_v48 = vmax.f32 %v2935_v43, 0.0  ;;  %v2326_v31 = vpop.permute.xlu0 %2325 }
 0x3eb   : > { %v2787_v24 = vpop.f32.mrf.mxu0  ;;  %v2939_v20 = vpop.f32.mrf.mxu1 }
 0x3ec   : > { %7345 = vst [vmem:[#allocation3_spill] sm:$0xff] %v6233_v48  ;;  %v2788_v34 = vadd.f32 %v2787_v24, %v6102_v3  ;;  %v2940_v18 = vadd.f32 %v2939_v20, %v2316_v53 }
 0x3ed   : > { %v2789_v57 = vpop.f32.mrf.mxu0  ;;  %v2941_v29 = vpop.f32.mrf.mxu1 }
 0x3ee   : > { %v6236_v63 = vmax.f32 %v2788_v34, 0.0  ;;  %v6238_v26 = vmax.f32 %v2940_v18, 0.0  ;;  %v2331_v57 = vpop.permute.xlu1 %2330 }
 0x3ef   : > { %v2790_v17 = vpop.f32.mrf.mxu0  ;;  %v2942_v46 = vpop.f32.mrf.mxu1 }
 0x3f0   : > { %7346 = vst [vmem:[#allocation5_spill] sm:$0xff] %v6238_v26  ;;  %v2791_v62 = vadd.f32 %v2790_v17, %v6110_v42  ;;  %v2943_v6 = vadd.f32 %v2942_v46, %v2321_v19 }
 0x3f1   : > { %v2792_v40 = vpop.f32.mrf.mxu0  ;;  %v2944_v43 = vpop.f32.mrf.mxu1 }
 0x3f2   : > { %v6241_v49 = vmax.f32 %v2791_v62, 0.0  ;;  %v6243_v48 = vmax.f32 %v2943_v6, 0.0  ;;  %v2336_v40 = vpop.permute.xlu0 %2335 }
 0x3f3   : > { %v2795_v3 = vpop.f32.mrf.mxu0  ;;  %v2947_v53 = vpop.f32.mrf.mxu1 }
 0x3f4   : > { %7347 = vst [vmem:[#allocation2_spill] sm:$0xff] %v6243_v48  ;;  %v2796_v24 = vadd.f32 %v2795_v3, %v6112_v55  ;;  %v2948_v20 = vadd.f32 %v2947_v53, %v2326_v31 }
 0x3f5   : > { %v2797_v34 = vpop.f32.mrf.mxu0  ;;  %v2949_v18 = vpop.f32.mrf.mxu1 }
 0x3f6   : > { %v6246_v29 = vmax.f32 %v2796_v24, 0.0  ;;  %v6248_v26 = vmax.f32 %v2948_v20, 0.0  ;;  %v2341_v34 = vpop.permute.xlu1 %2340 }
 0x3f7   : > { %v2798_v42 = vpop.f32.mrf.mxu0  ;;  %v2950_v19 = vpop.f32.mrf.mxu1 }
 0x3f8   : > { %7348 = vst [vmem:[#allocation7_spill] sm:$0xff] %v6248_v26  ;;  %v2799_v17 = vadd.f32 %v2798_v42, %v6117_v32  ;;  %v2951_v46 = vadd.f32 %v2950_v19, %v2331_v57 }
 0x3f9   : > { %v2800_v62 = vpop.f32.mrf.mxu0  ;;  %v2952_v6 = vpop.f32.mrf.mxu1 }
 0x3fa   : > { %v6251_v43 = vmax.f32 %v2799_v17, 0.0  ;;  %v6253_v48 = vmax.f32 %v2951_v46, 0.0  ;;  %v2346_v62 = vpop.permute.xlu0 %2345 }
 0x3fb   : > { %v2803_v55 = vpop.f32.mrf.mxu0  ;;  %v2955_v31 = vpop.f32.mrf.mxu1 }
 0x3fc   : > { %7349 = vst [vmem:[#allocation8_spill] sm:$0xff] %v6253_v48  ;;  %v2804_v3 = vadd.f32 %v2803_v55, %v6122_v4  ;;  %v2956_v53 = vadd.f32 %v2955_v31, %v2336_v40 }
 0x3fd   : > { %v2805_v24 = vpop.f32.mrf.mxu0  ;;  %v2957_v20 = vpop.f32.mrf.mxu1 }
 0x3fe   : > { %v6256_v18 = vmax.f32 %v2804_v3, 0.0  ;;  %v6258_v26 = vmax.f32 %v2956_v53, 0.0  ;;  %v2351_v24 = vpop.permute.xlu1 %2350 }
 0x3ff   : > { %v2806_v32 = vpop.f32.mrf.mxu0  ;;  %v2958_v57 = vpop.f32.mrf.mxu1 }
 0x400   : > { %7350 = vst [vmem:[#allocation9_spill] sm:$0xff] %v6258_v26  ;;  %v2807_v42 = vadd.f32 %v2806_v32, %v6124_v16  ;;  %v2959_v19 = vadd.f32 %v2958_v57, %v2341_v34 }
 0x401   : > { %v2808_v17 = vpop.f32.mrf.mxu0  ;;  %v2960_v46 = vpop.f32.mrf.mxu1 }
 0x402   : > { %v6261_v6 = vmax.f32 %v2807_v42, 0.0  ;;  %v6263_v48 = vmax.f32 %v2959_v19, 0.0  ;;  %v2356_v17 = vpop.permute.xlu0 %2355 }
 0x403   : > { %v2811_v4 = vpop.f32.mrf.mxu0  ;;  %v2963_v40 = vpop.f32.mrf.mxu1 }
 0x404   : > { %7351 = vst [vmem:[#allocation10_spill] sm:$0xff] %v6263_v48  ;;  %v2812_v55 = vadd.f32 %v2811_v4, %v6129_v2  ;;  %v2964_v31 = vadd.f32 %v2963_v40, %v2346_v62 }
 0x405   : > { %v2813_v3 = vpop.f32.mrf.mxu0  ;;  %v2965_v53 = vpop.f32.mrf.mxu1 }
 0x406   : > { %v6266_v20 = vmax.f32 %v2812_v55, 0.0  ;;  %v6268_v26 = vmax.f32 %v2964_v31, 0.0  ;;  %v2361_v3 = vpop.permute.xlu1 %2360 }
 0x407   : > { %v2814_v16 = vpop.f32.mrf.mxu0  ;;  %v2966_v34 = vpop.f32.mrf.mxu1 }
 0x408   : > { %7352 = vst [vmem:[#allocation11_spill] sm:$0xff] %v6268_v26  ;;  %v2815_v32 = vadd.f32 %v2814_v16, %v6134_v35  ;;  %v2967_v57 = vadd.f32 %v2966_v34, %v2351_v24 }
 0x409   : > { %v2816_v42 = vpop.f32.mrf.mxu0  ;;  %v2968_v19 = vpop.f32.mrf.mxu1 }
 0x40a   : > { %v6271_v46 = vmax.f32 %v2815_v32, 0.0  ;;  %v6273_v48 = vmax.f32 %v2967_v57, 0.0  ;;  %v2366_v42 = vpop.permute.xlu0 %2365 }
 0x40b   : > { %v2819_v2 = vpop.f32.mrf.mxu0  ;;  %v2971_v62 = vpop.f32.mrf.mxu1 }
 0x40c   : > { %7353 = vst [vmem:[#allocation12_spill] sm:$0xff] %v6273_v48  ;;  %v2820_v4 = vadd.f32 %v2819_v2, %v6136_v28  ;;  %v2972_v40 = vadd.f32 %v2971_v62, %v2356_v17 }
 0x40d   : > { %v2821_v55 = vpop.f32.mrf.mxu0  ;;  %v2973_v31 = vpop.f32.mrf.mxu1 }
 0x40e   : > { %v6276_v53 = vmax.f32 %v2820_v4, 0.0  ;;  %v6278_v26 = vmax.f32 %v2972_v40, 0.0  ;;  %v2371_v55 = vpop.permute.xlu1 %2370 }
 0x40f   : > { %v2822_v35 = vpop.f32.mrf.mxu0  ;;  %v2974_v24 = vpop.f32.mrf.mxu1 }
 0x410   : > { %7354 = vst [vmem:[#allocation13_spill] sm:$0xff] %v6278_v26  ;;  %v2823_v16 = vadd.f32 %v2822_v35, %v6144_v36  ;;  %v2975_v34 = vadd.f32 %v2974_v24, %v2361_v3 }
 0x411   : > { %v2824_v32 = vpop.f32.mrf.mxu0  ;;  %v2976_v57 = vpop.f32.mrf.mxu1 }
 0x412   : > { %v6281_v19 = vmax.f32 %v2823_v16, 0.0  ;;  %v6283_v48 = vmax.f32 %v2975_v34, 0.0  ;;  %v2376_v32 = vpop.permute.xlu0 %2375 }
 0x413   : > { %v2827_v28 = vpop.f32.mrf.mxu0  ;;  %v2979_v17 = vpop.f32.mrf.mxu1 }
 0x414   : > { %7355 = vst [vmem:[#allocation14_spill] sm:$0xff] %v6283_v48  ;;  %v2828_v2 = vadd.f32 %v2827_v28, %v6146_v37  ;;  %v2980_v62 = vadd.f32 %v2979_v17, %v2366_v42 }
 0x415   : > { %v2829_v4 = vpop.f32.mrf.mxu0  ;;  %v2981_v40 = vpop.f32.mrf.mxu1 }
 0x416   : > { %v6286_v31 = vmax.f32 %v2828_v2, 0.0  ;;  %v6288_v26 = vmax.f32 %v2980_v62, 0.0  ;;  %v2381_v4 = vpop.permute.xlu1 %2380 }
 0x417   : > { %v2830_v36 = vpop.f32.mrf.mxu0  ;;  %v2982_v3 = vpop.f32.mrf.mxu1 }
 0x418   : > { %7356 = vst [vmem:[#allocation15_spill] sm:$0xff] %v6288_v26  ;;  %v2831_v35 = vadd.f32 %v2830_v36, %v6151_v51  ;;  %v2983_v24 = vadd.f32 %v2982_v3, %v2371_v55 }
 0x419   : > { %v2832_v16 = vpop.f32.mrf.mxu0  ;;  %v2984_v34 = vpop.f32.mrf.mxu1 }
 0x41a   : > { %v6291_v57 = vmax.f32 %v2831_v35, 0.0  ;;  %v6293_v48 = vmax.f32 %v2983_v24, 0.0  ;;  %v2386_v16 = vpop.permute.xlu0 %2385 }
 0x41b   : > { %v2835_v37 = vpop.f32.mrf.mxu0  ;;  %v2987_v42 = vpop.f32.mrf.mxu1 }
 0x41c   : > { %7357 = vst [vmem:[#allocation16_spill] sm:$0xff] %v6293_v48  ;;  %v2836_v28 = vadd.f32 %v2835_v37, %v6153_v25  ;;  %v2988_v17 = vadd.f32 %v2987_v42, %v2376_v32 }
 0x41d   : > { %v2837_v2 = vpop.f32.mrf.mxu0  ;;  %v2989_v62 = vpop.f32.mrf.mxu1 }
 0x41e   : > { %v6296_v40 = vmax.f32 %v2836_v28, 0.0  ;;  %v6298_v26 = vmax.f32 %v2988_v17, 0.0  ;;  %v2391_v2 = vpop.permute.xlu1 %2390 }
 0x41f   : > { %v2838_v51 = vpop.f32.mrf.mxu0  ;;  %v2990_v55 = vpop.f32.mrf.mxu1 }
 0x420   : > { %7358 = vst [vmem:[#allocation17_spill] sm:$0xff] %v6298_v26  ;;  %v2839_v36 = vadd.f32 %v2838_v51, %v6155_v59  ;;  %v2991_v3 = vadd.f32 %v2990_v55, %v2381_v4 }
 0x421   : > { %v2840_v35 = vpop.f32.mrf.mxu0  ;;  %v2992_v24 = vpop.f32.mrf.mxu1 }
 0x422   : > { %v6301_v34 = vmax.f32 %v2839_v36, 0.0  ;;  %v6303_v48 = vmax.f32 %v2991_v3, 0.0 }
 0x423   : > { %v2843_v25 = vpop.f32.mrf.mxu0  ;;  %v2995_v32 = vpop.f32.mrf.mxu1 }
 0x424   : > { %v2844_v37 = vadd.f32 %v2843_v25, %v6157_v9  ;;  %v2996_v42 = vadd.f32 %v2995_v32, %v2386_v16 }
 0x425   : > { %v2845_v28 = vpop.f32.mrf.mxu0  ;;  %v2997_v17 = vpop.f32.mrf.mxu1 }
 0x426   : > { %v6306_v62 = vmax.f32 %v2844_v37, 0.0  ;;  %v6308_v26 = vmax.f32 %v2996_v42, 0.0 }
 0x427   : > { %v2846_v59 = vpop.f32.mrf.mxu0  ;;  %v2998_v4 = vpop.f32.mrf.mxu1 }
 0x428   : > { %v2847_v51 = vadd.f32 %v2846_v59, %v6159_v56  ;;  %v2999_v55 = vadd.f32 %v2998_v4, %v2391_v2 }
 0x429   : > { %v2848_v36 = vpop.f32.mrf.mxu0  ;;  %v3000_v3 = vpop.f32.mrf.mxu1 }
 0x42a   : > { %v6311_v35 = vmax.f32 %v2847_v51, 0.0  ;;  %v6313_v24 = vmax.f32 %v2999_v55, 0.0 }
 0x42b   : > { %v2851_v9 = vpop.f32.mrf.mxu0 }
 0x42c   : > { %v2852_v16 = vadd.f32 %v2851_v9, %v6161_v45 }
 0x42d   : > { %v2853_v25 = vpop.f32.mrf.mxu0 }
 0x42e   : > { %v6316_v32 = vmax.f32 %v2852_v16, 0.0 }
 0x42f   : > { %v2854_v37 = vpop.f32.mrf.mxu0 }
 0x430   : > { %v2855_v42 = vadd.f32 %v2854_v37, %v6163_v23 }
 0x431   : > { %v2856_v28 = vpop.f32.mrf.mxu0 }
 0x432   : > { %v6319_v17 = vmax.f32 %v2855_v42, 0.0 }
 0x433   : > { %v2859_v56 = vpop.f32.mrf.mxu0 }
 0x434   : > { %v2860_v2 = vadd.f32 %v2859_v56, %v6165_v10 }
 0x435   : > { %v2861_v59 = vpop.f32.mrf.mxu0 }
 0x436   : > { %v6322_v4 = vmax.f32 %v2860_v2, 0.0 }
 0x437   : > { %v2862_v51 = vpop.f32.mrf.mxu0 }
 0x438   : > { %v2863_v55 = vadd.f32 %v2862_v51, %v6167_v50 }
 0x439   : > { %v2864_v36 = vpop.f32.mrf.mxu0 }
 0x43a   : > { %v6325_v45 = vmax.f32 %v2863_v55, 0.0 }
 0x43b   : > { %v2867_v3 = vpop.f32.mrf.mxu0 }
 0x43c   : > { %v2868_v9 = vadd.f32 %v2867_v3, %v6169_v61 }
 0x43d   : > { %v2869_v16 = vpop.f32.mrf.mxu0 }
 0x43e   : > { %v6328_v23 = vmax.f32 %v2868_v9, 0.0 }
 0x43f   : > { %v2870_v25 = vpop.f32.mrf.mxu0 }
 0x440   : > { %v2871_v37 = vadd.f32 %v2870_v25, %v6171_v39 }
 0x441   : > { %v2872_v42 = vpop.f32.mrf.mxu0 }
 0x442   : > { %v6331_v10 = vmax.f32 %v2871_v37, 0.0 }
 0x443   : > { %v2875_v28 = vpop.f32.mrf.mxu0 }
 0x444   : > { %v2876_v56 = vadd.f32 %v2875_v28, %v6173_v22 }
 0x445   : > { %v2877_v2 = vpop.f32.mrf.mxu0 }
 0x446   : > { %v6334_v50 = vmax.f32 %v2876_v56, 0.0 }
 0x447   : > { %v2878_v59 = vpop.f32.mrf.mxu0 }
 0x448   : > { %v2879_v51 = vadd.f32 %v2878_v59, %v6175_v54 }
 0x449   : > { %v2880_v55 = vpop.f32.mrf.mxu0 }
 0x44a   : > { %v6337_v61 = vmax.f32 %v2879_v51, 0.0 }
 0x44b   : > { %v2883_v36 = vpop.f32.mrf.mxu0 }
 0x44c   : > { %v2884_v3 = vadd.f32 %v2883_v36, %v6177_v41 }
 0x44d   : > { %v2885_v9 = vpop.f32.mrf.mxu0 }
 0x44e   : > { %v6340_v39 = vmax.f32 %v2884_v3, 0.0 }
 0x44f   : > { %v2886_v16 = vpop.f32.mrf.mxu0 }
 0x450   : > { %v2887_v25 = vadd.f32 %v2886_v16, %v6179_v8 }
 0x451   : > { %v2888_v37 = vpop.f32.mrf.mxu0 }
 0x452   : > { %v6343_v22 = vmax.f32 %v2887_v25, 0.0 }
 0x453   : > { %v2891_v42 = vpop.f32.mrf.mxu0 }
 0x454   : > { %v2892_v28 = vadd.f32 %v2891_v42, %v6181_v14 }
 0x455   : > { %v2893_v56 = vpop.f32.mrf.mxu0 }
 0x456   : > { %v6346_v54 = vmax.f32 %v2892_v28, 0.0  ;;  %3101 = sbr.rel (%p4059_p5) target bundleno = 1149 (0x47d), region = 52 }
 0x457   : > { %v2894_v2 = vpop.f32.mrf.mxu0 }
 0x458   : > { %v2895_v59 = vadd.f32 %v2894_v2, %v6183_v21 }
 0x459   : > { %v2896_v51 = vpop.f32.mrf.mxu0 }
 0x45a   : > { %v6349_v41 = vmax.f32 %v2895_v59, 0.0 }
 0x45b   : > { %v4192_v8 = vpack.c.bf16 %v6186_v27, %v6186_v27  ;;  %vm3326_vm2 = vcmask 125952   ;;  %v4193_v55 = vpack.c.bf16 %v6191_v7, %v6191_v7  ;;  %v4194_v14 = vpack.c.bf16 %v6196_v11, %v6196_v11 }
 0x45c   : > { %v4195_v36 = vpack.c.bf16 %v6201_v30, %v6201_v30  ;;  %v4196_v21 = vpack.c.bf16 %v6206_v38, %v6206_v38  ;;  %v4197_v3 = vpack.c.bf16 %v6211_v0, %v6211_v0  ;;  %v4198_v9 = vpack.c.bf16 %v6216_v15, %v6216_v15 }
 0x45d   : > { %3327 = vst.msk [vmem:[%s7329_s7] sm:$0xf] %vm3326_vm2, %v4192_v8  ;;  %3328 = vst.msk [vmem:[%s7329_s7 + $0x4] sm:$0xf] %vm3326_vm2, %v4193_v55  ;;  %v4199_v16 = vpack.c.bf16 %v6221_v58, %v6221_v58  ;;  %v4200_v25 = vpack.c.bf16 %v6226_v33, %v6226_v33  ;;  %v4201_v37 = vpack.c.bf16 %v6231_v5, %v6231_v5 }
 0x45e   : > { %3329 = vst.msk [vmem:[%s7329_s7 + $0x8] sm:$0xf] %vm3326_vm2, %v4194_v14  ;;  %v4202_v42 = vpack.c.bf16 %v6236_v63, %v6236_v63  ;;  %3330 = vst.msk [vmem:[%s7329_s7 + $0xc] sm:$0xf] %vm3326_vm2, %v4195_v36  ;;  %v4203_v28 = vpack.c.bf16 %v6241_v49, %v6241_v49  ;;  %v4204_v56 = vpack.c.bf16 %v6246_v29, %v6246_v29 }
 0x45f   : > { %3331 = vst.msk [vmem:[%s7329_s7 + $0x10] sm:$0xf] %vm3326_vm2, %v4196_v21  ;;  %3332 = vst.msk [vmem:[%s7329_s7 + $0x14] sm:$0xf] %vm3326_vm2, %v4197_v3  ;;  %v4205_v2 = vpack.c.bf16 %v6251_v43, %v6251_v43  ;;  %v4206_v59 = vpack.c.bf16 %v6256_v18, %v6256_v18  ;;  %v4207_v51 = vpack.c.bf16 %v6261_v6, %v6261_v6 }
 0x460   : > { %3333 = vst.msk [vmem:[%s7329_s7 + $0x18] sm:$0xf] %vm3326_vm2, %v4198_v9  ;;  %3334 = vst.msk [vmem:[%s7329_s7 + $0x1c] sm:$0xf] %vm3326_vm2, %v4199_v16  ;;  %v4208_v8 = vpack.c.bf16 %v6266_v20, %v6266_v20  ;;  %v4209_v55 = vpack.c.bf16 %v6271_v46, %v6271_v46  ;;  %v4210_v14 = vpack.c.bf16 %v6276_v53, %v6276_v53 }
 0x461   : > { %3335 = vst.msk [vmem:[%s7329_s7 + $0x20] sm:$0xf] %vm3326_vm2, %v4200_v25  ;;  %3336 = vst.msk [vmem:[%s7329_s7 + $0x24] sm:$0xf] %vm3326_vm2, %v4201_v37  ;;  %v4211_v36 = vpack.c.bf16 %v6281_v19, %v6281_v19  ;;  %v4212_v21 = vpack.c.bf16 %v6286_v31, %v6286_v31  ;;  %v4213_v3 = vpack.c.bf16 %v6291_v57, %v6291_v57 }
 0x462   : > { %3337 = vst.msk [vmem:[%s7329_s7 + $0x28] sm:$0xf] %vm3326_vm2, %v4202_v42  ;;  %3338 = vst.msk [vmem:[%s7329_s7 + $0x2c] sm:$0xf] %vm3326_vm2, %v4203_v28  ;;  %v4214_v9 = vpack.c.bf16 %v6296_v40, %v6296_v40  ;;  %v4215_v16 = vpack.c.bf16 %v6301_v34, %v6301_v34  ;;  %v4216_v25 = vpack.c.bf16 %v6306_v62, %v6306_v62 }
 0x463   : > { %3339 = vst.msk [vmem:[%s7329_s7 + $0x30] sm:$0xf] %vm3326_vm2, %v4204_v56  ;;  %3340 = vst.msk [vmem:[%s7329_s7 + $0x34] sm:$0xf] %vm3326_vm2, %v4205_v2  ;;  %v4217_v37 = vpack.c.bf16 %v6311_v35, %v6311_v35  ;;  %v4218_v42 = vpack.c.bf16 %v6316_v32, %v6316_v32  ;;  %v4219_v28 = vpack.c.bf16 %v6319_v17, %v6319_v17 }
 0x464   : > { %3341 = vst.msk [vmem:[%s7329_s7 + $0x38] sm:$0xf] %vm3326_vm2, %v4206_v59  ;;  %3342 = vst.msk [vmem:[%s7329_s7 + $0x3c] sm:$0xf] %vm3326_vm2, %v4207_v51  ;;  %v4220_v56 = vpack.c.bf16 %v6322_v4, %v6322_v4  ;;  %v4221_v2 = vpack.c.bf16 %v6325_v45, %v6325_v45  ;;  %v4222_v59 = vpack.c.bf16 %v6328_v23, %v6328_v23 }
 0x465   : > { %3343 = vst.msk [vmem:[%s7329_s7 + $0x40] sm:$0xf] %vm3326_vm2, %v4208_v8  ;;  %3344 = vst.msk [vmem:[%s7329_s7 + $0x44] sm:$0xf] %vm3326_vm2, %v4209_v55  ;;  %v4223_v51 = vpack.c.bf16 %v6331_v10, %v6331_v10  ;;  %v4224_v8 = vpack.c.bf16 %v6334_v50, %v6334_v50  ;;  %v4225_v55 = vpack.c.bf16 %v6337_v61, %v6337_v61 }
 0x466   : > { %3345 = vst.msk [vmem:[%s7329_s7 + $0x48] sm:$0xf] %vm3326_vm2, %v4210_v14  ;;  %3346 = vst.msk [vmem:[%s7329_s7 + $0x4c] sm:$0xf] %vm3326_vm2, %v4211_v36  ;;  %v4226_v14 = vpack.c.bf16 %v6340_v39, %v6340_v39  ;;  %v4227_v36 = vpack.c.bf16 %v6343_v22, %v6343_v22 }
 0x467   : > { %3347 = vst.msk [vmem:[%s7329_s7 + $0x50] sm:$0xf] %vm3326_vm2, %v4212_v21  ;;  %3348 = vst.msk [vmem:[%s7329_s7 + $0x54] sm:$0xf] %vm3326_vm2, %v4213_v3  ;;  %v4228_v21 = vpack.c.bf16 %v6346_v54, %v6346_v54  ;;  %v4229_v3 = vpack.c.bf16 %v6349_v41, %v6349_v41 }
 0x468   : > { %3349 = vst.msk [vmem:[%s7329_s7 + $0x58] sm:$0xf] %vm3326_vm2, %v4214_v9  ;;  %3350 = vst.msk [vmem:[%s7329_s7 + $0x5c] sm:$0xf] %vm3326_vm2, %v4215_v16  ;;  %v4230_v9 = vpack.c.bf16 %v6188_v60, %v6188_v60  ;;  %v4231_v16 = vpack.c.bf16 %v6193_v52, %v6193_v52 }
 0x469   : > { %3351 = vst.msk [vmem:[%s7329_s7 + $0x60] sm:$0xf] %vm3326_vm2, %v4216_v25  ;;  %3352 = vst.msk [vmem:[%s7329_s7 + $0x64] sm:$0xf] %vm3326_vm2, %v4217_v37  ;;  %v4232_v25 = vpack.c.bf16 %v6198_v12, %v6198_v12  ;;  %v4233_v37 = vpack.c.bf16 %v6203_v13, %v6203_v13 }
 0x46a   : > { %3353 = vst.msk [vmem:[%s7329_s7 + $0x68] sm:$0xf] %vm3326_vm2, %v4218_v42  ;;  %3354 = vst.msk [vmem:[%s7329_s7 + $0x6c] sm:$0xf] %vm3326_vm2, %v4219_v28  ;;  %v4234_v42 = vpack.c.bf16 %v6208_v1, %v6208_v1  ;;  %v4235_v28 = vpack.c.bf16 %v6213_v44, %v6213_v44 }
 0x46b   : > { %3355 = vst.msk [vmem:[%s7329_s7 + $0x70] sm:$0xf] %vm3326_vm2, %v4220_v56  ;;  %3356 = vst.msk [vmem:[%s7329_s7 + $0x74] sm:$0xf] %vm3326_vm2, %v4221_v2  ;;  %v4236_v56 = vpack.c.bf16 %v6218_v47, %v6218_v47  ;;  %v7359_v2 = vld [vmem:[#allocation4_spill] sm:$0xff] }
 0x46c   : > { %3357 = vst.msk [vmem:[%s7329_s7 + $0x78] sm:$0xf] %vm3326_vm2, %v4222_v59  ;;  %3358 = vst.msk [vmem:[%s7329_s7 + $0x7c] sm:$0xf] %vm3326_vm2, %v4223_v51  ;;  %v4237_v59 = vpack.c.bf16 %v7359_v2, %v7359_v2  ;;  %v7360_v51 = vld [vmem:[#allocation6_spill] sm:$0xff]  ;;  %v7366_v2 = vld [vmem:[#allocation9_spill] sm:$0xff] }
 0x46d   : > { %3359 = vst.msk [vmem:[%s7329_s7 + $0x80] sm:$0xf] %vm3326_vm2, %v4224_v8  ;;  %3360 = vst.msk [vmem:[%s7329_s7 + $0x84] sm:$0xf] %vm3326_vm2, %v4225_v55  ;;  %v4238_v8 = vpack.c.bf16 %v7360_v51, %v7360_v51  ;;  %v7361_v55 = vld [vmem:[#allocation3_spill] sm:$0xff]  ;;  %v7367_v51 = vld [vmem:[#allocation10_spill] sm:$0xff] }
 0x46e   : > { %3361 = vst.msk [vmem:[%s7329_s7 + $0x88] sm:$0xf] %vm3326_vm2, %v4226_v14  ;;  %3362 = vst.msk [vmem:[%s7329_s7 + $0x8c] sm:$0xf] %vm3326_vm2, %v4227_v36  ;;  %v4239_v14 = vpack.c.bf16 %v7361_v55, %v7361_v55  ;;  %v7362_v36 = vld [vmem:[#allocation5_spill] sm:$0xff]  ;;  %v4245_v55 = vpack.c.bf16 %v7367_v51, %v7367_v51 }
 0x46f   : > { %3363 = vst.msk [vmem:[%s7329_s7 + $0x90] sm:$0xf] %vm3326_vm2, %v4228_v21  ;;  %3364 = vst.msk [vmem:[%s7329_s7 + $0x94] sm:$0xf] %vm3326_vm2, %v4229_v3  ;;  %v4240_v21 = vpack.c.bf16 %v7362_v36, %v7362_v36  ;;  %v7363_v3 = vld [vmem:[#allocation2_spill] sm:$0xff]  ;;  %v7374_v51 = vld [vmem:[#allocation17_spill] sm:$0xff] }
 0x470   : > { %3365 = vst.msk [vmem:[%s7329_s7 + $0x98] sm:$0xf] %vm3326_vm2, %v4230_v9  ;;  %3366 = vst.msk [vmem:[%s7329_s7 + $0x9c] sm:$0xf] %vm3326_vm2, %v4231_v16  ;;  %v4241_v9 = vpack.c.bf16 %v7363_v3, %v7363_v3  ;;  %v7364_v16 = vld [vmem:[#allocation7_spill] sm:$0xff]  ;;  %v7370_v3 = vld [vmem:[#allocation13_spill] sm:$0xff] }
 0x471   : > { %3367 = vst.msk [vmem:[%s7329_s7 + $0xa0] sm:$0xf] %vm3326_vm2, %v4232_v25  ;;  %3368 = vst.msk [vmem:[%s7329_s7 + $0xa4] sm:$0xf] %vm3326_vm2, %v4233_v37  ;;  %v4242_v25 = vpack.c.bf16 %v7364_v16, %v7364_v16  ;;  %v7365_v37 = vld [vmem:[#allocation8_spill] sm:$0xff]  ;;  %v7371_v16 = vld [vmem:[#allocation14_spill] sm:$0xff] }
 0x472   : > { %3369 = vst.msk [vmem:[%s7329_s7 + $0xa8] sm:$0xf] %vm3326_vm2, %v4234_v42  ;;  %3370 = vst.msk [vmem:[%s7329_s7 + $0xac] sm:$0xf] %vm3326_vm2, %v4235_v28  ;;  %v4243_v42 = vpack.c.bf16 %v7365_v37, %v7365_v37  ;;  %v4244_v28 = vpack.c.bf16 %v7366_v2, %v7366_v2  ;;  %v4249_v37 = vpack.c.bf16 %v7371_v16, %v7371_v16 }
 0x473   : > { %3371 = vst.msk [vmem:[%s7329_s7 + $0xb0] sm:$0xf] %vm3326_vm2, %v4236_v56  ;;  %3372 = vst.msk [vmem:[%s7329_s7 + $0xb4] sm:$0xf] %vm3326_vm2, %v4237_v59  ;;  %v7368_v56 = vld [vmem:[#allocation11_spill] sm:$0xff]  ;;  %v7369_v59 = vld [vmem:[#allocation12_spill] sm:$0xff] }
 0x474   : > { %3373 = vst.msk [vmem:[%s7329_s7 + $0xb8] sm:$0xf] %vm3326_vm2, %v4238_v8  ;;  %v4246_v36 = vpack.c.bf16 %v7368_v56, %v7368_v56  ;;  %3374 = vst.msk [vmem:[%s7329_s7 + $0xbc] sm:$0xf] %vm3326_vm2, %v4239_v14  ;;  %v4247_v8 = vpack.c.bf16 %v7369_v59, %v7369_v59  ;;  %v4248_v14 = vpack.c.bf16 %v7370_v3, %v7370_v3 }
 0x475   : > { %3375 = vst.msk [vmem:[%s7329_s7 + $0xc0] sm:$0xf] %vm3326_vm2, %v4240_v21  ;;  %3376 = vst.msk [vmem:[%s7329_s7 + $0xc4] sm:$0xf] %vm3326_vm2, %v4241_v9  ;;  %v7372_v21 = vld [vmem:[#allocation15_spill] sm:$0xff]  ;;  %v7373_v9 = vld [vmem:[#allocation16_spill] sm:$0xff]  ;;  %v4253_v56 = vpack.c.bf16 %v6303_v48, %v6303_v48 }
 0x476   : > { %3377 = vst.msk [vmem:[%s7329_s7 + $0xc8] sm:$0xf] %vm3326_vm2, %v4242_v25  ;;  %v4250_v2 = vpack.c.bf16 %v7372_v21, %v7372_v21  ;;  %3378 = vst.msk [vmem:[%s7329_s7 + $0xcc] sm:$0xf] %vm3326_vm2, %v4243_v42  ;;  %v4251_v25 = vpack.c.bf16 %v7373_v9, %v7373_v9  ;;  %v4252_v42 = vpack.c.bf16 %v7374_v51, %v7374_v51 }
 0x477   : > { %3379 = vst.msk [vmem:[%s7329_s7 + $0xd0] sm:$0xf] %vm3326_vm2, %v4244_v28  ;;  %3380 = vst.msk [vmem:[%s7329_s7 + $0xd4] sm:$0xf] %vm3326_vm2, %v4245_v55  ;;  %v4254_v28 = vpack.c.bf16 %v6308_v26, %v6308_v26  ;;  %v4255_v55 = vpack.c.bf16 %v6313_v24, %v6313_v24 }
 0x478   : > { %3381 = vst.msk [vmem:[%s7329_s7 + $0xd8] sm:$0xf] %vm3326_vm2, %v4246_v36  ;;  %3382 = vst.msk [vmem:[%s7329_s7 + $0xdc] sm:$0xf] %vm3326_vm2, %v4247_v8 }
 0x479   : > { %3383 = vst.msk [vmem:[%s7329_s7 + $0xe0] sm:$0xf] %vm3326_vm2, %v4248_v14  ;;  %3384 = vst.msk [vmem:[%s7329_s7 + $0xe4] sm:$0xf] %vm3326_vm2, %v4249_v37 }
 0x47a   : > { %3385 = vst.msk [vmem:[%s7329_s7 + $0xe8] sm:$0xf] %vm3326_vm2, %v4250_v2  ;;  %3386 = vst.msk [vmem:[%s7329_s7 + $0xec] sm:$0xf] %vm3326_vm2, %v4251_v25 }
 0x47b   : > { %3387 = vst.msk [vmem:[%s7329_s7 + $0xf0] sm:$0xf] %vm3326_vm2, %v4252_v42  ;;  %3388 = vst.msk [vmem:[%s7329_s7 + $0xf4] sm:$0xf] %vm3326_vm2, %v4253_v56 }
 0x47c   : > { %3389 = vst.msk [vmem:[%s7329_s7 + $0xf8] sm:$0xf] %vm3326_vm2, %v4254_v28  ;;  %3390 = vst.msk [vmem:[%s7329_s7 + $0xfc] sm:$0xf] %vm3326_vm2, %v4255_v55 }
 0x47d PF: > { %p4124_p6 = scmp.le.s32.totalorder %s4895_s24, 0 }
 0x47f   : > { %3394 = sbr.rel (%p4124_p6) target bundleno = 1204 (0x4b4), region = 56 }
 0x484   : > { %v3395_v36 = vld [vmem:[%s7329_s7] sm:$0xf]  ;;  %v4256_v59 = vpack.c.bf16 %v6186_v27, %v6186_v27  ;;  %vm3747_vm3 = vcmask 125952   ;;  %v3396_v8 = vld [vmem:[%s7329_s7 + $0x4] sm:$0xf]  ;;  %v4257_v3 = vpack.c.bf16 %v6191_v7, %v6191_v7  ;;  %v4258_v14 = vpack.c.bf16 %v6196_v11, %v6196_v11 }
 0x485   : > { %v3397_v16 = vld [vmem:[%s7329_s7 + $0x8] sm:$0xf]  ;;  %v3398_v37 = vld [vmem:[%s7329_s7 + $0xc] sm:$0xf]  ;;  %v4259_v27 = vpack.c.bf16 %v6201_v30, %v6201_v30  ;;  %v3399_v21 = vld [vmem:[%s7329_s7 + $0x10] sm:$0xf]  ;;  %v4260_v7 = vpack.c.bf16 %v6206_v38, %v6206_v38  ;;  %v4261_v11 = vpack.c.bf16 %v6211_v0, %v6211_v0  ;;  %v4262_v2 = vpack.c.bf16 %v6216_v15, %v6216_v15 }
 0x486   : > { %v3683_v9 = vmax.bf16 %v4256_v59, %v3395_v36  ;;  %v3684_v25 = vmax.bf16 %v4257_v3, %v3396_v8  ;;  %v3685_v51 = vmax.bf16 %v4258_v14, %v3397_v16  ;;  %v3400_v30 = vld [vmem:[%s7329_s7 + $0x14] sm:$0xf]  ;;  %v3401_v42 = vld [vmem:[%s7329_s7 + $0x18] sm:$0xf]  ;;  %v3402_v38 = vld [vmem:[%s7329_s7 + $0x1c] sm:$0xf]  ;;  %v4263_v0 = vpack.c.bf16 %v6221_v58, %v6221_v58 }
 0x487   : > { %v3686_v56 = vmax.bf16 %v4259_v27, %v3398_v37  ;;  %v3687_v15 = vmax.bf16 %v4260_v7, %v3399_v21  ;;  %v3688_v28 = vmax.bf16 %v4261_v11, %v3400_v30  ;;  %v3689_v55 = vmax.bf16 %v4262_v2, %v3401_v42  ;;  %v3403_v36 = vld [vmem:[%s7329_s7 + $0x20] sm:$0xf]  ;;  %v3404_v59 = vld [vmem:[%s7329_s7 + $0x24] sm:$0xf]  ;;  %v3405_v8 = vld [vmem:[%s7329_s7 + $0x28] sm:$0xf] }
 0x488   : > { %3748 = vst.msk [vmem:[%s7329_s7] sm:$0xf] %vm3747_vm3, %v3683_v9  ;;  %3749 = vst.msk [vmem:[%s7329_s7 + $0x4] sm:$0xf] %vm3747_vm3, %v3684_v25  ;;  %v3690_v58 = vmax.bf16 %v4263_v0, %v3402_v38  ;;  %v4264_v3 = vpack.c.bf16 %v6226_v33, %v6226_v33  ;;  %v4265_v14 = vpack.c.bf16 %v6231_v5, %v6231_v5  ;;  %v3406_v37 = vld [vmem:[%s7329_s7 + $0x2c] sm:$0xf] }
 0x489   : > { %3750 = vst.msk [vmem:[%s7329_s7 + $0x8] sm:$0xf] %vm3747_vm3, %v3685_v51  ;;  %v4266_v16 = vpack.c.bf16 %v6236_v63, %v6236_v63  ;;  %v3407_v27 = vld [vmem:[%s7329_s7 + $0x30] sm:$0xf]  ;;  %v3408_v21 = vld [vmem:[%s7329_s7 + $0x34] sm:$0xf]  ;;  %v4267_v33 = vpack.c.bf16 %v6241_v49, %v6241_v49  ;;  %v4268_v5 = vpack.c.bf16 %v6246_v29, %v6246_v29  ;;  %v4269_v63 = vpack.c.bf16 %v6251_v43, %v6251_v43 }
 0x48a   : > { %3751 = vst.msk [vmem:[%s7329_s7 + $0xc] sm:$0xf] %vm3747_vm3, %v3686_v56  ;;  %3752 = vst.msk [vmem:[%s7329_s7 + $0x10] sm:$0xf] %vm3747_vm3, %v3687_v15  ;;  %v3409_v7 = vld [vmem:[%s7329_s7 + $0x38] sm:$0xf]  ;;  %v4270_v11 = vpack.c.bf16 %v6256_v18, %v6256_v18  ;;  %v3691_v49 = vmax.bf16 %v4264_v3, %v3403_v36  ;;  %v3692_v29 = vmax.bf16 %v4265_v14, %v3404_v59 }
 0x48b   : > { %3753 = vst.msk [vmem:[%s7329_s7 + $0x14] sm:$0xf] %vm3747_vm3, %v3688_v28  ;;  %3754 = vst.msk [vmem:[%s7329_s7 + $0x18] sm:$0xf] %vm3747_vm3, %v3689_v55  ;;  %v3410_v2 = vld [vmem:[%s7329_s7 + $0x3c] sm:$0xf]  ;;  %v3693_v9 = vmax.bf16 %v4266_v16, %v3405_v8  ;;  %v4271_v43 = vpack.c.bf16 %v6261_v6, %v6261_v6  ;;  %v3694_v18 = vmax.bf16 %v4267_v33, %v3406_v37 }
 0x48c   : > { %3755 = vst.msk [vmem:[%s7329_s7 + $0x1c] sm:$0xf] %vm3747_vm3, %v3690_v58  ;;  %v3411_v25 = vld [vmem:[%s7329_s7 + $0x40] sm:$0xf]  ;;  %v3695_v51 = vmax.bf16 %v4268_v5, %v3407_v27  ;;  %v3696_v30 = vmax.bf16 %v4269_v63, %v3408_v21  ;;  %v3697_v42 = vmax.bf16 %v4270_v11, %v3409_v7  ;;  %v3412_v38 = vld [vmem:[%s7329_s7 + $0x44] sm:$0xf]  ;;  %v4272_v15 = vpack.c.bf16 %v6266_v20, %v6266_v20 }
 0x48d   : > { %v3413_v0 = vld [vmem:[%s7329_s7 + $0x48] sm:$0xf]  ;;  %v3414_v6 = vld [vmem:[%s7329_s7 + $0x4c] sm:$0xf]  ;;  %3756 = vst.msk [vmem:[%s7329_s7 + $0x20] sm:$0xf] %vm3747_vm3, %v3691_v49  ;;  %v3698_v56 = vmax.bf16 %v4271_v43, %v3410_v2  ;;  %v4273_v28 = vpack.c.bf16 %v6271_v46, %v6271_v46  ;;  %v4274_v55 = vpack.c.bf16 %v6276_v53, %v6276_v53  ;;  %v4275_v20 = vpack.c.bf16 %v6281_v19, %v6281_v19 }
 0x48e   : > { %3757 = vst.msk [vmem:[%s7329_s7 + $0x24] sm:$0xf] %vm3747_vm3, %v3692_v29  ;;  %3758 = vst.msk [vmem:[%s7329_s7 + $0x28] sm:$0xf] %vm3747_vm3, %v3693_v9  ;;  %v3415_v36 = vld [vmem:[%s7329_s7 + $0x50] sm:$0xf]  ;;  %v4276_v46 = vpack.c.bf16 %v6286_v31, %v6286_v31  ;;  %v4277_v53 = vpack.c.bf16 %v6291_v57, %v6291_v57  ;;  %v4278_v58 = vpack.c.bf16 %v6296_v40, %v6296_v40 }
 0x48f   : > { %v3416_v59 = vld [vmem:[%s7329_s7 + $0x54] sm:$0xf]  ;;  %v3417_v8 = vld [vmem:[%s7329_s7 + $0x58] sm:$0xf]  ;;  %3759 = vst.msk [vmem:[%s7329_s7 + $0x2c] sm:$0xf] %vm3747_vm3, %v3694_v18  ;;  %v3699_v14 = vmax.bf16 %v4272_v15, %v3411_v25  ;;  %v3700_v19 = vmax.bf16 %v4273_v28, %v3412_v38  ;;  %v3701_v16 = vmax.bf16 %v4274_v55, %v3413_v0  ;;  %v4279_v31 = vpack.c.bf16 %v6301_v34, %v6301_v34 }
 0x490   : > { %3760 = vst.msk [vmem:[%s7329_s7 + $0x30] sm:$0xf] %vm3747_vm3, %v3695_v51  ;;  %3761 = vst.msk [vmem:[%s7329_s7 + $0x34] sm:$0xf] %vm3747_vm3, %v3696_v30  ;;  %v3418_v3 = vld [vmem:[%s7329_s7 + $0x5c] sm:$0xf]  ;;  %v3702_v40 = vmax.bf16 %v4275_v20, %v3414_v6  ;;  %v3703_v37 = vmax.bf16 %v4276_v46, %v3415_v36  ;;  %v3704_v27 = vmax.bf16 %v4277_v53, %v3416_v59 }
 0x491   : > { %3762 = vst.msk [vmem:[%s7329_s7 + $0x38] sm:$0xf] %vm3747_vm3, %v3697_v42  ;;  %3763 = vst.msk [vmem:[%s7329_s7 + $0x3c] sm:$0xf] %vm3747_vm3, %v3698_v56  ;;  %v3419_v57 = vld [vmem:[%s7329_s7 + $0x60] sm:$0xf]  ;;  %v3705_v21 = vmax.bf16 %v4278_v58, %v3417_v8  ;;  %v3706_v63 = vmax.bf16 %v4279_v31, %v3418_v3  ;;  %v4280_v7 = vpack.c.bf16 %v6306_v62, %v6306_v62 }
 0x492   : > { %v3420_v33 = vld [vmem:[%s7329_s7 + $0x64] sm:$0xf]  ;;  %v3421_v5 = vld [vmem:[%s7329_s7 + $0x68] sm:$0xf]  ;;  %v3422_v34 = vld [vmem:[%s7329_s7 + $0x6c] sm:$0xf]  ;;  %v4281_v11 = vpack.c.bf16 %v6311_v35, %v6311_v35  ;;  %v4282_v2 = vpack.c.bf16 %v6316_v32, %v6316_v32  ;;  %v4283_v62 = vpack.c.bf16 %v6319_v17, %v6319_v17  ;;  %v4284_v35 = vpack.c.bf16 %v6322_v4, %v6322_v4 }
 0x493   : > { %3764 = vst.msk [vmem:[%s7329_s7 + $0x40] sm:$0xf] %vm3747_vm3, %v3699_v14  ;;  %3765 = vst.msk [vmem:[%s7329_s7 + $0x44] sm:$0xf] %vm3747_vm3, %v3700_v19  ;;  %v3423_v49 = vld [vmem:[%s7329_s7 + $0x70] sm:$0xf]  ;;  %v4285_v32 = vpack.c.bf16 %v6325_v45, %v6325_v45  ;;  %v4286_v43 = vpack.c.bf16 %v6328_v23, %v6328_v23  ;;  %v3707_v18 = vmax.bf16 %v4280_v7, %v3419_v57 }
 0x494   : > { %3766 = vst.msk [vmem:[%s7329_s7 + $0x48] sm:$0xf] %vm3747_vm3, %v3701_v16  ;;  %v3424_v29 = vld [vmem:[%s7329_s7 + $0x74] sm:$0xf]  ;;  %v3425_v9 = vld [vmem:[%s7329_s7 + $0x78] sm:$0xf]  ;;  %v3708_v17 = vmax.bf16 %v4281_v11, %v3420_v33  ;;  %v3709_v51 = vmax.bf16 %v4282_v2, %v3421_v5  ;;  %v4287_v4 = vpack.c.bf16 %v6331_v10, %v6331_v10  ;;  %v3710_v23 = vmax.bf16 %v4283_v62, %v3422_v34 }
 0x495   : > { %3767 = vst.msk [vmem:[%s7329_s7 + $0x4c] sm:$0xf] %vm3747_vm3, %v3702_v40  ;;  %3768 = vst.msk [vmem:[%s7329_s7 + $0x50] sm:$0xf] %vm3747_vm3, %v3703_v37  ;;  %v3426_v25 = vld [vmem:[%s7329_s7 + $0x7c] sm:$0xf]  ;;  %v3711_v30 = vmax.bf16 %v4284_v35, %v3423_v49  ;;  %v3712_v42 = vmax.bf16 %v4285_v32, %v3424_v29  ;;  %v3713_v38 = vmax.bf16 %v4286_v43, %v3425_v9 }
 0x496   : > { %3769 = vst.msk [vmem:[%s7329_s7 + $0x54] sm:$0xf] %vm3747_vm3, %v3704_v27  ;;  %3770 = vst.msk [vmem:[%s7329_s7 + $0x58] sm:$0xf] %vm3747_vm3, %v3705_v21  ;;  %v3427_v45 = vld [vmem:[%s7329_s7 + $0x80] sm:$0xf]  ;;  %v3714_v56 = vmax.bf16 %v4287_v4, %v3426_v25  ;;  %v4288_v15 = vpack.c.bf16 %v6334_v50, %v6334_v50  ;;  %v4289_v28 = vpack.c.bf16 %v6337_v61, %v6337_v61 }
 0x497   : > { %3771 = vst.msk [vmem:[%s7329_s7 + $0x5c] sm:$0xf] %vm3747_vm3, %v3706_v63  ;;  %v3428_v0 = vld [vmem:[%s7329_s7 + $0x84] sm:$0xf]  ;;  %v3429_v6 = vld [vmem:[%s7329_s7 + $0x88] sm:$0xf]  ;;  %v4290_v55 = vpack.c.bf16 %v6340_v39, %v6340_v39  ;;  %v4291_v50 = vpack.c.bf16 %v6343_v22, %v6343_v22  ;;  %v4292_v61 = vpack.c.bf16 %v6346_v54, %v6346_v54  ;;  %v4293_v39 = vpack.c.bf16 %v6349_v41, %v6349_v41 }
 0x498   : > { %v3430_v10 = vld [vmem:[%s7329_s7 + $0x8c] sm:$0xf]  ;;  %3772 = vst.msk [vmem:[%s7329_s7 + $0x60] sm:$0xf] %vm3747_vm3, %v3707_v18  ;;  %3773 = vst.msk [vmem:[%s7329_s7 + $0x64] sm:$0xf] %vm3747_vm3, %v3708_v17  ;;  %v4294_v20 = vpack.c.bf16 %v6188_v60, %v6188_v60  ;;  %v3715_v53 = vmax.bf16 %v4288_v15, %v3427_v45  ;;  %v3716_v22 = vmax.bf16 %v4289_v28, %v3428_v0 }
 0x499   : > { %3774 = vst.msk [vmem:[%s7329_s7 + $0x68] sm:$0xf] %vm3747_vm3, %v3709_v51  ;;  %v3431_v36 = vld [vmem:[%s7329_s7 + $0x90] sm:$0xf]  ;;  %v3432_v59 = vld [vmem:[%s7329_s7 + $0x94] sm:$0xf]  ;;  %v3717_v58 = vmax.bf16 %v4290_v55, %v3429_v6  ;;  %v4295_v54 = vpack.c.bf16 %v6193_v52, %v6193_v52  ;;  %v3718_v60 = vmax.bf16 %v4291_v50, %v3430_v10  ;;  %v4296_v40 = vpack.c.bf16 %v6198_v12, %v6198_v12 }
 0x49a   : > { %v3433_v8 = vld [vmem:[%s7329_s7 + $0x98] sm:$0xf]  ;;  %3775 = vst.msk [vmem:[%s7329_s7 + $0x6c] sm:$0xf] %vm3747_vm3, %v3710_v23  ;;  %3776 = vst.msk [vmem:[%s7329_s7 + $0x70] sm:$0xf] %vm3747_vm3, %v3711_v30  ;;  %v3719_v3 = vmax.bf16 %v4292_v61, %v3431_v36  ;;  %v3720_v14 = vmax.bf16 %v4293_v39, %v3432_v59  ;;  %v4297_v37 = vpack.c.bf16 %v6203_v13, %v6203_v13 }
 0x49b   : > { %3777 = vst.msk [vmem:[%s7329_s7 + $0x74] sm:$0xf] %vm3747_vm3, %v3712_v42  ;;  %3778 = vst.msk [vmem:[%s7329_s7 + $0x78] sm:$0xf] %vm3747_vm3, %v3713_v38  ;;  %v3434_v46 = vld [vmem:[%s7329_s7 + $0x9c] sm:$0xf]  ;;  %v3721_v19 = vmax.bf16 %v4294_v20, %v3433_v8  ;;  %v4298_v27 = vpack.c.bf16 %v6208_v1, %v6208_v1  ;;  %v4299_v12 = vpack.c.bf16 %v6213_v44, %v6213_v44 }
 0x49c   : > { %3779 = vst.msk [vmem:[%s7329_s7 + $0x7c] sm:$0xf] %vm3747_vm3, %v3714_v56  ;;  %v3435_v41 = vld [vmem:[%s7329_s7 + $0xa0] sm:$0xf]  ;;  %v3436_v16 = vld [vmem:[%s7329_s7 + $0xa4] sm:$0xf]  ;;  %v3722_v57 = vmax.bf16 %v4295_v54, %v3434_v46  ;;  %v4300_v13 = vpack.c.bf16 %v6218_v47, %v6218_v47 }
 0x49d   : > { %v3437_v31 = vld [vmem:[%s7329_s7 + $0xa8] sm:$0xf]  ;;  %v3438_v52 = vld [vmem:[%s7329_s7 + $0xac] sm:$0xf]  ;;  %3780 = vst.msk [vmem:[%s7329_s7 + $0x80] sm:$0xf] %vm3747_vm3, %v3715_v53  ;;  %v3723_v2 = vmax.bf16 %v4296_v40, %v3435_v41  ;;  %v3724_v44 = vmax.bf16 %v4297_v37, %v3436_v16 }
 0x49e   : > { %3781 = vst.msk [vmem:[%s7329_s7 + $0x84] sm:$0xf] %vm3747_vm3, %v3716_v22  ;;  %3782 = vst.msk [vmem:[%s7329_s7 + $0x88] sm:$0xf] %vm3747_vm3, %v3717_v58  ;;  %v3439_v21 = vld [vmem:[%s7329_s7 + $0xb0] sm:$0xf]  ;;  %v3725_v49 = vmax.bf16 %v4298_v27, %v3437_v31  ;;  %v3726_v62 = vmax.bf16 %v4299_v12, %v3438_v52 }
 0x49f   : > { %v3440_v33 = vld [vmem:[%s7329_s7 + $0xb4] sm:$0xf]  ;;  %v3441_v5 = vld [vmem:[%s7329_s7 + $0xb8] sm:$0xf]  ;;  %3783 = vst.msk [vmem:[%s7329_s7 + $0x8c] sm:$0xf] %vm3747_vm3, %v3718_v60  ;;  %v3727_v35 = vmax.bf16 %v4300_v13, %v3439_v21 }
 0x4a0   : > { %3784 = vst.msk [vmem:[%s7329_s7 + $0x90] sm:$0xf] %vm3747_vm3, %v3719_v3  ;;  %3785 = vst.msk [vmem:[%s7329_s7 + $0x94] sm:$0xf] %vm3747_vm3, %v3720_v14  ;;  %v7375_v1 = vld [vmem:[#allocation4_spill] sm:$0xff]  ;;  %v7376_v63 = vld [vmem:[#allocation6_spill] sm:$0xff] }
 0x4a1   : > { %3786 = vst.msk [vmem:[%s7329_s7 + $0x98] sm:$0xf] %vm3747_vm3, %v3721_v19  ;;  %v4301_v34 = vpack.c.bf16 %v7375_v1, %v7375_v1  ;;  %v4302_v7 = vpack.c.bf16 %v7376_v63, %v7376_v63  ;;  %v3442_v11 = vld [vmem:[%s7329_s7 + $0xbc] sm:$0xf]  ;;  %3787 = vst.msk [vmem:[%s7329_s7 + $0x9c] sm:$0xf] %vm3747_vm3, %v3722_v57 }
 0x4a2   : > { %v7377_v29 = vld [vmem:[#allocation3_spill] sm:$0xff]  ;;  %v3443_v9 = vld [vmem:[%s7329_s7 + $0xc0] sm:$0xf]  ;;  %v3444_v25 = vld [vmem:[%s7329_s7 + $0xc4] sm:$0xf] }
 0x4a3   : > { %v4303_v47 = vpack.c.bf16 %v7377_v29, %v7377_v29  ;;  %v3728_v32 = vmax.bf16 %v4301_v34, %v3440_v33  ;;  %v3729_v43 = vmax.bf16 %v4302_v7, %v3441_v5  ;;  %v3445_v18 = vld [vmem:[%s7329_s7 + $0xc8] sm:$0xf]  ;;  %v3446_v17 = vld [vmem:[%s7329_s7 + $0xcc] sm:$0xf]  ;;  %3788 = vst.msk [vmem:[%s7329_s7 + $0xa0] sm:$0xf] %vm3747_vm3, %v3723_v2  ;;  %v4317_v7 = vpack.c.bf16 %v6303_v48, %v6303_v48 }
 0x4a4   : > { %3789 = vst.msk [vmem:[%s7329_s7 + $0xa4] sm:$0xf] %vm3747_vm3, %v3724_v44  ;;  %3790 = vst.msk [vmem:[%s7329_s7 + $0xa8] sm:$0xf] %vm3747_vm3, %v3725_v49  ;;  %v7378_v4 = vld [vmem:[#allocation5_spill] sm:$0xff]  ;;  %v7379_v23 = vld [vmem:[#allocation2_spill] sm:$0xff] }
 0x4a5   : > { %v3730_v51 = vmax.bf16 %v4303_v47, %v3442_v11  ;;  %v4304_v45 = vpack.c.bf16 %v7378_v4, %v7378_v4  ;;  %v4305_v30 = vpack.c.bf16 %v7379_v23, %v7379_v23  ;;  %v7380_v42 = vld [vmem:[#allocation7_spill] sm:$0xff]  ;;  %v3447_v0 = vld [vmem:[%s7329_s7 + $0xd0] sm:$0xf]  ;;  %v3448_v6 = vld [vmem:[%s7329_s7 + $0xd4] sm:$0xf]  ;;  %v4318_v11 = vpack.c.bf16 %v6308_v26, %v6308_v26 }
 0x4a6   : > { %v4306_v38 = vpack.c.bf16 %v7380_v42, %v7380_v42  ;;  %v3449_v10 = vld [vmem:[%s7329_s7 + $0xd8] sm:$0xf]  ;;  %3791 = vst.msk [vmem:[%s7329_s7 + $0xac] sm:$0xf] %vm3747_vm3, %v3726_v62  ;;  %3792 = vst.msk [vmem:[%s7329_s7 + $0xb0] sm:$0xf] %vm3747_vm3, %v3727_v35  ;;  %v4319_v47 = vpack.c.bf16 %v6313_v24, %v6313_v24 }
 0x4a7   : > { %3793 = vst.msk [vmem:[%s7329_s7 + $0xb4] sm:$0xf] %vm3747_vm3, %v3728_v32  ;;  %3794 = vst.msk [vmem:[%s7329_s7 + $0xb8] sm:$0xf] %vm3747_vm3, %v3729_v43  ;;  %v7381_v56 = vld [vmem:[#allocation8_spill] sm:$0xff]  ;;  %v7382_v28 = vld [vmem:[#allocation9_spill] sm:$0xff]  ;;  %v3731_v39 = vmax.bf16 %v4304_v45, %v3443_v9  ;;  %v3732_v20 = vmax.bf16 %v4305_v30, %v3444_v25 }
 0x4a8   : > { %v4307_v15 = vpack.c.bf16 %v7381_v56, %v7381_v56  ;;  %v4308_v55 = vpack.c.bf16 %v7382_v28, %v7382_v28  ;;  %v7383_v36 = vld [vmem:[#allocation10_spill] sm:$0xff]  ;;  %v7384_v8 = vld [vmem:[#allocation11_spill] sm:$0xff]  ;;  %v3450_v61 = vld [vmem:[%s7329_s7 + $0xdc] sm:$0xf]  ;;  %3795 = vst.msk [vmem:[%s7329_s7 + $0xbc] sm:$0xf] %vm3747_vm3, %v3730_v51  ;;  %v3733_v46 = vmax.bf16 %v4306_v38, %v3445_v18 }
 0x4a9   : > { %v4309_v59 = vpack.c.bf16 %v7383_v36, %v7383_v36  ;;  %v4310_v50 = vpack.c.bf16 %v7384_v8, %v7384_v8  ;;  %v7385_v53 = vld [vmem:[#allocation12_spill] sm:$0xff]  ;;  %v3451_v58 = vld [vmem:[%s7329_s7 + $0xe0] sm:$0xf]  ;;  %v3452_v14 = vld [vmem:[%s7329_s7 + $0xe4] sm:$0xf] }
 0x4aa   : > { %v4311_v22 = vpack.c.bf16 %v7385_v53, %v7385_v53  ;;  %v3734_v54 = vmax.bf16 %v4307_v15, %v3446_v17  ;;  %v3735_v41 = vmax.bf16 %v4308_v55, %v3447_v0  ;;  %v3453_v19 = vld [vmem:[%s7329_s7 + $0xe8] sm:$0xf]  ;;  %v3454_v16 = vld [vmem:[%s7329_s7 + $0xec] sm:$0xf]  ;;  %3796 = vst.msk [vmem:[%s7329_s7 + $0xc0] sm:$0xf] %vm3747_vm3, %v3731_v39 }
 0x4ab   : > { %v3736_v60 = vmax.bf16 %v4309_v59, %v3448_v6  ;;  %v3737_v3 = vmax.bf16 %v4310_v50, %v3449_v10  ;;  %3797 = vst.msk [vmem:[%s7329_s7 + $0xc4] sm:$0xf] %vm3747_vm3, %v3732_v20  ;;  %3798 = vst.msk [vmem:[%s7329_s7 + $0xc8] sm:$0xf] %vm3747_vm3, %v3733_v46  ;;  %v7386_v52 = vld [vmem:[#allocation13_spill] sm:$0xff]  ;;  %v7387_v40 = vld [vmem:[#allocation14_spill] sm:$0xff] }
 0x4ac   : > { %v3738_v31 = vmax.bf16 %v4311_v22, %v3450_v61  ;;  %v4312_v57 = vpack.c.bf16 %v7386_v52, %v7386_v52  ;;  %v4313_v37 = vpack.c.bf16 %v7387_v40, %v7387_v40  ;;  %v7388_v27 = vld [vmem:[#allocation15_spill] sm:$0xff]  ;;  %v3455_v33 = vld [vmem:[%s7329_s7 + $0xf0] sm:$0xf]  ;;  %v3456_v5 = vld [vmem:[%s7329_s7 + $0xf4] sm:$0xf] }
 0x4ad   : > { %v4314_v21 = vpack.c.bf16 %v7388_v27, %v7388_v27  ;;  %v3457_v12 = vld [vmem:[%s7329_s7 + $0xf8] sm:$0xf]  ;;  %3799 = vst.msk [vmem:[%s7329_s7 + $0xcc] sm:$0xf] %vm3747_vm3, %v3734_v54  ;;  %3800 = vst.msk [vmem:[%s7329_s7 + $0xd0] sm:$0xf] %vm3747_vm3, %v3735_v41  ;;  %v3744_v62 = vmax.bf16 %v4317_v7, %v3456_v5 }
 0x4ae   : > { %3801 = vst.msk [vmem:[%s7329_s7 + $0xd4] sm:$0xf] %vm3747_vm3, %v3736_v60  ;;  %3802 = vst.msk [vmem:[%s7329_s7 + $0xd8] sm:$0xf] %vm3747_vm3, %v3737_v3  ;;  %v7389_v13 = vld [vmem:[#allocation16_spill] sm:$0xff]  ;;  %v7390_v34 = vld [vmem:[#allocation17_spill] sm:$0xff]  ;;  %v3739_v44 = vmax.bf16 %v4312_v57, %v3451_v58  ;;  %v3740_v49 = vmax.bf16 %v4313_v37, %v3452_v14  ;;  %v3745_v35 = vmax.bf16 %v4318_v11, %v3457_v12 }
 0x4af   : > { %v4315_v1 = vpack.c.bf16 %v7389_v13, %v7389_v13  ;;  %v4316_v63 = vpack.c.bf16 %v7390_v34, %v7390_v34  ;;  %v3458_v2 = vld [vmem:[%s7329_s7 + $0xfc] sm:$0xf]  ;;  %3803 = vst.msk [vmem:[%s7329_s7 + $0xdc] sm:$0xf] %vm3747_vm3, %v3738_v31  ;;  %v3741_v29 = vmax.bf16 %v4314_v21, %v3453_v19  ;;  %3809 = vst.msk [vmem:[%s7329_s7 + $0xf4] sm:$0xf] %vm3747_vm3, %v3744_v62 }
 0x4b0   : > { %3804 = vst.msk [vmem:[%s7329_s7 + $0xe0] sm:$0xf] %vm3747_vm3, %v3739_v44  ;;  %3805 = vst.msk [vmem:[%s7329_s7 + $0xe4] sm:$0xf] %vm3747_vm3, %v3740_v49  ;;  %v3746_v26 = vmax.bf16 %v4319_v47, %v3458_v2 }
 0x4b1   : > { %v3742_v9 = vmax.bf16 %v4315_v1, %v3454_v16  ;;  %v3743_v48 = vmax.bf16 %v4316_v63, %v3455_v33  ;;  %3806 = vst.msk [vmem:[%s7329_s7 + $0xe8] sm:$0xf] %vm3747_vm3, %v3741_v29  ;;  %3810 = vst.msk [vmem:[%s7329_s7 + $0xf8] sm:$0xf] %vm3747_vm3, %v3745_v35 }
 0x4b2   : > { %3811 = vst.msk [vmem:[%s7329_s7 + $0xfc] sm:$0xf] %vm3747_vm3, %v3746_v26 }
 0x4b3   : > { %3807 = vst.msk [vmem:[%s7329_s7 + $0xec] sm:$0xf] %vm3747_vm3, %v3742_v9  ;;  %3808 = vst.msk [vmem:[%s7329_s7 + $0xf0] sm:$0xf] %vm3747_vm3, %v3743_v48 }
 0x4b4 PF: > { %s17_s26 = sadd.s32 1, %s4903_s26   ;;  %s7391_s24 = smov %s4899_s25 }
 0x4b5   : > { %p14_p7 = scmp.ge.s32.totalorder %s17_s26, 34   ;;  %s7392_s25 = smov %s7394_s27 }
 0x4b7   :  { %16 = sbr.rel (!%p14_p7) target bundleno = 2 (0x2), region = 86 }

// kernel: neg.8
= control target key start
LH: loop header
LB: loop body
LE: loop exit
PB: predicated region body
PF: predicated region fallthrough
CT: control target
= control target key end

     0   :  { %s72_s0 = inlined_call_operand.vmem [shape: f32[2,32,16], index: 0, kind: input, shape index: {}]   ;;  %s73_s1 = inlined_call_operand.vmem [shape: f32[2,32,16], index: 1, kind: output, shape index: {}]  }
   0x1   :  { %v2_v0 = vld [vmem:[%s72_s0] sm:$0xff]  ;;  %v32_v1 = vld [vmem:[%s72_s0 + $0x10] sm:$0xff]  ;;  %v34_v2 = vld [vmem:[%s72_s0 + $0x8] sm:$0xff] }
   0x2   :  { %v5_v3 = vxor.u32 2147483648, %v2_v0  ;;  %v12_v4 = vxor.u32 2147483648, %v32_v1  ;;  %v20_v5 = vxor.u32 2147483648, %v34_v2  ;;  %v36_v6 = vld [vmem:[%s72_s0 + $0x18] sm:$0xff] }
   0x3   :  { %v28_v7 = vxor.u32 2147483648, %v36_v6 }
   0x4   :  { %7 = vst [vmem:[%s73_s1] sm:$0xff] %v5_v3  ;;  %33 = vst [vmem:[%s73_s1 + $0x10] sm:$0xff] %v12_v4 }
   0x5   :  { %35 = vst [vmem:[%s73_s1 + $0x8] sm:$0xff] %v20_v5  ;;  %37 = vst [vmem:[%s73_s1 + $0x18] sm:$0xff] %v28_v7 }

// kernel: a_call__.13
= control target key start
LH: loop header
LB: loop body
LE: loop exit
PB: predicated region body
PF: predicated region fallthrough
CT: control target
= control target key end

     0   :  { %v3377_v1 = vmov 0   ;;  %vm2409_vm0 = vcmask 257024   ;;  %s4496_s0 = inlined_call_operand.vmem [shape: bf16[768,32], index: 0, kind: input, shape index: {}]   ;;  %s4497_s1 = inlined_call_operand.vmem [shape: bf16[256,768], index: 1, kind: input, shape index: {}]   ;;  %s4498_s2 = inlined_call_operand.vmem [shape: f32[256,1], index: 2, kind: input, shape index: {}, may-alias: {2,4}]   ;;  %s4499_s4 = inlined_call_operand.vmem [shape: f32[256,1], index: 4, kind: input, shape index: {}, may-alias: {2,4}]   ;;  %s4500_s3 = inlined_call_operand.vmem [shape: bf16[256,256], index: 3, kind: input, shape index: {}]   ;;  %s4501_s5 = inlined_call_operand.vmem [shape: bf16[256,32], index: 5, kind: output, shape index: {}]  }
   0x1   :  { %v3137_v0 = vld [vmem:[%s4496_s0 + $0x78] sm:$0xff]   ;;  %3135 = vset.pattern.permute.xlu0 %v3377_v1  ;;  %3136 = vset.pattern.permute.xlu1 %v3377_v1  ;;  %v3141_v5 = vld [vmem:[%s4496_s0 + $0x70] sm:$0xff]   ;;  %v3145_v9 = vld [vmem:[%s4496_s0 + $0x68] sm:$0xff]  }
   0x2   :  { %v3138_v2 = vld [vmem:[%s4496_s0 + $0x38] sm:$0xff]   ;;  %2686 = vmatprep.subr.bf16.mxu0 %v3137_v0  ;;  %v3142_v6 = vld [vmem:[%s4496_s0 + $0x30] sm:$0xff]   ;;  %v3146_v10 = vld [vmem:[%s4496_s0 + $0x28] sm:$0xff]  }
   0x3   :  { %v3139_v3 = vld [vmem:[%s4496_s0 + $0xf8] sm:$0xff]   ;;  %2687 = vmatpush3.bf16.msra.mxu0 %v3138_v2  ;;  %v3143_v7 = vld [vmem:[%s4496_s0 + $0xf0] sm:$0xff]   ;;  %v3147_v11 = vld [vmem:[%s4496_s0 + $0xe8] sm:$0xff]  }
   0x4   :  { %v3140_v4 = vld [vmem:[%s4496_s0 + $0xb8] sm:$0xff]   ;;  %2798 = vmatprep.subr.bf16.mxu1 %v3139_v3  ;;  %2688 = vmatprep.subr.bf16.mxu0 %v3141_v5  ;;  %v3144_v8 = vld [vmem:[%s4496_s0 + $0xb0] sm:$0xff]   ;;  %v3148_v12 = vld [vmem:[%s4496_s0 + $0xa8] sm:$0xff]  }
   0x5   :  { %2799 = vmatpush3.bf16.msra.mxu1 %v3140_v4  ;;  %v3149_v13 = vld [vmem:[%s4496_s0 + $0x60] sm:$0xff]   ;;  %v3153_v17 = vld [vmem:[%s4496_s0 + $0x58] sm:$0xff]   ;;  %v3157_v21 = vld [vmem:[%s4496_s0 + $0x50] sm:$0xff]  }
   0x6   :  { %2800 = vmatprep.subr.bf16.mxu1 %v3143_v7  ;;  %v3150_v14 = vld [vmem:[%s4496_s0 + $0x20] sm:$0xff]   ;;  %v3154_v18 = vld [vmem:[%s4496_s0 + $0x18] sm:$0xff]   ;;  %v3158_v22 = vld [vmem:[%s4496_s0 + $0x10] sm:$0xff]  }
   0x7   :  { %2689 = vmatpush3.bf16.msra.mxu0 %v3142_v6  ;;  %v3151_v15 = vld [vmem:[%s4496_s0 + $0xe0] sm:$0xff]   ;;  %v3155_v19 = vld [vmem:[%s4496_s0 + $0xd8] sm:$0xff]   ;;  %v3159_v23 = vld [vmem:[%s4496_s0 + $0xd0] sm:$0xff]  }
   0x8   :  { %2690 = vmatprep.subr.bf16.mxu0 %v3145_v9  ;;  %v3152_v16 = vld [vmem:[%s4496_s0 + $0xa0] sm:$0xff]   ;;  %v3156_v20 = vld [vmem:[%s4496_s0 + $0x98] sm:$0xff]   ;;  %v3160_v24 = vld [vmem:[%s4496_s0 + $0x90] sm:$0xff]  }
   0x9   :  { %2801 = vmatpush3.bf16.msra.mxu1 %v3144_v8  ;;  %v3161_v25 = vld [vmem:[%s4496_s0 + $0x48] sm:$0xff]   ;;  %v3165_v29 = vld [vmem:[%s4496_s0 + $0x40] sm:$0xff]   ;;  %v3178_v38 = vld [vmem:[%s4497_s1 + $0x3c] ss:$24 sps:$4 sm:$0xff]  }
   0xa   :  { %2802 = vmatprep.subr.bf16.mxu1 %v3147_v11  ;;  %v3162_v26 = vld [vmem:[%s4496_s0 + $0x8] sm:$0xff]   ;;  %v3166_v30 = vld [vmem:[%s4496_s0] sm:$0xff]   ;;  %v243_v39 = vld [vmem:[%s4498_s2 + $0xf0] sm:$0xff] }
   0xb   :  { %2691 = vmatpush3.bf16.msra.mxu0 %v3146_v10  ;;  %v3163_v27 = vld [vmem:[%s4496_s0 + $0xc8] sm:$0xff]   ;;  %v3167_v31 = vld [vmem:[%s4496_s0 + $0xc0] sm:$0xff]   ;;  %397 = vperm.xlu0 %3135, %v243_v39   ;;  %v244_v41 = vld [vmem:[%s4498_s2 + $0xf8] sm:$0xff] }
   0xc   :  { %2692 = vmatprep.subr.bf16.mxu0 %v3149_v13  ;;  %v3164_v28 = vld [vmem:[%s4496_s0 + $0x88] sm:$0xff]   ;;  %v3168_v32 = vld [vmem:[%s4497_s1] ss:$24 sps:$4 sm:$0xff]   ;;  %v3170_v33 = vld [vmem:[%s4497_s1 + $0x4] ss:$24 sps:$4 sm:$0xff]  }
   0xd   :  { %2803 = vmatpush3.bf16.msra.mxu1 %v3148_v12  ;;  %v3171_v34 = vld [vmem:[%s4496_s0 + $0x80] sm:$0xff]   ;;  %1205 = vmatprep.mubr.bf16.mxu0 %v3170_v33  ;;  %v3175_v37 = vld [vmem:[%s4497_s1 + $0x34] ss:$24 sps:$4 sm:$0xff]   ;;  %v3177_v40 = vld [vmem:[%s4497_s1 + $0x30] ss:$24 sps:$4 sm:$0xff]  }
   0xe   :  { %2804 = vmatprep.subr.bf16.mxu1 %v3151_v15  ;;  %v3172_v35 = vld [vmem:[%s4497_s1 + $0x8] ss:$24 sps:$4 sm:$0xff]   ;;  %v3174_v36 = vld [vmem:[%s4497_s1 + $0xc] ss:$24 sps:$4 sm:$0xff]   ;;  %v227_v42 = vld [vmem:[%s4498_s2 + $0x70] sm:$0xff] }
   0xf   :  { %2693 = vmatpush3.bf16.msra.mxu0 %v3150_v14  ;;  %1366 = vmatprep.mubr.bf16.mxu1 %v3174_v36  ;;  %v3181_v43 = vld [vmem:[%s4497_s1 + $0x64] ss:$24 sps:$4 sm:$0xff]   ;;  %v3180_v45 = vld [vmem:[%s4497_s1 + $0x38] ss:$24 sps:$4 sm:$0xff]   ;;  %v242_v48 = vld [vmem:[%s4498_s2 + $0xe8] sm:$0xff] }
  0x10   :  { %2694 = vmatprep.subr.bf16.mxu0 %v3153_v17  ;;  %317 = vperm.xlu1 %3136, %v227_v42   ;;  %v228_v44 = vld [vmem:[%s4498_s2 + $0x78] sm:$0xff]  ;;  %v3184_v46 = vld [vmem:[%s4497_s1 + $0x6c] ss:$24 sps:$4 sm:$0xff]   ;;  %v3186_v53 = vld [vmem:[%s4497_s1 + $0x68] ss:$24 sps:$4 sm:$0xff]  }
  0x11   :  { %2805 = vmatpush3.bf16.msra.mxu1 %v3152_v16  ;;  %402 = vperm.xlu0 %3135, %v244_v41   ;;  %v241_v47 = vld [vmem:[%s4498_s2 + $0xe0] sm:$0xff]  ;;  %v3187_v51 = vld [vmem:[%s4497_s1 + $0x94] ss:$24 sps:$4 sm:$0xff]   ;;  %v240_v56 = vld [vmem:[%s4498_s2 + $0xd8] sm:$0xff] }
  0x12   :  { %2806 = vmatprep.subr.bf16.mxu1 %v3155_v19  ;;  %v3183_v49 = vld [vmem:[%s4497_s1 + $0x60] ss:$24 sps:$4 sm:$0xff]   ;;  %v226_v52 = vld [vmem:[%s4498_s2 + $0x68] sm:$0xff]  ;;  %v3190_v54 = vld [vmem:[%s4497_s1 + $0x9c] ss:$24 sps:$4 sm:$0xff]  }
  0x13   :  { %2695 = vmatpush3.bf16.msra.mxu0 %v3154_v18  ;;  %v225_v50 = vld [vmem:[%s4498_s2 + $0x60] sm:$0xff]  ;;  %v239_v55 = vld [vmem:[%s4498_s2 + $0xd0] sm:$0xff]  ;;  %v224_v60 = vld [vmem:[%s4498_s2 + $0x58] sm:$0xff] }
  0x14   :  { %2696 = vmatprep.subr.bf16.mxu0 %v3157_v21  ;;  %322 = vperm.xlu1 %3136, %v228_v44   ;;  %v3189_v57 = vld [vmem:[%s4497_s1 + $0x90] ss:$24 sps:$4 sm:$0xff]   ;;  %v3193_v59 = vld [vmem:[%s4497_s1 + $0xc4] ss:$24 sps:$4 sm:$0xff]   ;;  %v3195_v1 = vld [vmem:[%s4497_s1 + $0xc0] ss:$24 sps:$4 sm:$0xff]  }
  0x15   :  { %2807 = vmatpush3.bf16.msra.mxu1 %v3156_v20  ;;  %387 = vperm.xlu0 %3135, %v241_v47   ;;  %v223_v58 = vld [vmem:[%s4498_s2 + $0x50] sm:$0xff]  ;;  %v3196_v62 = vld [vmem:[%s4497_s1 + $0xcc] ss:$24 sps:$4 sm:$0xff]   ;;  %v3198_v5 = vld [vmem:[%s4497_s1 + $0xc8] ss:$24 sps:$4 sm:$0xff]  }
  0x16   :  { %2808 = vmatprep.subr.bf16.mxu1 %v3159_v23  ;;  %v3192_v61 = vld [vmem:[%s4497_s1 + $0x98] ss:$24 sps:$4 sm:$0xff]   ;;  %v237_v63 = vld [vmem:[%s4498_s2 + $0xc0] sm:$0xff]  ;;  %v238_v0 = vld [vmem:[%s4498_s2 + $0xc8] sm:$0xff] }
  0x17   :  { %2697 = vmatpush3.bf16.msra.mxu0 %v3158_v22  ;;  %v221_v2 = vld [vmem:[%s4498_s2 + $0x40] sm:$0xff]  ;;  %v3199_v3 = vld [vmem:[%s4497_s1 + $0xf4] ss:$24 sps:$4 sm:$0xff]   ;;  %v236_v8 = vld [vmem:[%s4498_s2 + $0xb8] sm:$0xff] }
  0x18   :  { %2698 = vmatprep.subr.bf16.mxu0 %v3161_v25  ;;  %392 = vperm.xlu1 %3136, %v242_v48   ;;  %v222_v4 = vld [vmem:[%s4498_s2 + $0x48] sm:$0xff]  ;;  %v3202_v6 = vld [vmem:[%s4497_s1 + $0xfc] ss:$24 sps:$4 sm:$0xff]   ;;  %v3204_v13 = vld [vmem:[%s4497_s1 + $0xf8] ss:$24 sps:$4 sm:$0xff]  }
  0x19   :  { %2809 = vmatpush3.bf16.msra.mxu1 %v3160_v24  ;;  %307 = vperm.xlu0 %3135, %v225_v50   ;;  %v235_v7 = vld [vmem:[%s4498_s2 + $0xb0] sm:$0xff]  ;;  %v3205_v11 = vld [vmem:[%s4497_s1 + $0x124] ss:$24 sps:$4 sm:$0xff]   ;;  %v234_v16 = vld [vmem:[%s4498_s2 + $0xa8] sm:$0xff] }
  0x1a   :  { %2810 = vmatprep.subr.bf16.mxu1 %v3163_v27  ;;  %v3201_v9 = vld [vmem:[%s4497_s1 + $0xf0] ss:$24 sps:$4 sm:$0xff]   ;;  %v220_v12 = vld [vmem:[%s4498_s2 + $0x38] sm:$0xff]  ;;  %v3208_v14 = vld [vmem:[%s4497_s1 + $0x12c] ss:$24 sps:$4 sm:$0xff]  }
  0x1b   :  { %2699 = vmatpush3.bf16.msra.mxu0 %v3162_v26  ;;  %v219_v10 = vld [vmem:[%s4498_s2 + $0x30] sm:$0xff]  ;;  %v233_v15 = vld [vmem:[%s4498_s2 + $0xa0] sm:$0xff]  ;;  %v3244_v17 = vld [vmem:[%s4496_s0 + $0x178] sm:$0xff]  }
  0x1c   :  { %2700 = vmatprep.subr.bf16.mxu0 %v3165_v29  ;;  %312 = vperm.xlu1 %3136, %v226_v52   ;;  %v3207_v18 = vld [vmem:[%s4497_s1 + $0x120] ss:$24 sps:$4 sm:$0xff]   ;;  %v3211_v20 = vld [vmem:[%s4497_s1 + $0x154] ss:$24 sps:$4 sm:$0xff]   ;;  %v3213_v29 = vld [vmem:[%s4497_s1 + $0x150] ss:$24 sps:$4 sm:$0xff]  }
  0x1d   :  { %2811 = vmatpush3.bf16.msra.mxu1 %v3164_v28  ;;  %377 = vperm.xlu0 %3135, %v239_v55   ;;  %v217_v19 = vld [vmem:[%s4498_s2 + $0x20] sm:$0xff]  ;;  %v3247_v21 = vld [vmem:[%s4496_s0 + $0x138] sm:$0xff]   ;;  %v218_v22 = vld [vmem:[%s4498_s2 + $0x28] sm:$0xff] }
  0x1e   :  { %2812 = vmatprep.subr.bf16.mxu1 %v3167_v31  ;;  %v3210_v23 = vld [vmem:[%s4497_s1 + $0x128] ss:$24 sps:$4 sm:$0xff]   ;;  %v3249_v24 = vld [vmem:[%s4496_s0 + $0x170] sm:$0xff]   ;;  %v216_v36 = vld [vmem:[%s4498_s2 + $0x18] sm:$0xff] }
  0x1f   :  { %2701 = vmatpush3.bf16.msra.mxu0 %v3166_v30  ;;  %v3250_v25 = vld [vmem:[%s4496_s0 + $0x130] sm:$0xff]   ;;  %v3254_v28 = vld [vmem:[%s4496_s0 + $0x168] sm:$0xff]   ;;  %v232_v30 = vld [vmem:[%s4498_s2 + $0x98] sm:$0xff] }
  0x20   :  { %382 = vperm.xlu1 %3136, %v240_v56   ;;  %2910 = vmatprep.subr.bf16.mxu0 %v3244_v17  ;;  %v3214_v26 = vld [vmem:[%s4497_s1 + $0x15c] ss:$24 sps:$4 sm:$0xff]   ;;  %v3257_v31 = vld [vmem:[%s4496_s0 + $0x128] sm:$0xff]   ;;  %v3259_v33 = vld [vmem:[%s4496_s0 + $0x160] sm:$0xff]  }
  0x21   :  { %2813 = vmatpush3.bf16.msra.mxu1 %v3171_v34  ;;  %297 = vperm.xlu0 %3135, %v223_v58   ;;  %v231_v27 = vld [vmem:[%s4498_s2 + $0x90] sm:$0xff]  ;;  %v229_v39 = vld [vmem:[%s4498_s2 + $0x80] sm:$0xff]  ;;  %v230_v41 = vld [vmem:[%s4498_s2 + $0x88] sm:$0xff] }
  0x22   :  { %1206 = vmatmul.mubr.bf16.vlgmr.msra.gmra.mxu0 %v3168_v32  ;;  %v3217_v32 = vld [vmem:[%s4497_s1 + $0x184] ss:$24 sps:$4 sm:$0xff]   ;;  %v215_v34 = vld [vmem:[%s4498_s2 + $0x10] sm:$0xff]  ;;  %v3219_v42 = vld [vmem:[%s4497_s1 + $0x180] ss:$24 sps:$4 sm:$0xff]  }
  0x23   :  { %1213 = vmatprep.mubr.bf16.mxu0 %v3175_v37  ;;  %2911 = vmatpush3.bf16.msra.mxu0 %v3247_v21  ;;  %v3220_v37 = vld [vmem:[%s4497_s1 + $0x18c] ss:$24 sps:$4 sm:$0xff]   ;;  %v3269_v44 = vld [vmem:[%s4496_s0 + $0x150] sm:$0xff]   ;;  %v3222_v47 = vld [vmem:[%s4497_s1 + $0x188] ss:$24 sps:$4 sm:$0xff]  }
  0x24   :  { %1367 = vmatmul.mubr.bf16.vlgmr.msra.gmra.mxu1 %v3172_v35  ;;  %302 = vperm.xlu1 %3136, %v224_v60   ;;  %v3216_v35 = vld [vmem:[%s4497_s1 + $0x158] ss:$24 sps:$4 sm:$0xff]   ;;  %v214_v48 = vld [vmem:[%s4498_s2 + $0x8] sm:$0xff]  ;;  %v3229_v55 = vld [vmem:[%s4497_s1 + $0x1e4] ss:$24 sps:$4 sm:$0xff]  }
  0x25   :  { %1374 = vmatprep.mubr.bf16.mxu1 %v3178_v38  ;;  %367 = vperm.xlu0 %3135, %v237_v63   ;;  %v3260_v38 = vld [vmem:[%s4496_s0 + $0x120] sm:$0xff]   ;;  %v3274_v50 = vld [vmem:[%s4496_s0 + $0x148] sm:$0xff]   ;;  %v1742_v21 = vld [vmem:[%s4499_s4 + $0x30] sm:$0xff] }
  0x26   :  { %2912 = vmatprep.subr.bf16.mxu0 %v3249_v24  ;;  %v3277_v52 = vld [vmem:[%s4496_s0 + $0x108] sm:$0xff]   ;;  %v3280_v56 = vld [vmem:[%s4496_s0 + $0x100] sm:$0xff]  }
  0x27   :  { %2913 = vmatpush3.bf16.msra.mxu0 %v3250_v25  ;;  %v3232_v58 = vld [vmem:[%s4497_s1 + $0x1ec] ss:$24 sps:$4 sm:$0xff]   ;;  %v3237_v63 = vld [vmem:[%s4497_s1 + $0x210] ss:$24 sps:$4 sm:$0xff]  }
  0x28   :  { %372 = vperm.xlu1 %3136, %v238_v0   ;;  %2914 = vmatprep.subr.bf16.mxu0 %v3254_v28  ;;  %v3235_v60 = vld [vmem:[%s4497_s1 + $0x214] ss:$24 sps:$4 sm:$0xff]   ;;  %v3241_v0 = vld [vmem:[%s4497_s1 + $0x244] ss:$24 sps:$4 sm:$0xff]  }
  0x29   :  { %287 = vperm.xlu0 %3135, %v221_v2   ;;  %v3245_v2 = vld [vmem:[%s4497_s1 + $0x24c] ss:$24 sps:$4 sm:$0xff]   ;;  %v1746_v28 = vld [vmem:[%s4499_s4 + $0x50] sm:$0xff] }
  0x2a   :  { %1214 = vmatmul.mubr.bf16.gmra.mxu0 %v3177_v40  ;;  %v3264_v40 = vld [vmem:[%s4496_s0 + $0x158] sm:$0xff]   ;;  %v1740_v17 = vld [vmem:[%s4499_s4 + $0x20] sm:$0xff]  ;;  %v3283_v24 = vld [vmem:[%s4497_s1 + $0x14] ss:$24 sps:$4 sm:$0xff]  }
  0x2b   :  { %1221 = vmatprep.mubr.bf16.mxu0 %v3181_v43  ;;  %2915 = vmatpush3.bf16.msra.mxu0 %v3257_v31  ;;  %v3267_v43 = vld [vmem:[%s4496_s0 + $0x118] sm:$0xff]   ;;  %v1744_v25 = vld [vmem:[%s4499_s4 + $0x40] sm:$0xff] }
  0x2c   :  { %1375 = vmatmul.mubr.bf16.gmra.mxu1 %v3180_v45  ;;  %292 = vperm.xlu1 %3136, %v222_v4   ;;  %v3223_v45 = vld [vmem:[%s4497_s1 + $0x1b4] ss:$24 sps:$4 sm:$0xff]   ;;  %v3284_v31 = vld [vmem:[%s4497_s1 + $0x44] ss:$24 sps:$4 sm:$0xff]  }
  0x2d   :  { %1382 = vmatprep.mubr.bf16.mxu1 %v3184_v46  ;;  %357 = vperm.xlu0 %3135, %v235_v7   ;;  %v213_v46 = vld [vmem:[%s4498_s2] sm:$0xff]  ;;  %v3251_v4 = vld [vmem:[%s4497_s1 + $0x274] ss:$24 sps:$4 sm:$0xff]   ;;  %v3253_v7 = vld [vmem:[%s4497_s1 + $0x270] ss:$24 sps:$4 sm:$0xff]  }
  0x2e   :  { %2916 = vmatprep.subr.bf16.mxu0 %v3259_v33  ;;  %v1748_v33 = vld [vmem:[%s4499_s4 + $0x60] sm:$0xff] }
  0x2f   :  { %2917 = vmatpush3.bf16.msra.mxu0 %v3260_v38  ;;  %v1751_v38 = vld [vmem:[%s4499_s4 + $0x78] sm:$0xff] }
  0x30   :  { %362 = vperm.xlu1 %3136, %v236_v8   ;;  %2918 = vmatprep.subr.bf16.mxu0 %v3264_v40  ;;  %v3261_v8 = vld [vmem:[%s4497_s1 + $0x2a4] ss:$24 sps:$4 sm:$0xff]  }
  0x31   :  { %277 = vperm.xlu0 %3135, %v219_v10   ;;  %v1737_v10 = vld [vmem:[%s4499_s4 + $0x8] sm:$0xff] }
  0x32   :  { %1222 = vmatmul.mubr.bf16.gmra.mxu0 %v3183_v49  ;;  %v3270_v49 = vld [vmem:[%s4496_s0 + $0x110] sm:$0xff]  }
  0x33   :  { %1229 = vmatprep.mubr.bf16.mxu0 %v3187_v51  ;;  %2919 = vmatpush3.bf16.msra.mxu0 %v3267_v43  ;;  %v3226_v51 = vld [vmem:[%s4497_s1 + $0x1bc] ss:$24 sps:$4 sm:$0xff]   ;;  %v1752_v43 = vld [vmem:[%s4499_s4 + $0x80] sm:$0xff] }
  0x34   :  { %1383 = vmatmul.mubr.bf16.gmra.mxu1 %v3186_v53  ;;  %282 = vperm.xlu1 %3136, %v220_v12   ;;  %v3279_v53 = vld [vmem:[%s4496_s0 + $0x140] sm:$0xff]  }
  0x35   :  { %1390 = vmatprep.mubr.bf16.mxu1 %v3190_v54  ;;  %347 = vperm.xlu0 %3135, %v233_v15   ;;  %v3225_v54 = vld [vmem:[%s4497_s1 + $0x1b0] ss:$24 sps:$4 sm:$0xff]   ;;  %v3265_v12 = vld [vmem:[%s4497_s1 + $0x2ac] ss:$24 sps:$4 sm:$0xff]   ;;  %v3263_v15 = vld [vmem:[%s4497_s1 + $0x2a0] ss:$24 sps:$4 sm:$0xff]  }
  0x36   :  { %2920 = vmatprep.subr.bf16.mxu0 %v3269_v44  ;;  %v1753_v44 = vld [vmem:[%s4499_s4 + $0x88] sm:$0xff] }
  0x37   :  { %2921 = vmatpush3.bf16.msra.mxu0 %v3270_v49  ;;  %v3289_v49 = vld [vmem:[%s4497_s1 + $0x70] ss:$24 sps:$4 sm:$0xff]  }
  0x38   :  { %352 = vperm.xlu1 %3136, %v234_v16   ;;  %2922 = vmatprep.subr.bf16.mxu0 %v3274_v50  ;;  %v3271_v16 = vld [vmem:[%s4497_s1 + $0x2d4] ss:$24 sps:$4 sm:$0xff]  }
  0x39   :  { %267 = vperm.xlu0 %3135, %v217_v19   ;;  %v3268_v19 = vld [vmem:[%s4497_s1 + $0x2a8] ss:$24 sps:$4 sm:$0xff]  }
  0x3a   :  { %1230 = vmatmul.mubr.bf16.gmra.mxu0 %v3189_v57  ;;  %v3228_v57 = vld [vmem:[%s4497_s1 + $0x1b8] ss:$24 sps:$4 sm:$0xff]  }
  0x3b   :  { %1237 = vmatprep.mubr.bf16.mxu0 %v3193_v59  ;;  %2923 = vmatpush3.bf16.msra.mxu0 %v3277_v52  ;;  %v3231_v59 = vld [vmem:[%s4497_s1 + $0x1e0] ss:$24 sps:$4 sm:$0xff]  }
  0x3c   :  { %1391 = vmatmul.mubr.bf16.gmra.mxu1 %v3192_v61  ;;  %272 = vperm.xlu1 %3136, %v218_v22   ;;  %v3234_v61 = vld [vmem:[%s4497_s1 + $0x1e8] ss:$24 sps:$4 sm:$0xff]   ;;  %v1743_v22 = vld [vmem:[%s4499_s4 + $0x38] sm:$0xff] }
  0x3d   :  { %1398 = vmatprep.mubr.bf16.mxu1 %v3196_v62  ;;  %337 = vperm.xlu0 %3135, %v231_v27   ;;  %v3238_v62 = vld [vmem:[%s4497_s1 + $0x21c] ss:$24 sps:$4 sm:$0xff]   ;;  %v3278_v27 = vld [vmem:[%s4497_s1 + $0x2d8] ss:$24 sps:$4 sm:$0xff]  }
  0x3e   :  { %2924 = vmatprep.subr.bf16.mxu0 %v3279_v53  ;;  %v1756_v53 = vld [vmem:[%s4499_s4 + $0xa0] sm:$0xff] }
  0x3f   :  { %2925 = vmatpush3.bf16.msra.mxu0 %v3280_v56 }
  0x40   :  { %342 = vperm.xlu1 %3136, %v232_v30   ;;  %v3281_v30 = vld [vmem:[%s4497_s1 + $0x10] ss:$24 sps:$4 sm:$0xff]  }
  0x41   :  { %257 = vperm.xlu0 %3135, %v215_v34   ;;  %v1749_v34 = vld [vmem:[%s4499_s4 + $0x68] sm:$0xff] }
  0x42   :  { %1238 = vmatmul.mubr.bf16.gmra.mxu0 %v3195_v1  ;;  %v3240_v1 = vld [vmem:[%s4497_s1 + $0x218] ss:$24 sps:$4 sm:$0xff]  }
  0x43   :  { %1245 = vmatprep.mubr.bf16.mxu0 %v3199_v3  ;;  %v3243_v3 = vld [vmem:[%s4497_s1 + $0x240] ss:$24 sps:$4 sm:$0xff]  }
  0x44   :  { %1399 = vmatmul.mubr.bf16.gmra.mxu1 %v3198_v5  ;;  %262 = vperm.xlu1 %3136, %v216_v36   ;;  %v3248_v5 = vld [vmem:[%s4497_s1 + $0x248] ss:$24 sps:$4 sm:$0xff]  }
  0x45   :  { %1406 = vmatprep.mubr.bf16.mxu1 %v3202_v6  ;;  %327 = vperm.xlu0 %3135, %v229_v39   ;;  %v3255_v6 = vld [vmem:[%s4497_s1 + $0x27c] ss:$24 sps:$4 sm:$0xff]   ;;  %v3286_v39 = vld [vmem:[%s4497_s1 + $0x40] ss:$24 sps:$4 sm:$0xff]  }
  0x48   :  { %332 = vperm.xlu1 %3136, %v230_v41   ;;  %v3287_v41 = vld [vmem:[%s4497_s1 + $0x74] ss:$24 sps:$4 sm:$0xff]  }
  0x49   :  { %247 = vperm.xlu0 %3135, %v213_v46  }
  0x4a   :  { %1246 = vmatmul.mubr.bf16.gmra.mxu0 %v3201_v9  ;;  %v1736_v9 = vld [vmem:[%s4499_s4] sm:$0xff] }
  0x4b   :  { %1253 = vmatprep.mubr.bf16.mxu0 %v3205_v11  ;;  %v3258_v11 = vld [vmem:[%s4497_s1 + $0x278] ss:$24 sps:$4 sm:$0xff]  }
  0x4c   :  { %1407 = vmatmul.mubr.bf16.gmra.mxu1 %v3204_v13  ;;  %252 = vperm.xlu1 %3136, %v214_v48   ;;  %v1738_v13 = vld [vmem:[%s4499_s4 + $0x10] sm:$0xff]  ;;  %v1755_v48 = vld [vmem:[%s4499_s4 + $0x98] sm:$0xff] }
  0x4d   :  { %1414 = vmatprep.mubr.bf16.mxu1 %v3208_v14  ;;  %1770 = vperm.xlu0 %3135, %v1736_v9   ;;  %v1739_v14 = vld [vmem:[%s4499_s4 + $0x18] sm:$0xff]  ;;  %v1764_v9 = vld [vmem:[%s4499_s4 + $0xe0] sm:$0xff] }
  0x50   :  { %1775 = vperm.xlu1 %3136, %v1737_v10   ;;  %v1765_v10 = vld [vmem:[%s4499_s4 + $0xe8] sm:$0xff] }
  0x51   :  { %1780 = vperm.xlu0 %3135, %v1738_v13   ;;  %v1766_v13 = vld [vmem:[%s4499_s4 + $0xf0] sm:$0xff] }
  0x52   :  { %1254 = vmatmul.mubr.bf16.gmra.mxu0 %v3207_v18  ;;  %v1741_v18 = vld [vmem:[%s4499_s4 + $0x28] sm:$0xff] }
  0x53   :  { %1261 = vmatprep.mubr.bf16.mxu0 %v3211_v20  ;;  %v3275_v20 = vld [vmem:[%s4497_s1 + $0x2dc] ss:$24 sps:$4 sm:$0xff]  }
  0x54   :  { %1415 = vmatmul.mubr.bf16.gmra.mxu1 %v3210_v23  ;;  %1785 = vperm.xlu1 %3136, %v1739_v14   ;;  %v3273_v23 = vld [vmem:[%s4497_s1 + $0x2d0] ss:$24 sps:$4 sm:$0xff]   ;;  %v1767_v14 = vld [vmem:[%s4499_s4 + $0xf8] sm:$0xff] }
  0x55   :  { %1422 = vmatprep.mubr.bf16.mxu1 %v3214_v26  ;;  %1790 = vperm.xlu0 %3135, %v1740_v17   ;;  %v1745_v26 = vld [vmem:[%s4499_s4 + $0x48] sm:$0xff] }
  0x56   :  { %v3299_v17 = vld [vmem:[%s4497_s1 + $0x134] ss:$24 sps:$4 sm:$0xff]  }
  0x58   :  { %1795 = vperm.xlu1 %3136, %v1741_v18  }
  0x59   :  { %1800 = vperm.xlu0 %3135, %v1742_v21   ;;  %v3301_v21 = vld [vmem:[%s4497_s1 + $0x130] ss:$24 sps:$4 sm:$0xff]  }
  0x5a   :  { %1262 = vmatmul.mubr.bf16.gmra.mxu0 %v3213_v29  ;;  %v1747_v29 = vld [vmem:[%s4499_s4 + $0x58] sm:$0xff] }
  0x5b   :  { %1269 = vmatprep.mubr.bf16.mxu0 %v3217_v32 }
  0x5c   :  { %1423 = vmatmul.mubr.bf16.gmra.mxu1 %v3216_v35  ;;  %1805 = vperm.xlu1 %3136, %v1743_v22   ;;  %v3302_v22 = vld [vmem:[%s4497_s1 + $0x164] ss:$24 sps:$4 sm:$0xff]  }
  0x5d   :  { %1430 = vmatprep.mubr.bf16.mxu1 %v3220_v37  ;;  %1810 = vperm.xlu0 %3135, %v1744_v25   ;;  %v1750_v37 = vld [vmem:[%s4499_s4 + $0x70] sm:$0xff]  ;;  %v3304_v25 = vld [vmem:[%s4497_s1 + $0x160] ss:$24 sps:$4 sm:$0xff]  }
  0x60   :  { %1815 = vperm.xlu1 %3136, %v1745_v26  }
  0x61   :  { %1820 = vperm.xlu0 %3135, %v1746_v28  }
  0x62   :  { %1270 = vmatmul.mubr.bf16.gmra.mxu0 %v3219_v42 }
  0x63   :  { %1277 = vmatprep.mubr.bf16.mxu0 %v3223_v45 }
  0x64   :  { %1431 = vmatmul.mubr.bf16.gmra.mxu1 %v3222_v47  ;;  %1825 = vperm.xlu1 %3136, %v1747_v29   ;;  %v1754_v47 = vld [vmem:[%s4499_s4 + $0x90] sm:$0xff] }
  0x65   :  { %1438 = vmatprep.mubr.bf16.mxu1 %v3226_v51  ;;  %1830 = vperm.xlu0 %3135, %v1748_v33   ;;  %v3290_v51 = vld [vmem:[%s4497_s1 + $0xa4] ss:$24 sps:$4 sm:$0xff]  }
  0x66   :  { %v3308_v33 = vld [vmem:[%s4497_s1 + $0x1c4] ss:$24 sps:$4 sm:$0xff]  }
  0x68   :  { %1835 = vperm.xlu1 %3136, %v1749_v34  }
  0x69   :  { %1840 = vperm.xlu0 %3135, %v1750_v37  }
  0x6a   :  { %1278 = vmatmul.mubr.bf16.gmra.mxu0 %v3225_v54  ;;  %v1757_v54 = vld [vmem:[%s4499_s4 + $0xa8] sm:$0xff] }
  0x6b   :  { %1285 = vmatprep.mubr.bf16.mxu0 %v3229_v55 }
  0x6c   :  { %1439 = vmatmul.mubr.bf16.gmra.mxu1 %v3228_v57  ;;  %1845 = vperm.xlu1 %3136, %v1751_v38   ;;  %v1758_v57 = vld [vmem:[%s4499_s4 + $0xb0] sm:$0xff] }
  0x6d   :  { %1446 = vmatprep.mubr.bf16.mxu1 %v3232_v58  ;;  %1850 = vperm.xlu0 %3135, %v1752_v43   ;;  %v1759_v58 = vld [vmem:[%s4499_s4 + $0xb8] sm:$0xff] }
  0x70   :  { %1855 = vperm.xlu1 %3136, %v1753_v44  }
  0x71   :  { %1860 = vperm.xlu0 %3135, %v1754_v47   ;;  %v3310_v47 = vld [vmem:[%s4497_s1 + $0x1c0] ss:$24 sps:$4 sm:$0xff]  }
  0x72   :  { %1286 = vmatmul.mubr.bf16.gmra.mxu0 %v3231_v59  ;;  %v3292_v59 = vld [vmem:[%s4497_s1 + $0xa0] ss:$24 sps:$4 sm:$0xff]  }
  0x73   :  { %1293 = vmatprep.mubr.bf16.mxu0 %v3235_v60 }
  0x74   :  { %1447 = vmatmul.mubr.bf16.gmra.mxu1 %v3234_v61  ;;  %1865 = vperm.xlu1 %3136, %v1755_v48   ;;  %v3293_v61 = vld [vmem:[%s4497_s1 + $0xd4] ss:$24 sps:$4 sm:$0xff]  }
  0x75   :  { %1454 = vmatprep.mubr.bf16.mxu1 %v3238_v62  ;;  %1870 = vperm.xlu0 %3135, %v1756_v53  }
  0x78   :  { %1875 = vperm.xlu1 %3136, %v1757_v54  }
  0x79   :  { %1880 = vperm.xlu0 %3135, %v1758_v57  }
  0x7a   :  { %1294 = vmatmul.mubr.bf16.gmra.mxu0 %v3237_v63  ;;  %v1760_v63 = vld [vmem:[%s4499_s4 + $0xc0] sm:$0xff] }
  0x7b   :  { %1301 = vmatprep.mubr.bf16.mxu0 %v3241_v0  ;;  %v1761_v0 = vld [vmem:[%s4499_s4 + $0xc8] sm:$0xff] }
  0x7c   :  { %1455 = vmatmul.mubr.bf16.gmra.mxu1 %v3240_v1  ;;  %1885 = vperm.xlu1 %3136, %v1759_v58  }
  0x7d   :  { %1462 = vmatprep.mubr.bf16.mxu1 %v3245_v2  ;;  %1890 = vperm.xlu0 %3135, %v1760_v63  }
  0x80   :  { %1895 = vperm.xlu1 %3136, %v1761_v0  }
  0x82   :  { %1302 = vmatmul.mubr.bf16.gmra.mxu0 %v3243_v3  ;;  %v1762_v3 = vld [vmem:[%s4499_s4 + $0xd0] sm:$0xff] }
  0x83   :  { %1309 = vmatprep.mubr.bf16.mxu0 %v3251_v4  ;;  %v1763_v4 = vld [vmem:[%s4499_s4 + $0xd8] sm:$0xff]  ;;  %1900 = vperm.xlu0 %3135, %v1762_v3  }
  0x84   :  { %1463 = vmatmul.mubr.bf16.gmra.mxu1 %v3248_v5  ;;  %v3295_v5 = vld [vmem:[%s4497_s1 + $0xd0] ss:$24 sps:$4 sm:$0xff]   ;;  %1905 = vperm.xlu1 %3136, %v1763_v4  }
  0x85   :  { %1470 = vmatprep.mubr.bf16.mxu1 %v3255_v6 }
  0x86   :  { %v3885_v32 = vpop.permute.xlu0 %397 }
  0x87   :  { %1910 = vperm.xlu0 %3135, %v1764_v9  }
  0x88   :  { %1915 = vperm.xlu1 %3136, %v1765_v10  }
  0x8a   :  { %1310 = vmatmul.mubr.bf16.gmra.mxu0 %v3253_v7  ;;  %v3296_v7 = vld [vmem:[%s4497_s1 + $0x104] ss:$24 sps:$4 sm:$0xff]  }
  0x8b   :  { %1317 = vmatprep.mubr.bf16.mxu0 %v3261_v8  ;;  %v3893_v35 = vpop.permute.xlu1 %317  ;;  %1920 = vperm.xlu0 %3135, %v1766_v13  }
  0x8c   :  { %1471 = vmatmul.mubr.bf16.gmra.mxu1 %v3258_v11  ;;  %v3895_v36 = vpop.permute.xlu0 %402  ;;  %1925 = vperm.xlu1 %3136, %v1767_v14   ;;  %v3313_v14 = vld [vmem:[%s4497_s1 + $0x1f0] ss:$24 sps:$4 sm:$0xff]  }
  0x8d   :  { %1478 = vmatprep.mubr.bf16.mxu1 %v3265_v12 }
  0x8f   :  { %v3906_v40 = vpop.permute.xlu1 %322 }
  0x90   :  { %v3911_v42 = vpop.permute.xlu0 %387 }
  0x92   :  { %1318 = vmatmul.mubr.bf16.gmra.mxu0 %v3263_v15  ;;  %v3298_v15 = vld [vmem:[%s4497_s1 + $0x100] ss:$24 sps:$4 sm:$0xff]  }
  0x93   :  { %1325 = vmatprep.mubr.bf16.mxu0 %v3271_v16  ;;  %v3919_v45 = vpop.permute.xlu1 %392 }
  0x94   :  { %1479 = vmatmul.mubr.bf16.gmra.mxu1 %v3268_v19  ;;  %v3921_v46 = vpop.permute.xlu0 %307 }
  0x95   :  { %1486 = vmatprep.mubr.bf16.mxu1 %v3275_v20 }
  0x97   :  { %v3932_v50 = vpop.permute.xlu1 %312 }
  0x98   :  { %v3937_v52 = vpop.permute.xlu0 %377 }
  0x9a   :  { %1326 = vmatmul.mubr.bf16.gmra.mxu0 %v3273_v23 }
  0x9b   :  { %1527 = vmatprep.mubr.bf16.mxu0 %v3283_v24  ;;  %v3945_v55 = vpop.permute.xlu1 %382 }
  0x9c   :  { %1487 = vmatmul.mubr.bf16.gmra.mxu1 %v3278_v27  ;;  %v3947_v56 = vpop.permute.xlu0 %297  ;;  %v3305_v27 = vld [vmem:[%s4497_s1 + $0x194] ss:$24 sps:$4 sm:$0xff]  }
  0x9f   :  { %v3958_v60 = vpop.permute.xlu1 %302 }
  0xa0   :  { %v3963_v62 = vpop.permute.xlu0 %367 }
  0xa2   :  { %1528 = vmatmul.mubr.bf16.vlgmr.msra.gmra.mxu0 %v3281_v30 }
  0xa3   :  { %1535 = vmatprep.mubr.bf16.mxu0 %v3284_v31  ;;  %v3971_v1 = vpop.permute.xlu1 %372  ;;  %v3307_v31 = vld [vmem:[%s4497_s1 + $0x190] ss:$24 sps:$4 sm:$0xff]  }
  0xa4   :  { %v3973_v2 = vpop.permute.xlu0 %287 }
  0xa7   :  { %v3984_v6 = vpop.permute.xlu1 %292 }
  0xa8   :  { %v3989_v8 = vpop.permute.xlu0 %357 }
  0xaa   :  { %1536 = vmatmul.mubr.bf16.gmra.mxu0 %v3286_v39 }
  0xab   :  { %1543 = vmatprep.mubr.bf16.mxu0 %v3287_v41  ;;  %v3997_v11 = vpop.permute.xlu1 %362 }
  0xac   :  { %v3999_v12 = vpop.permute.xlu0 %277 }
  0xaf   :  { %v4010_v16 = vpop.permute.xlu1 %282 }
  0xb0   :  { %v4015_v18 = vpop.permute.xlu0 %347 }
  0xb2   :  { %1544 = vmatmul.mubr.bf16.gmra.mxu0 %v3289_v49 }
  0xb3   :  { %1551 = vmatprep.mubr.bf16.mxu0 %v3290_v51  ;;  %v4017_v19 = vpop.permute.xlu1 %352  ;;  %v3311_v51 = vld [vmem:[%s4497_s1 + $0x1f4] ss:$24 sps:$4 sm:$0xff]  }
  0xb4   :  { %v4019_v20 = vpop.permute.xlu0 %267 }
  0xb7   :  { %v4027_v23 = vpop.permute.xlu1 %272 }
  0xb8   :  { %v4029_v24 = vpop.permute.xlu0 %337 }
  0xba   :  { %1552 = vmatmul.mubr.bf16.gmra.mxu0 %v3292_v59 }
  0xbb   :  { %1559 = vmatprep.mubr.bf16.mxu0 %v3293_v61  ;;  %v4034_v26 = vpop.permute.xlu1 %342 }
  0xbc   :  { %v258_v28 = vpop.permute.xlu0 %257 }
  0xbf   :  { %v263_v29 = vpop.permute.xlu1 %262 }
  0xc0   :  { %v4039_v30 = vpop.permute.xlu0 %327 }
  0xc2   :  { %1560 = vmatmul.mubr.bf16.gmra.mxu0 %v3295_v5 }
  0xc3   :  { %1567 = vmatprep.mubr.bf16.mxu0 %v3296_v7  ;;  %v4047_v37 = vpop.permute.xlu1 %332 }
  0xc4   :  { %v248_v39 = vpop.permute.xlu0 %247 }
  0xc7   :  { %v253_v57 = vpop.permute.xlu1 %252 }
  0xca   :  { %1568 = vmatmul.mubr.bf16.gmra.mxu0 %v3298_v15 }
  0xcb   :  { %1575 = vmatprep.mubr.bf16.mxu0 %v3299_v17 }
  0xd2   :  { %1576 = vmatmul.mubr.bf16.gmra.mxu0 %v3301_v21  ;;  %v3314_v21 = vld [vmem:[%s4497_s1 + $0x224] ss:$24 sps:$4 sm:$0xff]  }
  0xd3   :  { %1583 = vmatprep.mubr.bf16.mxu0 %v3302_v22 }
  0xda   :  { %1584 = vmatmul.mubr.bf16.gmra.mxu0 %v3304_v25 }
  0xdb   :  { %1591 = vmatprep.mubr.bf16.mxu0 %v3305_v27 }
  0xe2   :  { %v2702_v34 = vpop.f32.mrf.mxu0  ;;  %1592 = vmatmul.mubr.bf16.gmra.mxu0 %v3307_v31 }
  0xe3   :  { %1599 = vmatprep.mubr.bf16.mxu0 %v3308_v33 }
  0xe4   :  { %v2703_v38 = vpop.f32.mrf.mxu0  ;;  %v2814_v43 = vpop.f32.mrf.mxu1 }
  0xe5   :  { %v2704_v41 = vadd.f32 %v2703_v38, %v2702_v34 }
  0xe6   :  { %v2705_v44 = vpop.f32.mrf.mxu0  ;;  %v2815_v49 = vpop.f32.mrf.mxu1 }
  0xe7   :  { %v1208_v48 = vadd.f32 %v2704_v41, %v248_v39  ;;  %v2816_v53 = vadd.f32 %v2815_v49, %v2814_v43  ;;  %v3316_v49 = vld [vmem:[%s4497_s1 + $0x220] ss:$24 sps:$4 sm:$0xff]  }
  0xe8   :  { %v2706_v54 = vpop.f32.mrf.mxu0  ;;  %v2817_v59 = vpop.f32.mrf.mxu1 }
  0xe9   :  { %v2707_v58 = vadd.f32 %v2706_v54, %v2705_v44  ;;  %v4055_v61 = vadd.f32 %v2816_v53, %v1208_v48 }
  0xea   :  { %v2708_v63 = vpop.f32.mrf.mxu0  ;;  %1600 = vmatmul.mubr.bf16.gmra.mxu0 %v3310_v47  ;;  %v2818_v3 = vpop.f32.mrf.mxu1 }
  0xeb   :  { %v1211_v0 = vadd.f32 %v2707_v58, %v253_v57  ;;  %1607 = vmatprep.mubr.bf16.mxu0 %v3311_v51  ;;  %v2819_v4 = vadd.f32 %v2818_v3, %v2817_v59 }
  0xec   :  { %v2709_v5 = vpop.f32.mrf.mxu0  ;;  %v2820_v9 = vpop.f32.mrf.mxu1 }
  0xed   :  { %v2710_v7 = vadd.f32 %v2709_v5, %v2708_v63  ;;  %v4057_v10 = vadd.f32 %v2819_v4, %v1211_v0 }
  0xee   :  { %v2711_v13 = vpop.f32.mrf.mxu0  ;;  %v2821_v17 = vpop.f32.mrf.mxu1 }
  0xef   :  { %v1216_v15 = vadd.f32 %v2710_v7, %v258_v28  ;;  %v2822_v22 = vadd.f32 %v2821_v17, %v2820_v9 }
  0xf0   :  { %v2712_v25 = vpop.f32.mrf.mxu0  ;;  %v2823_v31 = vpop.f32.mrf.mxu1 }
  0xf1   :  { %v2713_v27 = vadd.f32 %v2712_v25, %v2711_v13  ;;  %v4065_v33 = vadd.f32 %v2822_v22, %v1216_v15  ;;  %v3317_v15 = vld [vmem:[%s4497_s1 + $0x250] ss:$24 sps:$4 sm:$0xff]  }
  0xf2   :  { %v2714_v34 = vpop.f32.mrf.mxu0  ;;  %1608 = vmatmul.mubr.bf16.gmra.mxu0 %v3313_v14  ;;  %v2824_v39 = vpop.f32.mrf.mxu1 }
  0xf3   :  { %v1219_v38 = vadd.f32 %v2713_v27, %v263_v29  ;;  %1615 = vmatprep.mubr.bf16.mxu0 %v3314_v21  ;;  %v2825_v41 = vadd.f32 %v2824_v39, %v2823_v31  ;;  %v3319_v29 = vld [vmem:[%s4497_s1 + $0x254] ss:$24 sps:$4 sm:$0xff]  }
  0xf4   :  { %v2715_v43 = vpop.f32.mrf.mxu0  ;;  %v2826_v28 = vpop.f32.mrf.mxu1 }
  0xf5   :  { %v2716_v44 = vadd.f32 %v2715_v43, %v2714_v34  ;;  %v4067_v47 = vadd.f32 %v2825_v41, %v1219_v38 }
  0xf6   :  { %v2717_v48 = vpop.f32.mrf.mxu0  ;;  %v2827_v53 = vpop.f32.mrf.mxu1 }
  0xf7   :  { %v1224_v51 = vadd.f32 %v2716_v44, %v4019_v20  ;;  %v2828_v54 = vadd.f32 %v2827_v53, %v2826_v28 }
  0xf8   :  { %v2718_v57 = vpop.f32.mrf.mxu0  ;;  %v2829_v59 = vpop.f32.mrf.mxu1 }
  0xf9   :  { %v2719_v58 = vadd.f32 %v2718_v57, %v2717_v48  ;;  %v4076_v63 = vadd.f32 %v2828_v54, %v1224_v51  ;;  %v3320_v51 = vld [vmem:[%s4497_s1 + $0x280] ss:$24 sps:$4 sm:$0xff]  }
  0xfa   :  { %v2720_v0 = vpop.f32.mrf.mxu0  ;;  %1616 = vmatmul.mubr.bf16.gmra.mxu0 %v3316_v49  ;;  %v2830_v4 = vpop.f32.mrf.mxu1 }
  0xfb   :  { %v1227_v3 = vadd.f32 %v2719_v58, %v4027_v23  ;;  %1623 = vmatprep.mubr.bf16.mxu0 %v3319_v29  ;;  %v2831_v5 = vadd.f32 %v2830_v4, %v2829_v59  ;;  %v3322_v23 = vld [vmem:[%s4497_s1 + $0x284] ss:$24 sps:$4 sm:$0xff]  }
  0xfc   :  { %v2721_v7 = vpop.f32.mrf.mxu0  ;;  %v2832_v9 = vpop.f32.mrf.mxu1 }
  0xfd   :  { %v2722_v20 = vadd.f32 %v2721_v7, %v2720_v0  ;;  %v4079_v13 = vadd.f32 %v2831_v5, %v1227_v3 }
  0xfe   :  { %v2723_v14 = vpop.f32.mrf.mxu0  ;;  %v2833_v21 = vpop.f32.mrf.mxu1 }
  0xff   :  { %v1232_v17 = vadd.f32 %v2722_v20, %v3999_v12  ;;  %v2834_v22 = vadd.f32 %v2833_v21, %v2832_v9 }
 0x100   :  { %v2724_v25 = vpop.f32.mrf.mxu0  ;;  %v2835_v31 = vpop.f32.mrf.mxu1 }
 0x101   :  { %v2725_v27 = vadd.f32 %v2724_v25, %v2723_v14  ;;  %v4088_v34 = vadd.f32 %v2834_v22, %v1232_v17  ;;  %v3323_v17 = vld [vmem:[%s4497_s1 + $0x2b0] ss:$24 sps:$4 sm:$0xff]  }
 0x102   :  { %v2726_v38 = vpop.f32.mrf.mxu0  ;;  %1624 = vmatmul.mubr.bf16.gmra.mxu0 %v3317_v15  ;;  %v2836_v41 = vpop.f32.mrf.mxu1 }
 0x103   :  { %v1235_v39 = vadd.f32 %v2725_v27, %v4010_v16  ;;  %1631 = vmatprep.mubr.bf16.mxu0 %v3322_v23  ;;  %v2837_v43 = vadd.f32 %v2836_v41, %v2835_v31  ;;  %v3325_v16 = vld [vmem:[%s4497_s1 + $0x2b4] ss:$24 sps:$4 sm:$0xff]  }
 0x104   :  { %v2727_v44 = vpop.f32.mrf.mxu0  ;;  %v2838_v28 = vpop.f32.mrf.mxu1 }
 0x105   :  { %v2728_v12 = vadd.f32 %v2727_v44, %v2726_v38  ;;  %v4091_v48 = vadd.f32 %v2837_v43, %v1235_v39 }
 0x106   :  { %v2729_v49 = vpop.f32.mrf.mxu0  ;;  %v2839_v29 = vpop.f32.mrf.mxu1 }
 0x107   :  { %v1240_v53 = vadd.f32 %v2728_v12, %v3973_v2  ;;  %v2840_v54 = vadd.f32 %v2839_v29, %v2838_v28 }
 0x108   :  { %v2730_v57 = vpop.f32.mrf.mxu0  ;;  %v2841_v59 = vpop.f32.mrf.mxu1 }
 0x109   :  { %v2731_v58 = vadd.f32 %v2730_v57, %v2729_v49  ;;  %v4100_v0 = vadd.f32 %v2840_v54, %v1240_v53  ;;  %v3326_v53 = vld [vmem:[%s4497_s1 + $0x2e0] ss:$24 sps:$4 sm:$0xff]  }
 0x10a   :  { %v2732_v3 = vpop.f32.mrf.mxu0  ;;  %1632 = vmatmul.mubr.bf16.gmra.mxu0 %v3320_v51  ;;  %v2842_v5 = vpop.f32.mrf.mxu1 }
 0x10b   :  { %v1243_v4 = vadd.f32 %v2731_v58, %v3984_v6  ;;  %1639 = vmatprep.mubr.bf16.mxu0 %v3325_v16  ;;  %v2843_v7 = vadd.f32 %v2842_v5, %v2841_v59  ;;  %v3328_v6 = vld [vmem:[%s4497_s1 + $0x2e4] ss:$24 sps:$4 sm:$0xff]  }
 0x10c   :  { %v2733_v20 = vpop.f32.mrf.mxu0  ;;  %v2844_v9 = vpop.f32.mrf.mxu1 }
 0x10d   :  { %v2734_v2 = vadd.f32 %v2733_v20, %v2732_v3  ;;  %v4103_v14 = vadd.f32 %v2843_v7, %v1243_v4 }
 0x10e   :  { %v2735_v15 = vpop.f32.mrf.mxu0  ;;  %v2845_v23 = vpop.f32.mrf.mxu1 }
 0x10f   :  { %v1248_v21 = vadd.f32 %v2734_v2, %v3947_v56  ;;  %v2846_v22 = vadd.f32 %v2845_v23, %v2844_v9 }
 0x110   :  { %v2736_v25 = vpop.f32.mrf.mxu0  ;;  %v2847_v31 = vpop.f32.mrf.mxu1 }
 0x111   :  { %v2737_v27 = vadd.f32 %v2736_v25, %v2735_v15  ;;  %v4112_v38 = vadd.f32 %v2846_v22, %v1248_v21 }
 0x112   :  { %v2738_v39 = vpop.f32.mrf.mxu0  ;;  %1640 = vmatmul.mubr.bf16.gmra.mxu0 %v3323_v17  ;;  %v2848_v43 = vpop.f32.mrf.mxu1 }
 0x113   :  { %v1251_v41 = vadd.f32 %v2737_v27, %v3958_v60  ;;  %1647 = vmatprep.mubr.bf16.mxu0 %v3328_v6  ;;  %v2849_v44 = vadd.f32 %v2848_v43, %v2847_v31 }
 0x114   :  { %v2739_v12 = vpop.f32.mrf.mxu0  ;;  %v2850_v28 = vpop.f32.mrf.mxu1 }
 0x115   :  { %v2740_v56 = vadd.f32 %v2739_v12, %v2738_v39  ;;  %v4115_v49 = vadd.f32 %v2849_v44, %v1251_v41 }
 0x116   :  { %v2741_v51 = vpop.f32.mrf.mxu0  ;;  %v2851_v16 = vpop.f32.mrf.mxu1 }
 0x117   :  { %v1256_v29 = vadd.f32 %v2740_v56, %v3921_v46  ;;  %v2852_v54 = vadd.f32 %v2851_v16, %v2850_v28 }
 0x118   :  { %v2742_v57 = vpop.f32.mrf.mxu0  ;;  %v2853_v60 = vpop.f32.mrf.mxu1 }
 0x119   :  { %v2743_v58 = vadd.f32 %v2742_v57, %v2741_v51  ;;  %v4121_v59 = vadd.f32 %v2852_v54, %v1256_v29 }
 0x11a   :  { %v2744_v3 = vpop.f32.mrf.mxu0  ;;  %1648 = vmatmul.mubr.bf16.gmra.mxu0 %v3326_v53  ;;  %v2854_v5 = vpop.f32.mrf.mxu1 }
 0x11b   :  { %v1259_v4 = vadd.f32 %v2743_v58, %v3932_v50  ;;  %v2855_v7 = vadd.f32 %v2854_v5, %v2853_v60 }
 0x11c   :  { %v2745_v20 = vpop.f32.mrf.mxu0  ;;  %v2856_v9 = vpop.f32.mrf.mxu1 }
 0x11d   :  { %v2746_v2 = vadd.f32 %v2745_v20, %v2744_v3  ;;  %v4124_v15 = vadd.f32 %v2855_v7, %v1259_v4 }
 0x11e   :  { %v2747_v17 = vpop.f32.mrf.mxu0  ;;  %v2857_v21 = vpop.f32.mrf.mxu1 }
 0x11f   :  { %v1264_v46 = vadd.f32 %v2746_v2, %v3893_v35  ;;  %v2858_v23 = vadd.f32 %v2857_v21, %v2856_v9 }
 0x120   :  { %v2748_v6 = vpop.f32.mrf.mxu0  ;;  %v2859_v25 = vpop.f32.mrf.mxu1 }
 0x121   :  { %v2749_v22 = vadd.f32 %v2748_v6, %v2747_v17  ;;  %v4127_v27 = vadd.f32 %v2858_v23, %v1264_v46 }
 0x122   :  { %v2750_v31 = vpop.f32.mrf.mxu0  ;;  %v2860_v39 = vpop.f32.mrf.mxu1 }
 0x123   :  { %v1267_v50 = vadd.f32 %v2749_v22, %v3906_v40  ;;  %v2861_v41 = vadd.f32 %v2860_v39, %v2859_v25 }
 0x124   :  { %v2751_v43 = vpop.f32.mrf.mxu0  ;;  %v2862_v12 = vpop.f32.mrf.mxu1 }
 0x125   :  { %v2752_v44 = vadd.f32 %v2751_v43, %v2750_v31  ;;  %v4130_v56 = vadd.f32 %v2861_v41, %v1267_v50 }
 0x126   :  { %v2753_v28 = vpop.f32.mrf.mxu0  ;;  %v2863_v51 = vpop.f32.mrf.mxu1 }
 0x127   :  { %v1272_v35 = vadd.f32 %v2752_v44, %v4039_v30  ;;  %v2864_v53 = vadd.f32 %v2863_v51, %v2862_v12 }
 0x128   :  { %v2754_v29 = vpop.f32.mrf.mxu0  ;;  %v2865_v54 = vpop.f32.mrf.mxu1 }
 0x129   :  { %v2755_v16 = vadd.f32 %v2754_v29, %v2753_v28  ;;  %v4133_v57 = vadd.f32 %v2864_v53, %v1272_v35 }
 0x12a   :  { %v2756_v58 = vpop.f32.mrf.mxu0  ;;  %v2866_v60 = vpop.f32.mrf.mxu1 }
 0x12b   :  { %v1275_v40 = vadd.f32 %v2755_v16, %v4047_v37  ;;  %v2867_v3 = vadd.f32 %v2866_v60, %v2865_v54 }
 0x12c   :  { %v2757_v4 = vpop.f32.mrf.mxu0  ;;  %v2868_v7 = vpop.f32.mrf.mxu1 }
 0x12d   :  { %v2758_v5 = vadd.f32 %v2757_v4, %v2756_v58  ;;  %v4136_v20 = vadd.f32 %v2867_v3, %v1275_v40 }
 0x12e   :  { %v2759_v2 = vpop.f32.mrf.mxu0  ;;  %v2869_v9 = vpop.f32.mrf.mxu1 }
 0x12f   :  { %v1280_v30 = vadd.f32 %v2758_v5, %v4029_v24  ;;  %v2870_v17 = vadd.f32 %v2869_v9, %v2868_v7 }
 0x130   :  { %v2760_v46 = vpop.f32.mrf.mxu0  ;;  %v2871_v23 = vpop.f32.mrf.mxu1 }
 0x131   :  { %v2761_v21 = vadd.f32 %v2760_v46, %v2759_v2  ;;  %v4139_v6 = vadd.f32 %v2870_v17, %v1280_v30 }
 0x132   :  { %v2762_v22 = vpop.f32.mrf.mxu0  ;;  %v2872_v25 = vpop.f32.mrf.mxu1 }
 0x133   :  { %v1283_v37 = vadd.f32 %v2761_v21, %v4034_v26  ;;  %v2873_v31 = vadd.f32 %v2872_v25, %v2871_v23 }
 0x134   :  { %v2763_v50 = vpop.f32.mrf.mxu0  ;;  %v2874_v41 = vpop.f32.mrf.mxu1 }
 0x135   :  { %v2764_v39 = vadd.f32 %v2763_v50, %v2762_v22  ;;  %v4142_v43 = vadd.f32 %v2873_v31, %v1283_v37 }
 0x136   :  { %v2765_v44 = vpop.f32.mrf.mxu0  ;;  %v2875_v12 = vpop.f32.mrf.mxu1 }
 0x137   :  { %v1288_v24 = vadd.f32 %v2764_v39, %v4015_v18  ;;  %v2876_v28 = vadd.f32 %v2875_v12, %v2874_v41 }
 0x138   :  { %v2766_v35 = vpop.f32.mrf.mxu0 }
 0x139   :  { %v4145_v51 = vadd.f32 %v2766_v35, %v2765_v44  ;;  %v4147_v53 = vadd.f32 %v2876_v28, %v1288_v24 }
 0x13a   :  { %v2768_v29 = vpop.f32.mrf.mxu0 }
 0x13c   :  { %v2769_v16 = vpop.f32.mrf.mxu0 }
 0x13d   :  { %v4149_v26 = vadd.f32 %v2769_v16, %v2768_v29 }
 0x13e   :  { %v2771_v54 = vpop.f32.mrf.mxu0 }
 0x140   :  { %v2772_v58 = vpop.f32.mrf.mxu0 }
 0x141   :  { %v4151_v40 = vadd.f32 %v2772_v58, %v2771_v54 }
 0x142   :  { %v2774_v60 = vpop.f32.mrf.mxu0 }
 0x144   :  { %v2775_v3 = vpop.f32.mrf.mxu0 }
 0x145   :  { %v4153_v4 = vadd.f32 %v2775_v3, %v2774_v60 }
 0x146   :  { %v2777_v18 = vpop.f32.mrf.mxu0 }
 0x148   :  { %v2778_v5 = vpop.f32.mrf.mxu0 }
 0x149   :  { %v4155_v7 = vadd.f32 %v2778_v5, %v2777_v18 }
 0x14a   :  { %v2780_v2 = vpop.f32.mrf.mxu0 }
 0x14c   :  { %v2781_v30 = vpop.f32.mrf.mxu0 }
 0x14d   :  { %v4157_v9 = vadd.f32 %v2781_v30, %v2780_v2 }
 0x14e   :  { %v2783_v17 = vpop.f32.mrf.mxu0 }
 0x150   :  { %v2784_v46 = vpop.f32.mrf.mxu0 }
 0x151   :  { %v4159_v21 = vadd.f32 %v2784_v46, %v2783_v17 }
 0x152   :  { %v2786_v23 = vpop.f32.mrf.mxu0 }
 0x154   :  { %v2787_v22 = vpop.f32.mrf.mxu0 }
 0x155   :  { %v4161_v37 = vadd.f32 %v2787_v22, %v2786_v23 }
 0x156   :  { %v2789_v25 = vpop.f32.mrf.mxu0 }
 0x158   :  { %v2790_v31 = vpop.f32.mrf.mxu0 }
 0x159   :  { %v4163_v50 = vadd.f32 %v2790_v31, %v2789_v25 }
 0x15a   :  { %v2792_v39 = vpop.f32.mrf.mxu0 }
 0x15c   :  { %v2793_v41 = vpop.f32.mrf.mxu0 }
 0x15d   :  { %v4165_v44 = vadd.f32 %v2793_v41, %v2792_v39 }
 0x15e   :  { %v2795_v24 = vpop.f32.mrf.mxu0 }
 0x160   :  { %v2796_v12 = vpop.f32.mrf.mxu0 }
 0x161   :  { %v4167_v28 = vadd.f32 %v2796_v12, %v2795_v24 }
 0x162   :  { %v2926_v35 = vpop.f32.mrf.mxu0 }
 0x164   :  { %v2927_v29 = vpop.f32.mrf.mxu0 }
 0x165   :  { %v2928_v16 = vadd.f32 %v2927_v29, %v2926_v35 }
 0x166   :  { %v2929_v54 = vpop.f32.mrf.mxu0 }
 0x167   :  { %v1530_v58 = vadd.f32 %v2928_v16, %v4055_v61 }
 0x168   :  { %v2930_v60 = vpop.f32.mrf.mxu0 }
 0x169   :  { %v2931_v3 = vadd.f32 %v2930_v60, %v2929_v54  ;;  %v1656_v30 = vmax.f32 %v1530_v58, 0.0 }
 0x16a   :  { %v2932_v18 = vpop.f32.mrf.mxu0 }
 0x16b   :  { %v1533_v5 = vadd.f32 %v2931_v3, %v4057_v10 }
 0x16c   :  { %v2933_v2 = vpop.f32.mrf.mxu0 }
 0x16d   :  { %v1657_v17 = vmax.f32 %v1533_v5, 0.0  ;;  %v2934_v46 = vadd.f32 %v2933_v2, %v2932_v18 }
 0x16e   :  { %v2935_v23 = vpop.f32.mrf.mxu0 }
 0x16f   :  { %v4171_v22 = vpack.c.bf16 %v1657_v17, %v1656_v30  ;;  %v1538_v25 = vadd.f32 %v2934_v46, %v4065_v33 }
 0x170   :  { %v2936_v31 = vpop.f32.mrf.mxu0 }
 0x171   :  { %v2937_v39 = vadd.f32 %v2936_v31, %v2935_v23  ;;  %v1658_v12 = vmax.f32 %v1538_v25, 0.0 }
 0x172   :  { %v2938_v41 = vpop.f32.mrf.mxu0 }
 0x173   :  { %v1541_v24 = vadd.f32 %v2937_v39, %v4067_v47 }
 0x174   :  { %v2939_v61 = vpop.f32.mrf.mxu0 }
 0x175   :  { %v1659_v35 = vmax.f32 %v1541_v24, 0.0  ;;  %v2940_v29 = vadd.f32 %v2939_v61, %v2938_v41 }
 0x176   :  { %v2941_v16 = vpop.f32.mrf.mxu0 }
 0x177   :  { %v4175_v10 = vpack.c.bf16 %v1659_v35, %v1658_v12  ;;  %v1546_v54 = vadd.f32 %v2940_v29, %v4076_v63  ;;  %v4183_v12 = vpop.f32.mrf.mxu1 }
 0x178   :  { %v2942_v58 = vpop.f32.mrf.mxu0 }
 0x179   :  { %v2943_v60 = vadd.f32 %v2942_v58, %v2941_v16  ;;  %v1660_v5 = vmax.f32 %v1546_v54, 0.0  ;;  %v4191_v58 = vpop.f32.mrf.mxu1 }
 0x17a   :  { %v2944_v3 = vpop.f32.mrf.mxu0 }
 0x17b   :  { %v1549_v18 = vadd.f32 %v2943_v60, %v4079_v13 }
 0x17c   :  { %v2945_v33 = vpop.f32.mrf.mxu0 }
 0x17d   :  { %v1661_v2 = vmax.f32 %v1549_v18, 0.0  ;;  %v2946_v30 = vadd.f32 %v2945_v33, %v2944_v3 }
 0x17e   :  { %v2947_v17 = vpop.f32.mrf.mxu0 }
 0x17f   :  { %v4179_v47 = vpack.c.bf16 %v1661_v2, %v1660_v5  ;;  %v1554_v46 = vadd.f32 %v2946_v30, %v4088_v34  ;;  %v3331_v34 = vld [vmem:[%s4500_s3 + $0x4] ss:$8 sps:$4 sm:$0xff]   ;;  %v4194_v2 = vpop.f32.mrf.mxu1 }
 0x180   :  { %v2948_v23 = vpop.f32.mrf.mxu0  ;;  %2120 = vmatprep.mubr.bf16.mxu1 %v3331_v34 }
 0x181   :  { %v2949_v25 = vadd.f32 %v2948_v23, %v2947_v17  ;;  %v1662_v41 = vmax.f32 %v1554_v46, 0.0 }
 0x182   :  { %v2950_v31 = vpop.f32.mrf.mxu0 }
 0x183   :  { %v1557_v39 = vadd.f32 %v2949_v25, %v4091_v48  ;;  %v4199_v25 = vpop.f32.mrf.mxu1 }
 0x184   :  { %v2951_v63 = vpop.f32.mrf.mxu0 }
 0x185   :  { %v1663_v24 = vmax.f32 %v1557_v39, 0.0  ;;  %v2952_v61 = vadd.f32 %v2951_v63, %v2950_v31 }
 0x186   :  { %v2953_v13 = vpop.f32.mrf.mxu0 }
 0x187   :  { %v4185_v35 = vpack.c.bf16 %v1663_v24, %v1662_v41  ;;  %v1562_v29 = vadd.f32 %v2952_v61, %v4100_v0  ;;  %v4202_v61 = vpop.f32.mrf.mxu1 }
 0x188   :  { %v2954_v16 = vpop.f32.mrf.mxu0 }
 0x189   :  { %v2955_v54 = vadd.f32 %v2954_v16, %v2953_v13  ;;  %v1664_v18 = vmax.f32 %v1562_v29, 0.0 }
 0x18a   :  { %v2956_v48 = vpop.f32.mrf.mxu0 }
 0x18b   :  { %v1565_v60 = vadd.f32 %v2955_v54, %v4103_v14  ;;  %v2884_v54 = vpop.f32.mrf.mxu1 }
 0x18c   :  { %v2957_v3 = vpop.f32.mrf.mxu0 }
 0x18d   :  { %v1665_v33 = vmax.f32 %v1565_v60, 0.0  ;;  %v2958_v5 = vadd.f32 %v2957_v3, %v2956_v48 }
 0x18e   :  { %v2959_v30 = vpop.f32.mrf.mxu0 }
 0x18f   :  { %v4196_v0 = vpack.c.bf16 %v1665_v33, %v1664_v18  ;;  %v1570_v17 = vadd.f32 %v2958_v5, %v4112_v38  ;;  %v4208_v5 = vpop.f32.mrf.mxu1 }
 0x190   :  { %v2960_v46 = vpop.f32.mrf.mxu0 }
 0x191   :  { %v2961_v23 = vadd.f32 %v2960_v46, %v2959_v30  ;;  %v1666_v14 = vmax.f32 %v1570_v17, 0.0 }
 0x192   :  { %v2962_v31 = vpop.f32.mrf.mxu0 }
 0x193   :  { %v1573_v39 = vadd.f32 %v2961_v23, %v4115_v49 }
 0x194   :  { %v2963_v63 = vpop.f32.mrf.mxu0 }
 0x195   :  { %v1667_v41 = vmax.f32 %v1573_v39, 0.0  ;;  %v2964_v24 = vadd.f32 %v2963_v63, %v2962_v31 }
 0x196   :  { %v2965_v13 = vpop.f32.mrf.mxu0 }
 0x197   :  { %v4204_v29 = vpack.c.bf16 %v1667_v41, %v1666_v14  ;;  %v1578_v16 = vadd.f32 %v2964_v24, %v4121_v59  ;;  %v4213_v59 = vpop.f32.mrf.mxu1 }
 0x198   :  { %v2966_v34 = vpop.f32.mrf.mxu0 }
 0x199   :  { %v2967_v38 = vadd.f32 %v2966_v34, %v2965_v13  ;;  %v1668_v18 = vmax.f32 %v1578_v16, 0.0  ;;  %v2889_v13 = vpop.f32.mrf.mxu1 }
 0x19a   :  { %v2968_v48 = vpop.f32.mrf.mxu0 }
 0x19b   :  { %v1581_v60 = vadd.f32 %v2967_v38, %v4124_v15 }
 0x19c   :  { %v2969_v3 = vpop.f32.mrf.mxu0 }
 0x19d   :  { %v1669_v49 = vmax.f32 %v1581_v60, 0.0  ;;  %v2970_v33 = vadd.f32 %v2969_v3, %v2968_v48 }
 0x19e   :  { %v2971_v30 = vpop.f32.mrf.mxu0 }
 0x19f   :  { %v4210_v17 = vpack.c.bf16 %v1669_v49, %v1668_v18  ;;  %v1586_v46 = vadd.f32 %v2970_v33, %v4127_v27  ;;  %v2890_v27 = vpop.f32.mrf.mxu1 }
 0x1a0   :  { %v2972_v23 = vpop.f32.mrf.mxu0 }
 0x1a1   :  { %v2973_v31 = vadd.f32 %v2972_v23, %v2971_v30  ;;  %v1670_v15 = vmax.f32 %v1586_v46, 0.0  ;;  %v4220_v23 = vpop.f32.mrf.mxu1 }
 0x1a2   :  { %v2974_v39 = vpop.f32.mrf.mxu0 }
 0x1a3   :  { %v1589_v63 = vadd.f32 %v2973_v31, %v4130_v56 }
 0x1a4   :  { %v2975_v14 = vpop.f32.mrf.mxu0 }
 0x1a5   :  { %v1671_v41 = vmax.f32 %v1589_v63, 0.0  ;;  %v2976_v24 = vadd.f32 %v2975_v14, %v2974_v39 }
 0x1a6   :  { %v2977_v16 = vpop.f32.mrf.mxu0 }
 0x1a7   :  { %v4216_v34 = vpack.c.bf16 %v1671_v41, %v1670_v15  ;;  %v1594_v38 = vadd.f32 %v2976_v24, %v4133_v57  ;;  %v2893_v57 = vpop.f32.mrf.mxu1 }
 0x1a8   :  { %v2978_v48 = vpop.f32.mrf.mxu0 }
 0x1a9   :  { %v2979_v60 = vadd.f32 %v2978_v48, %v2977_v16  ;;  %v1672_v33 = vmax.f32 %v1594_v38, 0.0  ;;  %v2879_v16 = vadd.f32 %v4191_v58, %v4183_v12  ;;  %v1299_v58 = vadd.f32 %v4151_v40, %v3997_v11 }
 0x1aa   :  { %v2980_v3 = vpop.f32.mrf.mxu0  ;;  %v1304_v11 = vadd.f32 %v4153_v4, %v3963_v62  ;;  %v2888_v40 = vadd.f32 %v4213_v59, %v4208_v5  ;;  %v1312_v59 = vadd.f32 %v4157_v9, %v3937_v52 }
 0x1ab   :  { %v1597_v18 = vadd.f32 %v2979_v60, %v4136_v20  ;;  %v1291_v20 = vadd.f32 %v4145_v51, %v4017_v19  ;;  %v1296_v19 = vadd.f32 %v4149_v26, %v3989_v8  ;;  %v2882_v51 = vadd.f32 %v4199_v25, %v4194_v2 }
 0x1ac   :  { %v2981_v49 = vpop.f32.mrf.mxu0 }
 0x1ad   :  { %v1673_v30 = vmax.f32 %v1597_v18, 0.0  ;;  %v2982_v56 = vadd.f32 %v2981_v49, %v2980_v3  ;;  %v2895_v3 = vpop.f32.mrf.mxu1 }
 0x1ae   :  { %v2983_v46 = vpop.f32.mrf.mxu0 }
 0x1af   :  { %v1602_v31 = vadd.f32 %v2982_v56, %v4139_v6  ;;  %v4223_v39 = vpack.c.bf16 %v1673_v30, %v1672_v33  ;;  %v1452_v30 = vadd.f32 %v2879_v16, %v1291_v20 }
 0x1b0   :  { %v2984_v63 = vpop.f32.mrf.mxu0 }
 0x1b1   :  { %v2985_v14 = vadd.f32 %v2984_v63, %v2983_v46  ;;  %v1674_v38 = vmax.f32 %v1602_v31, 0.0 }
 0x1b2   :  { %v2986_v15 = vpop.f32.mrf.mxu0 }
 0x1b3   :  { %v1605_v41 = vadd.f32 %v2985_v14, %v4142_v43  ;;  %v2896_v43 = vpop.f32.mrf.mxu1 }
 0x1b4   :  { %v2987_v24 = vpop.f32.mrf.mxu0 }
 0x1b5   :  { %v1675_v48 = vmax.f32 %v1605_v41, 0.0  ;;  %v2988_v60 = vadd.f32 %v2987_v24, %v2986_v15  ;;  %v2898_v41 = vpop.f32.mrf.mxu1  ;;  %v1457_v24 = vadd.f32 %v2882_v51, %v1296_v19  ;;  %v1465_v19 = vadd.f32 %v2888_v40, %v1304_v11 }
 0x1b6   :  { %v2989_v6 = vpop.f32.mrf.mxu0 }
 0x1b7   :  { %v1610_v18 = vadd.f32 %v2988_v60, %v4147_v53  ;;  %v4231_v49 = vpack.c.bf16 %v1675_v48, %v1674_v38  ;;  %v2885_v53 = vadd.f32 %v2884_v54, %v4202_v61  ;;  %v2899_v2 = vpop.f32.mrf.mxu1  ;;  %v1307_v54 = vadd.f32 %v4155_v7, %v3971_v1 }
 0x1b8   :  { %v2990_v33 = vpop.f32.mrf.mxu0  ;;  %v2894_v1 = vadd.f32 %v2893_v57, %v4220_v23  ;;  %v1320_v23 = vadd.f32 %v4161_v37, %v3911_v42  ;;  %v2900_v57 = vadd.f32 %v2899_v2, %v2898_v41  ;;  %v1328_v37 = vadd.f32 %v4165_v44, %v3885_v32 }
 0x1b9   :  { %v2991_v56 = vadd.f32 %v2990_v33, %v2989_v6  ;;  %v1676_v63 = vmax.f32 %v1610_v18, 0.0  ;;  %v1460_v8 = vadd.f32 %v2885_v53, %v1299_v58  ;;  %v2891_v6 = vadd.f32 %v2890_v27, %v2889_v13 }
 0x1ba   :  { %v2992_v46 = vpop.f32.mrf.mxu0  ;;  %v1315_v13 = vadd.f32 %v4159_v21, %v3945_v55  ;;  %v2897_v53 = vadd.f32 %v2896_v43, %v2895_v3  ;;  %v1323_v21 = vadd.f32 %v4163_v50, %v3919_v45  ;;  %v1331_v50 = vadd.f32 %v4167_v28, %v3895_v36  ;;  %v3329_v36 = vld [vmem:[%s4500_s3] ss:$8 sps:$4 sm:$0xff]   ;;  %v3332_v28 = vld [vmem:[%s4500_s3 + $0x14] ss:$8 sps:$4 sm:$0xff]  }
 0x1bb   :  { %v1613_v12 = vadd.f32 %v2991_v56, %v1452_v30  ;;  %v2901_v56 = vpop.f32.mrf.mxu1  ;;  %v1468_v58 = vadd.f32 %v2891_v6, %v1307_v54 }
 0x1bc   :  { %v2993_v31 = vpop.f32.mrf.mxu0 }
 0x1bd   :  { %v1677_v14 = vmax.f32 %v1613_v12, 0.0  ;;  %v2994_v15 = vadd.f32 %v2993_v31, %v2992_v46  ;;  %v2902_v31 = vpop.f32.mrf.mxu1 }
 0x1be   :  { %v2995_v20 = vpop.f32.mrf.mxu0  ;;  %v2903_v43 = vadd.f32 %v2902_v31, %v2901_v56 }
 0x1bf   :  { %v4240_v16 = vpack.c.bf16 %v1677_v14, %v1676_v63  ;;  %v1618_v26 = vadd.f32 %v2994_v15, %v1457_v24 }
 0x1c0   :  { %v2996_v38 = vpop.f32.mrf.mxu0 }
 0x1c1   :  { %v2997_v48 = vadd.f32 %v2996_v38, %v2995_v20  ;;  %v1678_v18 = vmax.f32 %v1618_v26, 0.0  ;;  %v2904_v20 = vpop.f32.mrf.mxu1  ;;  %v1473_v38 = vadd.f32 %v2894_v1, %v1312_v59 }
 0x1c2   :  { %v2998_v25 = vpop.f32.mrf.mxu0 }
 0x1c3   :  { %v1621_v61 = vadd.f32 %v2997_v48, %v1460_v8  ;;  %v1476_v48 = vadd.f32 %v2897_v53, %v1315_v13  ;;  %v2905_v52 = vpop.f32.mrf.mxu1 }
 0x1c4   :  { %v2999_v60 = vpop.f32.mrf.mxu0  ;;  %v2906_v41 = vadd.f32 %v2905_v52, %v2904_v20  ;;  %v3353_v20 = vld [vmem:[%s4500_s3 + $0x84] ss:$8 sps:$4 sm:$0xff]  }
 0x1c5   :  { %v1679_v33 = vmax.f32 %v1621_v61, 0.0  ;;  %v3000_v30 = vadd.f32 %v2999_v60, %v2998_v25  ;;  %v2907_v60 = vpop.f32.mrf.mxu1  ;;  %v3367_v52 = vld [vmem:[%s4500_s3 + $0xc4] ss:$8 sps:$4 sm:$0xff]  }
 0x1c6   :  { %v3001_v46 = vpop.f32.mrf.mxu0  ;;  %v1489_v59 = vadd.f32 %v2906_v41, %v1328_v37 }
 0x1c7   :  { %v4248_v51 = vpack.c.bf16 %v1679_v33, %v1678_v18  ;;  %v1626_v62 = vadd.f32 %v3000_v30, %v1465_v19  ;;  %v1481_v18 = vadd.f32 %v2900_v57, %v1320_v23  ;;  %v3370_v23 = vld [vmem:[%s4500_s3 + $0xd4] ss:$8 sps:$4 sm:$0xff]   ;;  %v3368_v57 = vld [vmem:[%s4500_s3 + $0xd0] ss:$8 sps:$4 sm:$0xff]  }
 0x1c8   :  { %v3002_v12 = vpop.f32.mrf.mxu0 }
 0x1c9   :  { %v3003_v4 = vadd.f32 %v3002_v12, %v3001_v46  ;;  %v1680_v63 = vmax.f32 %v1626_v62, 0.0  ;;  %v1484_v46 = vadd.f32 %v2903_v43, %v1323_v21  ;;  %v3371_v21 = vld [vmem:[%s4500_s3 + $0xe0] ss:$8 sps:$4 sm:$0xff]   ;;  %v3374_v43 = vld [vmem:[%s4500_s3 + $0xf0] ss:$8 sps:$4 sm:$0xff]  }
 0x1ca   :  { %v3004_v5 = vpop.f32.mrf.mxu0 }
 0x1cb   :  { %v1629_v7 = vadd.f32 %v3003_v4, %v1468_v58  ;;  %v2908_v58 = vpop.f32.mrf.mxu1 }
 0x1cc   :  { %v3005_v27 = vpop.f32.mrf.mxu0  ;;  %v2909_v56 = vadd.f32 %v2908_v58, %v2907_v60  ;;  %v1771_v60 = vpop.permute.xlu0 %1770 }
 0x1cd   :  { %v1681_v14 = vmax.f32 %v1629_v7, 0.0  ;;  %v3006_v15 = vadd.f32 %v3005_v27, %v3004_v5 }
 0x1ce   :  { %v3007_v24 = vpop.f32.mrf.mxu0  ;;  %v1492_v13 = vadd.f32 %v2909_v56, %v1331_v50 }
 0x1cf   :  { %v1700_v8 = vpack.c.bf16 %v1681_v14, %v1680_v63  ;;  %v1634_v25 = vadd.f32 %v3006_v15, %v1473_v38  ;;  %v3352_v15 = vld [vmem:[%s4500_s3 + $0x70] ss:$8 sps:$4 sm:$0xff]   ;;  %v3356_v38 = vld [vmem:[%s4500_s3 + $0x94] ss:$8 sps:$4 sm:$0xff]  }
 0x1d0   :  { %v3008_v26 = vpop.f32.mrf.mxu0  ;;  %v1781_v50 = vpop.permute.xlu0 %1780 }
 0x1d1   :  { %v3009_v11 = vadd.f32 %v3008_v26, %v3007_v24  ;;  %v1682_v40 = vmax.f32 %v1634_v25, 0.0  ;;  %v3355_v24 = vld [vmem:[%s4500_s3 + $0x80] ss:$8 sps:$4 sm:$0xff]   ;;  %v3359_v26 = vld [vmem:[%s4500_s3 + $0xa4] ss:$8 sps:$4 sm:$0xff]  }
 0x1d2   :  { %v3010_v9 = vpop.f32.mrf.mxu0  ;;  %v3362_v25 = vld [vmem:[%s4500_s3 + $0xb4] ss:$8 sps:$4 sm:$0xff]  }
 0x1d3   :  { %v1637_v55 = vadd.f32 %v3009_v11, %v1476_v48  ;;  %v3361_v48 = vld [vmem:[%s4500_s3 + $0xa0] ss:$8 sps:$4 sm:$0xff]   ;;  %v3364_v11 = vld [vmem:[%s4500_s3 + $0xb0] ss:$8 sps:$4 sm:$0xff]  }
 0x1d4   :  { %v3011_v3 = vpop.f32.mrf.mxu0 }
 0x1d5   :  { %v1683_v61 = vmax.f32 %v1637_v55, 0.0  ;;  %v3012_v54 = vadd.f32 %v3011_v3, %v3010_v9  ;;  %v3365_v9 = vld [vmem:[%s4500_s3 + $0xc0] ss:$8 sps:$4 sm:$0xff]   ;;  %v3373_v55 = vld [vmem:[%s4500_s3 + $0xe4] ss:$8 sps:$4 sm:$0xff]  }
 0x1d6   :  { %v3013_v6 = vpop.f32.mrf.mxu0  ;;  %v3376_v3 = vld [vmem:[%s4500_s3 + $0xf4] ss:$8 sps:$4 sm:$0xff]  }
 0x1d7   :  { %v1701_v33 = vpack.c.bf16 %v1683_v61, %v1682_v40  ;;  %v1642_v19 = vadd.f32 %v3012_v54, %v1481_v18 }
 0x1d8   :  { %v3014_v30 = vpop.f32.mrf.mxu0 }
 0x1d9   :  { %v3015_v12 = vadd.f32 %v3014_v30, %v3013_v6  ;;  %v1684_v62 = vmax.f32 %v1642_v19, 0.0  ;;  %v1776_v19 = vpop.permute.xlu1 %1775 }
 0x1da   :  { %v3016_v42 = vpop.f32.mrf.mxu0 }
 0x1db   :  { %v1645_v45 = vadd.f32 %v3015_v12, %v1484_v46 }
 0x1dc   :  { %v3017_v2 = vpop.f32.mrf.mxu0 }
 0x1dd   :  { %v1685_v4 = vmax.f32 %v1645_v45, 0.0  ;;  %v3018_v31 = vadd.f32 %v3017_v2, %v3016_v42 }
 0x1de   :  { %v3019_v5 = vpop.f32.mrf.mxu0 }
 0x1df   :  { %v1702_v1 = vpack.c.bf16 %v1685_v4, %v1684_v62  ;;  %v1650_v27 = vadd.f32 %v3018_v31, %v1489_v59  ;;  %v1786_v59 = vpop.permute.xlu1 %1785 }
 0x1e0   :  { %v3020_v7 = vpop.f32.mrf.mxu0 }
 0x1e1   :  { %v3021_v53 = vadd.f32 %v3020_v7, %v3019_v5  ;;  %v1686_v14 = vmax.f32 %v1650_v27, 0.0 }
 0x1e3   :  { %v1653_v63 = vadd.f32 %v3021_v53, %v1492_v13 }
 0x1e5   :  { %v1687_v32 = vmax.f32 %v1653_v63, 0.0 }
 0x1e7   :  { %v1703_v44 = vpack.c.bf16 %v1687_v32, %v1686_v14  ;;  %v1791_v14 = vpop.permute.xlu0 %1790 }
 0x1e9   :  { %3022 = vmatprep.subr.bf16.mxu1 %v1703_v44 }
 0x1ea   :  { %3023 = vmatpush3.bf16.msra.mxu1 %v4216_v34  ;;  %v3344_v34 = vld [vmem:[%s4500_s3 + $0x54] ss:$8 sps:$4 sm:$0xff]  }
 0x1eb   :  { %3024 = vmatprep.subr.bf16.mxu1 %v1702_v1 }
 0x1ee   :  { %3025 = vmatpush3.bf16.msra.mxu1 %v4210_v17  ;;  %v3343_v17 = vld [vmem:[%s4500_s3 + $0x40] ss:$8 sps:$4 sm:$0xff]  }
 0x1ef   :  { %3026 = vmatprep.subr.bf16.mxu1 %v1701_v33 }
 0x1f2   :  { %3027 = vmatpush3.bf16.msra.mxu1 %v4204_v29  ;;  %v3341_v29 = vld [vmem:[%s4500_s3 + $0x44] ss:$8 sps:$4 sm:$0xff]  }
 0x1f3   :  { %3028 = vmatprep.subr.bf16.mxu1 %v1700_v8  ;;  %v3358_v8 = vld [vmem:[%s4500_s3 + $0x90] ss:$8 sps:$4 sm:$0xff]  }
 0x1f6   :  { %3029 = vmatpush3.bf16.msra.mxu1 %v4196_v0  ;;  %v3340_v0 = vld [vmem:[%s4500_s3 + $0x30] ss:$8 sps:$4 sm:$0xff]  }
 0x1f7   :  { %3030 = vmatprep.subr.bf16.mxu1 %v4248_v51  ;;  %v3350_v51 = vld [vmem:[%s4500_s3 + $0x74] ss:$8 sps:$4 sm:$0xff]  }
 0x1fa   :  { %3031 = vmatpush3.bf16.msra.mxu1 %v4185_v35  ;;  %v3338_v35 = vld [vmem:[%s4500_s3 + $0x34] ss:$8 sps:$4 sm:$0xff]  }
 0x1fb   :  { %3032 = vmatprep.subr.bf16.mxu1 %v4240_v16  ;;  %v3349_v16 = vld [vmem:[%s4500_s3 + $0x60] ss:$8 sps:$4 sm:$0xff]  }
 0x1fe   :  { %3033 = vmatpush3.bf16.msra.mxu1 %v4179_v47  ;;  %v3334_v47 = vld [vmem:[%s4500_s3 + $0x10] ss:$8 sps:$4 sm:$0xff]  }
 0x1ff   :  { %3034 = vmatprep.subr.bf16.mxu1 %v4231_v49  ;;  %v3347_v49 = vld [vmem:[%s4500_s3 + $0x64] ss:$8 sps:$4 sm:$0xff]  }
 0x202   :  { %3035 = vmatpush3.bf16.msra.mxu1 %v4175_v10  ;;  %v3335_v10 = vld [vmem:[%s4500_s3 + $0x24] ss:$8 sps:$4 sm:$0xff]  }
 0x203   :  { %3036 = vmatprep.subr.bf16.mxu1 %v4223_v39  ;;  %v3346_v39 = vld [vmem:[%s4500_s3 + $0x50] ss:$8 sps:$4 sm:$0xff]  }
 0x206   :  { %3037 = vmatpush3.bf16.msra.mxu1 %v4171_v22  ;;  %v3337_v22 = vld [vmem:[%s4500_s3 + $0x20] ss:$8 sps:$4 sm:$0xff]  }
 0x209   :  { %2121 = vmatmul.mubr.bf16.vlgmr.msra.gmra.mxu1 %v3329_v36 }
 0x20a   :  { %2128 = vmatprep.mubr.bf16.mxu1 %v3332_v28 }
 0x211   :  { %2129 = vmatmul.mubr.bf16.gmra.mxu1 %v3334_v47 }
 0x212   :  { %2136 = vmatprep.mubr.bf16.mxu1 %v3335_v10 }
 0x219   :  { %2137 = vmatmul.mubr.bf16.gmra.mxu1 %v3337_v22  ;;  %v1796_v22 = vpop.permute.xlu1 %1795 }
 0x21a   :  { %2144 = vmatprep.mubr.bf16.mxu1 %v3338_v35 }
 0x221   :  { %2145 = vmatmul.mubr.bf16.gmra.mxu1 %v3340_v0 }
 0x222   :  { %2152 = vmatprep.mubr.bf16.mxu1 %v3341_v29 }
 0x229   :  { %2153 = vmatmul.mubr.bf16.gmra.mxu1 %v3343_v17 }
 0x22a   :  { %2160 = vmatprep.mubr.bf16.mxu1 %v3344_v34 }
 0x231   :  { %2161 = vmatmul.mubr.bf16.gmra.mxu1 %v3346_v39 }
 0x232   :  { %2168 = vmatprep.mubr.bf16.mxu1 %v3347_v49  ;;  %v1801_v49 = vpop.permute.xlu0 %1800 }
 0x239   :  { %2169 = vmatmul.mubr.bf16.gmra.mxu1 %v3349_v16 }
 0x23a   :  { %2176 = vmatprep.mubr.bf16.mxu1 %v3350_v51 }
 0x241   :  { %2177 = vmatmul.mubr.bf16.gmra.mxu1 %v3352_v15 }
 0x242   :  { %2184 = vmatprep.mubr.bf16.mxu1 %v3353_v20 }
 0x249   :  { %2185 = vmatmul.mubr.bf16.gmra.mxu1 %v3355_v24 }
 0x24a   :  { %2192 = vmatprep.mubr.bf16.mxu1 %v3356_v38 }
 0x251   :  { %2193 = vmatmul.mubr.bf16.gmra.mxu1 %v3358_v8  ;;  %v1806_v8 = vpop.permute.xlu1 %1805 }
 0x252   :  { %2200 = vmatprep.mubr.bf16.mxu1 %v3359_v26 }
 0x259   :  { %2201 = vmatmul.mubr.bf16.gmra.mxu1 %v3361_v48 }
 0x25a   :  { %2208 = vmatprep.mubr.bf16.mxu1 %v3362_v25 }
 0x261   :  { %2209 = vmatmul.mubr.bf16.gmra.mxu1 %v3364_v11 }
 0x262   :  { %2216 = vmatprep.mubr.bf16.mxu1 %v3367_v52 }
 0x269   :  { %2217 = vmatmul.mubr.bf16.gmra.mxu1 %v3365_v9 }
 0x26a   :  { %2224 = vmatprep.mubr.bf16.mxu1 %v3370_v23  ;;  %v1811_v23 = vpop.permute.xlu0 %1810 }
 0x271   :  { %2225 = vmatmul.mubr.bf16.gmra.mxu1 %v3368_v57 }
 0x272   :  { %2232 = vmatprep.mubr.bf16.mxu1 %v3373_v55 }
 0x279   :  { %2233 = vmatmul.mubr.bf16.gmra.mxu1 %v3371_v21 }
 0x27a   :  { %2240 = vmatprep.mubr.bf16.mxu1 %v3376_v3 }
 0x281   :  { %2241 = vmatmul.mubr.bf16.gmra.mxu1 %v3374_v43 }
 0x2c9   :  { %v3038_v40 = vpop.f32.mrf.mxu1 }
 0x2cb   :  { %v3039_v61 = vpop.f32.mrf.mxu1 }
 0x2cc   :  { %v3040_v54 = vadd.f32 %v3039_v61, %v3038_v40  ;;  %v1816_v61 = vpop.permute.xlu1 %1815 }
 0x2cd   :  { %v3041_v6 = vpop.f32.mrf.mxu1 }
 0x2ce   :  { %v2123_v18 = vadd.f32 %v3040_v54, %v1771_v60 }
 0x2cf   :  { %v3042_v33 = vpop.f32.mrf.mxu1 }
 0x2d0   :  { %v2249_v30 = vmax.f32 %v2123_v18, 0.0  ;;  %v3043_v46 = vadd.f32 %v3042_v33, %v3041_v6 }
 0x2d1   :  { %v3044_v12 = vpop.f32.mrf.mxu1 }
 0x2d2   :  { %v2654_v58 = vpack.c.bf16 %v2249_v30, %v2249_v30  ;;  %v2126_v42 = vadd.f32 %v3043_v46, %v1776_v19  ;;  %v1821_v46 = vpop.permute.xlu0 %1820 }
 0x2d3   :  { %v3045_v37 = vpop.f32.mrf.mxu1 }
 0x2d4   :  { %2410 = vst.msk [vmem:[%s4501_s5] sm:$0xf] %vm2409_vm0, %v2654_v58  ;;  %v2250_v41 = vmax.f32 %v2126_v42, 0.0  ;;  %v3046_v45 = vadd.f32 %v3045_v37, %v3044_v12 }
 0x2d5   :  { %v3047_v2 = vpop.f32.mrf.mxu1 }
 0x2d6   :  { %v2655_v56 = vpack.c.bf16 %v2250_v41, %v2250_v41  ;;  %v2131_v62 = vadd.f32 %v3046_v45, %v1781_v50  ;;  %v1826_v45 = vpop.permute.xlu1 %1825 }
 0x2d7   :  { %v3048_v4 = vpop.f32.mrf.mxu1 }
 0x2d8   :  { %2411 = vst.msk [vmem:[%s4501_s5 + $0x4] sm:$0xf] %vm2409_vm0, %v2655_v56  ;;  %v2251_v31 = vmax.f32 %v2131_v62, 0.0  ;;  %v3049_v5 = vadd.f32 %v3048_v4, %v3047_v2 }
 0x2d9   :  { %v3050_v1 = vpop.f32.mrf.mxu1 }
 0x2da   :  { %v2656_v7 = vpack.c.bf16 %v2251_v31, %v2251_v31  ;;  %v2134_v13 = vadd.f32 %v3049_v5, %v1786_v59  ;;  %v1831_v5 = vpop.permute.xlu0 %1830 }
 0x2db   :  { %v3051_v27 = vpop.f32.mrf.mxu1 }
 0x2dc   :  { %2412 = vst.msk [vmem:[%s4501_s5 + $0x8] sm:$0xf] %vm2409_vm0, %v2656_v7  ;;  %v2252_v53 = vmax.f32 %v2134_v13, 0.0  ;;  %v3052_v63 = vadd.f32 %v3051_v27, %v3050_v1 }
 0x2dd   :  { %v3053_v32 = vpop.f32.mrf.mxu1 }
 0x2de   :  { %v2657_v44 = vpack.c.bf16 %v2252_v53, %v2252_v53  ;;  %v2139_v36 = vadd.f32 %v3052_v63, %v1791_v14  ;;  %v1836_v63 = vpop.permute.xlu1 %1835 }
 0x2df   :  { %v3054_v28 = vpop.f32.mrf.mxu1 }
 0x2e0   :  { %2413 = vst.msk [vmem:[%s4501_s5 + $0xc] sm:$0xf] %vm2409_vm0, %v2657_v44  ;;  %v2253_v47 = vmax.f32 %v2139_v36, 0.0  ;;  %v3055_v10 = vadd.f32 %v3054_v28, %v3053_v32 }
 0x2e1   :  { %v3056_v35 = vpop.f32.mrf.mxu1 }
 0x2e2   :  { %v2658_v0 = vpack.c.bf16 %v2253_v47, %v2253_v47  ;;  %v2142_v29 = vadd.f32 %v3055_v10, %v1796_v22  ;;  %v1841_v10 = vpop.permute.xlu0 %1840 }
 0x2e3   :  { %v3057_v17 = vpop.f32.mrf.mxu1 }
 0x2e4   :  { %2414 = vst.msk [vmem:[%s4501_s5 + $0x10] sm:$0xf] %vm2409_vm0, %v2658_v0  ;;  %v2254_v34 = vmax.f32 %v2142_v29, 0.0  ;;  %v3058_v39 = vadd.f32 %v3057_v17, %v3056_v35 }
 0x2e5   :  { %v3059_v16 = vpop.f32.mrf.mxu1 }
 0x2e6   :  { %v2659_v51 = vpack.c.bf16 %v2254_v34, %v2254_v34  ;;  %v2147_v15 = vadd.f32 %v3058_v39, %v1801_v49  ;;  %v1846_v39 = vpop.permute.xlu1 %1845 }
 0x2e7   :  { %v3060_v20 = vpop.f32.mrf.mxu1 }
 0x2e8   :  { %2415 = vst.msk [vmem:[%s4501_s5 + $0x14] sm:$0xf] %vm2409_vm0, %v2659_v51  ;;  %v2255_v24 = vmax.f32 %v2147_v15, 0.0  ;;  %v3061_v38 = vadd.f32 %v3060_v20, %v3059_v16 }
 0x2e9   :  { %v3062_v26 = vpop.f32.mrf.mxu1 }
 0x2ea   :  { %v2660_v48 = vpack.c.bf16 %v2255_v24, %v2255_v24  ;;  %v2150_v25 = vadd.f32 %v3061_v38, %v1806_v8  ;;  %v1851_v38 = vpop.permute.xlu0 %1850 }
 0x2eb   :  { %v3063_v11 = vpop.f32.mrf.mxu1 }
 0x2ec   :  { %2416 = vst.msk [vmem:[%s4501_s5 + $0x18] sm:$0xf] %vm2409_vm0, %v2660_v48  ;;  %v2256_v52 = vmax.f32 %v2150_v25, 0.0  ;;  %v3064_v9 = vadd.f32 %v3063_v11, %v3062_v26 }
 0x2ed   :  { %v3065_v57 = vpop.f32.mrf.mxu1 }
 0x2ee   :  { %v2661_v55 = vpack.c.bf16 %v2256_v52, %v2256_v52  ;;  %v2155_v21 = vadd.f32 %v3064_v9, %v1811_v23  ;;  %v1856_v9 = vpop.permute.xlu1 %1855 }
 0x2ef   :  { %v3066_v3 = vpop.f32.mrf.mxu1 }
 0x2f0   :  { %2417 = vst.msk [vmem:[%s4501_s5 + $0x1c] sm:$0xf] %vm2409_vm0, %v2661_v55  ;;  %v2257_v43 = vmax.f32 %v2155_v21, 0.0  ;;  %v3067_v40 = vadd.f32 %v3066_v3, %v3065_v57 }
 0x2f1   :  { %v3068_v54 = vpop.f32.mrf.mxu1 }
 0x2f2   :  { %v2662_v60 = vpack.c.bf16 %v2257_v43, %v2257_v43  ;;  %v2158_v6 = vadd.f32 %v3067_v40, %v1816_v61  ;;  %v1861_v40 = vpop.permute.xlu0 %1860 }
 0x2f3   :  { %v3069_v18 = vpop.f32.mrf.mxu1 }
 0x2f4   :  { %2418 = vst.msk [vmem:[%s4501_s5 + $0x20] sm:$0xf] %vm2409_vm0, %v2662_v60  ;;  %v2258_v33 = vmax.f32 %v2158_v6, 0.0  ;;  %v3070_v30 = vadd.f32 %v3069_v18, %v3068_v54 }
 0x2f5   :  { %v3071_v19 = vpop.f32.mrf.mxu1 }
 0x2f6   :  { %v2663_v12 = vpack.c.bf16 %v2258_v33, %v2258_v33  ;;  %v2163_v58 = vadd.f32 %v3070_v30, %v1821_v46  ;;  %v1866_v30 = vpop.permute.xlu1 %1865 }
 0x2f7   :  { %v3072_v42 = vpop.f32.mrf.mxu1 }
 0x2f8   :  { %2419 = vst.msk [vmem:[%s4501_s5 + $0x24] sm:$0xf] %vm2409_vm0, %v2663_v12  ;;  %v2259_v37 = vmax.f32 %v2163_v58, 0.0  ;;  %v3073_v41 = vadd.f32 %v3072_v42, %v3071_v19 }
 0x2f9   :  { %v3074_v50 = vpop.f32.mrf.mxu1 }
 0x2fa   :  { %v2664_v2 = vpack.c.bf16 %v2259_v37, %v2259_v37  ;;  %v2166_v56 = vadd.f32 %v3073_v41, %v1826_v45  ;;  %v1871_v41 = vpop.permute.xlu0 %1870 }
 0x2fb   :  { %v3075_v62 = vpop.f32.mrf.mxu1 }
 0x2fc   :  { %2420 = vst.msk [vmem:[%s4501_s5 + $0x28] sm:$0xf] %vm2409_vm0, %v2664_v2  ;;  %v2260_v4 = vmax.f32 %v2166_v56, 0.0  ;;  %v3076_v31 = vadd.f32 %v3075_v62, %v3074_v50 }
 0x2fd   :  { %v3077_v59 = vpop.f32.mrf.mxu1 }
 0x2fe   :  { %v2665_v1 = vpack.c.bf16 %v2260_v4, %v2260_v4  ;;  %v2171_v7 = vadd.f32 %v3076_v31, %v1831_v5  ;;  %v1876_v31 = vpop.permute.xlu1 %1875 }
 0x2ff   :  { %v3078_v13 = vpop.f32.mrf.mxu1 }
 0x300   :  { %2421 = vst.msk [vmem:[%s4501_s5 + $0x2c] sm:$0xf] %vm2409_vm0, %v2665_v1  ;;  %v2261_v27 = vmax.f32 %v2171_v7, 0.0  ;;  %v3079_v53 = vadd.f32 %v3078_v13, %v3077_v59 }
 0x301   :  { %v3080_v14 = vpop.f32.mrf.mxu1 }
 0x302   :  { %v2666_v32 = vpack.c.bf16 %v2261_v27, %v2261_v27  ;;  %v2174_v44 = vadd.f32 %v3079_v53, %v1836_v63  ;;  %v1881_v53 = vpop.permute.xlu0 %1880 }
 0x303   :  { %v3081_v36 = vpop.f32.mrf.mxu1 }
 0x304   :  { %2422 = vst.msk [vmem:[%s4501_s5 + $0x30] sm:$0xf] %vm2409_vm0, %v2666_v32  ;;  %v2262_v28 = vmax.f32 %v2174_v44, 0.0  ;;  %v3082_v47 = vadd.f32 %v3081_v36, %v3080_v14 }
 0x305   :  { %v3083_v22 = vpop.f32.mrf.mxu1 }
 0x306   :  { %v2667_v35 = vpack.c.bf16 %v2262_v28, %v2262_v28  ;;  %v2179_v0 = vadd.f32 %v3082_v47, %v1841_v10  ;;  %v1886_v47 = vpop.permute.xlu1 %1885 }
 0x307   :  { %v3084_v29 = vpop.f32.mrf.mxu1 }
 0x308   :  { %2423 = vst.msk [vmem:[%s4501_s5 + $0x34] sm:$0xf] %vm2409_vm0, %v2667_v35  ;;  %v2263_v17 = vmax.f32 %v2179_v0, 0.0  ;;  %v3085_v34 = vadd.f32 %v3084_v29, %v3083_v22 }
 0x309   :  { %v3086_v49 = vpop.f32.mrf.mxu1 }
 0x30a   :  { %v2668_v16 = vpack.c.bf16 %v2263_v17, %v2263_v17  ;;  %v2182_v51 = vadd.f32 %v3085_v34, %v1846_v39  ;;  %v1891_v34 = vpop.permute.xlu0 %1890 }
 0x30b   :  { %v3087_v15 = vpop.f32.mrf.mxu1 }
 0x30c   :  { %2424 = vst.msk [vmem:[%s4501_s5 + $0x38] sm:$0xf] %vm2409_vm0, %v2668_v16  ;;  %v2264_v20 = vmax.f32 %v2182_v51, 0.0  ;;  %v3088_v24 = vadd.f32 %v3087_v15, %v3086_v49 }
 0x30d   :  { %v3089_v8 = vpop.f32.mrf.mxu1 }
 0x30e   :  { %v2669_v26 = vpack.c.bf16 %v2264_v20, %v2264_v20  ;;  %v2187_v48 = vadd.f32 %v3088_v24, %v1851_v38  ;;  %v1896_v24 = vpop.permute.xlu1 %1895 }
 0x30f   :  { %v3090_v25 = vpop.f32.mrf.mxu1 }
 0x310   :  { %2425 = vst.msk [vmem:[%s4501_s5 + $0x3c] sm:$0xf] %vm2409_vm0, %v2669_v26  ;;  %v2265_v11 = vmax.f32 %v2187_v48, 0.0  ;;  %v3091_v52 = vadd.f32 %v3090_v25, %v3089_v8 }
 0x311   :  { %v3092_v23 = vpop.f32.mrf.mxu1 }
 0x312   :  { %v2670_v57 = vpack.c.bf16 %v2265_v11, %v2265_v11  ;;  %v2190_v55 = vadd.f32 %v3091_v52, %v1856_v9  ;;  %v1901_v52 = vpop.permute.xlu0 %1900 }
 0x313   :  { %v3093_v21 = vpop.f32.mrf.mxu1 }
 0x314   :  { %2426 = vst.msk [vmem:[%s4501_s5 + $0x40] sm:$0xf] %vm2409_vm0, %v2670_v57  ;;  %v2266_v3 = vmax.f32 %v2190_v55, 0.0  ;;  %v3094_v43 = vadd.f32 %v3093_v21, %v3092_v23 }
 0x315   :  { %v3095_v61 = vpop.f32.mrf.mxu1 }
 0x316   :  { %v2671_v54 = vpack.c.bf16 %v2266_v3, %v2266_v3  ;;  %v2195_v60 = vadd.f32 %v3094_v43, %v1861_v40  ;;  %v1906_v43 = vpop.permute.xlu1 %1905 }
 0x317   :  { %v3096_v6 = vpop.f32.mrf.mxu1 }
 0x318   :  { %2427 = vst.msk [vmem:[%s4501_s5 + $0x44] sm:$0xf] %vm2409_vm0, %v2671_v54  ;;  %v2267_v18 = vmax.f32 %v2195_v60, 0.0  ;;  %v3097_v33 = vadd.f32 %v3096_v6, %v3095_v61 }
 0x319   :  { %v3098_v46 = vpop.f32.mrf.mxu1 }
 0x31a   :  { %v2672_v19 = vpack.c.bf16 %v2267_v18, %v2267_v18  ;;  %v2198_v12 = vadd.f32 %v3097_v33, %v1866_v30  ;;  %v1911_v33 = vpop.permute.xlu0 %1910 }
 0x31b   :  { %v3099_v58 = vpop.f32.mrf.mxu1 }
 0x31c   :  { %2428 = vst.msk [vmem:[%s4501_s5 + $0x48] sm:$0xf] %vm2409_vm0, %v2672_v19  ;;  %v2268_v42 = vmax.f32 %v2198_v12, 0.0  ;;  %v3100_v37 = vadd.f32 %v3099_v58, %v3098_v46 }
 0x31d   :  { %v3101_v45 = vpop.f32.mrf.mxu1 }
 0x31e   :  { %v2673_v50 = vpack.c.bf16 %v2268_v42, %v2268_v42  ;;  %v2203_v2 = vadd.f32 %v3100_v37, %v1871_v41  ;;  %v1916_v37 = vpop.permute.xlu1 %1915 }
 0x31f   :  { %v3102_v56 = vpop.f32.mrf.mxu1 }
 0x320   :  { %2429 = vst.msk [vmem:[%s4501_s5 + $0x4c] sm:$0xf] %vm2409_vm0, %v2673_v50  ;;  %v2269_v62 = vmax.f32 %v2203_v2, 0.0  ;;  %v3103_v4 = vadd.f32 %v3102_v56, %v3101_v45 }
 0x321   :  { %v3104_v5 = vpop.f32.mrf.mxu1 }
 0x322   :  { %v2674_v59 = vpack.c.bf16 %v2269_v62, %v2269_v62  ;;  %v2206_v1 = vadd.f32 %v3103_v4, %v1876_v31  ;;  %v1921_v4 = vpop.permute.xlu0 %1920 }
 0x323   :  { %v3105_v7 = vpop.f32.mrf.mxu1 }
 0x324   :  { %2430 = vst.msk [vmem:[%s4501_s5 + $0x50] sm:$0xf] %vm2409_vm0, %v2674_v59  ;;  %v2270_v13 = vmax.f32 %v2206_v1, 0.0  ;;  %v3106_v27 = vadd.f32 %v3105_v7, %v3104_v5 }
 0x325   :  { %v3107_v63 = vpop.f32.mrf.mxu1 }
 0x326   :  { %v2675_v14 = vpack.c.bf16 %v2270_v13, %v2270_v13  ;;  %v2211_v32 = vadd.f32 %v3106_v27, %v1881_v53  ;;  %v1926_v27 = vpop.permute.xlu1 %1925 }
 0x327   :  { %v3108_v44 = vpop.f32.mrf.mxu1 }
 0x328   :  { %2431 = vst.msk [vmem:[%s4501_s5 + $0x54] sm:$0xf] %vm2409_vm0, %v2675_v14  ;;  %v2271_v36 = vmax.f32 %v2211_v32, 0.0  ;;  %v3109_v28 = vadd.f32 %v3108_v44, %v3107_v63 }
 0x329   :  { %v3110_v10 = vpop.f32.mrf.mxu1 }
 0x32a   :  { %v2676_v22 = vpack.c.bf16 %v2271_v36, %v2271_v36  ;;  %v2214_v35 = vadd.f32 %v3109_v28, %v1886_v47 }
 0x32b   :  { %v3111_v0 = vpop.f32.mrf.mxu1 }
 0x32c   :  { %2432 = vst.msk [vmem:[%s4501_s5 + $0x58] sm:$0xf] %vm2409_vm0, %v2676_v22  ;;  %v2272_v29 = vmax.f32 %v2214_v35, 0.0  ;;  %v3112_v17 = vadd.f32 %v3111_v0, %v3110_v10 }
 0x32d   :  { %v3113_v39 = vpop.f32.mrf.mxu1 }
 0x32e   :  { %v2677_v49 = vpack.c.bf16 %v2272_v29, %v2272_v29  ;;  %v2219_v16 = vadd.f32 %v3112_v17, %v1891_v34 }
 0x32f   :  { %v3114_v51 = vpop.f32.mrf.mxu1 }
 0x330   :  { %2433 = vst.msk [vmem:[%s4501_s5 + $0x5c] sm:$0xf] %vm2409_vm0, %v2677_v49  ;;  %v2273_v15 = vmax.f32 %v2219_v16, 0.0  ;;  %v3115_v20 = vadd.f32 %v3114_v51, %v3113_v39 }
 0x331   :  { %v3116_v38 = vpop.f32.mrf.mxu1 }
 0x332   :  { %v2678_v8 = vpack.c.bf16 %v2273_v15, %v2273_v15  ;;  %v2222_v26 = vadd.f32 %v3115_v20, %v1896_v24 }
 0x333   :  { %v3117_v48 = vpop.f32.mrf.mxu1 }
 0x334   :  { %2434 = vst.msk [vmem:[%s4501_s5 + $0x60] sm:$0xf] %vm2409_vm0, %v2678_v8  ;;  %v2274_v25 = vmax.f32 %v2222_v26, 0.0  ;;  %v3118_v11 = vadd.f32 %v3117_v48, %v3116_v38 }
 0x335   :  { %v3119_v9 = vpop.f32.mrf.mxu1 }
 0x336   :  { %v2679_v23 = vpack.c.bf16 %v2274_v25, %v2274_v25  ;;  %v2227_v57 = vadd.f32 %v3118_v11, %v1901_v52 }
 0x337   :  { %v3120_v55 = vpop.f32.mrf.mxu1 }
 0x338   :  { %2435 = vst.msk [vmem:[%s4501_s5 + $0x64] sm:$0xf] %vm2409_vm0, %v2679_v23  ;;  %v2275_v21 = vmax.f32 %v2227_v57, 0.0  ;;  %v3121_v3 = vadd.f32 %v3120_v55, %v3119_v9 }
 0x339   :  { %v3122_v40 = vpop.f32.mrf.mxu1 }
 0x33a   :  { %v2680_v61 = vpack.c.bf16 %v2275_v21, %v2275_v21  ;;  %v2230_v54 = vadd.f32 %v3121_v3, %v1906_v43 }
 0x33b   :  { %v3123_v60 = vpop.f32.mrf.mxu1 }
 0x33c   :  { %2436 = vst.msk [vmem:[%s4501_s5 + $0x68] sm:$0xf] %vm2409_vm0, %v2680_v61  ;;  %v2276_v6 = vmax.f32 %v2230_v54, 0.0  ;;  %v3124_v18 = vadd.f32 %v3123_v60, %v3122_v40 }
 0x33d   :  { %v3125_v30 = vpop.f32.mrf.mxu1 }
 0x33e   :  { %v2681_v46 = vpack.c.bf16 %v2276_v6, %v2276_v6  ;;  %v2235_v19 = vadd.f32 %v3124_v18, %v1911_v33 }
 0x33f   :  { %v3126_v12 = vpop.f32.mrf.mxu1 }
 0x340   :  { %2437 = vst.msk [vmem:[%s4501_s5 + $0x6c] sm:$0xf] %vm2409_vm0, %v2681_v46  ;;  %v2277_v58 = vmax.f32 %v2235_v19, 0.0  ;;  %v3127_v42 = vadd.f32 %v3126_v12, %v3125_v30 }
 0x341   :  { %v3128_v41 = vpop.f32.mrf.mxu1 }
 0x342   :  { %v2682_v45 = vpack.c.bf16 %v2277_v58, %v2277_v58  ;;  %v2238_v50 = vadd.f32 %v3127_v42, %v1916_v37 }
 0x343   :  { %v3129_v2 = vpop.f32.mrf.mxu1 }
 0x344   :  { %2438 = vst.msk [vmem:[%s4501_s5 + $0x70] sm:$0xf] %vm2409_vm0, %v2682_v45  ;;  %v2278_v56 = vmax.f32 %v2238_v50, 0.0  ;;  %v3130_v62 = vadd.f32 %v3129_v2, %v3128_v41 }
 0x345   :  { %v3131_v31 = vpop.f32.mrf.mxu1 }
 0x346   :  { %v2683_v5 = vpack.c.bf16 %v2278_v56, %v2278_v56  ;;  %v2243_v59 = vadd.f32 %v3130_v62, %v1921_v4 }
 0x347   :  { %v3132_v1 = vpop.f32.mrf.mxu1 }
 0x348   :  { %2439 = vst.msk [vmem:[%s4501_s5 + $0x74] sm:$0xf] %vm2409_vm0, %v2683_v5  ;;  %v2279_v7 = vmax.f32 %v2243_v59, 0.0  ;;  %v3133_v13 = vadd.f32 %v3132_v1, %v3131_v31 }
 0x34a   :  { %v2684_v53 = vpack.c.bf16 %v2279_v7, %v2279_v7  ;;  %v2246_v63 = vadd.f32 %v3133_v13, %v1926_v27 }
 0x34c   :  { %2440 = vst.msk [vmem:[%s4501_s5 + $0x78] sm:$0xf] %vm2409_vm0, %v2684_v53  ;;  %v2280_v14 = vmax.f32 %v2246_v63, 0.0 }
 0x34e   :  { %v2685_v32 = vpack.c.bf16 %v2280_v14, %v2280_v14 }
 0x350   :  { %2441 = vst.msk [vmem:[%s4501_s5 + $0x7c] sm:$0xf] %vm2409_vm0, %v2685_v32 }

// kernel: neg.10
= control target key start
LH: loop header
LB: loop body
LE: loop exit
PB: predicated region body
PF: predicated region fallthrough
CT: control target
= control target key end

     0   :  { %s136_s0 = inlined_call_operand.vmem [shape: f32[2,64,32], index: 0, kind: input, shape index: {}]   ;;  %s137_s1 = inlined_call_operand.vmem [shape: f32[2,64,32], index: 1, kind: output, shape index: {}]  }
   0x1   :  { %v2_v0 = vld [vmem:[%s136_s0] sm:$0xff]  ;;  %v66_v2 = vld [vmem:[%s136_s0 + $0x8] sm:$0xff]  ;;  %v70_v7 = vld [vmem:[%s136_s0 + $0x10] sm:$0xff] }
   0x2   :  { %v64_v1 = vld [vmem:[%s136_s0 + $0x20] sm:$0xff]  ;;  %v5_v3 = vxor.u32 2147483648, %v2_v0  ;;  %v20_v5 = vxor.u32 2147483648, %v66_v2  ;;  %v68_v6 = vld [vmem:[%s136_s0 + $0x28] sm:$0xff]  ;;  %v72_v8 = vld [vmem:[%s136_s0 + $0x30] sm:$0xff]  ;;  %v36_v10 = vxor.u32 2147483648, %v70_v7 }
   0x3   :  { %v12_v4 = vxor.u32 2147483648, %v64_v1  ;;  %v28_v9 = vxor.u32 2147483648, %v68_v6  ;;  %v44_v11 = vxor.u32 2147483648, %v72_v8  ;;  %v74_v12 = vld [vmem:[%s136_s0 + $0x18] sm:$0xff] }
   0x4   :  { %v76_v13 = vld [vmem:[%s136_s0 + $0x38] sm:$0xff]  ;;  %7 = vst [vmem:[%s137_s1] sm:$0xff] %v5_v3  ;;  %67 = vst [vmem:[%s137_s1 + $0x8] sm:$0xff] %v20_v5  ;;  %v52_v14 = vxor.u32 2147483648, %v74_v12 }
   0x5   :  { %65 = vst [vmem:[%s137_s1 + $0x20] sm:$0xff] %v12_v4  ;;  %v60_v15 = vxor.u32 2147483648, %v76_v13  ;;  %69 = vst [vmem:[%s137_s1 + $0x28] sm:$0xff] %v28_v9 }
   0x6   :  { %71 = vst [vmem:[%s137_s1 + $0x10] sm:$0xff] %v36_v10  ;;  %73 = vst [vmem:[%s137_s1 + $0x30] sm:$0xff] %v44_v11 }
   0x7   :  { %75 = vst [vmem:[%s137_s1 + $0x18] sm:$0xff] %v52_v14  ;;  %77 = vst [vmem:[%s137_s1 + $0x38] sm:$0xff] %v60_v15 }

// kernel: a_call__.14
= control target key start
LH: loop header
LB: loop body
LE: loop exit
PB: predicated region body
PF: predicated region fallthrough
CT: control target
= control target key end

     0   :  { %v1968_v1 = vmov 0   ;;  %vm1464_vm0 = vcmask 519168   ;;  %s2600_s0 = inlined_call_operand.vmem [shape: bf16[384,64], index: 0, kind: input, shape index: {}]   ;;  %s2601_s1 = inlined_call_operand.vmem [shape: bf16[256,384], index: 1, kind: input, shape index: {}]   ;;  %s2602_s2 = inlined_call_operand.vmem [shape: f32[256,1], index: 2, kind: input, shape index: {}]   ;;  %s2603_s4 = inlined_call_operand.vmem [shape: f32[128,1], index: 4, kind: input, shape index: {}]   ;;  %s2604_s3 = inlined_call_operand.vmem [shape: bf16[128,256], index: 3, kind: input, shape index: {}]   ;;  %s2605_s5 = inlined_call_operand.vmem [shape: bf16[128,64], index: 5, kind: output, shape index: {}]  }
   0x1   :  { %v1856_v0 = vld [vmem:[%s2600_s0 + $0x78] sm:$0xff]   ;;  %1854 = vset.pattern.permute.xlu0 %v1968_v1  ;;  %1855 = vset.pattern.permute.xlu1 %v1968_v1  ;;  %v1858_v3 = vld [vmem:[%s2600_s0 + $0x70] sm:$0xff]   ;;  %v1861_v6 = vld [vmem:[%s2600_s0 + $0x68] sm:$0xff]  }
   0x2   :  { %v1857_v2 = vld [vmem:[%s2600_s0 + $0x38] sm:$0xff]   ;;  %1605 = vmatprep.subr.bf16.mxu0 %v1856_v0  ;;  %v1860_v5 = vld [vmem:[%s2600_s0 + $0x30] sm:$0xff]   ;;  %v1863_v8 = vld [vmem:[%s2600_s0 + $0x28] sm:$0xff]  }
   0x3   :  { %1606 = vmatpush3.bf16.msra.mxu0 %v1857_v2  ;;  %v1859_v4 = vld [vmem:[%s2600_s0 + $0xb8] sm:$0xff]   ;;  %v1862_v7 = vld [vmem:[%s2600_s0 + $0xb0] sm:$0xff]   ;;  %v1864_v9 = vld [vmem:[%s2600_s0 + $0x60] sm:$0xff]  }
   0x4   :  { %1607 = vmatprep.subr.bf16.mxu0 %v1858_v3  ;;  %1805 = vmatprep.subr.bf16.mxu1 %v1859_v4  ;;  %v1865_v10 = vld [vmem:[%s2600_s0 + $0xa8] sm:$0xff]   ;;  %v1866_v11 = vld [vmem:[%s2600_s0 + $0x20] sm:$0xff]   ;;  %v1867_v12 = vld [vmem:[%s2600_s0 + $0x58] sm:$0xff]  }
   0x5   :  { %1806 = vmatpush3.bf16.msra.mxu1 %v1859_v4  ;;  %v1868_v13 = vld [vmem:[%s2600_s0 + $0xa0] sm:$0xff]   ;;  %v1869_v14 = vld [vmem:[%s2600_s0 + $0x18] sm:$0xff]   ;;  %v1870_v16 = vld [vmem:[%s2600_s0 + $0x50] sm:$0xff]  }
   0x6   :  { %1807 = vmatprep.subr.bf16.mxu1 %v1862_v7  ;;  %v1871_v15 = vld [vmem:[%s2600_s0 + $0x98] sm:$0xff]   ;;  %v1872_v17 = vld [vmem:[%s2600_s0 + $0x10] sm:$0xff]   ;;  %v1873_v19 = vld [vmem:[%s2600_s0 + $0x48] sm:$0xff]  }
   0x7   :  { %1608 = vmatpush3.bf16.msra.mxu0 %v1860_v5  ;;  %v1874_v18 = vld [vmem:[%s2600_s0 + $0x90] sm:$0xff]   ;;  %v1875_v20 = vld [vmem:[%s2600_s0 + $0x8] sm:$0xff]   ;;  %v1876_v21 = vld [vmem:[%s2600_s0 + $0x40] sm:$0xff]  }
   0x8   :  { %1609 = vmatprep.subr.bf16.mxu0 %v1861_v6  ;;  %v1877_v22 = vld [vmem:[%s2600_s0 + $0x88] sm:$0xff]   ;;  %v1881_v23 = vld [vmem:[%s2601_s1 + $0x4] ss:$12 sps:$4 sm:$0xff]   ;;  %v164_v29 = vld [vmem:[%s2602_s2 + $0xf8] sm:$0xff] }
   0x9   :  { %1808 = vmatpush3.bf16.msra.mxu1 %v1862_v7  ;;  %v1878_v24 = vld [vmem:[%s2600_s0] sm:$0xff]   ;;  %757 = vmatprep.mubr.bf16.mxu0 %v1881_v23  ;;  %v1883_v25 = vld [vmem:[%s2601_s1 + $0x8] ss:$12 sps:$4 sm:$0xff]   ;;  %v148_v33 = vld [vmem:[%s2602_s2 + $0x78] sm:$0xff] }
   0xa   :  { %1809 = vmatprep.subr.bf16.mxu1 %v1865_v10  ;;  %v1882_v26 = vld [vmem:[%s2600_s0 + $0x80] sm:$0xff]   ;;  %1821 = vmatprep.mubr.bf16.mxu1 %v1883_v25  ;;  %v163_v27 = vld [vmem:[%s2602_s2 + $0xf0] sm:$0xff]  ;;  %v1885_v31 = vld [vmem:[%s2601_s1 + $0x1c] ss:$12 sps:$4 sm:$0xff]  }
   0xb   :  { %1610 = vmatpush3.bf16.msra.mxu0 %v1863_v8  ;;  %317 = vperm.xlu0 %1854, %v163_v27   ;;  %v1879_v28 = vld [vmem:[%s2601_s1] ss:$12 sps:$4 sm:$0xff]   ;;  %v147_v30 = vld [vmem:[%s2602_s2 + $0x70] sm:$0xff]  ;;  %v1891_v34 = vld [vmem:[%s2601_s1 + $0x38] ss:$12 sps:$4 sm:$0xff]  }
   0xc   :  { %1611 = vmatprep.subr.bf16.mxu0 %v1864_v9  ;;  %237 = vperm.xlu1 %1855, %v147_v30   ;;  %v1884_v32 = vld [vmem:[%s2601_s1 + $0x20] ss:$12 sps:$4 sm:$0xff]   ;;  %v1887_v36 = vld [vmem:[%s2601_s1 + $0x18] ss:$12 sps:$4 sm:$0xff]   ;;  %v1892_v40 = vld [vmem:[%s2601_s1 + $0x50] ss:$12 sps:$4 sm:$0xff]  }
   0xd   :  { %1810 = vmatpush3.bf16.msra.mxu1 %v1865_v10  ;;  %v161_v35 = vld [vmem:[%s2602_s2 + $0xe0] sm:$0xff]  ;;  %v162_v37 = vld [vmem:[%s2602_s2 + $0xe8] sm:$0xff]  ;;  %v159_v42 = vld [vmem:[%s2602_s2 + $0xd0] sm:$0xff] }
   0xe   :  { %1811 = vmatprep.subr.bf16.mxu1 %v1868_v13  ;;  %v145_v38 = vld [vmem:[%s2602_s2 + $0x60] sm:$0xff]  ;;  %v146_v41 = vld [vmem:[%s2602_s2 + $0x68] sm:$0xff]  ;;  %v1890_v44 = vld [vmem:[%s2601_s1 + $0x30] ss:$12 sps:$4 sm:$0xff]  }
   0xf   :  { %1612 = vmatpush3.bf16.msra.mxu0 %v1866_v11  ;;  %322 = vperm.xlu0 %1854, %v164_v29   ;;  %v1888_v39 = vld [vmem:[%s2601_s1 + $0x34] ss:$12 sps:$4 sm:$0xff]   ;;  %v160_v45 = vld [vmem:[%s2602_s2 + $0xd8] sm:$0xff]  ;;  %v158_v53 = vld [vmem:[%s2602_s2 + $0xc8] sm:$0xff] }
  0x10   :  { %1613 = vmatprep.subr.bf16.mxu0 %v1867_v12  ;;  %242 = vperm.xlu1 %1855, %v148_v33   ;;  %v1899_v43 = vld [vmem:[%s2601_s1 + $0x68] ss:$12 sps:$4 sm:$0xff]   ;;  %v1893_v47 = vld [vmem:[%s2601_s1 + $0x4c] ss:$12 sps:$4 sm:$0xff]   ;;  %v157_v50 = vld [vmem:[%s2602_s2 + $0xc0] sm:$0xff] }
  0x11   :  { %1812 = vmatpush3.bf16.msra.mxu1 %v1868_v13  ;;  %v143_v46 = vld [vmem:[%s2602_s2 + $0x50] sm:$0xff]  ;;  %v1900_v48 = vld [vmem:[%s2601_s1 + $0x80] ss:$12 sps:$4 sm:$0xff]   ;;  %v144_v49 = vld [vmem:[%s2602_s2 + $0x58] sm:$0xff] }
  0x12   :  { %1813 = vmatprep.subr.bf16.mxu1 %v1871_v15  ;;  %v1907_v51 = vld [vmem:[%s2601_s1 + $0x98] ss:$12 sps:$4 sm:$0xff]   ;;  %v1895_v52 = vld [vmem:[%s2601_s1 + $0x48] ss:$12 sps:$4 sm:$0xff]   ;;  %v1908_v58 = vld [vmem:[%s2601_s1 + $0xb0] ss:$12 sps:$4 sm:$0xff]  }
  0x13   :  { %1614 = vmatpush3.bf16.msra.mxu0 %v1869_v14  ;;  %307 = vperm.xlu0 %1854, %v161_v35   ;;  %v141_v54 = vld [vmem:[%s2602_s2 + $0x40] sm:$0xff]  ;;  %v142_v56 = vld [vmem:[%s2602_s2 + $0x48] sm:$0xff]  ;;  %v155_v57 = vld [vmem:[%s2602_s2 + $0xb0] sm:$0xff] }
  0x14   :  { %1615 = vmatprep.subr.bf16.mxu0 %v1870_v16  ;;  %312 = vperm.xlu1 %1855, %v162_v37   ;;  %v1896_v55 = vld [vmem:[%s2601_s1 + $0x64] ss:$12 sps:$4 sm:$0xff]   ;;  %v1915_v59 = vld [vmem:[%s2601_s1 + $0xc8] ss:$12 sps:$4 sm:$0xff]   ;;  %v156_v60 = vld [vmem:[%s2602_s2 + $0xb8] sm:$0xff] }
  0x15   :  { %1814 = vmatpush3.bf16.msra.mxu1 %v1871_v15  ;;  %v1898_v61 = vld [vmem:[%s2601_s1 + $0x60] ss:$12 sps:$4 sm:$0xff]   ;;  %v139_v62 = vld [vmem:[%s2602_s2 + $0x30] sm:$0xff]  ;;  %v1901_v63 = vld [vmem:[%s2601_s1 + $0x7c] ss:$12 sps:$4 sm:$0xff]  }
  0x16   :  { %1815 = vmatprep.subr.bf16.mxu1 %v1874_v18  ;;  %v140_v0 = vld [vmem:[%s2602_s2 + $0x38] sm:$0xff]  ;;  %v153_v1 = vld [vmem:[%s2602_s2 + $0xa0] sm:$0xff]  ;;  %v154_v5 = vld [vmem:[%s2602_s2 + $0xa8] sm:$0xff] }
  0x17   :  { %1616 = vmatpush3.bf16.msra.mxu0 %v1872_v17  ;;  %227 = vperm.xlu0 %1854, %v145_v38   ;;  %v1916_v2 = vld [vmem:[%s2601_s1 + $0xe0] ss:$12 sps:$4 sm:$0xff]   ;;  %v1923_v3 = vld [vmem:[%s2601_s1 + $0xf8] ss:$12 sps:$4 sm:$0xff]   ;;  %v1924_v9 = vld [vmem:[%s2601_s1 + $0x110] ss:$12 sps:$4 sm:$0xff]  }
  0x18   :  { %1617 = vmatprep.subr.bf16.mxu0 %v1873_v19  ;;  %232 = vperm.xlu1 %1855, %v146_v41   ;;  %v1903_v4 = vld [vmem:[%s2601_s1 + $0x78] ss:$12 sps:$4 sm:$0xff]   ;;  %v1904_v7 = vld [vmem:[%s2601_s1 + $0x94] ss:$12 sps:$4 sm:$0xff]   ;;  %v138_v8 = vld [vmem:[%s2602_s2 + $0x28] sm:$0xff] }
  0x19   :  { %1816 = vmatpush3.bf16.msra.mxu1 %v1874_v18  ;;  %v137_v6 = vld [vmem:[%s2602_s2 + $0x20] sm:$0xff]  ;;  %v151_v10 = vld [vmem:[%s2602_s2 + $0x90] sm:$0xff]  ;;  %v152_v12 = vld [vmem:[%s2602_s2 + $0x98] sm:$0xff] }
  0x1a   :  { %1817 = vmatprep.subr.bf16.mxu1 %v1877_v22  ;;  %v1931_v11 = vld [vmem:[%s2601_s1 + $0x128] ss:$12 sps:$4 sm:$0xff]   ;;  %v1906_v13 = vld [vmem:[%s2601_s1 + $0x90] ss:$12 sps:$4 sm:$0xff]   ;;  %v1909_v15 = vld [vmem:[%s2601_s1 + $0xac] ss:$12 sps:$4 sm:$0xff]  }
  0x1b   :  { %1618 = vmatpush3.bf16.msra.mxu0 %v1875_v20  ;;  %297 = vperm.xlu0 %1854, %v159_v42   ;;  %v135_v14 = vld [vmem:[%s2602_s2 + $0x10] sm:$0xff]  ;;  %v136_v16 = vld [vmem:[%s2602_s2 + $0x18] sm:$0xff]  ;;  %v1932_v17 = vld [vmem:[%s2601_s1 + $0x140] ss:$12 sps:$4 sm:$0xff]  }
  0x1c   :  { %1619 = vmatprep.subr.bf16.mxu0 %v1876_v21  ;;  %302 = vperm.xlu1 %1855, %v160_v45   ;;  %v149_v18 = vld [vmem:[%s2602_s2 + $0x80] sm:$0xff]  ;;  %v150_v20 = vld [vmem:[%s2602_s2 + $0x88] sm:$0xff]  ;;  %v1940_v25 = vld [vmem:[%s2601_s1 + $0x170] ss:$12 sps:$4 sm:$0xff]  }
  0x1d   :  { %1818 = vmatpush3.bf16.msra.mxu1 %v1877_v22  ;;  %v1939_v19 = vld [vmem:[%s2601_s1 + $0x158] ss:$12 sps:$4 sm:$0xff]   ;;  %v1911_v21 = vld [vmem:[%s2601_s1 + $0xa8] ss:$12 sps:$4 sm:$0xff]  }
  0x1e   :  { %1819 = vmatprep.subr.bf16.mxu1 %v1882_v26  ;;  %v133_v22 = vld [vmem:[%s2602_s2] sm:$0xff]  ;;  %v1112_v27 = vld [vmem:[%s2603_s4 + $0x8] sm:$0xff]  ;;  %v1113_v29 = vld [vmem:[%s2603_s4 + $0x10] sm:$0xff] }
  0x1f   :  { %1620 = vmatpush3.bf16.msra.mxu0 %v1878_v24  ;;  %217 = vperm.xlu0 %1854, %v143_v46   ;;  %v1912_v23 = vld [vmem:[%s2601_s1 + $0xc4] ss:$12 sps:$4 sm:$0xff]   ;;  %v134_v24 = vld [vmem:[%s2602_s2 + $0x8] sm:$0xff]  ;;  %v1118_v37 = vld [vmem:[%s2603_s4 + $0x38] sm:$0xff] }
  0x20   :  { %222 = vperm.xlu1 %1855, %v144_v49   ;;  %v1917_v30 = vld [vmem:[%s2601_s1 + $0xdc] ss:$12 sps:$4 sm:$0xff]   ;;  %v1117_v35 = vld [vmem:[%s2603_s4 + $0x30] sm:$0xff]  ;;  %v1119_v38 = vld [vmem:[%s2603_s4 + $0x40] sm:$0xff] }
  0x21   :  { %1820 = vmatpush3.bf16.msra.mxu1 %v1882_v26  ;;  %v1111_v26 = vld [vmem:[%s2603_s4] sm:$0xff]  ;;  %v1116_v33 = vld [vmem:[%s2603_s4 + $0x28] sm:$0xff]  ;;  %v1121_v41 = vld [vmem:[%s2603_s4 + $0x50] sm:$0xff] }
  0x22   :  { %758 = vmatmul.mubr.bf16.vlgmr.msra.gmra.mxu0 %v1879_v28  ;;  %v1914_v28 = vld [vmem:[%s2601_s1 + $0xc0] ss:$12 sps:$4 sm:$0xff]   ;;  %v1927_v46 = vld [vmem:[%s2601_s1 + $0x108] ss:$12 sps:$4 sm:$0xff]   ;;  %v1126_v49 = vld [vmem:[%s2603_s4 + $0x78] sm:$0xff] }
  0x23   :  { %765 = vmatprep.mubr.bf16.mxu0 %v1885_v31  ;;  %287 = vperm.xlu0 %1854, %v157_v50   ;;  %v1114_v31 = vld [vmem:[%s2603_s4 + $0x18] sm:$0xff]  ;;  %v1124_v45 = vld [vmem:[%s2603_s4 + $0x68] sm:$0xff] }
  0x24   :  { %1822 = vmatmul.mubr.bf16.vlgmr.msra.gmra.mxu1 %v1884_v32  ;;  %292 = vperm.xlu1 %1855, %v158_v53   ;;  %v1115_v32 = vld [vmem:[%s2603_s4 + $0x20] sm:$0xff]  ;;  %v1925_v42 = vld [vmem:[%s2601_s1 + $0x10c] ss:$12 sps:$4 sm:$0xff]  }
  0x25   :  { %1825 = vmatprep.mubr.bf16.mxu1 %v1891_v34  ;;  %v1919_v34 = vld [vmem:[%s2601_s1 + $0xd8] ss:$12 sps:$4 sm:$0xff]   ;;  %v1930_v50 = vld [vmem:[%s2601_s1 + $0x120] ss:$12 sps:$4 sm:$0xff]  }
  0x26   :  { %v1936_v53 = vld [vmem:[%s2601_s1 + $0x154] ss:$12 sps:$4 sm:$0xff]  }
  0x27   :  { %207 = vperm.xlu0 %1854, %v141_v54   ;;  %v1938_v54 = vld [vmem:[%s2601_s1 + $0x150] ss:$12 sps:$4 sm:$0xff]  }
  0x28   :  { %212 = vperm.xlu1 %1855, %v142_v56   ;;  %v1943_v56 = vld [vmem:[%s2601_s1 + $0x168] ss:$12 sps:$4 sm:$0xff]  }
  0x2a   :  { %766 = vmatmul.mubr.bf16.gmra.mxu0 %v1887_v36  ;;  %v1920_v36 = vld [vmem:[%s2601_s1 + $0xf4] ss:$12 sps:$4 sm:$0xff]  }
  0x2b   :  { %773 = vmatprep.mubr.bf16.mxu0 %v1888_v39  ;;  %277 = vperm.xlu0 %1854, %v155_v57   ;;  %v1120_v39 = vld [vmem:[%s2603_s4 + $0x48] sm:$0xff] }
  0x2c   :  { %1826 = vmatmul.mubr.bf16.gmra.mxu1 %v1892_v40  ;;  %282 = vperm.xlu1 %1855, %v156_v60   ;;  %v1922_v40 = vld [vmem:[%s2601_s1 + $0xf0] ss:$12 sps:$4 sm:$0xff]  }
  0x2d   :  { %1829 = vmatprep.mubr.bf16.mxu1 %v1899_v43  ;;  %v1122_v43 = vld [vmem:[%s2603_s4 + $0x58] sm:$0xff] }
  0x2f   :  { %197 = vperm.xlu0 %1854, %v139_v62  }
  0x30   :  { %202 = vperm.xlu1 %1855, %v140_v0  }
  0x32   :  { %774 = vmatmul.mubr.bf16.gmra.mxu0 %v1890_v44  ;;  %v1123_v44 = vld [vmem:[%s2603_s4 + $0x60] sm:$0xff] }
  0x33   :  { %781 = vmatprep.mubr.bf16.mxu0 %v1893_v47  ;;  %267 = vperm.xlu0 %1854, %v153_v1   ;;  %v1125_v47 = vld [vmem:[%s2603_s4 + $0x70] sm:$0xff] }
  0x34   :  { %1830 = vmatmul.mubr.bf16.gmra.mxu1 %v1900_v48  ;;  %272 = vperm.xlu1 %1855, %v154_v5   ;;  %v1928_v48 = vld [vmem:[%s2601_s1 + $0x124] ss:$12 sps:$4 sm:$0xff]  }
  0x35   :  { %1833 = vmatprep.mubr.bf16.mxu1 %v1907_v51  ;;  %v1933_v51 = vld [vmem:[%s2601_s1 + $0x13c] ss:$12 sps:$4 sm:$0xff]  }
  0x37   :  { %187 = vperm.xlu0 %1854, %v137_v6  }
  0x38   :  { %192 = vperm.xlu1 %1855, %v138_v8  }
  0x3a   :  { %782 = vmatmul.mubr.bf16.gmra.mxu0 %v1895_v52  ;;  %v1935_v52 = vld [vmem:[%s2601_s1 + $0x138] ss:$12 sps:$4 sm:$0xff]  }
  0x3b   :  { %789 = vmatprep.mubr.bf16.mxu0 %v1896_v55  ;;  %257 = vperm.xlu0 %1854, %v151_v10   ;;  %v1941_v55 = vld [vmem:[%s2601_s1 + $0x16c] ss:$12 sps:$4 sm:$0xff]  }
  0x3c   :  { %1834 = vmatmul.mubr.bf16.gmra.mxu1 %v1908_v58  ;;  %262 = vperm.xlu1 %1855, %v152_v12  }
  0x3d   :  { %1837 = vmatprep.mubr.bf16.mxu1 %v1915_v59 }
  0x3f   :  { %177 = vperm.xlu0 %1854, %v135_v14  }
  0x40   :  { %182 = vperm.xlu1 %1855, %v136_v16  }
  0x42   :  { %790 = vmatmul.mubr.bf16.gmra.mxu0 %v1898_v61 }
  0x43   :  { %797 = vmatprep.mubr.bf16.mxu0 %v1901_v63  ;;  %247 = vperm.xlu0 %1854, %v149_v18  }
  0x44   :  { %1838 = vmatmul.mubr.bf16.gmra.mxu1 %v1916_v2  ;;  %252 = vperm.xlu1 %1855, %v150_v20  }
  0x45   :  { %1841 = vmatprep.mubr.bf16.mxu1 %v1923_v3 }
  0x47   :  { %167 = vperm.xlu0 %1854, %v133_v22  }
  0x48   :  { %172 = vperm.xlu1 %1855, %v134_v24  }
  0x4a   :  { %798 = vmatmul.mubr.bf16.gmra.mxu0 %v1903_v4 }
  0x4b   :  { %805 = vmatprep.mubr.bf16.mxu0 %v1904_v7  ;;  %1129 = vperm.xlu0 %1854, %v1111_v26  }
  0x4c   :  { %1842 = vmatmul.mubr.bf16.gmra.mxu1 %v1924_v9  ;;  %1134 = vperm.xlu1 %1855, %v1112_v27  }
  0x4d   :  { %1845 = vmatprep.mubr.bf16.mxu1 %v1931_v11 }
  0x4f   :  { %1139 = vperm.xlu0 %1854, %v1113_v29  }
  0x50   :  { %1144 = vperm.xlu1 %1855, %v1114_v31  }
  0x52   :  { %806 = vmatmul.mubr.bf16.gmra.mxu0 %v1906_v13 }
  0x53   :  { %813 = vmatprep.mubr.bf16.mxu0 %v1909_v15  ;;  %1149 = vperm.xlu0 %1854, %v1115_v32  }
  0x54   :  { %1846 = vmatmul.mubr.bf16.gmra.mxu1 %v1932_v17  ;;  %1154 = vperm.xlu1 %1855, %v1116_v33  }
  0x55   :  { %1849 = vmatprep.mubr.bf16.mxu1 %v1939_v19 }
  0x57   :  { %1159 = vperm.xlu0 %1854, %v1117_v35  }
  0x58   :  { %1164 = vperm.xlu1 %1855, %v1118_v37  }
  0x5a   :  { %814 = vmatmul.mubr.bf16.gmra.mxu0 %v1911_v21 }
  0x5b   :  { %821 = vmatprep.mubr.bf16.mxu0 %v1912_v23  ;;  %1169 = vperm.xlu0 %1854, %v1119_v38  }
  0x5c   :  { %1850 = vmatmul.mubr.bf16.gmra.mxu1 %v1940_v25  ;;  %1174 = vperm.xlu1 %1855, %v1120_v39  }
  0x5f   :  { %1179 = vperm.xlu0 %1854, %v1121_v41  }
  0x60   :  { %1184 = vperm.xlu1 %1855, %v1122_v43  }
  0x62   :  { %822 = vmatmul.mubr.bf16.gmra.mxu0 %v1914_v28 }
  0x63   :  { %829 = vmatprep.mubr.bf16.mxu0 %v1917_v30  ;;  %1189 = vperm.xlu0 %1854, %v1123_v44  }
  0x64   :  { %1194 = vperm.xlu1 %1855, %v1124_v45  }
  0x67   :  { %1199 = vperm.xlu0 %1854, %v1125_v47  }
  0x68   :  { %1204 = vperm.xlu1 %1855, %v1126_v49  }
  0x6a   :  { %830 = vmatmul.mubr.bf16.gmra.mxu0 %v1919_v34 }
  0x6b   :  { %837 = vmatprep.mubr.bf16.mxu0 %v1920_v36 }
  0x72   :  { %838 = vmatmul.mubr.bf16.gmra.mxu0 %v1922_v40 }
  0x73   :  { %845 = vmatprep.mubr.bf16.mxu0 %v1925_v42 }
  0x7a   :  { %846 = vmatmul.mubr.bf16.gmra.mxu0 %v1927_v46 }
  0x7b   :  { %853 = vmatprep.mubr.bf16.mxu0 %v1928_v48 }
  0x82   :  { %854 = vmatmul.mubr.bf16.gmra.mxu0 %v1930_v50 }
  0x83   :  { %861 = vmatprep.mubr.bf16.mxu0 %v1933_v51 }
  0x86   :  { %v2359_v57 = vpop.permute.xlu0 %317 }
  0x87   :  { %v2361_v58 = vpop.permute.xlu1 %237 }
  0x8a   :  { %862 = vmatmul.mubr.bf16.gmra.mxu0 %v1935_v52  ;;  %v2363_v59 = vpop.permute.xlu0 %322 }
  0x8b   :  { %869 = vmatprep.mubr.bf16.mxu0 %v1936_v53  ;;  %v2365_v60 = vpop.permute.xlu1 %242 }
  0x8e   :  { %v2367_v61 = vpop.permute.xlu0 %307 }
  0x8f   :  { %v2369_v62 = vpop.permute.xlu1 %312 }
  0x92   :  { %870 = vmatmul.mubr.bf16.gmra.mxu0 %v1938_v54  ;;  %v2371_v63 = vpop.permute.xlu0 %227 }
  0x93   :  { %877 = vmatprep.mubr.bf16.mxu0 %v1941_v55  ;;  %v2373_v0 = vpop.permute.xlu1 %232 }
  0x96   :  { %v2375_v1 = vpop.permute.xlu0 %297 }
  0x97   :  { %v2377_v2 = vpop.permute.xlu1 %302 }
  0x9a   :  { %878 = vmatmul.mubr.bf16.gmra.mxu0 %v1943_v56  ;;  %v2379_v3 = vpop.permute.xlu0 %217 }
  0x9b   :  { %v2381_v4 = vpop.permute.xlu1 %222 }
  0x9e   :  { %v2383_v5 = vpop.permute.xlu0 %287 }
  0x9f   :  { %v2385_v6 = vpop.permute.xlu1 %292 }
  0xa2   :  { %v2387_v7 = vpop.permute.xlu0 %207 }
  0xa3   :  { %v2389_v8 = vpop.permute.xlu1 %212 }
  0xa6   :  { %v2391_v9 = vpop.permute.xlu0 %277 }
  0xa7   :  { %v2393_v10 = vpop.permute.xlu1 %282 }
  0xaa   :  { %v2395_v11 = vpop.permute.xlu0 %197 }
  0xab   :  { %v2397_v12 = vpop.permute.xlu1 %202 }
  0xae   :  { %v2399_v13 = vpop.permute.xlu0 %267 }
  0xaf   :  { %v2401_v14 = vpop.permute.xlu1 %272 }
  0xb2   :  { %v188_v15 = vpop.permute.xlu0 %187 }
  0xb3   :  { %v193_v16 = vpop.permute.xlu1 %192 }
  0xb6   :  { %v2403_v17 = vpop.permute.xlu0 %257 }
  0xb7   :  { %v2405_v18 = vpop.permute.xlu1 %262 }
  0xba   :  { %v178_v19 = vpop.permute.xlu0 %177 }
  0xbb   :  { %v183_v20 = vpop.permute.xlu1 %182 }
  0xbe   :  { %v2407_v21 = vpop.permute.xlu0 %247 }
  0xbf   :  { %v2409_v23 = vpop.permute.xlu1 %252 }
  0xc2   :  { %v168_v25 = vpop.permute.xlu0 %167 }
  0xc3   :  { %v173_v32 = vpop.permute.xlu1 %172 }
  0xe2   :  { %v1621_v22 = vpop.f32.mrf.mxu0 }
  0xe4   :  { %v1622_v24 = vpop.f32.mrf.mxu0  ;;  %v1823_v27 = vpop.f32.mrf.mxu1 }
  0xe5   :  { %v1623_v26 = vadd.f32 %v1622_v24, %v1621_v22 }
  0xe6   :  { %v1624_v28 = vpop.f32.mrf.mxu0  ;;  %v920_v30 = vpop.f32.mrf.mxu1 }
  0xe7   :  { %v760_v29 = vadd.f32 %v1623_v26, %v168_v25 }
  0xe8   :  { %v1625_v31 = vpop.f32.mrf.mxu0  ;;  %v1824_v35 = vpop.f32.mrf.mxu1 }
  0xe9   :  { %v1626_v33 = vadd.f32 %v1625_v31, %v1624_v28  ;;  %v921_v34 = vadd.f32 %v920_v30, %v760_v29 }
  0xea   :  { %v1627_v36 = vpop.f32.mrf.mxu0  ;;  %v923_v38 = vpop.f32.mrf.mxu1 }
  0xeb   :  { %v763_v37 = vadd.f32 %v1626_v33, %v173_v32  ;;  %v1047_v44 = vmax.f32 %v921_v34, 0.0 }
  0xec   :  { %v1628_v39 = vpop.f32.mrf.mxu0  ;;  %v1827_v43 = vpop.f32.mrf.mxu1 }
  0xed   :  { %v1629_v40 = vadd.f32 %v1628_v39, %v1627_v36  ;;  %v924_v41 = vadd.f32 %v923_v38, %v763_v37 }
  0xee   :  { %v1630_v42 = vpop.f32.mrf.mxu0  ;;  %v936_v52 = vpop.f32.mrf.mxu1 }
  0xef   :  { %v768_v45 = vadd.f32 %v1629_v40, %v178_v19  ;;  %v1048_v46 = vmax.f32 %v924_v41, 0.0 }
  0xf0   :  { %v1631_v47 = vpop.f32.mrf.mxu0  ;;  %v1828_v24 = vpop.f32.mrf.mxu1 }
  0xf1   :  { %v929_v48 = vadd.f32 %v1823_v27, %v768_v45  ;;  %v2411_v49 = vpack.c.bf16 %v1048_v46, %v1047_v44  ;;  %v1632_v50 = vadd.f32 %v1631_v47, %v1630_v42 }
  0xf2   :  { %v1633_v51 = vpop.f32.mrf.mxu0  ;;  %v939_v32 = vpop.f32.mrf.mxu1 }
  0xf3   :  { %2606 = vst [vmem:[#allocation2_spill] sm:$0xff] %v2411_v49  ;;  %v771_v53 = vadd.f32 %v1632_v50, %v183_v20  ;;  %v1049_v25 = vmax.f32 %v929_v48, 0.0 }
  0xf4   :  { %v1634_v54 = vpop.f32.mrf.mxu0  ;;  %v1831_v38 = vpop.f32.mrf.mxu1 }
  0xf5   :  { %v932_v55 = vadd.f32 %v1824_v35, %v771_v53  ;;  %v1635_v56 = vadd.f32 %v1634_v54, %v1633_v51 }
  0xf6   :  { %v1636_v22 = vpop.f32.mrf.mxu0  ;;  %v952_v46 = vpop.f32.mrf.mxu1 }
  0xf7   :  { %v1050_v26 = vmax.f32 %v932_v55, 0.0  ;;  %v776_v28 = vadd.f32 %v1635_v56, %v188_v15 }
  0xf8   :  { %v1637_v29 = vpop.f32.mrf.mxu0 }
  0xf9   :  { %v2413_v30 = vpack.c.bf16 %v1050_v26, %v1049_v25  ;;  %v1638_v19 = vadd.f32 %v1637_v29, %v1636_v22  ;;  %v937_v31 = vadd.f32 %v936_v52, %v776_v28  ;;  %v1832_v52 = vpop.f32.mrf.mxu1  ;;  %v1946_v22 = vld [vmem:[%s2604_s3 + $0x4] ss:$8 sps:$4 sm:$0xff]  }
  0xfa   :  { %v1639_v27 = vpop.f32.mrf.mxu0  ;;  %1319 = vmatprep.mubr.bf16.mxu1 %v1946_v22 }
  0xfb   :  { %2607 = vst [vmem:[#allocation3_spill] sm:$0xff] %v2413_v30  ;;  %v779_v33 = vadd.f32 %v1638_v19, %v193_v16  ;;  %v1051_v35 = vmax.f32 %v937_v31, 0.0  ;;  %v955_v26 = vpop.f32.mrf.mxu1 }
  0xfc   :  { %v1640_v34 = vpop.f32.mrf.mxu0 }
  0xfd   :  { %v1641_v36 = vadd.f32 %v1640_v34, %v1639_v27  ;;  %v940_v37 = vadd.f32 %v939_v32, %v779_v33  ;;  %v1835_v27 = vpop.f32.mrf.mxu1 }
  0xfe   :  { %v1642_v20 = vpop.f32.mrf.mxu0 }
  0xff   :  { %v784_v39 = vadd.f32 %v1641_v36, %v2395_v11  ;;  %v1052_v40 = vmax.f32 %v940_v37, 0.0 }
 0x100   :  { %v1643_v41 = vpop.f32.mrf.mxu0 }
 0x101   :  { %v945_v42 = vadd.f32 %v1827_v43, %v784_v39  ;;  %v2416_v15 = vpack.c.bf16 %v1052_v40, %v1051_v35  ;;  %v1644_v44 = vadd.f32 %v1643_v41, %v1642_v20  ;;  %v968_v35 = vpop.f32.mrf.mxu1 }
 0x102   :  { %v1645_v45 = vpop.f32.mrf.mxu0 }
 0x103   :  { %2608 = vst [vmem:[#allocation4_spill] sm:$0xff] %v2416_v15  ;;  %v787_v47 = vadd.f32 %v1644_v44, %v2397_v12  ;;  %v1053_v53 = vmax.f32 %v945_v42, 0.0 }
 0x104   :  { %v1646_v48 = vpop.f32.mrf.mxu0 }
 0x105   :  { %v948_v16 = vadd.f32 %v1828_v24, %v787_v47  ;;  %v1647_v50 = vadd.f32 %v1646_v48, %v1645_v45  ;;  %v1836_v45 = vpop.f32.mrf.mxu1 }
 0x106   :  { %v1648_v51 = vpop.f32.mrf.mxu0 }
 0x107   :  { %v1054_v54 = vmax.f32 %v948_v16, 0.0  ;;  %v792_v55 = vadd.f32 %v1647_v50, %v2387_v7 }
 0x108   :  { %v1649_v11 = vpop.f32.mrf.mxu0 }
 0x109   :  { %v2420_v56 = vpack.c.bf16 %v1054_v54, %v1053_v53  ;;  %v1650_v43 = vadd.f32 %v1649_v11, %v1648_v51  ;;  %v953_v12 = vadd.f32 %v952_v46, %v792_v55  ;;  %v971_v53 = vpop.f32.mrf.mxu1 }
 0x10a   :  { %v1651_v25 = vpop.f32.mrf.mxu0 }
 0x10b   :  { %v795_v24 = vadd.f32 %v1650_v43, %v2389_v8  ;;  %v1055_v7 = vmax.f32 %v953_v12, 0.0  ;;  %v1839_v43 = vpop.f32.mrf.mxu1 }
 0x10c   :  { %v1652_v28 = vpop.f32.mrf.mxu0 }
 0x10d   :  { %v1653_v29 = vadd.f32 %v1652_v28, %v1651_v25  ;;  %v956_v19 = vadd.f32 %v955_v26, %v795_v24 }
 0x10e   :  { %v1654_v31 = vpop.f32.mrf.mxu0 }
 0x10f   :  { %v800_v32 = vadd.f32 %v1653_v29, %v2379_v3  ;;  %v1056_v33 = vmax.f32 %v956_v19, 0.0  ;;  %v984_v29 = vpop.f32.mrf.mxu1 }
 0x110   :  { %v1655_v34 = vpop.f32.mrf.mxu0 }
 0x111   :  { %v2427_v36 = vpack.c.bf16 %v1056_v33, %v1055_v7  ;;  %v1656_v37 = vadd.f32 %v1655_v34, %v1654_v31  ;;  %v961_v39 = vadd.f32 %v1831_v38, %v800_v32  ;;  %v1840_v34 = vpop.f32.mrf.mxu1 }
 0x112   :  { %v1657_v20 = vpop.f32.mrf.mxu0 }
 0x113   :  { %v803_v40 = vadd.f32 %v1656_v37, %v2381_v4  ;;  %v1057_v46 = vmax.f32 %v961_v39, 0.0 }
 0x114   :  { %v1658_v8 = vpop.f32.mrf.mxu0 }
 0x115   :  { %v964_v41 = vadd.f32 %v1832_v52, %v803_v40  ;;  %v1659_v42 = vadd.f32 %v1658_v8, %v1657_v20 }
 0x116   :  { %v1660_v44 = vpop.f32.mrf.mxu0 }
 0x117   :  { %v1058_v47 = vmax.f32 %v964_v41, 0.0  ;;  %v808_v48 = vadd.f32 %v1659_v42, %v2371_v63  ;;  %v987_v41 = vpop.f32.mrf.mxu1 }
 0x118   :  { %v1661_v3 = vpop.f32.mrf.mxu0 }
 0x119   :  { %v2431_v16 = vpack.c.bf16 %v1058_v47, %v1057_v46  ;;  %v1662_v50 = vadd.f32 %v1661_v3, %v1660_v44  ;;  %v969_v54 = vadd.f32 %v968_v35, %v808_v48 }
 0x11a   :  { %v1663_v51 = vpop.f32.mrf.mxu0 }
 0x11b   :  { %v811_v38 = vadd.f32 %v1662_v50, %v2373_v0  ;;  %v1059_v22 = vmax.f32 %v969_v54, 0.0 }
 0x11c   :  { %v1664_v55 = vpop.f32.mrf.mxu0 }
 0x11d   :  { %v1665_v4 = vadd.f32 %v1664_v55, %v1663_v51  ;;  %v972_v11 = vadd.f32 %v971_v53, %v811_v38 }
 0x11e   :  { %v1666_v52 = vpop.f32.mrf.mxu0 }
 0x11f   :  { %v816_v25 = vadd.f32 %v1665_v4, %v2361_v58  ;;  %v1060_v26 = vmax.f32 %v972_v11, 0.0 }
 0x120   :  { %v1667_v12 = vpop.f32.mrf.mxu0 }
 0x121   :  { %v2435_v63 = vpack.c.bf16 %v1060_v26, %v1059_v22  ;;  %v1668_v24 = vadd.f32 %v1667_v12, %v1666_v52  ;;  %v977_v19 = vadd.f32 %v1835_v27, %v816_v25  ;;  %v2452_v22 = vpop.f32.mrf.mxu1 }
 0x122   :  { %v1669_v28 = vpop.f32.mrf.mxu0 }
 0x123   :  { %v819_v31 = vadd.f32 %v1668_v24, %v2365_v60  ;;  %v1061_v37 = vmax.f32 %v977_v19, 0.0  ;;  %v2456_v12 = vpop.f32.mrf.mxu1 }
 0x124   :  { %v1670_v7 = vpop.f32.mrf.mxu0 }
 0x125   :  { %v980_v0 = vadd.f32 %v1836_v45, %v819_v31  ;;  %v1671_v32 = vadd.f32 %v1670_v7, %v1669_v28 }
 0x126   :  { %v1672_v33 = vpop.f32.mrf.mxu0 }
 0x127   :  { %v1062_v20 = vmax.f32 %v980_v0, 0.0  ;;  %v824_v35 = vadd.f32 %v1671_v32, %v2407_v21 }
 0x128   :  { %v1673_v58 = vpop.f32.mrf.mxu0 }
 0x129   :  { %v2439_v39 = vpack.c.bf16 %v1062_v20, %v1061_v37  ;;  %v1674_v40 = vadd.f32 %v1673_v58, %v1672_v33  ;;  %v985_v42 = vadd.f32 %v984_v29, %v824_v35 }
 0x12a   :  { %v1675_v8 = vpop.f32.mrf.mxu0 }
 0x12b   :  { %v827_v27 = vadd.f32 %v1674_v40, %v2409_v23  ;;  %v1063_v47 = vmax.f32 %v985_v42, 0.0 }
 0x12c   :  { %v1676_v44 = vpop.f32.mrf.mxu0 }
 0x12d   :  { %v1677_v60 = vadd.f32 %v1676_v44, %v1675_v8  ;;  %v988_v46 = vadd.f32 %v987_v41, %v827_v27 }
 0x12e   :  { %v1678_v45 = vpop.f32.mrf.mxu0 }
 0x12f   :  { %v832_v48 = vadd.f32 %v1677_v60, %v2403_v17  ;;  %v1064_v3 = vmax.f32 %v988_v46, 0.0 }
 0x130   :  { %v1679_v50 = vpop.f32.mrf.mxu0 }
 0x131   :  { %v2443_v51 = vpack.c.bf16 %v1064_v3, %v1063_v47  ;;  %v1680_v21 = vadd.f32 %v1679_v50, %v1678_v45  ;;  %v993_v54 = vadd.f32 %v1839_v43, %v832_v48  ;;  %v2458_v43 = vpop.f32.mrf.mxu1 }
 0x132   :  { %v2445_v53 = vpop.f32.mrf.mxu0 }
 0x133   :  { %2609 = vst [vmem:[#allocation5_spill] sm:$0xff] %v2443_v51  ;;  %v835_v38 = vadd.f32 %v1680_v21, %v2405_v18  ;;  %v1065_v11 = vmax.f32 %v993_v54, 0.0  ;;  %v2460_v19 = vpop.f32.mrf.mxu1 }
 0x134   :  { %v2448_v55 = vpop.f32.mrf.mxu0 }
 0x135   :  { %v996_v23 = vadd.f32 %v1840_v34, %v835_v38  ;;  %v1847_v0 = vpop.f32.mrf.mxu1 }
 0x136   :  { %v2450_v4 = vpop.f32.mrf.mxu0 }
 0x137   :  { %v1066_v52 = vmax.f32 %v996_v23, 0.0  ;;  %v1016_v33 = vpop.f32.mrf.mxu1 }
 0x138   :  { %v1685_v17 = vpop.f32.mrf.mxu0 }
 0x139   :  { %v2454_v25 = vpack.c.bf16 %v1066_v52, %v1065_v11  ;;  %v1848_v20 = vpop.f32.mrf.mxu1 }
 0x13a   :  { %v1687_v26 = vpop.f32.mrf.mxu0 }
 0x13b   :  { %2610 = vst [vmem:[#allocation6_spill] sm:$0xff] %v2454_v25  ;;  %v1019_v40 = vpop.f32.mrf.mxu1 }
 0x13c   :  { %v1688_v24 = vpop.f32.mrf.mxu0 }
 0x13d   :  { %v1851_v42 = vpop.f32.mrf.mxu1 }
 0x13e   :  { %v1690_v28 = vpop.f32.mrf.mxu0 }
 0x13f   :  { %v1032_v60 = vpop.f32.mrf.mxu1 }
 0x140   :  { %v1691_v18 = vpop.f32.mrf.mxu0 }
 0x141   :  { %v1852_v47 = vpop.f32.mrf.mxu1 }
 0x142   :  { %v1693_v29 = vpop.f32.mrf.mxu0 }
 0x143   :  { %v1035_v11 = vpop.f32.mrf.mxu1 }
 0x144   :  { %v1694_v31 = vpop.f32.mrf.mxu0 }
 0x146   :  { %v1696_v7 = vpop.f32.mrf.mxu0 }
 0x148   :  { %v1697_v32 = vpop.f32.mrf.mxu0 }
 0x149   :  { %v1698_v25 = vadd.f32 %v1697_v32, %v1696_v7 }
 0x14a   :  { %v1699_v34 = vpop.f32.mrf.mxu0 }
 0x14c   :  { %v1700_v37 = vpop.f32.mrf.mxu0 }
 0x14d   :  { %v1701_v49 = vadd.f32 %v1700_v37, %v1699_v34 }
 0x14e   :  { %v1702_v35 = vpop.f32.mrf.mxu0 }
 0x150   :  { %v1703_v58 = vpop.f32.mrf.mxu0 }
 0x151   :  { %v1704_v54 = vadd.f32 %v1703_v58, %v1702_v35  ;;  %v864_v35 = vadd.f32 %v1701_v49, %v2375_v1 }
 0x152   :  { %v1705_v8 = vpop.f32.mrf.mxu0 }
 0x153   :  { %v867_v15 = vadd.f32 %v1704_v54, %v2377_v2  ;;  %v1025_v2 = vadd.f32 %v1847_v0, %v864_v35  ;;  %v2615_v0 = vld [vmem:[#allocation2_spill] sm:$0xff] }
 0x154   :  { %v1706_v41 = vpop.f32.mrf.mxu0  ;;  %v1962_v54 = vld [vmem:[%s2604_s3 + $0x64] ss:$8 sps:$4 sm:$0xff]  }
 0x155   :  { %v1707_v3 = vadd.f32 %v1706_v41, %v1705_v8  ;;  %v1695_v41 = vadd.f32 %v1694_v31, %v1693_v29  ;;  %v2613_v31 = vld [vmem:[#allocation3_spill] sm:$0xff] }
 0x156   :  { %v1708_v27 = vpop.f32.mrf.mxu0 }
 0x157   :  { %v872_v51 = vadd.f32 %v1707_v3, %v2367_v61  ;;  %v856_v7 = vadd.f32 %v1695_v41, %v2383_v5  ;;  %v1073_v5 = vmax.f32 %v1025_v2, 0.0  ;;  %v1958_v3 = vld [vmem:[%s2604_s3 + $0x40] ss:$8 sps:$4 sm:$0xff]  }
 0x158   :  { %v1709_v44 = vpop.f32.mrf.mxu0 }
 0x159   :  { %v1710_v45 = vadd.f32 %v1709_v44, %v1708_v27  ;;  %v1033_v58 = vadd.f32 %v1032_v60, %v872_v51  ;;  %v1955_v60 = vld [vmem:[%s2604_s3 + $0x30] ss:$8 sps:$4 sm:$0xff]  }
 0x15a   :  { %v1711_v46 = vpop.f32.mrf.mxu0 }
 0x15b   :  { %v875_v23 = vadd.f32 %v1710_v45, %v2369_v62  ;;  %v859_v62 = vadd.f32 %v1698_v25, %v2385_v6  ;;  %v1028_v45 = vadd.f32 %v1848_v20, %v867_v15  ;;  %v1075_v32 = vmax.f32 %v1033_v58, 0.0  ;;  %v1952_v20 = vld [vmem:[%s2604_s3 + $0x20] ss:$8 sps:$4 sm:$0xff]  }
 0x15c   :  { %v1712_v48 = vpop.f32.mrf.mxu0  ;;  %v1683_v6 = vadd.f32 %v2448_v55, %v2445_v53  ;;  %v1017_v25 = vadd.f32 %v1016_v33, %v856_v7  ;;  %v1950_v33 = vld [vmem:[%s2604_s3 + $0x24] ss:$8 sps:$4 sm:$0xff]  }
 0x15d   :  { %v1713_v50 = vadd.f32 %v1712_v48, %v1711_v46  ;;  %v1036_v44 = vadd.f32 %v1035_v11, %v875_v23  ;;  %v1692_v46 = vadd.f32 %v1691_v18, %v1690_v28  ;;  %v1689_v48 = vadd.f32 %v1688_v24, %v1687_v26  ;;  %v1965_v23 = vld [vmem:[%s2604_s3 + $0x74] ss:$8 sps:$4 sm:$0xff]   ;;  %v1967_v11 = vld [vmem:[%s2604_s3 + $0x70] ss:$8 sps:$4 sm:$0xff]  }
 0x15e   :  { %v1714_v21 = vpop.f32.mrf.mxu0  ;;  %v1020_v1 = vadd.f32 %v1019_v40, %v859_v62  ;;  %v1074_v49 = vmax.f32 %v1028_v45, 0.0  ;;  %v840_v24 = vadd.f32 %v1683_v6, %v2399_v13  ;;  %v1071_v28 = vmax.f32 %v1017_v25, 0.0  ;;  %v1953_v40 = vld [vmem:[%s2604_s3 + $0x34] ss:$8 sps:$4 sm:$0xff]   ;;  %v1135_v62 = vpop.permute.xlu1 %1134 }
 0x15f   :  { %v880_v38 = vadd.f32 %v1713_v50, %v2359_v57  ;;  %v1076_v37 = vmax.f32 %v1036_v44, 0.0  ;;  %v848_v15 = vadd.f32 %v1689_v48, %v2391_v9  ;;  %v1959_v50 = vld [vmem:[%s2604_s3 + $0x54] ss:$8 sps:$4 sm:$0xff]  }
 0x160   :  { %v1715_v52 = vpop.f32.mrf.mxu0 }
 0x161   :  { %v1716_v30 = vadd.f32 %v1715_v52, %v1714_v21  ;;  %v1041_v27 = vadd.f32 %v1851_v42, %v880_v38  ;;  %v1093_v51 = vpack.c.bf16 %v1076_v37, %v1075_v32  ;;  %v1961_v21 = vld [vmem:[%s2604_s3 + $0x50] ss:$8 sps:$4 sm:$0xff]   ;;  %v1964_v38 = vld [vmem:[%s2604_s3 + $0x60] ss:$8 sps:$4 sm:$0xff]  }
 0x163   :  { %v883_v8 = vadd.f32 %v1716_v30, %v2363_v59  ;;  %v1077_v34 = vmax.f32 %v1041_v27, 0.0  ;;  %v1686_v59 = vadd.f32 %v1685_v17, %v2450_v4  ;;  %v851_v30 = vadd.f32 %v1692_v46, %v2393_v10 }
 0x164   :  { %v1072_v17 = vmax.f32 %v1020_v1, 0.0  ;;  %v1092_v10 = vpack.c.bf16 %v1074_v49, %v1073_v5 }
 0x165   :  { %v1044_v57 = vadd.f32 %v1852_v47, %v883_v8  ;;  %v843_v26 = vadd.f32 %v1686_v59, %v2401_v14  ;;  %v1012_v4 = vadd.f32 %v2458_v43, %v851_v30  ;;  %v1001_v14 = vadd.f32 %v2456_v12, %v840_v24  ;;  %v1944_v12 = vld [vmem:[%s2604_s3] ss:$8 sps:$4 sm:$0xff]   ;;  %v1956_v47 = vld [vmem:[%s2604_s3 + $0x44] ss:$8 sps:$4 sm:$0xff]   ;;  %v1130_v8 = vpop.permute.xlu0 %1129 }
 0x166   :  { %v1091_v55 = vpack.c.bf16 %v1072_v17, %v1071_v28 }
 0x167   :  { %v1078_v61 = vmax.f32 %v1044_v57, 0.0  ;;  %v1004_v53 = vadd.f32 %v2460_v19, %v843_v26  ;;  %v1070_v9 = vmax.f32 %v1012_v4, 0.0  ;;  %v2612_v19 = vld [vmem:[#allocation6_spill] sm:$0xff] }
 0x169   :  { %v1094_v42 = vpack.c.bf16 %v1078_v61, %v1077_v34  ;;  %v1068_v43 = vmax.f32 %v1004_v53, 0.0  ;;  %v1140_v2 = vpop.permute.xlu0 %1139 }
 0x16b   :  { %1741 = vmatprep.subr.bf16.mxu1 %v1094_v42 }
 0x16c   :  { %1742 = vmatpush3.bf16.msra.mxu1 %v2439_v39  ;;  %v1009_v39 = vadd.f32 %v2452_v22, %v848_v15  ;;  %v2611_v22 = vld [vmem:[#allocation4_spill] sm:$0xff] }
 0x16d   :  { %1743 = vmatprep.subr.bf16.mxu1 %v1093_v51  ;;  %v1145_v51 = vpop.permute.xlu1 %1144  ;;  %v1150_v17 = vpop.permute.xlu0 %1149 }
 0x16e   :  { %v1069_v18 = vmax.f32 %v1009_v39, 0.0 }
 0x170   :  { %1744 = vmatpush3.bf16.msra.mxu1 %v2435_v63  ;;  %v1090_v29 = vpack.c.bf16 %v1070_v9, %v1069_v18  ;;  %v1067_v63 = vmax.f32 %v1001_v14, 0.0 }
 0x171   :  { %1745 = vmatprep.subr.bf16.mxu1 %v1092_v10 }
 0x172   :  { %v1089_v13 = vpack.c.bf16 %v1068_v43, %v1067_v63 }
 0x174   :  { %1746 = vmatpush3.bf16.msra.mxu1 %v2431_v16  ;;  %v2614_v16 = vld [vmem:[#allocation5_spill] sm:$0xff] }
 0x175   :  { %1747 = vmatprep.subr.bf16.mxu1 %v1091_v55  ;;  %v1155_v55 = vpop.permute.xlu1 %1154 }
 0x178   :  { %1748 = vmatpush3.bf16.msra.mxu1 %v2427_v36  ;;  %v1947_v36 = vld [vmem:[%s2604_s3 + $0x14] ss:$8 sps:$4 sm:$0xff]  }
 0x179   :  { %1749 = vmatprep.subr.bf16.mxu1 %v1090_v29 }
 0x17c   :  { %1750 = vmatpush3.bf16.msra.mxu1 %v2420_v56  ;;  %v1949_v56 = vld [vmem:[%s2604_s3 + $0x10] ss:$8 sps:$4 sm:$0xff]  }
 0x17d   :  { %1751 = vmatprep.subr.bf16.mxu1 %v1089_v13 }
 0x180   :  { %1752 = vmatpush3.bf16.msra.mxu1 %v2611_v22  ;;  %v1160_v22 = vpop.permute.xlu0 %1159 }
 0x181   :  { %1753 = vmatprep.subr.bf16.mxu1 %v2612_v19 }
 0x184   :  { %1754 = vmatpush3.bf16.msra.mxu1 %v2613_v31 }
 0x185   :  { %1755 = vmatprep.subr.bf16.mxu1 %v2614_v16 }
 0x188   :  { %1756 = vmatpush3.bf16.msra.mxu1 %v2615_v0 }
 0x18b   :  { %1320 = vmatmul.mubr.bf16.vlgmr.msra.gmra.mxu1 %v1944_v12 }
 0x18c   :  { %1327 = vmatprep.mubr.bf16.mxu1 %v1947_v36 }
 0x193   :  { %1328 = vmatmul.mubr.bf16.gmra.mxu1 %v1949_v56  ;;  %v1165_v56 = vpop.permute.xlu1 %1164 }
 0x194   :  { %1335 = vmatprep.mubr.bf16.mxu1 %v1950_v33 }
 0x19b   :  { %1336 = vmatmul.mubr.bf16.gmra.mxu1 %v1952_v20 }
 0x19c   :  { %1343 = vmatprep.mubr.bf16.mxu1 %v1953_v40 }
 0x1a3   :  { %1344 = vmatmul.mubr.bf16.gmra.mxu1 %v1955_v60 }
 0x1a4   :  { %1351 = vmatprep.mubr.bf16.mxu1 %v1956_v47 }
 0x1ab   :  { %1352 = vmatmul.mubr.bf16.gmra.mxu1 %v1958_v3 }
 0x1ac   :  { %1359 = vmatprep.mubr.bf16.mxu1 %v1959_v50  ;;  %v1170_v50 = vpop.permute.xlu0 %1169 }
 0x1b3   :  { %1360 = vmatmul.mubr.bf16.gmra.mxu1 %v1961_v21 }
 0x1b4   :  { %1367 = vmatprep.mubr.bf16.mxu1 %v1962_v54 }
 0x1bb   :  { %1368 = vmatmul.mubr.bf16.gmra.mxu1 %v1964_v38 }
 0x1bc   :  { %1375 = vmatprep.mubr.bf16.mxu1 %v1965_v23 }
 0x1c3   :  { %1376 = vmatmul.mubr.bf16.gmra.mxu1 %v1967_v11 }
 0x24b   :  { %v1757_v52 = vpop.f32.mrf.mxu1 }
 0x24d   :  { %v1758_v27 = vpop.f32.mrf.mxu1 }
 0x24e   :  { %v1759_v44 = vadd.f32 %v1758_v27, %v1757_v52  ;;  %v1175_v27 = vpop.permute.xlu1 %1174 }
 0x24f   :  { %v1760_v41 = vpop.f32.mrf.mxu1 }
 0x250   :  { %v1322_v35 = vadd.f32 %v1759_v44, %v1130_v8 }
 0x251   :  { %v1761_v58 = vpop.f32.mrf.mxu1 }
 0x252   :  { %v1384_v57 = vmax.f32 %v1322_v35, 0.0  ;;  %v1762_v46 = vadd.f32 %v1761_v58, %v1760_v41 }
 0x253   :  { %v1763_v45 = vpop.f32.mrf.mxu1 }
 0x254   :  { %v1589_v34 = vpack.c.bf16 %v1384_v57, %v1384_v57  ;;  %v1325_v37 = vadd.f32 %v1762_v46, %v1135_v62  ;;  %v1180_v46 = vpop.permute.xlu0 %1179 }
 0x255   :  { %v1764_v61 = vpop.f32.mrf.mxu1 }
 0x256   :  { %1465 = vst.msk [vmem:[%s2605_s5] sm:$0xf] %vm1464_vm0, %v1589_v34  ;;  %v1385_v48 = vmax.f32 %v1325_v37, 0.0  ;;  %v1765_v7 = vadd.f32 %v1764_v61, %v1763_v45 }
 0x257   :  { %v1766_v32 = vpop.f32.mrf.mxu1 }
 0x258   :  { %v1590_v42 = vpack.c.bf16 %v1385_v48, %v1385_v48  ;;  %v1330_v59 = vadd.f32 %v1765_v7, %v1140_v2  ;;  %v1185_v7 = vpop.permute.xlu1 %1184 }
 0x259   :  { %v1767_v30 = vpop.f32.mrf.mxu1 }
 0x25a   :  { %1466 = vst.msk [vmem:[%s2605_s5 + $0x4] sm:$0xf] %vm1464_vm0, %v1590_v42  ;;  %v1386_v1 = vmax.f32 %v1330_v59, 0.0  ;;  %v1768_v49 = vadd.f32 %v1767_v30, %v1766_v32 }
 0x25b   :  { %v1769_v6 = vpop.f32.mrf.mxu1 }
 0x25c   :  { %v1591_v15 = vpack.c.bf16 %v1386_v1, %v1386_v1  ;;  %v1333_v25 = vadd.f32 %v1768_v49, %v1145_v51  ;;  %v1190_v49 = vpop.permute.xlu0 %1189 }
 0x25d   :  { %v1770_v5 = vpop.f32.mrf.mxu1 }
 0x25e   :  { %1467 = vst.msk [vmem:[%s2605_s5 + $0x8] sm:$0xf] %vm1464_vm0, %v1591_v15  ;;  %v1387_v26 = vmax.f32 %v1333_v25, 0.0  ;;  %v1771_v4 = vadd.f32 %v1770_v5, %v1769_v6 }
 0x25f   :  { %v1772_v10 = vpop.f32.mrf.mxu1 }
 0x260   :  { %v1592_v24 = vpack.c.bf16 %v1387_v26, %v1387_v26  ;;  %v1338_v39 = vadd.f32 %v1771_v4, %v1150_v17  ;;  %v1195_v4 = vpop.permute.xlu1 %1194 }
 0x261   :  { %v1773_v28 = vpop.f32.mrf.mxu1 }
 0x262   :  { %1468 = vst.msk [vmem:[%s2605_s5 + $0xc] sm:$0xf] %vm1464_vm0, %v1592_v24  ;;  %v1388_v53 = vmax.f32 %v1338_v39, 0.0  ;;  %v1774_v9 = vadd.f32 %v1773_v28, %v1772_v10 }
 0x263   :  { %v1775_v14 = vpop.f32.mrf.mxu1 }
 0x264   :  { %v1593_v18 = vpack.c.bf16 %v1388_v53, %v1388_v53  ;;  %v1341_v43 = vadd.f32 %v1774_v9, %v1155_v55  ;;  %v1200_v9 = vpop.permute.xlu0 %1199 }
 0x265   :  { %v1776_v29 = vpop.f32.mrf.mxu1 }
 0x266   :  { %1469 = vst.msk [vmem:[%s2605_s5 + $0x10] sm:$0xf] %vm1464_vm0, %v1593_v18  ;;  %v1389_v63 = vmax.f32 %v1341_v43, 0.0  ;;  %v1777_v13 = vadd.f32 %v1776_v29, %v1775_v14 }
 0x267   :  { %v1778_v19 = vpop.f32.mrf.mxu1 }
 0x268   :  { %v1594_v31 = vpack.c.bf16 %v1389_v63, %v1389_v63  ;;  %v1346_v16 = vadd.f32 %v1777_v13, %v1160_v22  ;;  %v1205_v13 = vpop.permute.xlu1 %1204 }
 0x269   :  { %v1779_v12 = vpop.f32.mrf.mxu1 }
 0x26a   :  { %1470 = vst.msk [vmem:[%s2605_s5 + $0x14] sm:$0xf] %vm1464_vm0, %v1594_v31  ;;  %v1390_v0 = vmax.f32 %v1346_v16, 0.0  ;;  %v1780_v36 = vadd.f32 %v1779_v12, %v1778_v19 }
 0x26b   :  { %v1781_v33 = vpop.f32.mrf.mxu1 }
 0x26c   :  { %v1595_v20 = vpack.c.bf16 %v1390_v0, %v1390_v0  ;;  %v1349_v40 = vadd.f32 %v1780_v36, %v1165_v56 }
 0x26d   :  { %v1782_v60 = vpop.f32.mrf.mxu1 }
 0x26e   :  { %1471 = vst.msk [vmem:[%s2605_s5 + $0x18] sm:$0xf] %vm1464_vm0, %v1595_v20  ;;  %v1391_v47 = vmax.f32 %v1349_v40, 0.0  ;;  %v1783_v3 = vadd.f32 %v1782_v60, %v1781_v33 }
 0x26f   :  { %v1784_v21 = vpop.f32.mrf.mxu1 }
 0x270   :  { %v1596_v54 = vpack.c.bf16 %v1391_v47, %v1391_v47  ;;  %v1354_v38 = vadd.f32 %v1783_v3, %v1170_v50 }
 0x271   :  { %v1785_v23 = vpop.f32.mrf.mxu1 }
 0x272   :  { %1472 = vst.msk [vmem:[%s2605_s5 + $0x1c] sm:$0xf] %vm1464_vm0, %v1596_v54  ;;  %v1392_v11 = vmax.f32 %v1354_v38, 0.0  ;;  %v1786_v52 = vadd.f32 %v1785_v23, %v1784_v21 }
 0x273   :  { %v1787_v44 = vpop.f32.mrf.mxu1 }
 0x274   :  { %v1597_v8 = vpack.c.bf16 %v1392_v11, %v1392_v11  ;;  %v1357_v41 = vadd.f32 %v1786_v52, %v1175_v27 }
 0x275   :  { %v1788_v35 = vpop.f32.mrf.mxu1 }
 0x276   :  { %1473 = vst.msk [vmem:[%s2605_s5 + $0x20] sm:$0xf] %vm1464_vm0, %v1597_v8  ;;  %v1393_v58 = vmax.f32 %v1357_v41, 0.0  ;;  %v1789_v57 = vadd.f32 %v1788_v35, %v1787_v44 }
 0x277   :  { %v1790_v62 = vpop.f32.mrf.mxu1 }
 0x278   :  { %v1598_v45 = vpack.c.bf16 %v1393_v58, %v1393_v58  ;;  %v1362_v34 = vadd.f32 %v1789_v57, %v1180_v46 }
 0x279   :  { %v1791_v37 = vpop.f32.mrf.mxu1 }
 0x27a   :  { %1474 = vst.msk [vmem:[%s2605_s5 + $0x24] sm:$0xf] %vm1464_vm0, %v1598_v45  ;;  %v1394_v61 = vmax.f32 %v1362_v34, 0.0  ;;  %v1792_v48 = vadd.f32 %v1791_v37, %v1790_v62 }
 0x27b   :  { %v1793_v2 = vpop.f32.mrf.mxu1 }
 0x27c   :  { %v1599_v32 = vpack.c.bf16 %v1394_v61, %v1394_v61  ;;  %v1365_v42 = vadd.f32 %v1792_v48, %v1185_v7 }
 0x27d   :  { %v1794_v59 = vpop.f32.mrf.mxu1 }
 0x27e   :  { %1475 = vst.msk [vmem:[%s2605_s5 + $0x28] sm:$0xf] %vm1464_vm0, %v1599_v32  ;;  %v1395_v30 = vmax.f32 %v1365_v42, 0.0  ;;  %v1795_v1 = vadd.f32 %v1794_v59, %v1793_v2 }
 0x27f   :  { %v1796_v51 = vpop.f32.mrf.mxu1 }
 0x280   :  { %v1600_v6 = vpack.c.bf16 %v1395_v30, %v1395_v30  ;;  %v1370_v15 = vadd.f32 %v1795_v1, %v1190_v49 }
 0x281   :  { %v1797_v25 = vpop.f32.mrf.mxu1 }
 0x282   :  { %1476 = vst.msk [vmem:[%s2605_s5 + $0x2c] sm:$0xf] %vm1464_vm0, %v1600_v6  ;;  %v1396_v5 = vmax.f32 %v1370_v15, 0.0  ;;  %v1798_v26 = vadd.f32 %v1797_v25, %v1796_v51 }
 0x283   :  { %v1799_v17 = vpop.f32.mrf.mxu1 }
 0x284   :  { %v1601_v10 = vpack.c.bf16 %v1396_v5, %v1396_v5  ;;  %v1373_v24 = vadd.f32 %v1798_v26, %v1195_v4 }
 0x285   :  { %v1800_v39 = vpop.f32.mrf.mxu1 }
 0x286   :  { %1477 = vst.msk [vmem:[%s2605_s5 + $0x30] sm:$0xf] %vm1464_vm0, %v1601_v10  ;;  %v1397_v28 = vmax.f32 %v1373_v24, 0.0  ;;  %v1801_v53 = vadd.f32 %v1800_v39, %v1799_v17 }
 0x287   :  { %v1802_v55 = vpop.f32.mrf.mxu1 }
 0x288   :  { %v1602_v14 = vpack.c.bf16 %v1397_v28, %v1397_v28  ;;  %v1378_v18 = vadd.f32 %v1801_v53, %v1200_v9 }
 0x289   :  { %v1803_v43 = vpop.f32.mrf.mxu1 }
 0x28a   :  { %1478 = vst.msk [vmem:[%s2605_s5 + $0x34] sm:$0xf] %vm1464_vm0, %v1602_v14  ;;  %v1398_v29 = vmax.f32 %v1378_v18, 0.0  ;;  %v1804_v63 = vadd.f32 %v1803_v43, %v1802_v55 }
 0x28c   :  { %v1603_v22 = vpack.c.bf16 %v1398_v29, %v1398_v29  ;;  %v1381_v19 = vadd.f32 %v1804_v63, %v1205_v13 }
 0x28e   :  { %1479 = vst.msk [vmem:[%s2605_s5 + $0x38] sm:$0xf] %vm1464_vm0, %v1603_v22  ;;  %v1399_v31 = vmax.f32 %v1381_v19, 0.0 }
 0x290   :  { %v1604_v16 = vpack.c.bf16 %v1399_v31, %v1399_v31 }
 0x292   :  { %1480 = vst.msk [vmem:[%s2605_s5 + $0x3c] sm:$0xf] %vm1464_vm0, %v1604_v16 }

// kernel: a_call__.15
= control target key start
LH: loop header
LB: loop body
LE: loop exit
PB: predicated region body
PF: predicated region fallthrough
CT: control target
= control target key end

     0   :  { %v1373_v0 = vmov 0   ;;  %vm307_vm0 = vcmask 523264   ;;  %s1768_s0 = inlined_call_operand.vmem [shape: bf16[192,128], index: 0, kind: input, shape index: {}]   ;;  %s1769_s1 = inlined_call_operand.vmem [shape: bf16[128,192], index: 1, kind: input, shape index: {}]   ;;  %s1770_s2 = inlined_call_operand.vmem [shape: f32[128,1], index: 2, kind: input, shape index: {}, may-alias: {2,4,6}]   ;;  %s1771_s4 = inlined_call_operand.vmem [shape: f32[128,1], index: 4, kind: input, shape index: {}, may-alias: {2,4,6}]   ;;  %s1772_s6 = inlined_call_operand.vmem [shape: f32[128,1], index: 6, kind: input, shape index: {}, may-alias: {2,4,6}]   ;;  %s1773_s3 = inlined_call_operand.vmem [shape: bf16[128,128], index: 3, kind: input, shape index: {}]   ;;  %s1774_s5 = inlined_call_operand.vmem [shape: bf16[128,128], index: 5, kind: input, shape index: {}]   ;;  %s1775_s7 = inlined_call_operand.vmem [shape: bf16[128,128], index: 7, kind: output, shape index: {}]  }
   0x1   :  { %332 = vmatprep.subr.bf16.mxu0 %v1373_v0  ;;  %v1321_v1 = vld [vmem:[%s1768_s0 + $0x38] sm:$0xff]   ;;  %1319 = vset.pattern.permute.xlu0 %v1373_v0  ;;  %v1322_v2 = vld [vmem:[%s1768_s0 + $0x30] sm:$0xff]   ;;  %v1323_v3 = vld [vmem:[%s1768_s0 + $0x28] sm:$0xff]  }
   0x2   :  { %1320 = vset.pattern.permute.xlu1 %v1373_v0  ;;  %333 = vmatpush1.bf16.msra.mxu0 %v1321_v1  ;;  %v1324_v4 = vld [vmem:[%s1768_s0 + $0x20] sm:$0xff]   ;;  %v1325_v6 = vld [vmem:[%s1768_s0 + $0x18] sm:$0xff]   ;;  %v1326_v7 = vld [vmem:[%s1768_s0 + $0x10] sm:$0xff]  }
   0x3   :  { %334 = vmatprep.subr.bf16.mxu0 %v1373_v0  ;;  %v1335_v5 = vld [vmem:[%s1769_s1 + $0x4] ss:$8 sps:$4 sm:$0xff]   ;;  %v81_v8 = vld [vmem:[%s1770_s2 + $0x70] sm:$0xff]  ;;  %v82_v10 = vld [vmem:[%s1770_s2 + $0x78] sm:$0xff] }
   0x4   :  { %1119 = vmatprep.mubr.msk.bf16.mxu0 %vm307_vm0, %v1335_v5  ;;  %155 = vperm.xlu0 %1319, %v81_v8   ;;  %v79_v9 = vld [vmem:[%s1770_s2 + $0x60] sm:$0xff]  ;;  %v80_v11 = vld [vmem:[%s1770_s2 + $0x68] sm:$0xff]  ;;  %v77_v13 = vld [vmem:[%s1770_s2 + $0x50] sm:$0xff] }
   0x5   :  { %145 = vperm.xlu1 %1320, %v79_v9   ;;  %v1327_v12 = vld [vmem:[%s1768_s0 + $0x8] sm:$0xff]   ;;  %v78_v14 = vld [vmem:[%s1770_s2 + $0x58] sm:$0xff]  ;;  %v1328_v15 = vld [vmem:[%s1768_s0] sm:$0xff]  }
   0x6   :  { %335 = vmatpush1.bf16.msra.mxu0 %v1322_v2  ;;  %v75_v16 = vld [vmem:[%s1770_s2 + $0x40] sm:$0xff]  ;;  %v76_v17 = vld [vmem:[%s1770_s2 + $0x48] sm:$0xff]  ;;  %v1329_v18 = vld [vmem:[%s1768_s0 + $0x58] sm:$0xff]  }
   0x7   :  { %336 = vmatprep.subr.bf16.mxu0 %v1373_v0  ;;  %v73_v19 = vld [vmem:[%s1770_s2 + $0x30] sm:$0xff]  ;;  %v74_v20 = vld [vmem:[%s1770_s2 + $0x38] sm:$0xff]  ;;  %v71_v22 = vld [vmem:[%s1770_s2 + $0x20] sm:$0xff] }
   0x8   :  { %160 = vperm.xlu0 %1319, %v82_v10   ;;  %v1330_v21 = vld [vmem:[%s1768_s0 + $0x50] sm:$0xff]   ;;  %v72_v23 = vld [vmem:[%s1770_s2 + $0x28] sm:$0xff]  ;;  %v70_v26 = vld [vmem:[%s1770_s2 + $0x18] sm:$0xff] }
   0x9   :  { %150 = vperm.xlu1 %1320, %v80_v11   ;;  %v1331_v24 = vld [vmem:[%s1768_s0 + $0x48] sm:$0xff]   ;;  %v69_v25 = vld [vmem:[%s1770_s2 + $0x10] sm:$0xff]  ;;  %v1332_v27 = vld [vmem:[%s1768_s0 + $0x40] sm:$0xff]  }
   0xa   :  { %337 = vmatpush1.bf16.msra.mxu0 %v1323_v3  ;;  %v67_v28 = vld [vmem:[%s1770_s2] sm:$0xff]  ;;  %v68_v30 = vld [vmem:[%s1770_s2 + $0x8] sm:$0xff]  ;;  %v1336_v31 = vld [vmem:[%s1769_s1 + $0x14] ss:$8 sps:$4 sm:$0xff]  }
   0xb   :  { %338 = vmatprep.subr.bf16.mxu0 %v1373_v0  ;;  %v1333_v29 = vld [vmem:[%s1769_s1] ss:$8 sps:$4 sm:$0xff]   ;;  %v483_v32 = vld [vmem:[%s1771_s4 + $0x70] sm:$0xff]  ;;  %v484_v33 = vld [vmem:[%s1771_s4 + $0x78] sm:$0xff] }
   0xc   :  { %135 = vperm.xlu0 %1319, %v77_v13   ;;  %v481_v34 = vld [vmem:[%s1771_s4 + $0x60] sm:$0xff]  ;;  %v1338_v35 = vld [vmem:[%s1769_s1 + $0x10] ss:$8 sps:$4 sm:$0xff]   ;;  %v482_v36 = vld [vmem:[%s1771_s4 + $0x68] sm:$0xff] }
   0xd   :  { %140 = vperm.xlu1 %1320, %v78_v14   ;;  %v1339_v37 = vld [vmem:[%s1769_s1 + $0x24] ss:$8 sps:$4 sm:$0xff]   ;;  %v479_v38 = vld [vmem:[%s1771_s4 + $0x50] sm:$0xff]  ;;  %v480_v39 = vld [vmem:[%s1771_s4 + $0x58] sm:$0xff] }
   0xe   :  { %339 = vmatpush1.bf16.msra.mxu0 %v1324_v4  ;;  %v477_v40 = vld [vmem:[%s1771_s4 + $0x40] sm:$0xff]  ;;  %v478_v42 = vld [vmem:[%s1771_s4 + $0x48] sm:$0xff]  ;;  %v1342_v43 = vld [vmem:[%s1769_s1 + $0x34] ss:$8 sps:$4 sm:$0xff]  }
   0xf   :  { %340 = vmatprep.subr.bf16.mxu0 %v1373_v0  ;;  %v1341_v41 = vld [vmem:[%s1769_s1 + $0x20] ss:$8 sps:$4 sm:$0xff]   ;;  %v475_v44 = vld [vmem:[%s1771_s4 + $0x30] sm:$0xff]  ;;  %v476_v45 = vld [vmem:[%s1771_s4 + $0x38] sm:$0xff] }
  0x10   :  { %125 = vperm.xlu0 %1319, %v75_v16   ;;  %v473_v46 = vld [vmem:[%s1771_s4 + $0x20] sm:$0xff]  ;;  %v1344_v47 = vld [vmem:[%s1769_s1 + $0x30] ss:$8 sps:$4 sm:$0xff]   ;;  %v474_v48 = vld [vmem:[%s1771_s4 + $0x28] sm:$0xff] }
  0x11   :  { %130 = vperm.xlu1 %1320, %v76_v17   ;;  %v1345_v49 = vld [vmem:[%s1769_s1 + $0x44] ss:$8 sps:$4 sm:$0xff]   ;;  %v471_v50 = vld [vmem:[%s1771_s4 + $0x10] sm:$0xff]  ;;  %v472_v51 = vld [vmem:[%s1771_s4 + $0x18] sm:$0xff] }
  0x12   :  { %341 = vmatpush1.bf16.msra.mxu0 %v1325_v6  ;;  %v469_v52 = vld [vmem:[%s1771_s4] sm:$0xff]  ;;  %v470_v54 = vld [vmem:[%s1771_s4 + $0x8] sm:$0xff]  ;;  %v1348_v55 = vld [vmem:[%s1769_s1 + $0x54] ss:$8 sps:$4 sm:$0xff]  }
  0x13   :  { %342 = vmatprep.subr.bf16.mxu0 %v1373_v0  ;;  %v1347_v53 = vld [vmem:[%s1769_s1 + $0x40] ss:$8 sps:$4 sm:$0xff]   ;;  %v752_v58 = vld [vmem:[%s1772_s6 + $0x10] sm:$0xff]  ;;  %v753_v60 = vld [vmem:[%s1772_s6 + $0x18] sm:$0xff] }
  0x14   :  { %115 = vperm.xlu0 %1319, %v73_v19   ;;  %v750_v56 = vld [vmem:[%s1772_s6] sm:$0xff]  ;;  %v751_v57 = vld [vmem:[%s1772_s6 + $0x8] sm:$0xff]  ;;  %v1350_v59 = vld [vmem:[%s1769_s1 + $0x50] ss:$8 sps:$4 sm:$0xff]  }
  0x15   :  { %120 = vperm.xlu1 %1320, %v74_v20   ;;  %v1351_v61 = vld [vmem:[%s1769_s1 + $0x64] ss:$8 sps:$4 sm:$0xff]   ;;  %v1353_v1 = vld [vmem:[%s1769_s1 + $0x60] ss:$8 sps:$4 sm:$0xff]   ;;  %v757_v2 = vld [vmem:[%s1772_s6 + $0x38] sm:$0xff] }
  0x16   :  { %343 = vmatpush1.bf16.msra.mxu0 %v1326_v7  ;;  %v754_v62 = vld [vmem:[%s1772_s6 + $0x20] sm:$0xff]  ;;  %v755_v63 = vld [vmem:[%s1772_s6 + $0x28] sm:$0xff]  ;;  %v1354_v3 = vld [vmem:[%s1769_s1 + $0x74] ss:$8 sps:$4 sm:$0xff]  }
  0x17   :  { %344 = vmatprep.subr.bf16.mxu0 %v1373_v0  ;;  %v758_v4 = vld [vmem:[%s1772_s6 + $0x40] sm:$0xff]  ;;  %v759_v5 = vld [vmem:[%s1772_s6 + $0x48] sm:$0xff]  ;;  %v760_v6 = vld [vmem:[%s1772_s6 + $0x50] sm:$0xff] }
  0x18   :  { %105 = vperm.xlu0 %1319, %v71_v22   ;;  %v1356_v7 = vld [vmem:[%s1769_s1 + $0x70] ss:$8 sps:$4 sm:$0xff]   ;;  %v762_v9 = vld [vmem:[%s1772_s6 + $0x60] sm:$0xff]  ;;  %v763_v10 = vld [vmem:[%s1772_s6 + $0x68] sm:$0xff] }
  0x19   :  { %110 = vperm.xlu1 %1320, %v72_v23   ;;  %v761_v8 = vld [vmem:[%s1772_s6 + $0x58] sm:$0xff]  ;;  %v764_v11 = vld [vmem:[%s1772_s6 + $0x70] sm:$0xff]  ;;  %v1357_v17 = vld [vmem:[%s1773_s3] sm:$0xff]  }
  0x1a   :  { %345 = vmatpush1.bf16.msra.mxu0 %v1327_v12  ;;  %v765_v12 = vld [vmem:[%s1772_s6 + $0x78] sm:$0xff]  ;;  %1270 = vmatprep.mubr.bf16.mxu1 %v1357_v17 }
  0x1b   :  { %346 = vmatprep.subr.bf16.mxu0 %v1373_v0 }
  0x1c   :  { %95 = vperm.xlu0 %1319, %v69_v25  }
  0x1d   :  { %100 = vperm.xlu1 %1320, %v70_v26  }
  0x1e   :  { %347 = vmatpush1.bf16.msra.mxu0 %v1328_v15 }
  0x1f   :  { %356 = vmatprep.subr.bf16.mxu0 %v1373_v0 }
  0x20   :  { %85 = vperm.xlu0 %1319, %v67_v28  }
  0x21   :  { %90 = vperm.xlu1 %1320, %v68_v30  }
  0x22   :  { %357 = vmatpush2.bf16.msra.mxu0 %v1329_v18 }
  0x23   :  { %358 = vmatprep.subr.bf16.mxu0 %v1373_v0 }
  0x24   :  { %557 = vperm.xlu0 %1319, %v483_v32  }
  0x25   :  { %562 = vperm.xlu1 %1320, %v484_v33  }
  0x26   :  { %359 = vmatpush2.bf16.msra.mxu0 %v1330_v21 }
  0x27   :  { %360 = vmatprep.subr.bf16.mxu0 %v1373_v0 }
  0x28   :  { %547 = vperm.xlu0 %1319, %v481_v34  }
  0x29   :  { %552 = vperm.xlu1 %1320, %v482_v36  }
  0x2a   :  { %361 = vmatpush2.bf16.msra.mxu0 %v1331_v24 }
  0x2b   :  { %362 = vmatprep.subr.bf16.mxu0 %v1373_v0  ;;  %v756_v0 = vld [vmem:[%s1772_s6 + $0x30] sm:$0xff] }
  0x2c   :  { %537 = vperm.xlu0 %1319, %v479_v38  }
  0x2d   :  { %542 = vperm.xlu1 %1320, %v480_v39  }
  0x2e   :  { %363 = vmatpush2.bf16.msra.mxu0 %v1332_v27 }
  0x30   :  { %527 = vperm.xlu0 %1319, %v477_v40  }
  0x31   :  { %365 = vmatmul.mubr.bf16.vlgmr.msra.gmra.mxu0 %v1333_v29  ;;  %532 = vperm.xlu1 %1320, %v478_v42  }
  0x32   :  { %1120 = vmatprep.mubr.msk.bf16.mxu0 %vm307_vm0, %v1336_v31 }
  0x34   :  { %517 = vperm.xlu0 %1319, %v475_v44  }
  0x35   :  { %522 = vperm.xlu1 %1320, %v476_v45  }
  0x38   :  { %507 = vperm.xlu0 %1319, %v473_v46  }
  0x39   :  { %373 = vmatmul.mubr.bf16.gmra.mxu0 %v1338_v35  ;;  %512 = vperm.xlu1 %1320, %v474_v48  }
  0x3a   :  { %1121 = vmatprep.mubr.msk.bf16.mxu0 %vm307_vm0, %v1339_v37 }
  0x3c   :  { %497 = vperm.xlu0 %1319, %v471_v50  }
  0x3d   :  { %502 = vperm.xlu1 %1320, %v472_v51  }
  0x40   :  { %487 = vperm.xlu0 %1319, %v469_v52  }
  0x41   :  { %381 = vmatmul.mubr.bf16.gmra.mxu0 %v1341_v41  ;;  %492 = vperm.xlu1 %1320, %v470_v54  }
  0x42   :  { %1122 = vmatprep.mubr.msk.bf16.mxu0 %vm307_vm0, %v1342_v43 }
  0x44   :  { %768 = vperm.xlu0 %1319, %v750_v56  }
  0x45   :  { %773 = vperm.xlu1 %1320, %v751_v57  }
  0x48   :  { %778 = vperm.xlu0 %1319, %v752_v58  }
  0x49   :  { %389 = vmatmul.mubr.bf16.gmra.mxu0 %v1344_v47  ;;  %783 = vperm.xlu1 %1320, %v753_v60  }
  0x4a   :  { %1123 = vmatprep.mubr.msk.bf16.mxu0 %vm307_vm0, %v1345_v49 }
  0x4c   :  { %788 = vperm.xlu0 %1319, %v754_v62  }
  0x4d   :  { %793 = vperm.xlu1 %1320, %v755_v63  }
  0x50   :  { %798 = vperm.xlu0 %1319, %v756_v0  }
  0x51   :  { %397 = vmatmul.mubr.bf16.gmra.mxu0 %v1347_v53  ;;  %803 = vperm.xlu1 %1320, %v757_v2  }
  0x52   :  { %1124 = vmatprep.mubr.msk.bf16.mxu0 %vm307_vm0, %v1348_v55 }
  0x54   :  { %808 = vperm.xlu0 %1319, %v758_v4  }
  0x55   :  { %813 = vperm.xlu1 %1320, %v759_v5  }
  0x58   :  { %818 = vperm.xlu0 %1319, %v760_v6  }
  0x59   :  { %405 = vmatmul.mubr.bf16.gmra.mxu0 %v1350_v59  ;;  %823 = vperm.xlu1 %1320, %v761_v8  }
  0x5a   :  { %1125 = vmatprep.mubr.msk.bf16.mxu0 %vm307_vm0, %v1351_v61 }
  0x5c   :  { %828 = vperm.xlu0 %1319, %v762_v9  }
  0x5d   :  { %833 = vperm.xlu1 %1320, %v763_v10  }
  0x60   :  { %838 = vperm.xlu0 %1319, %v764_v11  }
  0x61   :  { %413 = vmatmul.mubr.bf16.gmra.mxu0 %v1353_v1  ;;  %843 = vperm.xlu1 %1320, %v765_v12  }
  0x62   :  { %1126 = vmatprep.mubr.msk.bf16.mxu0 %vm307_vm0, %v1354_v3 }
  0x69   :  { %421 = vmatmul.mubr.bf16.gmra.mxu0 %v1356_v7 }
  0x7f   :  { %v156_v13 = vpop.permute.xlu0 %155 }
  0x80   :  { %v146_v14 = vpop.permute.xlu1 %145 }
  0x83   :  { %v161_v15 = vpop.permute.xlu0 %160 }
  0x84   :  { %v151_v16 = vpop.permute.xlu1 %150 }
  0x87   :  { %v136_v18 = vpop.permute.xlu0 %135 }
  0x88   :  { %v141_v19 = vpop.permute.xlu1 %140 }
  0x8b   :  { %v1667_v20 = vpop.permute.xlu0 %125 }
  0x8c   :  { %v131_v21 = vpop.permute.xlu1 %130 }
  0x8f   :  { %v1669_v22 = vpop.permute.xlu0 %115 }
  0x90   :  { %v1671_v23 = vpop.permute.xlu1 %120 }
  0x93   :  { %v1673_v24 = vpop.permute.xlu0 %105 }
  0x94   :  { %v1675_v25 = vpop.permute.xlu1 %110 }
  0x97   :  { %v96_v26 = vpop.permute.xlu0 %95 }
  0x98   :  { %v101_v27 = vpop.permute.xlu1 %100 }
  0x9b   :  { %v86_v29 = vpop.permute.xlu0 %85 }
  0x9c   :  { %v91_v32 = vpop.permute.xlu1 %90 }
  0xf1   :  { %v366_v28 = vpop.f32.mrf.mxu0 }
  0xf2   :  { %v367_v31 = vadd.f32 %v366_v28, %v86_v29 }
  0xf3   :  { %v368_v30 = vpop.f32.mrf.mxu0 }
  0xf4   :  { %v429_v36 = vmax.f32 %v367_v31, 0.0 }
  0xf5   :  { %v369_v33 = vpop.f32.mrf.mxu0 }
  0xf6   :  { %v370_v34 = vadd.f32 %v369_v33, %v91_v32 }
  0xf7   :  { %v371_v35 = vpop.f32.mrf.mxu0 }
  0xf8   :  { %v430_v37 = vmax.f32 %v370_v34, 0.0 }
  0xf9   :  { %v374_v38 = vpop.f32.mrf.mxu0 }
  0xfa   :  { %v1677_v39 = vpack.c.bf16 %v430_v37, %v429_v36  ;;  %v375_v41 = vadd.f32 %v374_v38, %v96_v26 }
  0xfb   :  { %v376_v40 = vpop.f32.mrf.mxu0 }
  0xfc   :  { %v431_v45 = vmax.f32 %v375_v41, 0.0 }
  0xfd   :  { %v377_v42 = vpop.f32.mrf.mxu0 }
  0xfe   :  { %v378_v43 = vadd.f32 %v377_v42, %v101_v27  ;;  %v1361_v42 = vld [vmem:[%s1773_s3 + $0x20] sm:$0xff]  }
  0xff   :  { %v379_v44 = vpop.f32.mrf.mxu0 }
 0x100   :  { %v432_v46 = vmax.f32 %v378_v43, 0.0  ;;  %v1363_v43 = vld [vmem:[%s1773_s3 + $0x30] sm:$0xff]   ;;  %v1364_v44 = vld [vmem:[%s1773_s3 + $0x38] sm:$0xff]  }
 0x101   :  { %v382_v47 = vpop.f32.mrf.mxu0 }
 0x102   :  { %v1679_v48 = vpack.c.bf16 %v432_v46, %v431_v45  ;;  %v383_v37 = vadd.f32 %v382_v47, %v1673_v24  ;;  %v1359_v24 = vld [vmem:[%s1773_s3 + $0x10] sm:$0xff]   ;;  %v1365_v45 = vld [vmem:[%s1774_s5] sm:$0xff]  }
 0x103   :  { %v384_v49 = vpop.f32.mrf.mxu0 }
 0x105   :  { %v385_v50 = vpop.f32.mrf.mxu0 }
 0x107   :  { %v387_v51 = vpop.f32.mrf.mxu0 }
 0x109   :  { %v390_v52 = vpop.f32.mrf.mxu0 }
 0x10b   :  { %v392_v53 = vpop.f32.mrf.mxu0 }
 0x10d   :  { %v393_v54 = vpop.f32.mrf.mxu0 }
 0x10f   :  { %v395_v55 = vpop.f32.mrf.mxu0 }
 0x111   :  { %v398_v56 = vpop.f32.mrf.mxu0 }
 0x112   :  { %v399_v34 = vadd.f32 %v398_v56, %v1667_v20 }
 0x113   :  { %v400_v57 = vpop.f32.mrf.mxu0 }
 0x114   :  { %v437_v35 = vmax.f32 %v399_v34, 0.0 }
 0x115   :  { %v401_v58 = vpop.f32.mrf.mxu0 }
 0x116   :  { %v402_v31 = vadd.f32 %v401_v58, %v131_v21 }
 0x117   :  { %v403_v59 = vpop.f32.mrf.mxu0 }
 0x119   :  { %v406_v60 = vpop.f32.mrf.mxu0 }
 0x11a   :  { %v407_v28 = vadd.f32 %v406_v60, %v136_v18  ;;  %v386_v18 = vadd.f32 %v385_v50, %v1675_v25  ;;  %v1360_v25 = vld [vmem:[%s1773_s3 + $0x18] sm:$0xff]   ;;  %v563_v50 = vpop.permute.xlu1 %562 }
 0x11b   :  { %v408_v61 = vpop.f32.mrf.mxu0 }
 0x11c   :  { %v434_v20 = vmax.f32 %v386_v18, 0.0 }
 0x11d   :  { %v409_v62 = vpop.f32.mrf.mxu0 }
 0x11e   :  { %v410_v12 = vadd.f32 %v409_v62, %v141_v19  ;;  %v391_v19 = vadd.f32 %v390_v52, %v1669_v22  ;;  %v1358_v22 = vld [vmem:[%s1773_s3 + $0x8] sm:$0xff]   ;;  %v558_v52 = vpop.permute.xlu0 %557  ;;  %v553_v55 = vpop.permute.xlu1 %552 }
 0x11f   :  { %v411_v63 = vpop.f32.mrf.mxu0 }
 0x120   :  { %v440_v32 = vmax.f32 %v410_v12, 0.0  ;;  %v435_v38 = vmax.f32 %v391_v19, 0.0 }
 0x121   :  { %v414_v0 = vpop.f32.mrf.mxu0 }
 0x122   :  { %v415_v9 = vadd.f32 %v414_v0, %v146_v14  ;;  %v438_v14 = vmax.f32 %v402_v31, 0.0  ;;  %v548_v57 = vpop.permute.xlu0 %547  ;;  %v543_v60 = vpop.permute.xlu1 %542 }
 0x123   :  { %v416_v1 = vpop.f32.mrf.mxu0 }
 0x124   :  { %v441_v29 = vmax.f32 %v415_v9, 0.0  ;;  %v449_v36 = vpack.c.bf16 %v438_v14, %v437_v35 }
 0x125   :  { %v417_v2 = vpop.f32.mrf.mxu0 }
 0x126   :  { %v418_v6 = vadd.f32 %v417_v2, %v151_v16  ;;  %v439_v16 = vmax.f32 %v407_v28, 0.0  ;;  %v538_v62 = vpop.permute.xlu0 %537  ;;  %v533_v1 = vpop.permute.xlu1 %532 }
 0x127   :  { %v419_v3 = vpop.f32.mrf.mxu0 }
 0x128   :  { %v442_v17 = vmax.f32 %v418_v6, 0.0 }
 0x129   :  { %v422_v4 = vpop.f32.mrf.mxu0 }
 0x12a   :  { %v423_v7 = vadd.f32 %v422_v4, %v156_v13  ;;  %v451_v33 = vpack.c.bf16 %v442_v17, %v441_v29  ;;  %v394_v13 = vadd.f32 %v393_v54, %v1671_v23  ;;  %v433_v23 = vmax.f32 %v383_v37, 0.0  ;;  %v528_v4 = vpop.permute.xlu0 %527  ;;  %v523_v17 = vpop.permute.xlu1 %522 }
 0x12b   :  { %v424_v5 = vpop.f32.mrf.mxu0 }
 0x12c   :  { %v443_v26 = vmax.f32 %v423_v7, 0.0  ;;  %v436_v21 = vmax.f32 %v394_v13, 0.0  ;;  %v447_v41 = vpack.c.bf16 %v434_v20, %v433_v23 }
 0x12d   :  { %v425_v8 = vpop.f32.mrf.mxu0 }
 0x12e   :  { %v426_v10 = vadd.f32 %v425_v8, %v161_v15  ;;  %v450_v15 = vpack.c.bf16 %v440_v32, %v439_v16  ;;  %v448_v40 = vpack.c.bf16 %v436_v21, %v435_v38  ;;  %v513_v13 = vpop.permute.xlu1 %512 }
 0x12f   :  { %v427_v11 = vpop.f32.mrf.mxu0 }
 0x130   :  { %v444_v27 = vmax.f32 %v426_v10, 0.0 }
 0x132   :  { %v452_v30 = vpack.c.bf16 %v444_v27, %v443_v26  ;;  %v503_v20 = vpop.permute.xlu1 %502 }
 0x134   :  { %1254 = vmatprep.subr.bf16.mxu1 %v452_v30 }
 0x135   :  { %1255 = vmatpush3.bf16.msra.mxu1 %v452_v30  ;;  %v518_v30 = vpop.permute.xlu0 %517 }
 0x136   :  { %1256 = vmatprep.subr.bf16.mxu1 %v451_v33 }
 0x139   :  { %1257 = vmatpush3.bf16.msra.mxu1 %v451_v33  ;;  %v508_v35 = vpop.permute.xlu0 %507 }
 0x13a   :  { %1258 = vmatprep.subr.bf16.mxu1 %v450_v15 }
 0x13d   :  { %1259 = vmatpush3.bf16.msra.mxu1 %v450_v15 }
 0x13e   :  { %1260 = vmatprep.subr.bf16.mxu1 %v449_v36 }
 0x141   :  { %1261 = vmatpush3.bf16.msra.mxu1 %v449_v36 }
 0x142   :  { %1262 = vmatprep.subr.bf16.mxu1 %v448_v40 }
 0x145   :  { %1263 = vmatpush3.bf16.msra.mxu1 %v448_v40 }
 0x146   :  { %1264 = vmatprep.subr.bf16.mxu1 %v447_v41 }
 0x149   :  { %1265 = vmatpush3.bf16.msra.mxu1 %v447_v41  ;;  %v498_v41 = vpop.permute.xlu0 %497 }
 0x14a   :  { %1266 = vmatprep.subr.bf16.mxu1 %v1679_v48 }
 0x14d   :  { %1267 = vmatpush3.bf16.msra.mxu1 %v1679_v48 }
 0x14e   :  { %1268 = vmatprep.subr.bf16.mxu1 %v1677_v39 }
 0x151   :  { %1269 = vmatpush3.bf16.msra.mxu1 %v1677_v39  ;;  %v1362_v39 = vld [vmem:[%s1773_s3 + $0x28] sm:$0xff]  }
 0x154   :  { %1271 = vmatmul.mubr.bf16.vlgmr.msra.gmra.mxu1 %v1358_v22 }
 0x155   :  { %1274 = vmatprep.mubr.bf16.mxu1 %v1359_v24 }
 0x15c   :  { %1275 = vmatmul.mubr.bf16.gmra.mxu1 %v1360_v25 }
 0x15d   :  { %1278 = vmatprep.mubr.bf16.mxu1 %v1361_v42 }
 0x164   :  { %1279 = vmatmul.mubr.bf16.gmra.mxu1 %v1362_v39 }
 0x165   :  { %1282 = vmatprep.mubr.bf16.mxu1 %v1363_v43  ;;  %v493_v43 = vpop.permute.xlu1 %492 }
 0x16c   :  { %1283 = vmatmul.mubr.bf16.gmra.mxu1 %v1364_v44 }
 0x16d   :  { %1302 = vmatprep.mubr.bf16.mxu1 %v1365_v45 }
 0x214   :  { %v1714_v46 = vpop.f32.mrf.mxu1 }
 0x215   :  { %v656_v42 = vadd.f32 %v1714_v46, %v498_v41  ;;  %v1366_v46 = vld [vmem:[%s1774_s5 + $0x8] sm:$0xff]  }
 0x216   :  { %v1716_v47 = vpop.f32.mrf.mxu1 }
 0x218   :  { %v1273_v48 = vpop.f32.mrf.mxu1 }
 0x219   :  { %v659_v22 = vadd.f32 %v1273_v48, %v503_v20 }
 0x21a   :  { %v1718_v49 = vpop.f32.mrf.mxu1 }
 0x21b   :  { %v713_v44 = vmax.f32 %v659_v22, 0.0  ;;  %v651_v45 = vadd.f32 %v1718_v49, %v493_v43  ;;  %v1367_v49 = vld [vmem:[%s1774_s5 + $0x10] sm:$0xff]  }
 0x21c   :  { %v1276_v51 = vpop.f32.mrf.mxu1 }
 0x21d   :  { %v672_v18 = vadd.f32 %v1276_v51, %v518_v30  ;;  %v488_v51 = vpop.permute.xlu0 %487  ;;  %v711_v48 = vmax.f32 %v651_v45, 0.0 }
 0x21e   :  { %v663_v53 = vpop.f32.mrf.mxu1 }
 0x21f   :  { %v716_v40 = vmax.f32 %v672_v18, 0.0  ;;  %v664_v23 = vadd.f32 %v663_v53, %v508_v35  ;;  %v648_v53 = vadd.f32 %v1716_v47, %v488_v51  ;;  %v1368_v47 = vld [vmem:[%s1774_s5 + $0x18] sm:$0xff]  }
 0x220   :  { %v1277_v54 = vpop.f32.mrf.mxu1 }
 0x221   :  { %v675_v14 = vadd.f32 %v1277_v54, %v523_v17  ;;  %v714_v39 = vmax.f32 %v664_v23, 0.0 }
 0x222   :  { %v666_v56 = vpop.f32.mrf.mxu1 }
 0x223   :  { %v717_v36 = vmax.f32 %v675_v14, 0.0  ;;  %v667_v37 = vadd.f32 %v666_v56, %v513_v13 }
 0x224   :  { %v1280_v58 = vpop.f32.mrf.mxu1 }
 0x225   :  { %v688_v26 = vadd.f32 %v1280_v58, %v538_v62  ;;  %v729_v24 = vpack.c.bf16 %v717_v36, %v716_v40  ;;  %v715_v25 = vmax.f32 %v667_v37, 0.0  ;;  %v1370_v58 = vld [vmem:[%s1774_s5 + $0x28] sm:$0xff]   ;;  %v774_v62 = vpop.permute.xlu1 %773 }
 0x226   :  { %v679_v59 = vpop.f32.mrf.mxu1 }
 0x227   :  { %v720_v34 = vmax.f32 %v688_v26, 0.0  ;;  %v680_v16 = vadd.f32 %v679_v59, %v528_v4  ;;  %v1371_v59 = vld [vmem:[%s1774_s5 + $0x30] sm:$0xff]  }
 0x228   :  { %v1281_v61 = vpop.f32.mrf.mxu1 }
 0x229   :  { %v691_v9 = vadd.f32 %v1281_v61, %v543_v60  ;;  %v718_v21 = vmax.f32 %v680_v16, 0.0  ;;  %v1372_v60 = vld [vmem:[%s1774_s5 + $0x38] sm:$0xff]   ;;  %v769_v61 = vpop.permute.xlu0 %768 }
 0x22a   :  { %v682_v63 = vpop.f32.mrf.mxu1 }
 0x22b   :  { %v721_v31 = vmax.f32 %v691_v9, 0.0  ;;  %v683_v32 = vadd.f32 %v682_v63, %v533_v1 }
 0x22c   :  { %v1284_v0 = vpop.f32.mrf.mxu1 }
 0x22d   :  { %v704_v3 = vadd.f32 %v1284_v0, %v558_v52  ;;  %v731_v15 = vpack.c.bf16 %v721_v31, %v720_v34  ;;  %v719_v19 = vmax.f32 %v683_v32, 0.0  ;;  %v712_v52 = vmax.f32 %v656_v42, 0.0  ;;  %v779_v63 = vpop.permute.xlu0 %778  ;;  %v784_v0 = vpop.permute.xlu1 %783 }
 0x22e   :  { %v695_v2 = vpop.f32.mrf.mxu1 }
 0x22f   :  { %v696_v6 = vadd.f32 %v695_v2, %v548_v57  ;;  %v724_v10 = vmax.f32 %v704_v3, 0.0  ;;  %v730_v38 = vpack.c.bf16 %v719_v19, %v718_v21  ;;  %v727_v54 = vpack.c.bf16 %v713_v44, %v712_v52  ;;  %v1369_v57 = vld [vmem:[%s1774_s5 + $0x20] sm:$0xff]  }
 0x230   :  { %v1285_v5 = vpop.f32.mrf.mxu1 }
 0x231   :  { %v707_v7 = vadd.f32 %v1285_v5, %v563_v50  ;;  %v722_v27 = vmax.f32 %v696_v6, 0.0  ;;  %v728_v50 = vpack.c.bf16 %v715_v25, %v714_v39  ;;  %v789_v1 = vpop.permute.xlu0 %788  ;;  %v794_v2 = vpop.permute.xlu1 %793 }
 0x232   :  { %v698_v8 = vpop.f32.mrf.mxu1 }
 0x233   :  { %v725_v11 = vmax.f32 %v707_v7, 0.0  ;;  %v699_v12 = vadd.f32 %v698_v8, %v553_v55  ;;  %v710_v55 = vmax.f32 %v648_v53, 0.0 }
 0x235   :  { %v733_v28 = vpack.c.bf16 %v725_v11, %v724_v10  ;;  %v723_v29 = vmax.f32 %v699_v12, 0.0  ;;  %v726_v56 = vpack.c.bf16 %v711_v48, %v710_v55  ;;  %v799_v4 = vpop.permute.xlu0 %798  ;;  %v804_v7 = vpop.permute.xlu1 %803 }
 0x237   :  { %v732_v33 = vpack.c.bf16 %v723_v29, %v722_v27  ;;  %1286 = vmatprep.subr.bf16.mxu1 %v733_v28 }
 0x238   :  { %1287 = vmatpush3.bf16.msra.mxu1 %v733_v28 }
 0x239   :  { %1288 = vmatprep.subr.bf16.mxu1 %v732_v33  ;;  %v809_v27 = vpop.permute.xlu0 %808  ;;  %v814_v32 = vpop.permute.xlu1 %813 }
 0x23c   :  { %1289 = vmatpush3.bf16.msra.mxu1 %v732_v33 }
 0x23d   :  { %1290 = vmatprep.subr.bf16.mxu1 %v731_v15  ;;  %v819_v19 = vpop.permute.xlu0 %818  ;;  %v824_v37 = vpop.permute.xlu1 %823 }
 0x240   :  { %1291 = vmatpush3.bf16.msra.mxu1 %v731_v15 }
 0x241   :  { %1292 = vmatprep.subr.bf16.mxu1 %v730_v38  ;;  %v829_v25 = vpop.permute.xlu0 %828  ;;  %v834_v44 = vpop.permute.xlu1 %833 }
 0x244   :  { %1293 = vmatpush3.bf16.msra.mxu1 %v730_v38 }
 0x245   :  { %1294 = vmatprep.subr.bf16.mxu1 %v729_v24 }
 0x248   :  { %1295 = vmatpush3.bf16.msra.mxu1 %v729_v24 }
 0x249   :  { %1296 = vmatprep.subr.bf16.mxu1 %v728_v50 }
 0x24c   :  { %1297 = vmatpush3.bf16.msra.mxu1 %v728_v50 }
 0x24d   :  { %1298 = vmatprep.subr.bf16.mxu1 %v727_v54 }
 0x250   :  { %1299 = vmatpush3.bf16.msra.mxu1 %v727_v54 }
 0x251   :  { %1300 = vmatprep.subr.bf16.mxu1 %v726_v56 }
 0x254   :  { %1301 = vmatpush3.bf16.msra.mxu1 %v726_v56  ;;  %v839_v56 = vpop.permute.xlu0 %838 }
 0x257   :  { %1303 = vmatmul.mubr.bf16.vlgmr.msra.gmra.mxu1 %v1366_v46 }
 0x258   :  { %1306 = vmatprep.mubr.bf16.mxu1 %v1367_v49 }
 0x25f   :  { %1307 = vmatmul.mubr.bf16.gmra.mxu1 %v1368_v47 }
 0x260   :  { %1310 = vmatprep.mubr.bf16.mxu1 %v1369_v57  ;;  %v844_v57 = vpop.permute.xlu1 %843 }
 0x267   :  { %1311 = vmatmul.mubr.bf16.gmra.mxu1 %v1370_v58 }
 0x268   :  { %1314 = vmatprep.mubr.bf16.mxu1 %v1371_v59 }
 0x26f   :  { %1315 = vmatmul.mubr.bf16.gmra.mxu1 %v1372_v60 }
 0x317   :  { %v1304_v3 = vpop.f32.mrf.mxu1 }
 0x318   :  { %v937_v6 = vadd.f32 %v1304_v3, %v779_v63 }
 0x319   :  { %v928_v5 = vpop.f32.mrf.mxu1 }
 0x31a   :  { %v929_v9 = vadd.f32 %v928_v5, %v769_v61  ;;  %v993_v12 = vmax.f32 %v937_v6, 0.0 }
 0x31b   :  { %v1305_v8 = vpop.f32.mrf.mxu1 }
 0x31c   :  { %v940_v10 = vadd.f32 %v1305_v8, %v784_v0  ;;  %v991_v29 = vmax.f32 %v929_v9, 0.0 }
 0x31d   :  { %v931_v11 = vpop.f32.mrf.mxu1 }
 0x31e   :  { %v994_v17 = vmax.f32 %v940_v10, 0.0  ;;  %v932_v26 = vadd.f32 %v931_v11, %v774_v62 }
 0x31f   :  { %v1308_v28 = vpop.f32.mrf.mxu1 }
 0x320   :  { %v1183_v30 = vpack.c.bf16 %v994_v17, %v993_v12  ;;  %v992_v31 = vmax.f32 %v932_v26, 0.0  ;;  %v953_v16 = vadd.f32 %v1308_v28, %v799_v4 }
 0x321   :  { %v944_v33 = vpop.f32.mrf.mxu1 }
 0x322   :  { %1215 = vst [vmem:[%s1775_s7 + $0x8] sm:$0xff] %v1183_v30   ;;  %v1178_v34 = vpack.c.bf16 %v992_v31, %v991_v29  ;;  %v945_v14 = vadd.f32 %v944_v33, %v789_v1  ;;  %v997_v18 = vmax.f32 %v953_v16, 0.0 }
 0x323   :  { %v1309_v13 = vpop.f32.mrf.mxu1 }
 0x324   :  { %1179 = vst [vmem:[%s1775_s7] sm:$0xff] %v1178_v34   ;;  %v956_v15 = vadd.f32 %v1309_v13, %v804_v7  ;;  %v995_v20 = vmax.f32 %v945_v14, 0.0 }
 0x325   :  { %v947_v35 = vpop.f32.mrf.mxu1 }
 0x326   :  { %v998_v21 = vmax.f32 %v956_v15, 0.0  ;;  %v948_v36 = vadd.f32 %v947_v35, %v794_v2 }
 0x327   :  { %v1312_v38 = vpop.f32.mrf.mxu1 }
 0x328   :  { %v1193_v40 = vpack.c.bf16 %v998_v21, %v997_v18  ;;  %v996_v23 = vmax.f32 %v948_v36, 0.0  ;;  %v969_v24 = vadd.f32 %v1312_v38, %v819_v19 }
 0x329   :  { %v960_v41 = vpop.f32.mrf.mxu1 }
 0x32a   :  { %1217 = vst [vmem:[%s1775_s7 + $0x18] sm:$0xff] %v1193_v40   ;;  %v1188_v22 = vpack.c.bf16 %v996_v23, %v995_v20  ;;  %v961_v39 = vadd.f32 %v960_v41, %v809_v27  ;;  %v1001_v50 = vmax.f32 %v969_v24, 0.0 }
 0x32b   :  { %v1313_v42 = vpop.f32.mrf.mxu1 }
 0x32c   :  { %1216 = vst [vmem:[%s1775_s7 + $0x10] sm:$0xff] %v1188_v22   ;;  %v972_v43 = vadd.f32 %v1313_v42, %v824_v37  ;;  %v999_v54 = vmax.f32 %v961_v39, 0.0 }
 0x32d   :  { %v963_v45 = vpop.f32.mrf.mxu1 }
 0x32e   :  { %v1002_v51 = vmax.f32 %v972_v43, 0.0  ;;  %v964_v52 = vadd.f32 %v963_v45, %v814_v32 }
 0x32f   :  { %v1316_v53 = vpop.f32.mrf.mxu1 }
 0x330   :  { %v1203_v48 = vpack.c.bf16 %v1002_v51, %v1001_v50  ;;  %v1000_v55 = vmax.f32 %v964_v52, 0.0  ;;  %v985_v47 = vadd.f32 %v1316_v53, %v839_v56 }
 0x331   :  { %v976_v46 = vpop.f32.mrf.mxu1 }
 0x332   :  { %1219 = vst [vmem:[%s1775_s7 + $0x28] sm:$0xff] %v1203_v48   ;;  %v1198_v49 = vpack.c.bf16 %v1000_v55, %v999_v54  ;;  %v977_v59 = vadd.f32 %v976_v46, %v829_v25  ;;  %v1005_v62 = vmax.f32 %v985_v47, 0.0 }
 0x333   :  { %v1317_v58 = vpop.f32.mrf.mxu1 }
 0x334   :  { %1218 = vst [vmem:[%s1775_s7 + $0x20] sm:$0xff] %v1198_v49   ;;  %v988_v60 = vadd.f32 %v1317_v58, %v844_v57  ;;  %v1003_v1 = vmax.f32 %v977_v59, 0.0 }
 0x335   :  { %v979_v61 = vpop.f32.mrf.mxu1 }
 0x336   :  { %v1006_v63 = vmax.f32 %v988_v60, 0.0  ;;  %v980_v0 = vadd.f32 %v979_v61, %v834_v44 }
 0x338   :  { %v1213_v2 = vpack.c.bf16 %v1006_v63, %v1005_v62  ;;  %v1004_v3 = vmax.f32 %v980_v0, 0.0 }
 0x33a   :  { %1221 = vst [vmem:[%s1775_s7 + $0x38] sm:$0xff] %v1213_v2   ;;  %v1208_v4 = vpack.c.bf16 %v1004_v3, %v1003_v1 }
 0x33c   :  { %1220 = vst [vmem:[%s1775_s7 + $0x30] sm:$0xff] %v1208_v4  }

// kernel: a_call__.16
= control target key start
LH: loop header
LB: loop body
LE: loop exit
PB: predicated region body
PF: predicated region fallthrough
CT: control target
= control target key end

     0   :  { %v1542_v0 = vmov 0   ;;  %vm469_vm0 = vcmask 64512   ;;  %vm518_vm1 = vcmask 1043456   ;;  %vm1544_vm2 = vmmov 0   ;;  %s2108_s0 = inlined_call_operand.vmem [shape: bf16[136,128], index: 0, kind: input, shape index: {}]   ;;  %s2109_s1 = inlined_call_operand.vmem [shape: bf16[256,136], index: 1, kind: input, shape index: {}]   ;;  %s2110_s2 = inlined_call_operand.vmem [shape: f32[256,1], index: 2, kind: input, shape index: {}]   ;;  %s2111_s4 = inlined_call_operand.vmem [shape: f32[128,1], index: 4, kind: input, shape index: {}]   ;;  %s2112_s6 = inlined_call_operand.vmem [shape: f32[64,1], index: 6, kind: input, shape index: {}]   ;;  %s2113_s8 = inlined_call_operand.vmem [shape: f32[8,1], index: 8, kind: input, shape index: {}]   ;;  %s2114_s3 = inlined_call_operand.vmem [shape: bf16[128,256], index: 3, kind: input, shape index: {}]   ;;  %s2115_s5 = inlined_call_operand.vmem [shape: bf16[64,128], index: 5, kind: input, shape index: {}]   ;;  %s2116_s7 = inlined_call_operand.vmem [shape: bf16[8,64], index: 7, kind: input, shape index: {}]   ;;  %s2117_s9 = inlined_call_operand.vmem [shape: f32[8,128], index: 9, kind: output, shape index: {}]  }
   0x1   :  { %522 = vmatprep.subr.bf16.mxu0 %v1542_v0  ;;  %v1457_v1 = vld [vmem:[%s2108_s0 + $0x38] sm:$0xff]   ;;  %1455 = vset.pattern.permute.xlu0 %v1542_v0  ;;  %v1458_v2 = vld [vmem:[%s2108_s0 + $0x30] sm:$0xff]   ;;  %v1459_v3 = vld [vmem:[%s2108_s0 + $0x28] sm:$0xff]   ;;  %vm1208_vm3 = vcmask 523264  }
   0x2   :  { %1456 = vset.pattern.permute.xlu1 %v1542_v0  ;;  %523 = vmatpush1.bf16.msra.mxu0 %v1457_v1  ;;  %v1468_v4 = vld [vmem:[%s2109_s1 + $0x4] ss:$8 sps:$4 sm:$0xff]   ;;  %v112_v6 = vld [vmem:[%s2110_s2 + $0xf0] sm:$0xff]  ;;  %v113_v8 = vld [vmem:[%s2110_s2 + $0xf8] sm:$0xff] }
   0x3   :  { %524 = vmatprep.subr.bf16.mxu0 %v1542_v0  ;;  %v1460_v5 = vld [vmem:[%s2108_s0 + $0x20] sm:$0xff]   ;;  %1298 = vmatprep.mubr.msk.bf16.mxu0 %vm469_vm0, %v1468_v4  ;;  %v96_v7 = vld [vmem:[%s2110_s2 + $0x70] sm:$0xff]  ;;  %v1461_v9 = vld [vmem:[%s2108_s0 + $0x18] sm:$0xff]  }
   0x4   :  { %266 = vperm.xlu0 %1455, %v112_v6   ;;  %186 = vperm.xlu1 %1456, %v96_v7   ;;  %v97_v10 = vld [vmem:[%s2110_s2 + $0x78] sm:$0xff]  ;;  %v110_v11 = vld [vmem:[%s2110_s2 + $0xe0] sm:$0xff]  ;;  %v1462_v12 = vld [vmem:[%s2108_s0 + $0x10] sm:$0xff]  }
   0x5   :  { %v111_v13 = vld [vmem:[%s2110_s2 + $0xe8] sm:$0xff]  ;;  %v94_v14 = vld [vmem:[%s2110_s2 + $0x60] sm:$0xff]  ;;  %v108_v17 = vld [vmem:[%s2110_s2 + $0xd0] sm:$0xff] }
   0x6   :  { %525 = vmatpush1.bf16.msra.mxu0 %v1458_v2  ;;  %v1463_v15 = vld [vmem:[%s2108_s0 + $0x8] sm:$0xff]   ;;  %v1464_v18 = vld [vmem:[%s2108_s0] sm:$0xff]   ;;  %v109_v19 = vld [vmem:[%s2110_s2 + $0xd8] sm:$0xff] }
   0x7   :  { %526 = vmatprep.subr.bf16.mxu0 %v1542_v0  ;;  %v95_v16 = vld [vmem:[%s2110_s2 + $0x68] sm:$0xff]  ;;  %v1465_v20 = vld [vmem:[%s2108_s0 + $0x40] ss:$0 sps:$4 sm:$0xff]   ;;  %v92_v21 = vld [vmem:[%s2110_s2 + $0x50] sm:$0xff] }
   0x8   :  { %271 = vperm.xlu0 %1455, %v113_v8   ;;  %191 = vperm.xlu1 %1456, %v97_v10   ;;  %v93_v22 = vld [vmem:[%s2110_s2 + $0x58] sm:$0xff]  ;;  %v520_v23 = vsel %vm518_vm1, %v1465_v20, 0  ;;  %v1466_v24 = vld [vmem:[%s2109_s1] ss:$8 sps:$4 sm:$0xff]   ;;  %v104_v31 = vld [vmem:[%s2110_s2 + $0xb0] sm:$0xff] }
   0x9   :  { %v1469_v25 = vld [vmem:[%s2109_s1 + $0x14] ss:$8 sps:$4 sm:$0xff]   ;;  %v106_v26 = vld [vmem:[%s2110_s2 + $0xc0] sm:$0xff]  ;;  %v107_v27 = vld [vmem:[%s2110_s2 + $0xc8] sm:$0xff] }
   0xa   :  { %527 = vmatpush1.bf16.msra.mxu0 %v1459_v3  ;;  %v90_v28 = vld [vmem:[%s2110_s2 + $0x40] sm:$0xff]  ;;  %v91_v29 = vld [vmem:[%s2110_s2 + $0x48] sm:$0xff]  ;;  %v1471_v30 = vld [vmem:[%s2109_s1 + $0x10] ss:$8 sps:$4 sm:$0xff]  }
   0xb   :  { %528 = vmatprep.subr.bf16.mxu0 %v1542_v0  ;;  %v1472_v32 = vld [vmem:[%s2109_s1 + $0x24] ss:$8 sps:$4 sm:$0xff]   ;;  %v105_v33 = vld [vmem:[%s2110_s2 + $0xb8] sm:$0xff]  ;;  %v88_v34 = vld [vmem:[%s2110_s2 + $0x30] sm:$0xff] }
   0xc   :  { %256 = vperm.xlu0 %1455, %v110_v11   ;;  %261 = vperm.xlu1 %1456, %v111_v13   ;;  %v89_v35 = vld [vmem:[%s2110_s2 + $0x38] sm:$0xff]  ;;  %v1474_v36 = vld [vmem:[%s2109_s1 + $0x20] ss:$8 sps:$4 sm:$0xff]   ;;  %v100_v43 = vld [vmem:[%s2110_s2 + $0x90] sm:$0xff] }
   0xd   :  { %v102_v37 = vld [vmem:[%s2110_s2 + $0xa0] sm:$0xff]  ;;  %v1475_v38 = vld [vmem:[%s2109_s1 + $0x34] ss:$8 sps:$4 sm:$0xff]   ;;  %v103_v39 = vld [vmem:[%s2110_s2 + $0xa8] sm:$0xff] }
   0xe   :  { %529 = vmatpush1.bf16.msra.mxu0 %v1460_v5  ;;  %v86_v40 = vld [vmem:[%s2110_s2 + $0x20] sm:$0xff]  ;;  %v87_v41 = vld [vmem:[%s2110_s2 + $0x28] sm:$0xff]  ;;  %v1477_v42 = vld [vmem:[%s2109_s1 + $0x30] ss:$8 sps:$4 sm:$0xff]  }
   0xf   :  { %530 = vmatprep.subr.bf16.mxu0 %v1542_v0  ;;  %v1478_v44 = vld [vmem:[%s2109_s1 + $0x44] ss:$8 sps:$4 sm:$0xff]   ;;  %v101_v45 = vld [vmem:[%s2110_s2 + $0x98] sm:$0xff]  ;;  %v84_v46 = vld [vmem:[%s2110_s2 + $0x10] sm:$0xff] }
  0x10   :  { %176 = vperm.xlu0 %1455, %v94_v14   ;;  %181 = vperm.xlu1 %1456, %v95_v16   ;;  %v85_v47 = vld [vmem:[%s2110_s2 + $0x18] sm:$0xff]  ;;  %v1480_v48 = vld [vmem:[%s2109_s1 + $0x40] ss:$8 sps:$4 sm:$0xff]   ;;  %v761_v55 = vld [vmem:[%s2111_s4 + $0x70] sm:$0xff] }
  0x11   :  { %v98_v49 = vld [vmem:[%s2110_s2 + $0x80] sm:$0xff]  ;;  %v1481_v50 = vld [vmem:[%s2109_s1 + $0x54] ss:$8 sps:$4 sm:$0xff]   ;;  %v99_v51 = vld [vmem:[%s2110_s2 + $0x88] sm:$0xff] }
  0x12   :  { %531 = vmatpush1.bf16.msra.mxu0 %v1461_v9  ;;  %v82_v52 = vld [vmem:[%s2110_s2] sm:$0xff]  ;;  %v83_v53 = vld [vmem:[%s2110_s2 + $0x8] sm:$0xff]  ;;  %v1483_v54 = vld [vmem:[%s2109_s1 + $0x50] ss:$8 sps:$4 sm:$0xff]  }
  0x13   :  { %532 = vmatprep.subr.bf16.mxu0 %v1542_v0  ;;  %v1484_v56 = vld [vmem:[%s2109_s1 + $0x64] ss:$8 sps:$4 sm:$0xff]   ;;  %v762_v57 = vld [vmem:[%s2111_s4 + $0x78] sm:$0xff]  ;;  %v1486_v60 = vld [vmem:[%s2109_s1 + $0x60] ss:$8 sps:$4 sm:$0xff]  }
  0x14   :  { %246 = vperm.xlu0 %1455, %v108_v17   ;;  %251 = vperm.xlu1 %1456, %v109_v19   ;;  %v759_v58 = vld [vmem:[%s2111_s4 + $0x60] sm:$0xff]  ;;  %v760_v59 = vld [vmem:[%s2111_s4 + $0x68] sm:$0xff]  ;;  %v757_v61 = vld [vmem:[%s2111_s4 + $0x50] sm:$0xff] }
  0x15   :  { %v1487_v62 = vld [vmem:[%s2109_s1 + $0x74] ss:$8 sps:$4 sm:$0xff]   ;;  %v756_v1 = vld [vmem:[%s2111_s4 + $0x48] sm:$0xff]  ;;  %v1489_v2 = vld [vmem:[%s2109_s1 + $0x70] ss:$8 sps:$4 sm:$0xff]  }
  0x16   :  { %533 = vmatpush1.bf16.msra.mxu0 %v1462_v12  ;;  %v758_v63 = vld [vmem:[%s2111_s4 + $0x58] sm:$0xff]  ;;  %v753_v3 = vld [vmem:[%s2111_s4 + $0x30] sm:$0xff]  ;;  %v1490_v4 = vld [vmem:[%s2109_s1 + $0x84] ss:$8 sps:$4 sm:$0xff]  }
  0x17   :  { %534 = vmatprep.subr.bf16.mxu0 %v1542_v0  ;;  %v754_v5 = vld [vmem:[%s2111_s4 + $0x38] sm:$0xff]  ;;  %v751_v6 = vld [vmem:[%s2111_s4 + $0x20] sm:$0xff]  ;;  %v752_v7 = vld [vmem:[%s2111_s4 + $0x28] sm:$0xff] }
  0x18   :  { %166 = vperm.xlu0 %1455, %v92_v21   ;;  %171 = vperm.xlu1 %1456, %v93_v22   ;;  %v1492_v8 = vld [vmem:[%s2109_s1 + $0x80] ss:$8 sps:$4 sm:$0xff]   ;;  %v749_v9 = vld [vmem:[%s2111_s4 + $0x10] sm:$0xff]  ;;  %v750_v11 = vld [vmem:[%s2111_s4 + $0x18] sm:$0xff] }
  0x19   :  { %v1493_v10 = vld [vmem:[%s2109_s1 + $0x94] ss:$8 sps:$4 sm:$0xff]   ;;  %v747_v12 = vld [vmem:[%s2111_s4] sm:$0xff]  ;;  %v748_v13 = vld [vmem:[%s2111_s4 + $0x8] sm:$0xff] }
  0x1a   :  { %535 = vmatpush1.bf16.msra.mxu0 %v1463_v15  ;;  %v1495_v14 = vld [vmem:[%s2109_s1 + $0x90] ss:$8 sps:$4 sm:$0xff]   ;;  %v1496_v16 = vld [vmem:[%s2109_s1 + $0xa4] ss:$8 sps:$4 sm:$0xff]   ;;  %v1498_v20 = vld [vmem:[%s2109_s1 + $0xa0] ss:$8 sps:$4 sm:$0xff]  }
  0x1b   :  { %536 = vmatprep.subr.bf16.mxu0 %v1542_v0  ;;  %v1058_v15 = vld [vmem:[%s2112_s6 + $0x30] sm:$0xff]  ;;  %v1059_v17 = vld [vmem:[%s2112_s6 + $0x38] sm:$0xff]  ;;  %v1057_v19 = vld [vmem:[%s2112_s6 + $0x28] sm:$0xff] }
  0x1c   :  { %236 = vperm.xlu0 %1455, %v106_v26   ;;  %241 = vperm.xlu1 %1456, %v107_v27   ;;  %v1054_v21 = vld [vmem:[%s2112_s6 + $0x10] sm:$0xff]  ;;  %v1202_v27 = vld [vmem:[%s2113_s8] sm:$0xff] }
  0x1d   :  { %v1499_v22 = vld [vmem:[%s2109_s1 + $0xb4] ss:$8 sps:$4 sm:$0xff]   ;;  %v1501_v26 = vld [vmem:[%s2109_s1 + $0xb0] ss:$8 sps:$4 sm:$0xff]  }
  0x1e   :  { %537 = vmatpush1.bf16.msra.mxu0 %v1464_v18  ;;  %v1056_v18 = vld [vmem:[%s2112_s6 + $0x20] sm:$0xff] }
  0x1f   :  { %552 = vmatprep.subr.bf16.mxu0 %v1542_v0  ;;  %v755_v0 = vld [vmem:[%s2111_s4 + $0x40] sm:$0xff] }
  0x20   :  { %156 = vperm.xlu0 %1455, %v90_v28   ;;  %161 = vperm.xlu1 %1456, %v91_v29   ;;  %v1502_v28 = vld [vmem:[%s2109_s1 + $0xc4] ss:$8 sps:$4 sm:$0xff]   ;;  %v1504_v29 = vld [vmem:[%s2109_s1 + $0xc0] ss:$8 sps:$4 sm:$0xff]  }
  0x22   :  { %553 = vmatpush2.bf16.msra.mxu0 %v520_v23  ;;  %v1055_v23 = vld [vmem:[%s2112_s6 + $0x18] sm:$0xff] }
  0x24   :  { %226 = vperm.xlu0 %1455, %v104_v31   ;;  %231 = vperm.xlu1 %1456, %v105_v33   ;;  %v1507_v31 = vld [vmem:[%s2109_s1 + $0xd0] ss:$8 sps:$4 sm:$0xff]  }
  0x25   :  { %555 = vmatmul.mubr.bf16.vlgmr.msra.gmra.mxu0 %v1466_v24  ;;  %v1052_v24 = vld [vmem:[%s2112_s6] sm:$0xff] }
  0x26   :  { %1299 = vmatprep.mubr.msk.bf16.mxu0 %vm469_vm0, %v1469_v25  ;;  %v1053_v25 = vld [vmem:[%s2112_s6 + $0x8] sm:$0xff] }
  0x28   :  { %146 = vperm.xlu0 %1455, %v88_v34   ;;  %151 = vperm.xlu1 %1456, %v89_v35   ;;  %v1510_v35 = vld [vmem:[%s2109_s1 + $0xe0] ss:$8 sps:$4 sm:$0xff]  }
  0x2c   :  { %216 = vperm.xlu0 %1455, %v102_v37   ;;  %221 = vperm.xlu1 %1456, %v103_v39   ;;  %v1511_v37 = vld [vmem:[%s2109_s1 + $0xf4] ss:$8 sps:$4 sm:$0xff]  }
  0x2d   :  { %563 = vmatmul.mubr.bf16.gmra.mxu0 %v1471_v30  ;;  %v1505_v30 = vld [vmem:[%s2109_s1 + $0xd4] ss:$8 sps:$4 sm:$0xff]  }
  0x2e   :  { %1300 = vmatprep.mubr.msk.bf16.mxu0 %vm469_vm0, %v1472_v32  ;;  %v1508_v32 = vld [vmem:[%s2109_s1 + $0xe4] ss:$8 sps:$4 sm:$0xff]  }
  0x30   :  { %136 = vperm.xlu0 %1455, %v86_v40   ;;  %141 = vperm.xlu1 %1456, %v87_v41   ;;  %v1513_v40 = vld [vmem:[%s2109_s1 + $0xf0] ss:$8 sps:$4 sm:$0xff]  }
  0x34   :  { %206 = vperm.xlu0 %1455, %v100_v43   ;;  %211 = vperm.xlu1 %1456, %v101_v45  }
  0x35   :  { %571 = vmatmul.mubr.bf16.gmra.mxu0 %v1474_v36 }
  0x36   :  { %1301 = vmatprep.mubr.msk.bf16.mxu0 %vm469_vm0, %v1475_v38 }
  0x38   :  { %126 = vperm.xlu0 %1455, %v84_v46   ;;  %131 = vperm.xlu1 %1456, %v85_v47  }
  0x3c   :  { %196 = vperm.xlu0 %1455, %v98_v49   ;;  %201 = vperm.xlu1 %1456, %v99_v51  }
  0x3d   :  { %579 = vmatmul.mubr.bf16.gmra.mxu0 %v1477_v42 }
  0x3e   :  { %1302 = vmatprep.mubr.msk.bf16.mxu0 %vm469_vm0, %v1478_v44 }
  0x40   :  { %116 = vperm.xlu0 %1455, %v82_v52   ;;  %121 = vperm.xlu1 %1456, %v83_v53  }
  0x44   :  { %835 = vperm.xlu0 %1455, %v761_v55   ;;  %840 = vperm.xlu1 %1456, %v762_v57  }
  0x45   :  { %587 = vmatmul.mubr.bf16.gmra.mxu0 %v1480_v48 }
  0x46   :  { %1303 = vmatprep.mubr.msk.bf16.mxu0 %vm469_vm0, %v1481_v50 }
  0x48   :  { %825 = vperm.xlu0 %1455, %v759_v58   ;;  %830 = vperm.xlu1 %1456, %v760_v59  }
  0x4c   :  { %815 = vperm.xlu0 %1455, %v757_v61   ;;  %820 = vperm.xlu1 %1456, %v758_v63  }
  0x4d   :  { %595 = vmatmul.mubr.bf16.gmra.mxu0 %v1483_v54 }
  0x4e   :  { %1304 = vmatprep.mubr.msk.bf16.mxu0 %vm469_vm0, %v1484_v56 }
  0x50   :  { %805 = vperm.xlu0 %1455, %v755_v0   ;;  %810 = vperm.xlu1 %1456, %v756_v1  }
  0x54   :  { %795 = vperm.xlu0 %1455, %v753_v3   ;;  %800 = vperm.xlu1 %1456, %v754_v5  }
  0x55   :  { %603 = vmatmul.mubr.bf16.gmra.mxu0 %v1486_v60 }
  0x56   :  { %1305 = vmatprep.mubr.msk.bf16.mxu0 %vm469_vm0, %v1487_v62 }
  0x58   :  { %785 = vperm.xlu0 %1455, %v751_v6   ;;  %790 = vperm.xlu1 %1456, %v752_v7  }
  0x5c   :  { %775 = vperm.xlu0 %1455, %v749_v9   ;;  %780 = vperm.xlu1 %1456, %v750_v11  }
  0x5d   :  { %611 = vmatmul.mubr.bf16.gmra.mxu0 %v1489_v2 }
  0x5e   :  { %1306 = vmatprep.mubr.msk.bf16.mxu0 %vm469_vm0, %v1490_v4 }
  0x60   :  { %765 = vperm.xlu0 %1455, %v747_v12   ;;  %770 = vperm.xlu1 %1456, %v748_v13  }
  0x64   :  { %1092 = vperm.xlu0 %1455, %v1058_v15   ;;  %1097 = vperm.xlu1 %1456, %v1059_v17  }
  0x65   :  { %619 = vmatmul.mubr.bf16.gmra.mxu0 %v1492_v8 }
  0x66   :  { %1307 = vmatprep.mubr.msk.bf16.mxu0 %vm469_vm0, %v1493_v10 }
  0x68   :  { %1082 = vperm.xlu0 %1455, %v1056_v18   ;;  %1087 = vperm.xlu1 %1456, %v1057_v19  }
  0x6c   :  { %1072 = vperm.xlu0 %1455, %v1054_v21   ;;  %1077 = vperm.xlu1 %1456, %v1055_v23  }
  0x6d   :  { %627 = vmatmul.mubr.bf16.gmra.mxu0 %v1495_v14 }
  0x6e   :  { %1308 = vmatprep.mubr.msk.bf16.mxu0 %vm469_vm0, %v1496_v16 }
  0x70   :  { %1062 = vperm.xlu0 %1455, %v1052_v24   ;;  %1067 = vperm.xlu1 %1456, %v1053_v25  }
  0x74   :  { %1205 = vperm.xlu0 %1455, %v1202_v27  }
  0x75   :  { %635 = vmatmul.mubr.bf16.gmra.mxu0 %v1498_v20 }
  0x76   :  { %1309 = vmatprep.mubr.msk.bf16.mxu0 %vm469_vm0, %v1499_v22 }
  0x7d   :  { %643 = vmatmul.mubr.bf16.gmra.mxu0 %v1501_v26 }
  0x7e   :  { %1310 = vmatprep.mubr.msk.bf16.mxu0 %vm469_vm0, %v1502_v28 }
  0x7f   :  { %v1894_v33 = vpop.permute.xlu0 %266  ;;  %v1896_v34 = vpop.permute.xlu1 %186 }
  0x83   :  { %v1902_v36 = vpop.permute.xlu0 %271  ;;  %v1907_v38 = vpop.permute.xlu1 %191 }
  0x85   :  { %651 = vmatmul.mubr.bf16.gmra.mxu0 %v1504_v29 }
  0x86   :  { %1311 = vmatprep.mubr.msk.bf16.mxu0 %vm469_vm0, %v1505_v30 }
  0x87   :  { %v1910_v39 = vpop.permute.xlu0 %256  ;;  %v1915_v41 = vpop.permute.xlu1 %261 }
  0x8b   :  { %v1917_v42 = vpop.permute.xlu0 %176  ;;  %v1919_v43 = vpop.permute.xlu1 %181 }
  0x8d   :  { %659 = vmatmul.mubr.bf16.gmra.mxu0 %v1507_v31 }
  0x8e   :  { %1312 = vmatprep.mubr.msk.bf16.mxu0 %vm469_vm0, %v1508_v32 }
  0x8f   :  { %v1921_v44 = vpop.permute.xlu0 %246  ;;  %v1923_v45 = vpop.permute.xlu1 %251 }
  0x93   :  { %v1925_v46 = vpop.permute.xlu0 %166  ;;  %v1927_v47 = vpop.permute.xlu1 %171 }
  0x95   :  { %667 = vmatmul.mubr.bf16.gmra.mxu0 %v1510_v35 }
  0x96   :  { %1313 = vmatprep.mubr.msk.bf16.mxu0 %vm469_vm0, %v1511_v37 }
  0x97   :  { %v1929_v48 = vpop.permute.xlu0 %236  ;;  %v1931_v49 = vpop.permute.xlu1 %241 }
  0x9b   :  { %v157_v50 = vpop.permute.xlu0 %156  ;;  %v162_v51 = vpop.permute.xlu1 %161 }
  0x9d   :  { %675 = vmatmul.mubr.bf16.gmra.mxu0 %v1513_v40 }
  0x9f   :  { %v1933_v52 = vpop.permute.xlu0 %226  ;;  %v1935_v53 = vpop.permute.xlu1 %231 }
  0xa3   :  { %v147_v54 = vpop.permute.xlu0 %146  ;;  %v152_v55 = vpop.permute.xlu1 %151 }
  0xa7   :  { %v1937_v56 = vpop.permute.xlu0 %216  ;;  %v1939_v57 = vpop.permute.xlu1 %221 }
  0xab   :  { %v137_v58 = vpop.permute.xlu0 %136  ;;  %v142_v59 = vpop.permute.xlu1 %141 }
  0xaf   :  { %v1941_v60 = vpop.permute.xlu0 %206  ;;  %v1943_v61 = vpop.permute.xlu1 %211 }
  0xb3   :  { %v127_v62 = vpop.permute.xlu0 %126  ;;  %v132_v63 = vpop.permute.xlu1 %131 }
  0xb7   :  { %v1945_v0 = vpop.permute.xlu0 %196  ;;  %v1947_v1 = vpop.permute.xlu1 %201 }
  0xbb   :  { %v117_v2 = vpop.permute.xlu0 %116  ;;  %v122_v5 = vpop.permute.xlu1 %121 }
  0xe5   :  { %v556_v3 = vpop.f32.mrf.mxu0 }
  0xe6   :  { %v557_v6 = vadd.f32 %v556_v3, %v117_v2 }
  0xe7   :  { %v558_v4 = vpop.f32.mrf.mxu0 }
  0xe8   :  { %v683_v10 = vmax.f32 %v557_v6, 0.0 }
  0xe9   :  { %v559_v7 = vpop.f32.mrf.mxu0 }
  0xea   :  { %v560_v8 = vadd.f32 %v559_v7, %v122_v5 }
  0xeb   :  { %v561_v9 = vpop.f32.mrf.mxu0 }
  0xec   :  { %v684_v11 = vmax.f32 %v560_v8, 0.0 }
  0xed   :  { %v564_v12 = vpop.f32.mrf.mxu0 }
  0xee   :  { %v1949_v13 = vpack.c.bf16 %v684_v11, %v683_v10  ;;  %v565_v15 = vadd.f32 %v564_v12, %v127_v62 }
  0xef   :  { %v566_v14 = vpop.f32.mrf.mxu0 }
  0xf0   :  { %v685_v19 = vmax.f32 %v565_v15, 0.0 }
  0xf1   :  { %v567_v16 = vpop.f32.mrf.mxu0 }
  0xf2   :  { %v568_v17 = vadd.f32 %v567_v16, %v132_v63 }
  0xf3   :  { %v569_v18 = vpop.f32.mrf.mxu0 }
  0xf4   :  { %v686_v20 = vmax.f32 %v568_v17, 0.0 }
  0xf5   :  { %v572_v21 = vpop.f32.mrf.mxu0 }
  0xf6   :  { %v1951_v22 = vpack.c.bf16 %v686_v20, %v685_v19  ;;  %v573_v24 = vadd.f32 %v572_v21, %v137_v58  ;;  %v1516_v58 = vld [vmem:[%s2114_s3 + $0x4] ss:$8 sps:$4 sm:$0xff]  }
  0xf7   :  { %v574_v23 = vpop.f32.mrf.mxu0  ;;  %955 = vmatprep.mubr.bf16.mxu1 %v1516_v58 }
  0xf8   :  { %v687_v28 = vmax.f32 %v573_v24, 0.0 }
  0xf9   :  { %v575_v25 = vpop.f32.mrf.mxu0 }
  0xfa   :  { %v576_v26 = vadd.f32 %v575_v25, %v142_v59 }
  0xfb   :  { %v577_v27 = vpop.f32.mrf.mxu0 }
  0xfc   :  { %v688_v29 = vmax.f32 %v576_v26, 0.0 }
  0xfd   :  { %v580_v30 = vpop.f32.mrf.mxu0 }
  0xfe   :  { %v1953_v31 = vpack.c.bf16 %v688_v29, %v687_v28  ;;  %v581_v35 = vadd.f32 %v580_v30, %v147_v54 }
  0xff   :  { %v582_v32 = vpop.f32.mrf.mxu0 }
 0x100   :  { %v689_v63 = vmax.f32 %v581_v35, 0.0 }
 0x101   :  { %v583_v37 = vpop.f32.mrf.mxu0 }
 0x102   :  { %v584_v40 = vadd.f32 %v583_v37, %v152_v55 }
 0x103   :  { %v585_v62 = vpop.f32.mrf.mxu0 }
 0x104   :  { %v690_v2 = vmax.f32 %v584_v40, 0.0 }
 0x105   :  { %v588_v3 = vpop.f32.mrf.mxu0 }
 0x106   :  { %v1955_v4 = vpack.c.bf16 %v690_v2, %v689_v63  ;;  %v589_v5 = vadd.f32 %v588_v3, %v157_v50 }
 0x107   :  { %v590_v59 = vpop.f32.mrf.mxu0 }
 0x108   :  { %v691_v9 = vmax.f32 %v589_v5, 0.0 }
 0x109   :  { %v591_v6 = vpop.f32.mrf.mxu0 }
 0x10a   :  { %v592_v7 = vadd.f32 %v591_v6, %v162_v51 }
 0x10b   :  { %v593_v8 = vpop.f32.mrf.mxu0 }
 0x10c   :  { %v692_v54 = vmax.f32 %v592_v7, 0.0 }
 0x10d   :  { %v596_v10 = vpop.f32.mrf.mxu0 }
 0x10e   :  { %v1960_v55 = vpack.c.bf16 %v692_v54, %v691_v9  ;;  %v597_v12 = vadd.f32 %v596_v10, %v1925_v46 }
 0x10f   :  { %v598_v11 = vpop.f32.mrf.mxu0 }
 0x110   :  { %v693_v17 = vmax.f32 %v597_v12, 0.0 }
 0x111   :  { %v599_v14 = vpop.f32.mrf.mxu0 }
 0x112   :  { %v600_v15 = vadd.f32 %v599_v14, %v1927_v47 }
 0x113   :  { %v601_v16 = vpop.f32.mrf.mxu0 }
 0x114   :  { %v694_v18 = vmax.f32 %v600_v15, 0.0 }
 0x115   :  { %v604_v19 = vpop.f32.mrf.mxu0 }
 0x116   :  { %v1964_v50 = vpack.c.bf16 %v694_v18, %v693_v17  ;;  %v605_v51 = vadd.f32 %v604_v19, %v1917_v42 }
 0x117   :  { %v606_v20 = vpop.f32.mrf.mxu0 }
 0x118   :  { %v695_v25 = vmax.f32 %v605_v51, 0.0 }
 0x119   :  { %v607_v21 = vpop.f32.mrf.mxu0 }
 0x11a   :  { %v608_v23 = vadd.f32 %v607_v21, %v1919_v43 }
 0x11b   :  { %v609_v24 = vpop.f32.mrf.mxu0 }
 0x11c   :  { %v696_v26 = vmax.f32 %v608_v23, 0.0 }
 0x11d   :  { %v612_v27 = vpop.f32.mrf.mxu0 }
 0x11e   :  { %v1968_v46 = vpack.c.bf16 %v696_v26, %v695_v25  ;;  %v613_v47 = vadd.f32 %v612_v27, %v1896_v34 }
 0x11f   :  { %v614_v28 = vpop.f32.mrf.mxu0 }
 0x120   :  { %v697_v35 = vmax.f32 %v613_v47, 0.0 }
 0x121   :  { %v615_v29 = vpop.f32.mrf.mxu0 }
 0x122   :  { %v616_v30 = vadd.f32 %v615_v29, %v1907_v38 }
 0x123   :  { %v617_v32 = vpop.f32.mrf.mxu0 }
 0x124   :  { %v698_v37 = vmax.f32 %v616_v30, 0.0 }
 0x125   :  { %v620_v40 = vpop.f32.mrf.mxu0 }
 0x126   :  { %v722_v42 = vpack.c.bf16 %v698_v37, %v697_v35  ;;  %v621_v43 = vadd.f32 %v620_v40, %v1945_v0 }
 0x127   :  { %v622_v62 = vpop.f32.mrf.mxu0 }
 0x128   :  { %v699_v58 = vmax.f32 %v621_v43, 0.0 }
 0x129   :  { %v623_v63 = vpop.f32.mrf.mxu0 }
 0x12a   :  { %v624_v2 = vadd.f32 %v623_v63, %v1947_v1 }
 0x12b   :  { %v625_v3 = vpop.f32.mrf.mxu0 }
 0x12c   :  { %v700_v59 = vmax.f32 %v624_v2, 0.0 }
 0x12d   :  { %v628_v5 = vpop.f32.mrf.mxu0 }
 0x12e   :  { %v1974_v6 = vpack.c.bf16 %v700_v59, %v699_v58  ;;  %v629_v38 = vadd.f32 %v628_v5, %v1941_v60 }
 0x12f   :  { %v630_v34 = vpop.f32.mrf.mxu0 }
 0x130   :  { %v701_v54 = vmax.f32 %v629_v38, 0.0 }
 0x131   :  { %v631_v7 = vpop.f32.mrf.mxu0 }
 0x132   :  { %v632_v8 = vadd.f32 %v631_v7, %v1943_v61 }
 0x133   :  { %v633_v9 = vpop.f32.mrf.mxu0 }
 0x134   :  { %v702_v10 = vmax.f32 %v632_v8, 0.0 }
 0x135   :  { %v636_v11 = vpop.f32.mrf.mxu0 }
 0x136   :  { %v1978_v0 = vpack.c.bf16 %v702_v10, %v701_v54 }
 0x137   :  { %v638_v12 = vpop.f32.mrf.mxu0 }
 0x139   :  { %v639_v1 = vpop.f32.mrf.mxu0 }
 0x13b   :  { %v641_v14 = vpop.f32.mrf.mxu0 }
 0x13c   :  { %v1535_v14 = vld [vmem:[%s2114_s3 + $0x74] ss:$8 sps:$4 sm:$0xff]  }
 0x13d   :  { %v644_v15 = vpop.f32.mrf.mxu0 }
 0x13f   :  { %v646_v16 = vpop.f32.mrf.mxu0 }
 0x140   :  { %v2046_v16 = vpop.permute.xlu0 %835 }
 0x141   :  { %v647_v17 = vpop.f32.mrf.mxu0 }
 0x143   :  { %v649_v18 = vpop.f32.mrf.mxu0 }
 0x144   :  { %v2050_v18 = vpop.permute.xlu0 %825 }
 0x145   :  { %v652_v19 = vpop.f32.mrf.mxu0 }
 0x147   :  { %v654_v20 = vpop.f32.mrf.mxu0 }
 0x148   :  { %v1538_v20 = vld [vmem:[%s2115_s5] sm:$0xff]  }
 0x149   :  { %v655_v51 = vpop.f32.mrf.mxu0 }
 0x14a   :  { %v656_v34 = vadd.f32 %v655_v51, %v1931_v49  ;;  %v640_v49 = vadd.f32 %v639_v1, %v1939_v57  ;;  %v1519_v57 = vld [vmem:[%s2114_s3 + $0x10] ss:$8 sps:$4 sm:$0xff]   ;;  %v1534_v1 = vld [vmem:[%s2114_s3 + $0x60] ss:$8 sps:$4 sm:$0xff]   ;;  %v2057_v51 = vpop.permute.xlu0 %815 }
 0x14b   :  { %v657_v60 = vpop.f32.mrf.mxu0 }
 0x14c   :  { %v704_v10 = vmax.f32 %v640_v49, 0.0 }
 0x14d   :  { %v660_v21 = vpop.f32.mrf.mxu0 }
 0x14e   :  { %v661_v58 = vadd.f32 %v660_v21, %v1921_v44  ;;  %v645_v44 = vadd.f32 %v644_v15, %v1933_v52  ;;  %v1514_v52 = vld [vmem:[%s2114_s3] ss:$8 sps:$4 sm:$0xff]   ;;  %v1537_v15 = vld [vmem:[%s2114_s3 + $0x70] ss:$8 sps:$4 sm:$0xff]   ;;  %v2061_v21 = vpop.permute.xlu0 %805 }
 0x14f   :  { %v662_v23 = vpop.f32.mrf.mxu0 }
 0x151   :  { %v663_v61 = vpop.f32.mrf.mxu0 }
 0x152   :  { %v664_v43 = vadd.f32 %v663_v61, %v1923_v45  ;;  %v708_v45 = vmax.f32 %v656_v34, 0.0  ;;  %v2065_v61 = vpop.permute.xlu0 %795 }
 0x153   :  { %v665_v24 = vpop.f32.mrf.mxu0 }
 0x155   :  { %v668_v25 = vpop.f32.mrf.mxu0 }
 0x156   :  { %v669_v37 = vadd.f32 %v668_v25, %v1910_v39  ;;  %v709_v39 = vmax.f32 %v661_v58, 0.0  ;;  %v2069_v25 = vpop.permute.xlu0 %785 }
 0x157   :  { %v670_v26 = vpop.f32.mrf.mxu0 }
 0x158   :  { %v711_v59 = vmax.f32 %v669_v37, 0.0 }
 0x159   :  { %v671_v27 = vpop.f32.mrf.mxu0 }
 0x15a   :  { %v672_v30 = vadd.f32 %v671_v27, %v1915_v41  ;;  %v710_v41 = vmax.f32 %v664_v43, 0.0  ;;  %v776_v27 = vpop.permute.xlu0 %775 }
 0x15b   :  { %v673_v28 = vpop.f32.mrf.mxu0 }
 0x15c   :  { %v712_v63 = vmax.f32 %v672_v30, 0.0  ;;  %v728_v7 = vpack.c.bf16 %v710_v41, %v709_v39 }
 0x15d   :  { %v676_v47 = vpop.f32.mrf.mxu0 }
 0x15e   :  { %v677_v32 = vadd.f32 %v676_v47, %v1894_v33  ;;  %v729_v38 = vpack.c.bf16 %v712_v63, %v711_v59  ;;  %v653_v33 = vadd.f32 %v652_v19, %v1929_v48  ;;  %v637_v48 = vadd.f32 %v636_v11, %v1937_v56  ;;  %v1517_v56 = vld [vmem:[%s2114_s3 + $0x14] ss:$8 sps:$4 sm:$0xff]   ;;  %v1531_v11 = vld [vmem:[%s2114_s3 + $0x50] ss:$8 sps:$4 sm:$0xff]  }
 0x15f   :  { %v678_v29 = vpop.f32.mrf.mxu0 }
 0x160   :  { %v713_v2 = vmax.f32 %v677_v32, 0.0  ;;  %v707_v8 = vmax.f32 %v653_v33, 0.0  ;;  %v703_v12 = vmax.f32 %v637_v48, 0.0 }
 0x161   :  { %v679_v35 = vpop.f32.mrf.mxu0 }
 0x162   :  { %v680_v40 = vadd.f32 %v679_v35, %v1902_v36  ;;  %v648_v36 = vadd.f32 %v647_v17, %v1935_v53  ;;  %v727_v54 = vpack.c.bf16 %v708_v45, %v707_v8  ;;  %v2048_v17 = vpop.permute.xlu1 %840  ;;  %v766_v35 = vpop.permute.xlu0 %765 }
 0x163   :  { %v681_v62 = vpop.f32.mrf.mxu0 }
 0x164   :  { %v714_v3 = vmax.f32 %v680_v40, 0.0  ;;  %v706_v9 = vmax.f32 %v648_v36, 0.0 }
 0x166   :  { %v730_v5 = vpack.c.bf16 %v714_v3, %v713_v2  ;;  %v2052_v19 = vpop.permute.xlu1 %830 }
 0x168   :  { %1335 = vmatprep.subr.bf16.mxu1 %v730_v5 }
 0x169   :  { %1336 = vmatpush3.bf16.msra.mxu1 %v722_v42  ;;  %v705_v42 = vmax.f32 %v645_v44, 0.0 }
 0x16a   :  { %1337 = vmatprep.subr.bf16.mxu1 %v729_v38  ;;  %v2059_v60 = vpop.permute.xlu1 %820 }
 0x16b   :  { %v726_v53 = vpack.c.bf16 %v706_v9, %v705_v42 }
 0x16d   :  { %1338 = vmatpush3.bf16.msra.mxu1 %v1968_v46  ;;  %v725_v46 = vpack.c.bf16 %v704_v10, %v703_v12 }
 0x16e   :  { %1339 = vmatprep.subr.bf16.mxu1 %v728_v7  ;;  %v2063_v23 = vpop.permute.xlu1 %810 }
 0x171   :  { %1340 = vmatpush3.bf16.msra.mxu1 %v1964_v50  ;;  %v1528_v50 = vld [vmem:[%s2114_s3 + $0x40] ss:$8 sps:$4 sm:$0xff]  }
 0x172   :  { %1341 = vmatprep.subr.bf16.mxu1 %v727_v54  ;;  %v2067_v24 = vpop.permute.xlu1 %800 }
 0x175   :  { %1342 = vmatpush3.bf16.msra.mxu1 %v1960_v55  ;;  %v1526_v55 = vld [vmem:[%s2114_s3 + $0x44] ss:$8 sps:$4 sm:$0xff]  }
 0x176   :  { %1343 = vmatprep.subr.bf16.mxu1 %v726_v53  ;;  %v2071_v26 = vpop.permute.xlu1 %790 }
 0x179   :  { %1344 = vmatpush3.bf16.msra.mxu1 %v1955_v4  ;;  %v1525_v4 = vld [vmem:[%s2114_s3 + $0x30] ss:$8 sps:$4 sm:$0xff]  }
 0x17a   :  { %1345 = vmatprep.subr.bf16.mxu1 %v725_v46  ;;  %v781_v47 = vpop.permute.xlu1 %780 }
 0x17d   :  { %1346 = vmatpush3.bf16.msra.mxu1 %v1953_v31  ;;  %v1523_v31 = vld [vmem:[%s2114_s3 + $0x34] ss:$8 sps:$4 sm:$0xff]  }
 0x17e   :  { %1347 = vmatprep.subr.bf16.mxu1 %v1978_v0  ;;  %v1532_v0 = vld [vmem:[%s2114_s3 + $0x64] ss:$8 sps:$4 sm:$0xff]   ;;  %v771_v43 = vpop.permute.xlu1 %770 }
 0x181   :  { %1348 = vmatpush3.bf16.msra.mxu1 %v1951_v22  ;;  %v1520_v22 = vld [vmem:[%s2114_s3 + $0x24] ss:$8 sps:$4 sm:$0xff]  }
 0x182   :  { %1349 = vmatprep.subr.bf16.mxu1 %v1974_v6  ;;  %v1529_v6 = vld [vmem:[%s2114_s3 + $0x54] ss:$8 sps:$4 sm:$0xff]  }
 0x185   :  { %1350 = vmatpush3.bf16.msra.mxu1 %v1949_v13  ;;  %v1522_v13 = vld [vmem:[%s2114_s3 + $0x20] ss:$8 sps:$4 sm:$0xff]  }
 0x188   :  { %956 = vmatmul.mubr.bf16.vlgmr.msra.gmra.mxu1 %v1514_v52 }
 0x189   :  { %963 = vmatprep.mubr.bf16.mxu1 %v1517_v56 }
 0x190   :  { %964 = vmatmul.mubr.bf16.gmra.mxu1 %v1519_v57 }
 0x191   :  { %971 = vmatprep.mubr.bf16.mxu1 %v1520_v22 }
 0x198   :  { %972 = vmatmul.mubr.bf16.gmra.mxu1 %v1522_v13 }
 0x199   :  { %979 = vmatprep.mubr.bf16.mxu1 %v1523_v31 }
 0x1a0   :  { %980 = vmatmul.mubr.bf16.gmra.mxu1 %v1525_v4 }
 0x1a1   :  { %987 = vmatprep.mubr.bf16.mxu1 %v1526_v55 }
 0x1a8   :  { %988 = vmatmul.mubr.bf16.gmra.mxu1 %v1528_v50 }
 0x1a9   :  { %995 = vmatprep.mubr.bf16.mxu1 %v1529_v6 }
 0x1b0   :  { %996 = vmatmul.mubr.bf16.gmra.mxu1 %v1531_v11 }
 0x1b1   :  { %1003 = vmatprep.mubr.bf16.mxu1 %v1532_v0 }
 0x1b8   :  { %1004 = vmatmul.mubr.bf16.gmra.mxu1 %v1534_v1 }
 0x1b9   :  { %1011 = vmatprep.mubr.bf16.mxu1 %v1535_v14 }
 0x1c0   :  { %1012 = vmatmul.mubr.bf16.gmra.mxu1 %v1537_v15 }
 0x1c1   :  { %1432 = vmatprep.mubr.bf16.mxu1 %v1538_v20 }
 0x248   :  { %v1351_v28 = vpop.f32.mrf.mxu1 }
 0x24a   :  { %v1352_v29 = vpop.f32.mrf.mxu1 }
 0x24b   :  { %v1353_v30 = vadd.f32 %v1352_v29, %v1351_v28 }
 0x24c   :  { %v1354_v32 = vpop.f32.mrf.mxu1 }
 0x24d   :  { %v958_v40 = vadd.f32 %v1353_v30, %v766_v35 }
 0x24e   :  { %v1355_v37 = vpop.f32.mrf.mxu1 }
 0x24f   :  { %v1356_v62 = vadd.f32 %v1355_v37, %v1354_v32  ;;  %v1020_v58 = vmax.f32 %v958_v40, 0.0 }
 0x250   :  { %v1357_v63 = vpop.f32.mrf.mxu1 }
 0x251   :  { %v961_v2 = vadd.f32 %v1356_v62, %v771_v43 }
 0x252   :  { %v1358_v3 = vpop.f32.mrf.mxu1 }
 0x253   :  { %v1021_v59 = vmax.f32 %v961_v2, 0.0  ;;  %v1359_v5 = vadd.f32 %v1358_v3, %v1357_v63 }
 0x254   :  { %v1360_v34 = vpop.f32.mrf.mxu1 }
 0x255   :  { %v2073_v41 = vpack.c.bf16 %v1021_v59, %v1020_v58  ;;  %v966_v33 = vadd.f32 %v1359_v5, %v776_v27 }
 0x256   :  { %v1361_v38 = vpop.f32.mrf.mxu1 }
 0x257   :  { %v1362_v39 = vadd.f32 %v1361_v38, %v1360_v34  ;;  %v1022_v44 = vmax.f32 %v966_v33, 0.0 }
 0x258   :  { %v1363_v36 = vpop.f32.mrf.mxu1 }
 0x259   :  { %v969_v45 = vadd.f32 %v1362_v39, %v781_v47 }
 0x25a   :  { %v1364_v7 = vpop.f32.mrf.mxu1 }
 0x25b   :  { %v1023_v8 = vmax.f32 %v969_v45, 0.0 }
 0x25c   :  { %v1366_v49 = vpop.f32.mrf.mxu1 }
 0x25d   :  { %v2075_v9 = vpack.c.bf16 %v1023_v8, %v1022_v44 }
 0x25e   :  { %v1367_v54 = vpop.f32.mrf.mxu1 }
 0x260   :  { %v1369_v48 = vpop.f32.mrf.mxu1 }
 0x262   :  { %v1370_v42 = vpop.f32.mrf.mxu1 }
 0x264   :  { %v1372_v10 = vpop.f32.mrf.mxu1 }
 0x266   :  { %v1373_v53 = vpop.f32.mrf.mxu1 }
 0x268   :  { %v1375_v12 = vpop.f32.mrf.mxu1 }
 0x26a   :  { %v1376_v46 = vpop.f32.mrf.mxu1 }
 0x26b   :  { %v1377_v3 = vadd.f32 %v1376_v46, %v1375_v12 }
 0x26c   :  { %v1378_v52 = vpop.f32.mrf.mxu1 }
 0x26e   :  { %v1379_v56 = vpop.f32.mrf.mxu1 }
 0x26f   :  { %v1380_v40 = vadd.f32 %v1379_v56, %v1378_v52  ;;  %v1093_v52 = vpop.permute.xlu0 %1092 }
 0x270   :  { %v1381_v57 = vpop.f32.mrf.mxu1 }
 0x272   :  { %v1382_v22 = vpop.f32.mrf.mxu1 }
 0x273   :  { %v1383_v32 = vadd.f32 %v1382_v22, %v1381_v57 }
 0x274   :  { %v1384_v13 = vpop.f32.mrf.mxu1 }
 0x275   :  { %v998_v58 = vadd.f32 %v1383_v32, %v2057_v51  ;;  %v1365_v51 = vadd.f32 %v1364_v7, %v1363_v36  ;;  %v1543_v36 = vmov 0.0  }
 0x276   :  { %v1385_v31 = vpop.f32.mrf.mxu1 }
 0x277   :  { %v1386_v28 = vadd.f32 %v1385_v31, %v1384_v13  ;;  %v1030_v33 = vmax.f32 %v998_v58, 0.0  ;;  %v1083_v13 = vpop.permute.xlu0 %1082 }
 0x278   :  { %v1387_v4 = vpop.f32.mrf.mxu1 }
 0x279   :  { %v1001_v62 = vadd.f32 %v1386_v28, %v2059_v60  ;;  %v1368_v60 = vadd.f32 %v1367_v54, %v1366_v49 }
 0x27a   :  { %v1388_v55 = vpop.f32.mrf.mxu1 }
 0x27b   :  { %v1389_v20 = vadd.f32 %v1388_v55, %v1387_v4  ;;  %v1031_v34 = vmax.f32 %v1001_v62, 0.0 }
 0x27c   :  { %v1390_v50 = vpop.f32.mrf.mxu1 }
 0x27d   :  { %v1006_v35 = vadd.f32 %v1389_v20, %v2050_v18  ;;  %v1371_v18 = vadd.f32 %v1370_v42, %v1369_v48  ;;  %v1041_v44 = vpack.c.bf16 %v1031_v34, %v1030_v33  ;;  %v1073_v20 = vpop.permute.xlu0 %1072 }
 0x27e   :  { %v1391_v6 = vpop.f32.mrf.mxu1 }
 0x27f   :  { %v1392_v1 = vadd.f32 %v1391_v6, %v1390_v50  ;;  %v1032_v59 = vmax.f32 %v1006_v35, 0.0  ;;  %v982_v8 = vadd.f32 %v1371_v18, %v2065_v61  ;;  %v1539_v61 = vld [vmem:[%s2115_s5 + $0x8] sm:$0xff]  }
 0x280   :  { %v1393_v11 = vpop.f32.mrf.mxu1 }
 0x281   :  { %v1009_v47 = vadd.f32 %v1392_v1, %v2052_v19  ;;  %v1374_v19 = vadd.f32 %v1373_v53, %v1372_v10  ;;  %v1026_v48 = vmax.f32 %v982_v8, 0.0  ;;  %v1063_v62 = vpop.permute.xlu0 %1062 }
 0x282   :  { %v1394_v0 = vpop.f32.mrf.mxu1 }
 0x283   :  { %v1395_v14 = vadd.f32 %v1394_v0, %v1393_v11  ;;  %v1033_v43 = vmax.f32 %v1009_v47, 0.0  ;;  %v985_v39 = vadd.f32 %v1374_v19, %v2067_v24 }
 0x284   :  { %v1396_v15 = vpop.f32.mrf.mxu1 }
 0x285   :  { %v1014_v29 = vadd.f32 %v1395_v14, %v2046_v16  ;;  %v993_v16 = vadd.f32 %v1380_v40, %v2063_v23  ;;  %v1042_v38 = vpack.c.bf16 %v1033_v43, %v1032_v59  ;;  %v977_v23 = vadd.f32 %v1368_v60, %v2071_v26  ;;  %v1541_v26 = vld [vmem:[%s2115_s5 + $0x18] sm:$0xff]   ;;  %v1206_v19 = vpop.permute.xlu0 %1205 }
 0x286   :  { %v1397_v27 = vpop.f32.mrf.mxu1  ;;  %v1027_v53 = vmax.f32 %v985_v39, 0.0 }
 0x287   :  { %v1398_v30 = vadd.f32 %v1397_v27, %v1396_v15  ;;  %v1034_v63 = vmax.f32 %v1014_v29, 0.0  ;;  %v1029_v45 = vmax.f32 %v993_v16, 0.0  ;;  %v1025_v49 = vmax.f32 %v977_v23, 0.0 }
 0x288   :  { %v1039_v54 = vpack.c.bf16 %v1027_v53, %v1026_v48 }
 0x289   :  { %v1017_v37 = vadd.f32 %v1398_v30, %v2048_v17  ;;  %v990_v17 = vadd.f32 %v1377_v3, %v2061_v21  ;;  %v974_v21 = vadd.f32 %v1365_v51, %v2069_v25  ;;  %v1540_v25 = vld [vmem:[%s2115_s5 + $0x10] sm:$0xff]  }
 0x28b   :  { %v1035_v2 = vmax.f32 %v1017_v37, 0.0  ;;  %v1028_v10 = vmax.f32 %v990_v17, 0.0  ;;  %v1024_v24 = vmax.f32 %v974_v21, 0.0 }
 0x28d   :  { %v1043_v5 = vpack.c.bf16 %v1035_v2, %v1034_v63  ;;  %v1040_v12 = vpack.c.bf16 %v1029_v45, %v1028_v10  ;;  %v1038_v42 = vpack.c.bf16 %v1025_v49, %v1024_v24 }
 0x28f   :  { %1416 = vmatprep.subr.bf16.mxu1 %v1043_v5 }
 0x290   :  { %1417 = vmatpush3.bf16.msra.mxu1 %v1043_v5  ;;  %v1201_v5 = vld [vmem:[%s2116_s7] sm:$0xf] }
 0x291   :  { %1418 = vmatprep.subr.bf16.mxu1 %v1042_v38 }
 0x294   :  { %1419 = vmatpush3.bf16.msra.mxu1 %v1042_v38 }
 0x295   :  { %1420 = vmatprep.subr.bf16.mxu1 %v1041_v44 }
 0x298   :  { %1421 = vmatpush3.bf16.msra.mxu1 %v1041_v44 }
 0x299   :  { %1422 = vmatprep.subr.bf16.mxu1 %v1040_v12 }
 0x29c   :  { %1423 = vmatpush3.bf16.msra.mxu1 %v1040_v12 }
 0x29d   :  { %1424 = vmatprep.subr.bf16.mxu1 %v1039_v54 }
 0x2a0   :  { %1425 = vmatpush3.bf16.msra.mxu1 %v1039_v54 }
 0x2a1   :  { %1426 = vmatprep.subr.bf16.mxu1 %v1038_v42 }
 0x2a4   :  { %1427 = vmatpush3.bf16.msra.mxu1 %v1038_v42 }
 0x2a5   :  { %1428 = vmatprep.subr.bf16.mxu1 %v2075_v9 }
 0x2a8   :  { %1429 = vmatpush3.bf16.msra.mxu1 %v2075_v9  ;;  %v1098_v9 = vpop.permute.xlu1 %1097 }
 0x2a9   :  { %1430 = vmatprep.subr.bf16.mxu1 %v2073_v41 }
 0x2ac   :  { %1431 = vmatpush3.bf16.msra.mxu1 %v2073_v41  ;;  %v1088_v57 = vpop.permute.xlu1 %1087 }
 0x2ad   :  { %1440 = vmatprep.subr.bf16.mxu1 %v1543_v36 }
 0x2af   :  { %1433 = vmatmul.mubr.bf16.vlgmr.msra.gmra.mxu1 %v1539_v61 }
 0x2b0   :  { %1436 = vmatprep.mubr.bf16.mxu1 %v1540_v25  ;;  %v1078_v6 = vpop.permute.xlu1 %1077 }
 0x2b4   :  { %v1068_v32 = vpop.permute.xlu1 %1067 }
 0x2b7   :  { %1437 = vmatmul.mubr.bf16.gmra.mxu1 %v1541_v26 }
 0x2b8   :  { %1448 = vmatprep.mubr.msk.bf16.mxu1 %vm1544_vm2, %v1543_v36 }
 0x36f   :  { %v1434_v7 = vpop.f32.mrf.mxu1 }
 0x370   :  { %v1167_v29 = vadd.f32 %v1434_v7, %v1073_v20 }
 0x371   :  { %v1158_v46 = vpop.f32.mrf.mxu1 }
 0x372   :  { %v1191_v43 = vmax.f32 %v1167_v29, 0.0  ;;  %v1159_v63 = vadd.f32 %v1158_v46, %v1063_v62 }
 0x373   :  { %v1435_v41 = vpop.f32.mrf.mxu1 }
 0x374   :  { %v1170_v27 = vadd.f32 %v1435_v41, %v1078_v6  ;;  %v1189_v58 = vmax.f32 %v1159_v63, 0.0 }
 0x375   :  { %v1161_v56 = vpop.f32.mrf.mxu1 }
 0x376   :  { %v1192_v35 = vmax.f32 %v1170_v27, 0.0  ;;  %v1162_v37 = vadd.f32 %v1161_v56, %v1068_v32 }
 0x377   :  { %v1438_v22 = vpop.f32.mrf.mxu1 }
 0x378   :  { %v1183_v4 = vadd.f32 %v1438_v22, %v1093_v52  ;;  %v1198_v2 = vpack.c.bf16 %v1192_v35, %v1191_v43  ;;  %v1190_v3 = vmax.f32 %v1162_v37, 0.0 }
 0x379   :  { %v1174_v31 = vpop.f32.mrf.mxu1 }
 0x37a   :  { %v1195_v0 = vmax.f32 %v1183_v4, 0.0  ;;  %v1175_v1 = vadd.f32 %v1174_v31, %v1083_v13  ;;  %v1197_v59 = vpack.c.bf16 %v1190_v3, %v1189_v58 }
 0x37b   :  { %v1439_v55 = vpop.f32.mrf.mxu1 }
 0x37c   :  { %v1186_v50 = vadd.f32 %v1439_v55, %v1098_v9  ;;  %v1193_v30 = vmax.f32 %v1175_v1, 0.0 }
 0x37d   :  { %v1177_v11 = vpop.f32.mrf.mxu1 }
 0x37e   :  { %v1196_v14 = vmax.f32 %v1186_v50, 0.0  ;;  %v1178_v15 = vadd.f32 %v1177_v11, %v1088_v57 }
 0x380   :  { %v1200_v28 = vpack.c.bf16 %v1196_v14, %v1195_v0  ;;  %v1194_v47 = vmax.f32 %v1178_v15, 0.0 }
 0x382   :  { %1441 = vmatpush3.bf16.msra.mxu1 %v1200_v28  ;;  %v1199_v40 = vpack.c.bf16 %v1194_v47, %v1193_v30 }
 0x383   :  { %1442 = vmatprep.subr.bf16.mxu1 %v1543_v36 }
 0x386   :  { %1443 = vmatpush3.bf16.msra.mxu1 %v1199_v40 }
 0x387   :  { %1444 = vmatprep.subr.bf16.mxu1 %v1543_v36 }
 0x38a   :  { %1445 = vmatpush3.bf16.msra.mxu1 %v1198_v2 }
 0x38b   :  { %1446 = vmatprep.subr.bf16.mxu1 %v1543_v36 }
 0x38e   :  { %1447 = vmatpush3.bf16.msra.mxu1 %v1197_v59 }
 0x391   :  { %1449 = vmatmul.mubr.msk.bf16.vlgmr.msra.gmra.mxu1 %vm1208_vm3, %v1201_v5 }
 0x451   :  { %v1246_v16 = vpop.f32.mrf.mxu1 }
 0x452   :  { %v1247_v34 = vadd.f32 %v1246_v16, %v1206_v19 }
 0x453   :  { %v1450_v38 = vpop.f32.mrf.mxu1 }
 0x454   :  { %1252 = vst [vmem:[%s2117_s9] sm:$0xff] %v1247_v34 }
 0x455   :  { %v1249_v18 = vpop.f32.mrf.mxu1 }
 0x457   :  { %v1451_v17 = vpop.f32.mrf.mxu1 }

</bundles_post_ra>
